<compile_context>
chip_gen: v6e
topology: v6e:2x2x1
jax: 0.10.0
libtpu: 0.0.40
codegen_flags: <defaults>
</compile_context>

<pallas_src>
import functools

import jax
import jax.numpy as jnp
from jax.experimental import pallas as pl
from jax.experimental.pallas import tpu as pltpu


_MXU_DTYPE = jnp.bfloat16          # MXU-native input dtype (v5e/v6e/v7x)
_LANES = 128                       # pad output channels to full lane width
_TM_MAX = 512                      # row tile; fits default scoped VMEM on all gens
_VMEM_LIMIT = 48 * 1024 * 1024


def _round_up(x, m):
    return (x + m - 1) // m * m


# ----------------------------- Pallas kernels ------------------------------

def _conv_relu_pool_kernel(x_ref, w_ref, b_ref, o_ref):
    """Fused conv(matmul) + bias + ReLU + 2x2 average-pool.

    x_ref: (4, tm, K)  bf16 -- the four 2x2-pool-window taps of tm pooled
                               output positions, already im2col'd.
    w_ref: (K, Np)     bf16 -- conv weights, output channels padded to Np=128k.
    b_ref: (1, Np)     f32
    o_ref: (tm, Np)    bf16 -- pooled activations (lane-dense).
    """
    w = w_ref[...]
    b = b_ref[...]
    acc = jnp.zeros(o_ref.shape, jnp.float32)
    for t in range(4):                              # static unroll: 4 MXU matmuls
        z = jnp.dot(x_ref[t], w, preferred_element_type=jnp.float32) + b
        acc = acc + jnp.maximum(z, 0.0)             # ReLU before pooling
    o_ref[...] = (0.25 * acc).astype(o_ref.dtype)


def _matmul_bias_kernel(x_ref, w_ref, b_ref, o_ref, *, relu):
    """(tm, K) @ (K, N) + (1, N), optional ReLU; f32 accumulation/epilogue."""
    z = jnp.dot(x_ref[...], w_ref[...], preferred_element_type=jnp.float32)
    z = z + b_ref[...]
    if relu:
        z = jnp.maximum(z, 0.0)
    o_ref[...] = z.astype(o_ref.dtype)


# --------------------------- pallas_call wrappers ---------------------------

def _row_tile(m):
    return m if m <= _TM_MAX else _TM_MAX


def conv_relu_pool_matmul(patches, w_mat, b_pad):
    """patches: (4, M, K) bf16, w_mat: (K, Np) bf16, b_pad: (1, Np) f32."""
    _, M, K = patches.shape
    Np = w_mat.shape[1]
    tm = _row_tile(M)
    grid = (pl.cdiv(M, tm),)
    cost = pl.CostEstimate(
        flops=2 * 4 * M * K * Np + 6 * M * Np,
        transcendentals=0,
        bytes_accessed=4 * M * K * 2 + K * Np * 2 + Np * 4 + M * Np * 2)
    return pl.pallas_call(
        _conv_relu_pool_kernel,
        out_shape=jax.ShapeDtypeStruct((M, Np), _MXU_DTYPE),
        grid=grid,
        in_specs=[
            pl.BlockSpec((4, tm, K), lambda i: (0, i, 0)),   # M-tiled patches
            pl.BlockSpec((K, Np), lambda i: (0, 0)),         # resident weight
            pl.BlockSpec((1, Np), lambda i: (0, 0)),         # resident bias
        ],
        out_specs=pl.BlockSpec((tm, Np), lambda i: (i, 0)),
        compiler_params=pltpu.CompilerParams(
            dimension_semantics=("parallel",),
            vmem_limit_bytes=_VMEM_LIMIT),
        cost_estimate=cost,
    )(patches, w_mat, b_pad)


def matmul_bias(x, w, b, *, relu, out_dtype=jnp.float32):
    """x: (M, K), w: (K, N), b: (N,). N must be a multiple of 128."""
    M, K = x.shape
    K2, N = w.shape
    assert K == K2, (K, K2)
    tm = _row_tile(M)
    grid = (pl.cdiv(M, tm),)
    cost = pl.CostEstimate(
        flops=2 * M * K * N + 2 * M * N,
        transcendentals=0,
        bytes_accessed=M * K * 2 + K * N * 2 + N * 4 + M * N * 4)
    return pl.pallas_call(
        functools.partial(_matmul_bias_kernel, relu=relu),
        out_shape=jax.ShapeDtypeStruct((M, N), out_dtype),
        grid=grid,
        in_specs=[
            pl.BlockSpec((tm, K), lambda i: (i, 0)),
            pl.BlockSpec((K, N), lambda i: (0, 0)),          # resident weight
            pl.BlockSpec((1, N), lambda i: (0, 0)),          # resident bias
        ],
        out_specs=pl.BlockSpec((tm, N), lambda i: (i, 0)),
        compiler_params=pltpu.CompilerParams(
            dimension_semantics=("parallel",),
            vmem_limit_bytes=_VMEM_LIMIT),
        cost_estimate=cost,
    )(x.astype(_MXU_DTYPE), w.astype(_MXU_DTYPE),
      b.reshape(1, N).astype(jnp.float32))


# ------------------------------ JAX glue ------------------------------------

def _im2col_pooled_nhwc(x, kh, kw):
    """Valid-conv patches grouped by 2x2-pool tap.

    x: (N, H, W, C)  ->  (4, N*OH2*OW2, C*kh*kw)
    Tap axis t = ph*2 + pw (position inside the 2x2 pool window); the K axis is
    ordered (c_in, kh, kw) to match PyTorch's weight.reshape(C_out, C_in*KH*KW).
    """
    N, H, W, C = x.shape
    OH, OW = H - kh + 1, W - kw + 1
    OH2, OW2 = OH // 2, OW // 2
    cols = [x[:, i:i + OH, j:j + OW, :] for i in range(kh) for j in range(kw)]
    p = jnp.stack(cols, axis=-1)                         # (N, OH, OW, C, kh*kw)
    p = p.reshape(N, OH2, 2, OW2, 2, C, kh * kw)
    p = p.transpose(2, 4, 0, 1, 3, 5, 6)                 # (2, 2, N, OH2, OW2, C, khkw)
    return p.reshape(4, N * OH2 * OW2, C * kh * kw), OH2, OW2


def conv2d_relu_pool(x_nhwc, w_oihw, b):
    """Conv2d (stride 1, no padding) + bias + ReLU + 2x2 avg-pool; NHWC in/out."""
    C_out, C_in, KH, KW = w_oihw.shape
    N = x_nhwc.shape[0]
    patches, OH2, OW2 = _im2col_pooled_nhwc(x_nhwc, KH, KW)
    patches = patches.astype(_MXU_DTYPE)
    # TODO(synk): conv2's im2col is still materialized in HBM (25x read
    # amplification); in-kernel patch generation (manual-DMA gather) is a
    # follow-up — bf16 patches halve the traffic in the meantime.
    K = C_in * KH * KW
    Np = _round_up(C_out, _LANES)
    w_mat = jnp.pad(w_oihw.reshape(C_out, K).T,
                    ((0, 0), (0, Np - C_out))).astype(_MXU_DTYPE)   # (K, Np)
    b_pad = jnp.pad(b, (0, Np - C_out)).reshape(1, Np).astype(jnp.float32)
    out = conv_relu_pool_matmul(patches, w_mat, b_pad)              # (N*OH2*OW2, Np)
    out = out[:, :C_out]
    return out.reshape(N, OH2, OW2, C_out)


def _fc1_weight_hwc(w_cio, c, h, w):
    """Permute fc1 weight rows from PyTorch (C,H,W) flatten order to (H,W,C)."""
    out_dim = w_cio.shape[1]
    return (w_cio.reshape(c, h, w, out_dim)
            .transpose(1, 2, 0, 3)
            .reshape(c * h * w, out_dim))


def init_params(key):
    k1, k2, k3, k4, k5, k6 = jax.random.split(key, 6)
    return {
        "conv1_w": 0.10 * jax.random.normal(k1, (32, 1, 5, 5), jnp.float32),
        "conv1_b": 0.01 * jax.random.normal(k2, (32,), jnp.float32),
        "conv2_w": 0.05 * jax.random.normal(k3, (64, 32, 5, 5), jnp.float32),
        "conv2_b": 0.01 * jax.random.normal(k4, (64,), jnp.float32),
        "fc1_w":  0.02 * jax.random.normal(k5, (1024, 1024), jnp.float32),  # (in, out)
        "fc1_b":  0.01 * jax.random.normal(k6, (1024,), jnp.float32),
    }


def fashion_cnn_forward(params, x, y, y_onehot, time_window=10):
    """x: (T, B, 1, 28, 28) time-major (spiking-style), NCHW per step.

    Returns (out, loss_total) with out of shape (T, B, 1024), matching
    x.view(x.size(0), x.size(1), -1) -> fc1 of the PyTorch module.
    """
    del y, y_onehot, time_window  # only used by the local-loss blocks
    # TODO(synk): LocalLossBlock{Conv,Linear} local losses / learning-rule
    # internals (FELL/BELL/ELL) are not reproducible without their sources;
    # blocks are approximated by conv/linear (+ReLU) and loss_total stays 0.
    T, B, C, H, W = x.shape
    loss_total = jnp.float32(0.0)

    xt = x.reshape(T * B, C, H, W).transpose(0, 2, 3, 1)              # NHWC once
    xt = conv2d_relu_pool(xt, params["conv1_w"], params["conv1_b"])   # (TB,12,12,32)
    xt = conv2d_relu_pool(xt, params["conv2_w"], params["conv2_b"])   # (TB, 4, 4,64)
    xt = xt.reshape(T * B, 4 * 4 * 64)                                # (H,W,C) flatten
    # Permute fc1 weight rows once so the (H,W,C)-flattened activations match
    # PyTorch's (C,H,W) flatten convention -- no activation transpose needed.
    w_fc = _fc1_weight_hwc(params["fc1_w"], 64, 4, 4)
    out = matmul_bias(xt, w_fc, params["fc1_b"], relu=False)          # (TB,1024) f32
    return out.reshape(T, B, 1024), loss_total


if __name__ == "__main__":
    key = jax.random.PRNGKey(0)
    kx, kp = jax.random.split(key)
    T, B = 2, 2                       # small time window, small batch
    x = jax.random.normal(kx, (T, B, 1, 28, 28), jnp.float32)
    y = jnp.array([3, 7], dtype=jnp.int32)
    y_onehot = jax.nn.one_hot(y, 10, dtype=jnp.float32)
    params = init_params(kp)

    fwd = jax.jit(functools.partial(fashion_cnn_forward, time_window=2))
    out, loss_total = fwd(params, x, y, y_onehot)
    jax.block_until_ready(out)
    assert out.shape == (T, B, 1024), out.shape
    assert out.dtype == jnp.float32
    print("KERNEL_OK")
</pallas_src>

<mosaic_0001>
module attributes {stable_mosaic.version = 11 : i64} {
  func.func @_conv_relu_pool_kernel(%arg0: i32, %arg1: memref<4x512x25xbf16, #tpu.memory_space<vmem>>, %arg2: memref<25x128xbf16, #tpu.memory_space<vmem>>, %arg3: memref<1x128xf32, #tpu.memory_space<vmem>>, %arg4: memref<512x128xbf16, #tpu.memory_space<vmem>>) attributes {dimension_semantics = [#tpu.dimension_semantics<parallel>], iteration_bounds = array<i64: 2>, scalar_prefetch = 0 : i64, scratch_operands = 0 : i64, tpu.core_type = #tpu.core_type<tc>, window_params = [{transform_indices = @transform_0, window_bounds = array<i64: 4, 512, 25>}, {pipeline_mode = #tpu.pipeline_mode<synchronous>, transform_indices = @transform_1, window_bounds = array<i64: 25, 128>}, {pipeline_mode = #tpu.pipeline_mode<synchronous>, transform_indices = @transform_2, window_bounds = array<i64: 1, 128>}, {transform_indices = @transform_3, window_bounds = array<i64: 512, 128>}]} {
    %c0 = arith.constant 0 : index
    %c0_0 = arith.constant 0 : index
    %0 = vector.load %arg2[%c0, %c0_0] : memref<25x128xbf16, #tpu.memory_space<vmem>>, vector<25x128xbf16>
    %c0_1 = arith.constant 0 : index
    %c0_2 = arith.constant 0 : index
    %1 = vector.load %arg3[%c0_1, %c0_2] : memref<1x128xf32, #tpu.memory_space<vmem>>, vector<1x128xf32>
    %cst = arith.constant 0.000000e+00 : f32
    %2 = vector.broadcast %cst : f32 to vector<512x128xf32>
    %c0_3 = arith.constant 0 : index
    %c0_4 = arith.constant 0 : index
    %c0_5 = arith.constant 0 : index
    %3 = vector.load %arg1[%c0_3, %c0_4, %c0_5] : memref<4x512x25xbf16, #tpu.memory_space<vmem>>, vector<1x512x25xbf16>
    %4 = vector.shape_cast %3 : vector<1x512x25xbf16> to vector<512x25xbf16>
    %cst_6 = arith.constant dense<0.000000e+00> : vector<512x128xf32>
    %5 = tpu.matmul %4, %0, %cst_6 {dimension_numbers = #tpu.dot_dimension_numbers<[1], [0], [0], [1], [0, 0, 1, 1], [], []>} : vector<512x25xbf16>, vector<25x128xbf16>, vector<512x128xf32> -> vector<512x128xf32>
    %6 = vector.broadcast %1 : vector<1x128xf32> to vector<512x128xf32>
    %7 = arith.addf %5, %6 : vector<512x128xf32>
    %cst_7 = arith.constant 0.000000e+00 : f32
    %8 = vector.broadcast %cst_7 : f32 to vector<512x128xf32>
    %9 = arith.maximumf %7, %8 : vector<512x128xf32>
    %10 = arith.addf %2, %9 : vector<512x128xf32>
    %c1 = arith.constant 1 : index
    %c0_8 = arith.constant 0 : index
    %c0_9 = arith.constant 0 : index
    %11 = vector.load %arg1[%c1, %c0_8, %c0_9] : memref<4x512x25xbf16, #tpu.memory_space<vmem>>, vector<1x512x25xbf16>
    %12 = vector.shape_cast %11 : vector<1x512x25xbf16> to vector<512x25xbf16>
    %cst_10 = arith.constant dense<0.000000e+00> : vector<512x128xf32>
    %13 = tpu.matmul %12, %0, %cst_10 {dimension_numbers = #tpu.dot_dimension_numbers<[1], [0], [0], [1], [0, 0, 1, 1], [], []>} : vector<512x25xbf16>, vector<25x128xbf16>, vector<512x128xf32> -> vector<512x128xf32>
    %14 = vector.broadcast %1 : vector<1x128xf32> to vector<512x128xf32>
    %15 = arith.addf %13, %14 : vector<512x128xf32>
    %cst_11 = arith.constant 0.000000e+00 : f32
    %16 = vector.broadcast %cst_11 : f32 to vector<512x128xf32>
    %17 = arith.maximumf %15, %16 : vector<512x128xf32>
    %18 = arith.addf %10, %17 : vector<512x128xf32>
    %c2 = arith.constant 2 : index
    %c0_12 = arith.constant 0 : index
    %c0_13 = arith.constant 0 : index
    %19 = vector.load %arg1[%c2, %c0_12, %c0_13] : memref<4x512x25xbf16, #tpu.memory_space<vmem>>, vector<1x512x25xbf16>
    %20 = vector.shape_cast %19 : vector<1x512x25xbf16> to vector<512x25xbf16>
    %cst_14 = arith.constant dense<0.000000e+00> : vector<512x128xf32>
    %21 = tpu.matmul %20, %0, %cst_14 {dimension_numbers = #tpu.dot_dimension_numbers<[1], [0], [0], [1], [0, 0, 1, 1], [], []>} : vector<512x25xbf16>, vector<25x128xbf16>, vector<512x128xf32> -> vector<512x128xf32>
    %22 = vector.broadcast %1 : vector<1x128xf32> to vector<512x128xf32>
    %23 = arith.addf %21, %22 : vector<512x128xf32>
    %cst_15 = arith.constant 0.000000e+00 : f32
    %24 = vector.broadcast %cst_15 : f32 to vector<512x128xf32>
    %25 = arith.maximumf %23, %24 : vector<512x128xf32>
    %26 = arith.addf %18, %25 : vector<512x128xf32>
    %c3 = arith.constant 3 : index
    %c0_16 = arith.constant 0 : index
    %c0_17 = arith.constant 0 : index
    %27 = vector.load %arg1[%c3, %c0_16, %c0_17] : memref<4x512x25xbf16, #tpu.memory_space<vmem>>, vector<1x512x25xbf16>
    %28 = vector.shape_cast %27 : vector<1x512x25xbf16> to vector<512x25xbf16>
    %cst_18 = arith.constant dense<0.000000e+00> : vector<512x128xf32>
    %29 = tpu.matmul %28, %0, %cst_18 {dimension_numbers = #tpu.dot_dimension_numbers<[1], [0], [0], [1], [0, 0, 1, 1], [], []>} : vector<512x25xbf16>, vector<25x128xbf16>, vector<512x128xf32> -> vector<512x128xf32>
    %30 = vector.broadcast %1 : vector<1x128xf32> to vector<512x128xf32>
    %31 = arith.addf %29, %30 : vector<512x128xf32>
    %cst_19 = arith.constant 0.000000e+00 : f32
    %32 = vector.broadcast %cst_19 : f32 to vector<512x128xf32>
    %33 = arith.maximumf %31, %32 : vector<512x128xf32>
    %34 = arith.addf %26, %33 : vector<512x128xf32>
    %cst_20 = arith.constant 2.500000e-01 : f32
    %35 = vector.broadcast %cst_20 : f32 to vector<512x128xf32>
    %36 = arith.mulf %35, %34 : vector<512x128xf32>
    %37 = arith.truncf %36 : vector<512x128xf32> to vector<512x128xbf16>
    %c0_21 = arith.constant 0 : index
    %c0_22 = arith.constant 0 : index
    %38 = vector.load %arg4[%c0_21, %c0_22] : memref<512x128xbf16, #tpu.memory_space<vmem>>, vector<512x128xbf16>
    tpu.vector_store %arg4[%c0_21, %c0_22], %37 {strides = array<i32>} : memref<512x128xbf16, #tpu.memory_space<vmem>>, vector<512x128xbf16>,
    return
  }
  func.func @transform_0(%arg0: i32) -> (i32, i32, i32) {
    %c0_i32 = arith.constant 0 : i32
    %c0_i32_0 = arith.constant 0 : i32
    %c0_i32_1 = arith.constant 0 : i32
    return %c0_i32, %arg0, %c0_i32_0 : i32, i32, i32
  }
  func.func @transform_1(%arg0: i32) -> (i32, i32) {
    %c0_i32 = arith.constant 0 : i32
    %c0_i32_0 = arith.constant 0 : i32
    %c0_i32_1 = arith.constant 0 : i32
    return %c0_i32, %c0_i32_0 : i32, i32
  }
  func.func @transform_2(%arg0: i32) -> (i32, i32) {
    %c0_i32 = arith.constant 0 : i32
    %c0_i32_0 = arith.constant 0 : i32
    %c0_i32_1 = arith.constant 0 : i32
    return %c0_i32, %c0_i32_0 : i32, i32
  }
  func.func @transform_3(%arg0: i32) -> (i32, i32) {
    %c0_i32 = arith.constant 0 : i32
    %c0_i32_0 = arith.constant 0 : i32
    return %arg0, %c0_i32 : i32, i32
  }
}

module attributes {stable_mosaic.version = 11 : i64} {
  func.func @_conv_relu_pool_kernel(%arg0: i32, %arg1: memref<4x64x800xbf16, #tpu.memory_space<vmem>>, %arg2: memref<800x128xbf16, #tpu.memory_space<vmem>>, %arg3: memref<1x128xf32, #tpu.memory_space<vmem>>, %arg4: memref<64x128xbf16, #tpu.memory_space<vmem>>) attributes {dimension_semantics = [#tpu.dimension_semantics<parallel>], iteration_bounds = array<i64: 1>, scalar_prefetch = 0 : i64, scratch_operands = 0 : i64, tpu.core_type = #tpu.core_type<tc>, window_params = [{transform_indices = @transform_0, window_bounds = array<i64: 4, 64, 800>}, {pipeline_mode = #tpu.pipeline_mode<synchronous>, transform_indices = @transform_1, window_bounds = array<i64: 800, 128>}, {pipeline_mode = #tpu.pipeline_mode<synchronous>, transform_indices = @transform_2, window_bounds = array<i64: 1, 128>}, {transform_indices = @transform_3, window_bounds = array<i64: 64, 128>}]} {
    %c0 = arith.constant 0 : index
    %c0_0 = arith.constant 0 : index
    %0 = vector.load %arg2[%c0, %c0_0] : memref<800x128xbf16, #tpu.memory_space<vmem>>, vector<800x128xbf16>
    %c0_1 = arith.constant 0 : index
    %c0_2 = arith.constant 0 : index
    %1 = vector.load %arg3[%c0_1, %c0_2] : memref<1x128xf32, #tpu.memory_space<vmem>>, vector<1x128xf32>
    %cst = arith.constant 0.000000e+00 : f32
    %2 = vector.broadcast %cst : f32 to vector<64x128xf32>
    %c0_3 = arith.constant 0 : index
    %c0_4 = arith.constant 0 : index
    %c0_5 = arith.constant 0 : index
    %3 = vector.load %arg1[%c0_3, %c0_4, %c0_5] : memref<4x64x800xbf16, #tpu.memory_space<vmem>>, vector<1x64x800xbf16>
    %4 = vector.shape_cast %3 : vector<1x64x800xbf16> to vector<64x800xbf16>
    %cst_6 = arith.constant dense<0.000000e+00> : vector<64x128xf32>
    %5 = tpu.matmul %4, %0, %cst_6 {dimension_numbers = #tpu.dot_dimension_numbers<[1], [0], [0], [1], [0, 0, 1, 1], [], []>} : vector<64x800xbf16>, vector<800x128xbf16>, vector<64x128xf32> -> vector<64x128xf32>
    %6 = vector.broadcast %1 : vector<1x128xf32> to vector<64x128xf32>
    %7 = arith.addf %5, %6 : vector<64x128xf32>
    %cst_7 = arith.constant 0.000000e+00 : f32
    %8 = vector.broadcast %cst_7 : f32 to vector<64x128xf32>
    %9 = arith.maximumf %7, %8 : vector<64x128xf32>
    %10 = arith.addf %2, %9 : vector<64x128xf32>
    %c1 = arith.constant 1 : index
    %c0_8 = arith.constant 0 : index
    %c0_9 = arith.constant 0 : index
    %11 = vector.load %arg1[%c1, %c0_8, %c0_9] : memref<4x64x800xbf16, #tpu.memory_space<vmem>>, vector<1x64x800xbf16>
    %12 = vector.shape_cast %11 : vector<1x64x800xbf16> to vector<64x800xbf16>
    %cst_10 = arith.constant dense<0.000000e+00> : vector<64x128xf32>
    %13 = tpu.matmul %12, %0, %cst_10 {dimension_numbers = #tpu.dot_dimension_numbers<[1], [0], [0], [1], [0, 0, 1, 1], [], []>} : vector<64x800xbf16>, vector<800x128xbf16>, vector<64x128xf32> -> vector<64x128xf32>
    %14 = vector.broadcast %1 : vector<1x128xf32> to vector<64x128xf32>
    %15 = arith.addf %13, %14 : vector<64x128xf32>
    %cst_11 = arith.constant 0.000000e+00 : f32
    %16 = vector.broadcast %cst_11 : f32 to vector<64x128xf32>
    %17 = arith.maximumf %15, %16 : vector<64x128xf32>
    %18 = arith.addf %10, %17 : vector<64x128xf32>
    %c2 = arith.constant 2 : index
    %c0_12 = arith.constant 0 : index
    %c0_13 = arith.constant 0 : index
    %19 = vector.load %arg1[%c2, %c0_12, %c0_13] : memref<4x64x800xbf16, #tpu.memory_space<vmem>>, vector<1x64x800xbf16>
    %20 = vector.shape_cast %19 : vector<1x64x800xbf16> to vector<64x800xbf16>
    %cst_14 = arith.constant dense<0.000000e+00> : vector<64x128xf32>
    %21 = tpu.matmul %20, %0, %cst_14 {dimension_numbers = #tpu.dot_dimension_numbers<[1], [0], [0], [1], [0, 0, 1, 1], [], []>} : vector<64x800xbf16>, vector<800x128xbf16>, vector<64x128xf32> -> vector<64x128xf32>
    %22 = vector.broadcast %1 : vector<1x128xf32> to vector<64x128xf32>
    %23 = arith.addf %21, %22 : vector<64x128xf32>
    %cst_15 = arith.constant 0.000000e+00 : f32
    %24 = vector.broadcast %cst_15 : f32 to vector<64x128xf32>
    %25 = arith.maximumf %23, %24 : vector<64x128xf32>
    %26 = arith.addf %18, %25 : vector<64x128xf32>
    %c3 = arith.constant 3 : index
    %c0_16 = arith.constant 0 : index
    %c0_17 = arith.constant 0 : index
    %27 = vector.load %arg1[%c3, %c0_16, %c0_17] : memref<4x64x800xbf16, #tpu.memory_space<vmem>>, vector<1x64x800xbf16>
    %28 = vector.shape_cast %27 : vector<1x64x800xbf16> to vector<64x800xbf16>
    %cst_18 = arith.constant dense<0.000000e+00> : vector<64x128xf32>
    %29 = tpu.matmul %28, %0, %cst_18 {dimension_numbers = #tpu.dot_dimension_numbers<[1], [0], [0], [1], [0, 0, 1, 1], [], []>} : vector<64x800xbf16>, vector<800x128xbf16>, vector<64x128xf32> -> vector<64x128xf32>
    %30 = vector.broadcast %1 : vector<1x128xf32> to vector<64x128xf32>
    %31 = arith.addf %29, %30 : vector<64x128xf32>
    %cst_19 = arith.constant 0.000000e+00 : f32
    %32 = vector.broadcast %cst_19 : f32 to vector<64x128xf32>
    %33 = arith.maximumf %31, %32 : vector<64x128xf32>
    %34 = arith.addf %26, %33 : vector<64x128xf32>
    %cst_20 = arith.constant 2.500000e-01 : f32
    %35 = vector.broadcast %cst_20 : f32 to vector<64x128xf32>
    %36 = arith.mulf %35, %34 : vector<64x128xf32>
    %37 = arith.truncf %36 : vector<64x128xf32> to vector<64x128xbf16>
    %c0_21 = arith.constant 0 : index
    %c0_22 = arith.constant 0 : index
    %38 = vector.load %arg4[%c0_21, %c0_22] : memref<64x128xbf16, #tpu.memory_space<vmem>>, vector<64x128xbf16>
    tpu.vector_store %arg4[%c0_21, %c0_22], %37 {strides = array<i32>} : memref<64x128xbf16, #tpu.memory_space<vmem>>, vector<64x128xbf16>,
    return
  }
  func.func @transform_0(%arg0: i32) -> (i32, i32, i32) {
    %c0_i32 = arith.constant 0 : i32
    %c0_i32_0 = arith.constant 0 : i32
    %c0_i32_1 = arith.constant 0 : i32
    return %c0_i32, %arg0, %c0_i32_0 : i32, i32, i32
  }
  func.func @transform_1(%arg0: i32) -> (i32, i32) {
    %c0_i32 = arith.constant 0 : i32
    %c0_i32_0 = arith.constant 0 : i32
    %c0_i32_1 = arith.constant 0 : i32
    return %c0_i32, %c0_i32_0 : i32, i32
  }
  func.func @transform_2(%arg0: i32) -> (i32, i32) {
    %c0_i32 = arith.constant 0 : i32
    %c0_i32_0 = arith.constant 0 : i32
    %c0_i32_1 = arith.constant 0 : i32
    return %c0_i32, %c0_i32_0 : i32, i32
  }
  func.func @transform_3(%arg0: i32) -> (i32, i32) {
    %c0_i32 = arith.constant 0 : i32
    %c0_i32_0 = arith.constant 0 : i32
    return %arg0, %c0_i32 : i32, i32
  }
}

module attributes {stable_mosaic.version = 11 : i64} {
  func.func @_matmul_bias_kernel(%arg0: i32, %arg1: memref<4x1024xbf16, #tpu.memory_space<vmem>>, %arg2: memref<1024x1024xbf16, #tpu.memory_space<vmem>>, %arg3: memref<1x1024xf32, #tpu.memory_space<vmem>>, %arg4: memref<4x1024xf32, #tpu.memory_space<vmem>>) attributes {dimension_semantics = [#tpu.dimension_semantics<parallel>], iteration_bounds = array<i64: 1>, scalar_prefetch = 0 : i64, scratch_operands = 0 : i64, tpu.core_type = #tpu.core_type<tc>, window_params = [{transform_indices = @transform_0, window_bounds = array<i64: 4, 1024>}, {pipeline_mode = #tpu.pipeline_mode<synchronous>, transform_indices = @transform_1, window_bounds = array<i64: 1024, 1024>}, {pipeline_mode = #tpu.pipeline_mode<synchronous>, transform_indices = @transform_2, window_bounds = array<i64: 1, 1024>}, {transform_indices = @transform_3, window_bounds = array<i64: 4, 1024>}]} {
    %c0 = arith.constant 0 : index
    %c0_0 = arith.constant 0 : index
    %0 = vector.load %arg1[%c0, %c0_0] : memref<4x1024xbf16, #tpu.memory_space<vmem>>, vector<4x1024xbf16>
    %c0_1 = arith.constant 0 : index
    %c0_2 = arith.constant 0 : index
    %1 = vector.load %arg2[%c0_1, %c0_2] : memref<1024x1024xbf16, #tpu.memory_space<vmem>>, vector<1024x1024xbf16>
    %cst = arith.constant dense<0.000000e+00> : vector<4x1024xf32>
    %2 = tpu.matmul %0, %1, %cst {dimension_numbers = #tpu.dot_dimension_numbers<[1], [0], [0], [1], [0, 0, 1, 1], [], []>} : vector<4x1024xbf16>, vector<1024x1024xbf16>, vector<4x1024xf32> -> vector<4x1024xf32>
    %c0_3 = arith.constant 0 : index
    %c0_4 = arith.constant 0 : index
    %3 = vector.load %arg3[%c0_3, %c0_4] : memref<1x1024xf32, #tpu.memory_space<vmem>>, vector<1x1024xf32>
    %4 = vector.broadcast %3 : vector<1x1024xf32> to vector<4x1024xf32>
    %5 = arith.addf %2, %4 : vector<4x1024xf32>
    %c0_5 = arith.constant 0 : index
    %c0_6 = arith.constant 0 : index
    %6 = vector.load %arg4[%c0_5, %c0_6] : memref<4x1024xf32, #tpu.memory_space<vmem>>, vector<4x1024xf32>
    tpu.vector_store %arg4[%c0_5, %c0_6], %5 {strides = array<i32>} : memref<4x1024xf32, #tpu.memory_space<vmem>>, vector<4x1024xf32>,
    return
  }
  func.func @transform_0(%arg0: i32) -> (i32, i32) {
    %c0_i32 = arith.constant 0 : i32
    %c0_i32_0 = arith.constant 0 : i32
    return %arg0, %c0_i32 : i32, i32
  }
  func.func @transform_1(%arg0: i32) -> (i32, i32) {
    %c0_i32 = arith.constant 0 : i32
    %c0_i32_0 = arith.constant 0 : i32
    %c0_i32_1 = arith.constant 0 : i32
    return %c0_i32, %c0_i32_0 : i32, i32
  }
  func.func @transform_2(%arg0: i32) -> (i32, i32) {
    %c0_i32 = arith.constant 0 : i32
    %c0_i32_0 = arith.constant 0 : i32
    %c0_i32_1 = arith.constant 0 : i32
    return %c0_i32, %c0_i32_0 : i32, i32
  }
  func.func @transform_3(%arg0: i32) -> (i32, i32) {
    %c0_i32 = arith.constant 0 : i32
    %c0_i32_0 = arith.constant 0 : i32
    return %arg0, %c0_i32 : i32, i32
  }
}

</mosaic_0001>

<bundles_post_ra>
// kernel: fashion_cnn_forward.3
= control target key start
LH: loop header
LB: loop body
LE: loop exit
PB: predicated region body
PF: predicated region fallthrough
CT: control target
= control target key end

     0   :  { %s6169_s12 = smov 0   ;;  %s6171_s13 = smov 0   ;;  %s7380_s0 = inlined_call_operand.vmem [shape: bf16[4,576,25], index: 0, kind: input, shape index: {}]   ;;  %s7381_s1 = inlined_call_operand.vmem [shape: bf16[25,128], index: 1, kind: input, shape index: {}]   ;;  %s7382_s2 = inlined_call_operand.vmem [shape: f32[1,128], index: 2, kind: input, shape index: {}]   ;;  %s7383_s3 = inlined_call_operand.vmem [shape: bf16[576,128], index: 3, kind: output, shape index: {}]  }
   0x1   :  { %s6173_s14 = smov 0  }
   0x2 LB: > { %s6185_s15 = sadd.s32 4294967295, %s6082_s14   ;;  %s6188_s16 = sadd.s32 1, %s6082_s14   ;;  %s6082_s14 = sphi %s6173_s14, %s7441_s14   ;;  %s6078_s13 = sphi %s6171_s13, %s7440_s13   ;;  %s6074_s12 = sphi %s6169_s12, %s7439_s12  }
   0x3   : > { %s17_s17 = ssub.s32 %s6082_s14, %s6188_s16  ;;  %s20_s18 = sadd.s32 1, %s6078_s13 }
   0x4   : > { %p18_p0 = scmp.eq.s32.totalorder %s17_s17, 0  ;;  %p27_p1 = scmp.ne.s32.totalorder %s6078_s13, %s6074_s12 }
   0x5   : > { %p28_p2 = scmp.eq.s32.totalorder %s6082_s14, 0  ;;  %p99_p3 = scmp.eq.s32.totalorder %s6185_s15, 1 }
   0x6   : > { %s6198_s19 = scalar_select %p18_p0, %s6078_s13, %s20_s18  }
   0x7   : > { %p29_p4 = por %p28_p2, %p27_p1  ;;  %p6200_p5 = por %p99_p3, %p27_p1 }
   0x8   : > { %p4491_p6 = scmp.ge.s32.totalorder %s6082_s14, 2 }
   0xa   : > { %127 = sbr.rel (%p4491_p6) target bundleno = 101 (0x65), region = 24 }
   0xf   : > { %130 = sbr.rel (!%p29_p4) target bundleno = 101 (0x65), region = 28  ;;  %s132_s21 = sand.u32 (%p29_p4), 1, %s6078_s13  }
  0x10   : > { %s4493_s22 = sshll.u32 (%p29_p4), %s6082_s14, 6  ;;  %s4492_s23 = sshll.u32 (%p29_p4), %s132_s21, 10 }
  0x11   : > { %s136_s24 = ssub.s32 (%p29_p4), 72, %s4493_s22  ;;  %s5042_s25 = sshll.u32 (%p29_p4), %s6082_s14, 8 }
  0x12   : > { %p137_p7 = scmp.lt.s32.totalorder (%p29_p4), %s136_s24, 64  ;;  %s6213_s28 = scalar_lea.vmem (%p29_p4), %s7380_s0, %s5042_s25  }
  0x13   : > { %s6216_s30 = scalar_lea.vmem (%p29_p4), [#allocation2], %s4492_s23  }
  0x14   : > { %s7443_s24 = smov (!%p137_p7, %s136_s24), 64 }
  0x15   : > { %s4494_s29 = sshll.u32 %s7443_s24, 8 }
  0x16   : > { %p4497_p8 = scmp.eq.s32.totalorder %s4494_s29, 0 }
  0x17   : > { %s6219_s4 = sshrl.u32 (!%p4497_p8), %s7443_s24, 4 }
  0x18   : > { %145 = sbr.rel (%p4497_p8) target bundleno = 101 (0x65), region = 32  ;;  %p4498_p9 = scmp.le.s32.totalorder (!%p4497_p8), %s6219_s4, 0 }
  0x1d   : > { %4417 = sbr.rel (%p4498_p9) target bundleno = 84 (0x54), region = 196  ;;  %s7385_s5 = smov (!%p4498_p9), %s6216_s30 }
  0x1e   : > { %s7386_s6 = smov (!%p4498_p9), %s6213_s28  ;;  %s6228_s7 = smov (!%p4498_p9), 0  }
  0x1f   : > { %s6230_s8 = smov (!%p4498_p9), 0  }
  0x22 LB: >> { %v162_v0 = vld [vmem:[%s6090_s6] sm:$0xf]  ;;  %v164_v1 = vld [vmem:[%s6090_s6 + $0x4] sm:$0xf]  ;;  %v166_v2 = vld [vmem:[%s6090_s6 + $0x8] sm:$0xf]  ;;  %s6098_s8 = sphi %s6230_s8, %s156_s8   ;;  %s6094_s7 = sphi %s6228_s7, %s7387_s7   ;;  %s6090_s6 = sphi %s7386_s6, %s295_s6   ;;  %s6086_s5 = sphi %s7385_s5, %s296_s5  }
  0x23   : >> { %163 = vst [vmem:[%s6086_s5] sm:$0xf] %v162_v0  ;;  %165 = vst [vmem:[%s6086_s5 + $0x4] sm:$0xf] %v164_v1  ;;  %v168_v3 = vld [vmem:[%s6090_s6 + $0xc] sm:$0xf]  ;;  %s290_s9 = sadd.s32 1, %s6094_s7 }
  0x24   : >> { %167 = vst [vmem:[%s6086_s5 + $0x8] sm:$0xf] %v166_v2  ;;  %v170_v4 = vld [vmem:[%s6090_s6 + $0x10] sm:$0xf]  ;;  %v172_v5 = vld [vmem:[%s6090_s6 + $0x14] sm:$0xf]  ;;  %p291_p10 = scmp.ge.s32.totalorder %s290_s9, %s6219_s4 }
  0x25   : >> { %169 = vst [vmem:[%s6086_s5 + $0xc] sm:$0xf] %v168_v3  ;;  %171 = vst [vmem:[%s6086_s5 + $0x10] sm:$0xf] %v170_v4  ;;  %v174_v6 = vld [vmem:[%s6090_s6 + $0x18] sm:$0xf] }
  0x26   : >> { %173 = vst [vmem:[%s6086_s5 + $0x14] sm:$0xf] %v172_v5  ;;  %v176_v7 = vld [vmem:[%s6090_s6 + $0x1c] sm:$0xf]  ;;  %v178_v8 = vld [vmem:[%s6090_s6 + $0x20] sm:$0xf] }
  0x27   : >> { %175 = vst [vmem:[%s6086_s5 + $0x18] sm:$0xf] %v174_v6  ;;  %177 = vst [vmem:[%s6086_s5 + $0x1c] sm:$0xf] %v176_v7  ;;  %v180_v9 = vld [vmem:[%s6090_s6 + $0x24] sm:$0xf] }
  0x28   : >> { %179 = vst [vmem:[%s6086_s5 + $0x20] sm:$0xf] %v178_v8  ;;  %v182_v10 = vld [vmem:[%s6090_s6 + $0x28] sm:$0xf]  ;;  %v184_v11 = vld [vmem:[%s6090_s6 + $0x2c] sm:$0xf] }
  0x29   : >> { %181 = vst [vmem:[%s6086_s5 + $0x24] sm:$0xf] %v180_v9  ;;  %183 = vst [vmem:[%s6086_s5 + $0x28] sm:$0xf] %v182_v10  ;;  %v186_v12 = vld [vmem:[%s6090_s6 + $0x30] sm:$0xf] }
  0x2a   : >> { %185 = vst [vmem:[%s6086_s5 + $0x2c] sm:$0xf] %v184_v11  ;;  %v188_v13 = vld [vmem:[%s6090_s6 + $0x34] sm:$0xf]  ;;  %v190_v14 = vld [vmem:[%s6090_s6 + $0x38] sm:$0xf] }
  0x2b   : >> { %187 = vst [vmem:[%s6086_s5 + $0x30] sm:$0xf] %v186_v12  ;;  %189 = vst [vmem:[%s6086_s5 + $0x34] sm:$0xf] %v188_v13  ;;  %v192_v15 = vld [vmem:[%s6090_s6 + $0x3c] sm:$0xf] }
  0x2c   : >> { %191 = vst [vmem:[%s6086_s5 + $0x38] sm:$0xf] %v190_v14  ;;  %v194_v16 = vld [vmem:[%s6090_s6 + $0x120] sm:$0xf]  ;;  %v196_v17 = vld [vmem:[%s6090_s6 + $0x124] sm:$0xf] }
  0x2d   : >> { %193 = vst [vmem:[%s6086_s5 + $0x3c] sm:$0xf] %v192_v15  ;;  %195 = vst [vmem:[%s6086_s5 + $0x100] sm:$0xf] %v194_v16  ;;  %v198_v18 = vld [vmem:[%s6090_s6 + $0x128] sm:$0xf] }
  0x2e   : >> { %197 = vst [vmem:[%s6086_s5 + $0x104] sm:$0xf] %v196_v17  ;;  %v200_v19 = vld [vmem:[%s6090_s6 + $0x12c] sm:$0xf]  ;;  %v202_v20 = vld [vmem:[%s6090_s6 + $0x130] sm:$0xf] }
  0x2f   : >> { %199 = vst [vmem:[%s6086_s5 + $0x108] sm:$0xf] %v198_v18  ;;  %201 = vst [vmem:[%s6086_s5 + $0x10c] sm:$0xf] %v200_v19  ;;  %v204_v21 = vld [vmem:[%s6090_s6 + $0x134] sm:$0xf] }
  0x30   : >> { %203 = vst [vmem:[%s6086_s5 + $0x110] sm:$0xf] %v202_v20  ;;  %v206_v22 = vld [vmem:[%s6090_s6 + $0x138] sm:$0xf]  ;;  %v208_v23 = vld [vmem:[%s6090_s6 + $0x13c] sm:$0xf] }
  0x31   : >> { %205 = vst [vmem:[%s6086_s5 + $0x114] sm:$0xf] %v204_v21  ;;  %207 = vst [vmem:[%s6086_s5 + $0x118] sm:$0xf] %v206_v22  ;;  %v210_v24 = vld [vmem:[%s6090_s6 + $0x140] sm:$0xf] }
  0x32   : >> { %209 = vst [vmem:[%s6086_s5 + $0x11c] sm:$0xf] %v208_v23  ;;  %v212_v25 = vld [vmem:[%s6090_s6 + $0x144] sm:$0xf]  ;;  %v214_v26 = vld [vmem:[%s6090_s6 + $0x148] sm:$0xf] }
  0x33   : >> { %211 = vst [vmem:[%s6086_s5 + $0x120] sm:$0xf] %v210_v24  ;;  %213 = vst [vmem:[%s6086_s5 + $0x124] sm:$0xf] %v212_v25  ;;  %v216_v27 = vld [vmem:[%s6090_s6 + $0x14c] sm:$0xf] }
  0x34   : >> { %215 = vst [vmem:[%s6086_s5 + $0x128] sm:$0xf] %v214_v26  ;;  %v218_v28 = vld [vmem:[%s6090_s6 + $0x150] sm:$0xf]  ;;  %v220_v29 = vld [vmem:[%s6090_s6 + $0x154] sm:$0xf] }
  0x35   : >> { %217 = vst [vmem:[%s6086_s5 + $0x12c] sm:$0xf] %v216_v27  ;;  %219 = vst [vmem:[%s6086_s5 + $0x130] sm:$0xf] %v218_v28  ;;  %v222_v30 = vld [vmem:[%s6090_s6 + $0x158] sm:$0xf] }
  0x36   : >> { %221 = vst [vmem:[%s6086_s5 + $0x134] sm:$0xf] %v220_v29  ;;  %v224_v31 = vld [vmem:[%s6090_s6 + $0x15c] sm:$0xf]  ;;  %v226_v32 = vld [vmem:[%s6090_s6 + $0x240] sm:$0xf] }
  0x37   : >> { %223 = vst [vmem:[%s6086_s5 + $0x138] sm:$0xf] %v222_v30  ;;  %225 = vst [vmem:[%s6086_s5 + $0x13c] sm:$0xf] %v224_v31  ;;  %v228_v33 = vld [vmem:[%s6090_s6 + $0x244] sm:$0xf] }
  0x38   : >> { %227 = vst [vmem:[%s6086_s5 + $0x200] sm:$0xf] %v226_v32  ;;  %v230_v34 = vld [vmem:[%s6090_s6 + $0x248] sm:$0xf]  ;;  %v232_v35 = vld [vmem:[%s6090_s6 + $0x24c] sm:$0xf] }
  0x39   : >> { %229 = vst [vmem:[%s6086_s5 + $0x204] sm:$0xf] %v228_v33  ;;  %231 = vst [vmem:[%s6086_s5 + $0x208] sm:$0xf] %v230_v34  ;;  %v234_v36 = vld [vmem:[%s6090_s6 + $0x250] sm:$0xf] }
  0x3a   : >> { %233 = vst [vmem:[%s6086_s5 + $0x20c] sm:$0xf] %v232_v35  ;;  %v236_v37 = vld [vmem:[%s6090_s6 + $0x254] sm:$0xf]  ;;  %v238_v38 = vld [vmem:[%s6090_s6 + $0x258] sm:$0xf] }
  0x3b   : >> { %235 = vst [vmem:[%s6086_s5 + $0x210] sm:$0xf] %v234_v36  ;;  %237 = vst [vmem:[%s6086_s5 + $0x214] sm:$0xf] %v236_v37  ;;  %v240_v39 = vld [vmem:[%s6090_s6 + $0x25c] sm:$0xf] }
  0x3c   : >> { %239 = vst [vmem:[%s6086_s5 + $0x218] sm:$0xf] %v238_v38  ;;  %v242_v40 = vld [vmem:[%s6090_s6 + $0x260] sm:$0xf]  ;;  %v244_v41 = vld [vmem:[%s6090_s6 + $0x264] sm:$0xf] }
  0x3d   : >> { %241 = vst [vmem:[%s6086_s5 + $0x21c] sm:$0xf] %v240_v39  ;;  %243 = vst [vmem:[%s6086_s5 + $0x220] sm:$0xf] %v242_v40  ;;  %v246_v42 = vld [vmem:[%s6090_s6 + $0x268] sm:$0xf] }
  0x3e   : >> { %245 = vst [vmem:[%s6086_s5 + $0x224] sm:$0xf] %v244_v41  ;;  %v248_v43 = vld [vmem:[%s6090_s6 + $0x26c] sm:$0xf]  ;;  %v250_v44 = vld [vmem:[%s6090_s6 + $0x270] sm:$0xf] }
  0x3f   : >> { %247 = vst [vmem:[%s6086_s5 + $0x228] sm:$0xf] %v246_v42  ;;  %249 = vst [vmem:[%s6086_s5 + $0x22c] sm:$0xf] %v248_v43  ;;  %v252_v45 = vld [vmem:[%s6090_s6 + $0x274] sm:$0xf] }
  0x40   : >> { %251 = vst [vmem:[%s6086_s5 + $0x230] sm:$0xf] %v250_v44  ;;  %v254_v46 = vld [vmem:[%s6090_s6 + $0x278] sm:$0xf]  ;;  %v256_v47 = vld [vmem:[%s6090_s6 + $0x27c] sm:$0xf] }
  0x41   : >> { %253 = vst [vmem:[%s6086_s5 + $0x234] sm:$0xf] %v252_v45  ;;  %255 = vst [vmem:[%s6086_s5 + $0x238] sm:$0xf] %v254_v46  ;;  %v258_v48 = vld [vmem:[%s6090_s6 + $0x360] sm:$0xf] }
  0x42   : >> { %257 = vst [vmem:[%s6086_s5 + $0x23c] sm:$0xf] %v256_v47  ;;  %v260_v49 = vld [vmem:[%s6090_s6 + $0x364] sm:$0xf]  ;;  %v262_v50 = vld [vmem:[%s6090_s6 + $0x368] sm:$0xf] }
  0x43   : >> { %259 = vst [vmem:[%s6086_s5 + $0x300] sm:$0xf] %v258_v48  ;;  %261 = vst [vmem:[%s6086_s5 + $0x304] sm:$0xf] %v260_v49  ;;  %v264_v51 = vld [vmem:[%s6090_s6 + $0x36c] sm:$0xf] }
  0x44   : >> { %263 = vst [vmem:[%s6086_s5 + $0x308] sm:$0xf] %v262_v50  ;;  %v266_v52 = vld [vmem:[%s6090_s6 + $0x370] sm:$0xf]  ;;  %v268_v53 = vld [vmem:[%s6090_s6 + $0x374] sm:$0xf] }
  0x45   : >> { %265 = vst [vmem:[%s6086_s5 + $0x30c] sm:$0xf] %v264_v51  ;;  %267 = vst [vmem:[%s6086_s5 + $0x310] sm:$0xf] %v266_v52  ;;  %v270_v54 = vld [vmem:[%s6090_s6 + $0x378] sm:$0xf] }
  0x46   : >> { %269 = vst [vmem:[%s6086_s5 + $0x314] sm:$0xf] %v268_v53  ;;  %v272_v55 = vld [vmem:[%s6090_s6 + $0x37c] sm:$0xf]  ;;  %v274_v56 = vld [vmem:[%s6090_s6 + $0x380] sm:$0xf] }
  0x47   : >> { %271 = vst [vmem:[%s6086_s5 + $0x318] sm:$0xf] %v270_v54  ;;  %273 = vst [vmem:[%s6086_s5 + $0x31c] sm:$0xf] %v272_v55  ;;  %v276_v57 = vld [vmem:[%s6090_s6 + $0x384] sm:$0xf] }
  0x48   : >> { %275 = vst [vmem:[%s6086_s5 + $0x320] sm:$0xf] %v274_v56  ;;  %v278_v58 = vld [vmem:[%s6090_s6 + $0x388] sm:$0xf]  ;;  %v280_v59 = vld [vmem:[%s6090_s6 + $0x38c] sm:$0xf] }
  0x49   : >> { %277 = vst [vmem:[%s6086_s5 + $0x324] sm:$0xf] %v276_v57  ;;  %279 = vst [vmem:[%s6086_s5 + $0x328] sm:$0xf] %v278_v58  ;;  %v282_v60 = vld [vmem:[%s6090_s6 + $0x390] sm:$0xf] }
  0x4a   : >> { %281 = vst [vmem:[%s6086_s5 + $0x32c] sm:$0xf] %v280_v59  ;;  %v284_v61 = vld [vmem:[%s6090_s6 + $0x394] sm:$0xf]  ;;  %v286_v62 = vld [vmem:[%s6090_s6 + $0x398] sm:$0xf] }
  0x4b   : >> { %283 = vst [vmem:[%s6086_s5 + $0x330] sm:$0xf] %v282_v60  ;;  %285 = vst [vmem:[%s6086_s5 + $0x334] sm:$0xf] %v284_v61  ;;  %v288_v63 = vld [vmem:[%s6090_s6 + $0x39c] sm:$0xf] }
  0x4c   : >> { %287 = vst [vmem:[%s6086_s5 + $0x338] sm:$0xf] %v286_v62  ;;  %289 = vst [vmem:[%s6086_s5 + $0x33c] sm:$0xf] %v288_v63  ;;  %s7445_s9 = smov (%p291_p10, %s290_s9), 0  ;;  %s156_s8 = sadd.s32 1, %s6098_s8  }
  0x4d   : >> { %s4499_s10 = sshll.u32 %s7445_s9, 6  ;;  %p155_p11 = scmp.ge.s32.totalorder %s156_s8, %s6219_s4 }
  0x4e   : >> { %s295_s6 = scalar_lea.vmem %s6213_s28, %s4499_s10   ;;  %s296_s5 = scalar_lea.vmem %s6216_s30, %s4499_s10 [#allocation2]  }
  0x4f   : >> { %s7387_s7 = smov %s7445_s9  ;;  %158 = sbr.rel (!%p155_p11) target bundleno = 34 (0x22), region = 202 }
  0x54 PF: > { %s6387_s11 = sand.u32 15, %s7443_s24   ;;  %s5043_s17 = sshll.u32 %s6219_s4, 6 }
  0x55   : > { %s6391_s18 = scalar_lea.vmem %s6213_s28, %s5043_s17   ;;  %s6394_s21 = scalar_lea.vmem %s6216_s30, %s5043_s17 [#allocation2]  }
  0x56   : > { %p4504_p12 = scmp.le.s32.totalorder %s6387_s11, 0 }
  0x57   : > { %s7388_s22 = smov (!%p4504_p12), %s6394_s21  ;;  %s7389_s23 = smov (!%p4504_p12), %s6391_s18 }
  0x58   : > { %4431 = sbr.rel (%p4504_p12) target bundleno = 101 (0x65), region = 207  ;;  %s6108_s25 = smov (!%p4504_p12), 0  }
  0x59   : > { %s6112_s26 = smov (!%p4504_p12), 0  }
  0x5d LB: >> { %v313_v0 = vld [vmem:[%s6106_s23] sm:$0xf]  ;;  %s321_s24 = sadd.s32 1, %s6110_s25  ;;  %s307_s26 = sadd.s32 1, %s6114_s26   ;;  %s6114_s26 = sphi %s6112_s26, %s307_s26   ;;  %s6110_s25 = sphi %s6108_s25, %s6109_s25   ;;  %s6106_s23 = sphi %s7389_s23, %s326_s23   ;;  %s6102_s22 = sphi %s7388_s22, %s327_s22  }
  0x5e   : >> { %v315_v1 = vld [vmem:[%s6106_s23 + $0x120] sm:$0xf]  ;;  %314 = vst [vmem:[%s6102_s22] sm:$0xf] %v313_v0  ;;  %p322_p13 = scmp.ge.s32.totalorder %s321_s24, %s6387_s11  ;;  %p306_p0 = scmp.ge.s32.totalorder %s307_s26, %s6387_s11 }
  0x5f   : >> { %v317_v2 = vld [vmem:[%s6106_s23 + $0x240] sm:$0xf]  ;;  %316 = vst [vmem:[%s6102_s22 + $0x100] sm:$0xf] %v315_v1 }
  0x60   : >> { %318 = vst [vmem:[%s6102_s22 + $0x200] sm:$0xf] %v317_v2  ;;  %v319_v3 = vld [vmem:[%s6106_s23 + $0x360] sm:$0xf]  ;;  %s7447_s24 = smov (%p322_p13, %s321_s24), 0  ;;  %309 = sbr.rel (!%p306_p0) target bundleno = 93 (0x5d), region = 213 }
  0x61   : >> { %320 = vst [vmem:[%s6102_s22 + $0x300] sm:$0xf] %v319_v3  ;;  %s4505_s27 = sshll.u32 %s7447_s24, 2  ;;  %s6109_s25 = smov %s7447_s24  }
  0x62   : >> { %s326_s23 = scalar_lea.vmem %s6391_s18, %s4505_s27   ;;  %s327_s22 = scalar_lea.vmem %s6394_s21, %s4505_s27 [#allocation2]  }
  0x65 PF: > { %p4507_p1 = scmp.ge.s32.totalorder %s6082_s14, 1  ;;  %p550_p2 = scmp.lt.s32.totalorder %s6082_s14, 3 }
  0x67   : > { %p551_p3 = pnand %p4507_p1, %p550_p2 }
  0x69   : > { %554 = sbr.rel (%p551_p3) target bundleno = 664 (0x298), region = 90 }
  0x6e   : > { %v5864_v4 = vld [vmem:[%s7381_s1 + $0x8] sm:$0x1f]   ;;  %vm933_vm0 = vcmask 1043456   ;;  %vm934_vm1 = vcmask 1044480   ;;  %v6148_v5 = vmov 65535   ;;  %s557_s30 = sand.u32 1, %s6074_s12  }
  0x6f   : > { %v935_v6 = vsel %vm933_vm0, 4294967295, %v6148_v5  ;;  %s4508_s4 = sshll.u32 %s557_s30, 10  ;;  %v5865_v9 = vld [vmem:[%s7381_s1] sm:$0xff]   ;;  %vm836_vm2 = vcmask 203776   ;;  %s4509_s11 = sshll.u32 %s557_s30, 8 }
  0x70   : > { %v936_v7 = vsel %vm934_vm1, %v935_v6, 0  ;;  %s6424_s14 = scalar_lea.vmem [#allocation2], %s4508_s4  ;;  %s6972_s12 = scalar_lea.vmem [#allocation3], %s4509_s11  }
  0x71   : > { %v938_v8 = vand.u32 %v5864_v4, %v936_v7  ;;  %v5866_v10 = vld [vmem:[%s6424_s14] sm:$0xff]   ;;  %v5868_v12 = vld [vmem:[%s6424_s14 + $0x8] sm:$0xff]   ;;  %v5870_v14 = vld [vmem:[%s6424_s14 + $0x10] sm:$0xff]   ;;  %s5026_s21 = sshll.u32 (%p6200_p5), %s6185_s15, 6  ;;  %s5109_s22 = sshll.u32 (%p6200_p5), %s6185_s15, 8 }
  0x72   : > { %v5867_v11 = vld [vmem:[%s6424_s14 + $0x100] sm:$0xff]   ;;  %5443 = vmatprep.mubr.msk.bf16.mxu0 %vm836_vm2, %v5866_v10  ;;  %v5869_v13 = vld [vmem:[%s6424_s14 + $0x108] sm:$0xff]   ;;  %v5871_v15 = vld [vmem:[%s6424_s14 + $0x110] sm:$0xff]   ;;  %s3963_s23 = ssub.s32 (%p6200_p5), 72, %s5026_s21  ;;  %s7188_s24 = scalar_lea.vmem (%p6200_p5), %s7383_s3, %s5109_s22  }
  0x73   : > { %5439 = vmatprep.subr.bf16.mxu0 %v938_v8  ;;  %5507 = vmatprep.subr.bf16.mxu1 %v938_v8  ;;  %v5872_v16 = vld [vmem:[%s6424_s14 + $0x18] sm:$0xff]   ;;  %v5874_v18 = vld [vmem:[%s6424_s14 + $0x20] sm:$0xff]   ;;  %v5876_v20 = vld [vmem:[%s6424_s14 + $0x28] sm:$0xff]   ;;  %p3964_p4 = scmp.lt.s32.totalorder (%p6200_p5), %s3963_s23, 64 }
  0x74   : > { %5440 = vmatpush3.bf16.msra.mxu0 %v938_v8  ;;  %5508 = vmatpush3.bf16.msra.mxu1 %v938_v8  ;;  %v5873_v17 = vld [vmem:[%s6424_s14 + $0x118] sm:$0xff]   ;;  %v5875_v19 = vld [vmem:[%s6424_s14 + $0x120] sm:$0xff]   ;;  %v5877_v21 = vld [vmem:[%s6424_s14 + $0x128] sm:$0xff]  }
  0x75   : > { %5441 = vmatprep.subr.bf16.mxu0 %v5865_v9  ;;  %5509 = vmatprep.subr.bf16.mxu1 %v5865_v9  ;;  %v5878_v22 = vld [vmem:[%s6424_s14 + $0x30] sm:$0xff]   ;;  %v5880_v24 = vld [vmem:[%s6424_s14 + $0x38] sm:$0xff]   ;;  %v5882_v26 = vld [vmem:[%s6424_s14 + $0x40] sm:$0xff]  }
  0x76   : > { %5511 = vmatprep.mubr.msk.bf16.mxu1 %vm836_vm2, %v5867_v11  ;;  %v5879_v23 = vld [vmem:[%s6424_s14 + $0x130] sm:$0xff]   ;;  %v5881_v25 = vld [vmem:[%s6424_s14 + $0x138] sm:$0xff]   ;;  %v5883_v27 = vld [vmem:[%s6424_s14 + $0x140] sm:$0xff]  }
  0x77   : > { %v5884_v28 = vld [vmem:[%s6424_s14 + $0x48] sm:$0xff]   ;;  %v5886_v30 = vld [vmem:[%s6424_s14 + $0x50] sm:$0xff]   ;;  %v5888_v32 = vld [vmem:[%s6424_s14 + $0x58] sm:$0xff]  }
  0x78   : > { %5442 = vmatpush3.bf16.msra.mxu0 %v5865_v9  ;;  %5510 = vmatpush3.bf16.msra.mxu1 %v5865_v9  ;;  %v5885_v29 = vld [vmem:[%s6424_s14 + $0x148] sm:$0xff]   ;;  %v5887_v31 = vld [vmem:[%s6424_s14 + $0x150] sm:$0xff]   ;;  %v5889_v33 = vld [vmem:[%s6424_s14 + $0x158] sm:$0xff]  }
  0x79   : > { %5575 = vmatprep.subr.bf16.mxu0 %v938_v8  ;;  %5643 = vmatprep.subr.bf16.mxu1 %v938_v8  ;;  %v5890_v34 = vld [vmem:[%s6424_s14 + $0x60] sm:$0xff]   ;;  %v5892_v36 = vld [vmem:[%s6424_s14 + $0x68] sm:$0xff]   ;;  %v5894_v38 = vld [vmem:[%s6424_s14 + $0x70] sm:$0xff]  }
  0x7a   : > { %v5891_v35 = vld [vmem:[%s6424_s14 + $0x160] sm:$0xff]   ;;  %v5893_v37 = vld [vmem:[%s6424_s14 + $0x168] sm:$0xff]   ;;  %v5895_v39 = vld [vmem:[%s6424_s14 + $0x170] sm:$0xff]  }
  0x7b   : > { %5444 = vmatmul.mubr.msk.bf16.vlgmr.msra.gmra.mxu0 %vm836_vm2, %v5868_v12  ;;  %5512 = vmatmul.mubr.msk.bf16.vlgmr.msra.gmra.mxu1 %vm836_vm2, %v5869_v13  ;;  %v5896_v40 = vld [vmem:[%s6424_s14 + $0x78] sm:$0xff]   ;;  %v5898_v42 = vld [vmem:[%s6424_s14 + $0x80] sm:$0xff]   ;;  %v5900_v44 = vld [vmem:[%s6424_s14 + $0x88] sm:$0xff]  }
  0x7c   : > { %5576 = vmatpush3.bf16.msra.mxu0 %v938_v8  ;;  %5644 = vmatpush3.bf16.msra.mxu1 %v938_v8  ;;  %v5897_v41 = vld [vmem:[%s6424_s14 + $0x178] sm:$0xff]   ;;  %v5899_v43 = vld [vmem:[%s6424_s14 + $0x180] sm:$0xff]   ;;  %v5901_v45 = vld [vmem:[%s6424_s14 + $0x188] sm:$0xff]  }
  0x7d   : > { %5447 = vmatprep.mubr.msk.bf16.mxu0 %vm836_vm2, %v5870_v14  ;;  %5515 = vmatprep.mubr.msk.bf16.mxu1 %vm836_vm2, %v5871_v15  ;;  %v5902_v46 = vld [vmem:[%s6424_s14 + $0x90] sm:$0xff]   ;;  %v5904_v48 = vld [vmem:[%s6424_s14 + $0x98] sm:$0xff]   ;;  %v5906_v50 = vld [vmem:[%s6424_s14 + $0xa0] sm:$0xff]  }
  0x7e   : > { %5577 = vmatprep.subr.bf16.mxu0 %v5865_v9  ;;  %5645 = vmatprep.subr.bf16.mxu1 %v5865_v9  ;;  %v5903_v47 = vld [vmem:[%s6424_s14 + $0x190] sm:$0xff]   ;;  %v5905_v49 = vld [vmem:[%s6424_s14 + $0x198] sm:$0xff]   ;;  %v5907_v51 = vld [vmem:[%s6424_s14 + $0x1a0] sm:$0xff]  }
  0x7f   : > { %v5908_v52 = vld [vmem:[%s6424_s14 + $0xa8] sm:$0xff]   ;;  %v5910_v54 = vld [vmem:[%s6424_s14 + $0xb0] sm:$0xff]   ;;  %v5912_v56 = vld [vmem:[%s6424_s14 + $0xb8] sm:$0xff]  }
  0x80   : > { %5578 = vmatpush3.bf16.msra.mxu0 %v5865_v9  ;;  %5646 = vmatpush3.bf16.msra.mxu1 %v5865_v9  ;;  %v5909_v53 = vld [vmem:[%s6424_s14 + $0x1a8] sm:$0xff]   ;;  %v5911_v55 = vld [vmem:[%s6424_s14 + $0x1b0] sm:$0xff]   ;;  %v5913_v57 = vld [vmem:[%s6424_s14 + $0x1b8] sm:$0xff]  }
  0x81   : > { %v5914_v58 = vld [vmem:[%s6424_s14 + $0xc0] sm:$0xff]   ;;  %v5916_v60 = vld [vmem:[%s6424_s14 + $0xc8] sm:$0xff]   ;;  %v5918_v62 = vld [vmem:[%s6424_s14 + $0xd0] sm:$0xff]  }
  0x82   : > { %v5915_v59 = vld [vmem:[%s6424_s14 + $0x1c0] sm:$0xff]   ;;  %v5917_v61 = vld [vmem:[%s6424_s14 + $0x1c8] sm:$0xff]   ;;  %v5919_v63 = vld [vmem:[%s6424_s14 + $0x1d0] sm:$0xff]  }
  0x83   : > { %5448 = vmatmul.mubr.msk.bf16.gmra.mxu0 %vm836_vm2, %v5872_v16  ;;  %5516 = vmatmul.mubr.msk.bf16.gmra.mxu1 %vm836_vm2, %v5873_v17  ;;  %v5920_v0 = vld [vmem:[%s6424_s14 + $0xd8] sm:$0xff]   ;;  %v5922_v2 = vld [vmem:[%s6424_s14 + $0xe0] sm:$0xff]   ;;  %v5924_v4 = vld [vmem:[%s6424_s14 + $0xe8] sm:$0xff]  }
  0x84   : > { %5451 = vmatprep.mubr.msk.bf16.mxu0 %vm836_vm2, %v5874_v18  ;;  %5519 = vmatprep.mubr.msk.bf16.mxu1 %vm836_vm2, %v5875_v19  ;;  %v5921_v1 = vld [vmem:[%s6424_s14 + $0x1d8] sm:$0xff]   ;;  %v5923_v3 = vld [vmem:[%s6424_s14 + $0x1e0] sm:$0xff]   ;;  %v5925_v5 = vld [vmem:[%s6424_s14 + $0x1e8] sm:$0xff]  }
  0x85   : > { %v5926_v6 = vld [vmem:[%s6424_s14 + $0xf0] sm:$0xff]   ;;  %v5928_v8 = vld [vmem:[%s6424_s14 + $0xf8] sm:$0xff]   ;;  %v5930_v10 = vld [vmem:[%s6424_s14 + $0x200] sm:$0xff]  }
  0x86   : > { %v5927_v7 = vld [vmem:[%s6424_s14 + $0x1f0] sm:$0xff]   ;;  %v5929_v9 = vld [vmem:[%s6424_s14 + $0x1f8] sm:$0xff]   ;;  %v5931_v11 = vld [vmem:[%s6424_s14 + $0x300] sm:$0xff]  }
  0x87   : > { %v5932_v12 = vld [vmem:[%s6424_s14 + $0x208] sm:$0xff]   ;;  %v5934_v14 = vld [vmem:[%s6424_s14 + $0x210] sm:$0xff]   ;;  %v5936_v16 = vld [vmem:[%s6424_s14 + $0x218] sm:$0xff]  }
  0x88   : > { %v5933_v13 = vld [vmem:[%s6424_s14 + $0x308] sm:$0xff]   ;;  %v5935_v15 = vld [vmem:[%s6424_s14 + $0x310] sm:$0xff]   ;;  %v5937_v17 = vld [vmem:[%s6424_s14 + $0x318] sm:$0xff]  }
  0x89   : > { %v5938_v18 = vld [vmem:[%s6424_s14 + $0x220] sm:$0xff]  }
  0x8a   : > { %v5939_v19 = vld [vmem:[%s6424_s14 + $0x320] sm:$0xff]  }
  0x8b   : > { %5452 = vmatmul.mubr.msk.bf16.gmra.mxu0 %vm836_vm2, %v5876_v20  ;;  %5520 = vmatmul.mubr.msk.bf16.gmra.mxu1 %vm836_vm2, %v5877_v21  ;;  %v5940_v20 = vld [vmem:[%s6424_s14 + $0x228] sm:$0xff]  }
  0x8c   : > { %5455 = vmatprep.mubr.msk.bf16.mxu0 %vm836_vm2, %v5878_v22  ;;  %5523 = vmatprep.mubr.msk.bf16.mxu1 %vm836_vm2, %v5879_v23  ;;  %v5941_v21 = vld [vmem:[%s6424_s14 + $0x328] sm:$0xff]   ;;  %v5942_v22 = vld [vmem:[%s6424_s14 + $0x230] sm:$0xff]  }
  0x8d   : > { %v5943_v23 = vld [vmem:[%s6424_s14 + $0x330] sm:$0xff]  }
  0x93   : > { %5456 = vmatmul.mubr.msk.bf16.gmra.mxu0 %vm836_vm2, %v5880_v24  ;;  %5524 = vmatmul.mubr.msk.bf16.gmra.mxu1 %vm836_vm2, %v5881_v25  ;;  %v5944_v24 = vld [vmem:[%s6424_s14 + $0x238] sm:$0xff]  }
  0x94   : > { %5459 = vmatprep.mubr.msk.bf16.mxu0 %vm836_vm2, %v5882_v26  ;;  %5527 = vmatprep.mubr.msk.bf16.mxu1 %vm836_vm2, %v5883_v27  ;;  %v5945_v25 = vld [vmem:[%s6424_s14 + $0x338] sm:$0xff]   ;;  %v5946_v26 = vld [vmem:[%s6424_s14 + $0x240] sm:$0xff]  }
  0x95   : > { %v5947_v27 = vld [vmem:[%s6424_s14 + $0x340] sm:$0xff]  }
  0x9b   : > { %5460 = vmatmul.mubr.msk.bf16.gmra.mxu0 %vm836_vm2, %v5884_v28  ;;  %5528 = vmatmul.mubr.msk.bf16.gmra.mxu1 %vm836_vm2, %v5885_v29  ;;  %v5948_v28 = vld [vmem:[%s6424_s14 + $0x248] sm:$0xff]  }
  0x9c   : > { %5463 = vmatprep.mubr.msk.bf16.mxu0 %vm836_vm2, %v5886_v30  ;;  %5531 = vmatprep.mubr.msk.bf16.mxu1 %vm836_vm2, %v5887_v31  ;;  %v5949_v29 = vld [vmem:[%s6424_s14 + $0x348] sm:$0xff]   ;;  %v5950_v30 = vld [vmem:[%s6424_s14 + $0x250] sm:$0xff]  }
  0x9d   : > { %v5951_v31 = vld [vmem:[%s6424_s14 + $0x350] sm:$0xff]  }
  0xa3   : > { %5464 = vmatmul.mubr.msk.bf16.gmra.mxu0 %vm836_vm2, %v5888_v32  ;;  %5532 = vmatmul.mubr.msk.bf16.gmra.mxu1 %vm836_vm2, %v5889_v33  ;;  %v5952_v32 = vld [vmem:[%s6424_s14 + $0x258] sm:$0xff]  }
  0xa4   : > { %5467 = vmatprep.mubr.msk.bf16.mxu0 %vm836_vm2, %v5890_v34  ;;  %5535 = vmatprep.mubr.msk.bf16.mxu1 %vm836_vm2, %v5891_v35  ;;  %v5953_v33 = vld [vmem:[%s6424_s14 + $0x358] sm:$0xff]   ;;  %v5954_v34 = vld [vmem:[%s6424_s14 + $0x260] sm:$0xff]  }
  0xa5   : > { %v5955_v35 = vld [vmem:[%s6424_s14 + $0x360] sm:$0xff]  }
  0xab   : > { %5468 = vmatmul.mubr.msk.bf16.gmra.mxu0 %vm836_vm2, %v5892_v36  ;;  %5536 = vmatmul.mubr.msk.bf16.gmra.mxu1 %vm836_vm2, %v5893_v37  ;;  %v5956_v36 = vld [vmem:[%s6424_s14 + $0x268] sm:$0xff]  }
  0xac   : > { %5471 = vmatprep.mubr.msk.bf16.mxu0 %vm836_vm2, %v5894_v38  ;;  %5539 = vmatprep.mubr.msk.bf16.mxu1 %vm836_vm2, %v5895_v39  ;;  %v5957_v37 = vld [vmem:[%s6424_s14 + $0x368] sm:$0xff]   ;;  %v5958_v38 = vld [vmem:[%s6424_s14 + $0x270] sm:$0xff]  }
  0xad   : > { %v5959_v39 = vld [vmem:[%s6424_s14 + $0x370] sm:$0xff]  }
  0xb3   : > { %5472 = vmatmul.mubr.msk.bf16.gmra.mxu0 %vm836_vm2, %v5896_v40  ;;  %5540 = vmatmul.mubr.msk.bf16.gmra.mxu1 %vm836_vm2, %v5897_v41  ;;  %v5960_v40 = vld [vmem:[%s6424_s14 + $0x278] sm:$0xff]  }
  0xb4   : > { %5475 = vmatprep.mubr.msk.bf16.mxu0 %vm836_vm2, %v5898_v42  ;;  %5543 = vmatprep.mubr.msk.bf16.mxu1 %vm836_vm2, %v5899_v43  ;;  %v5961_v41 = vld [vmem:[%s6424_s14 + $0x378] sm:$0xff]   ;;  %v5962_v42 = vld [vmem:[%s6424_s14 + $0x280] sm:$0xff]  }
  0xb5   : > { %v5963_v43 = vld [vmem:[%s6424_s14 + $0x380] sm:$0xff]  }
  0xbb   : > { %5476 = vmatmul.mubr.msk.bf16.gmra.mxu0 %vm836_vm2, %v5900_v44  ;;  %5544 = vmatmul.mubr.msk.bf16.gmra.mxu1 %vm836_vm2, %v5901_v45  ;;  %v5964_v44 = vld [vmem:[%s6424_s14 + $0x288] sm:$0xff]  }
  0xbc   : > { %5479 = vmatprep.mubr.msk.bf16.mxu0 %vm836_vm2, %v5902_v46  ;;  %5547 = vmatprep.mubr.msk.bf16.mxu1 %vm836_vm2, %v5903_v47  ;;  %v5965_v45 = vld [vmem:[%s6424_s14 + $0x388] sm:$0xff]   ;;  %v5966_v46 = vld [vmem:[%s6424_s14 + $0x290] sm:$0xff]  }
  0xbd   : > { %v5967_v47 = vld [vmem:[%s6424_s14 + $0x390] sm:$0xff]  }
  0xc3   : > { %5480 = vmatmul.mubr.msk.bf16.gmra.mxu0 %vm836_vm2, %v5904_v48  ;;  %5548 = vmatmul.mubr.msk.bf16.gmra.mxu1 %vm836_vm2, %v5905_v49  ;;  %v6629_v48 = vld [vmem:[%s7382_s2] ss:$0 sm:$0xff] }
  0xc4   : > { %5483 = vmatprep.mubr.msk.bf16.mxu0 %vm836_vm2, %v5906_v50  ;;  %5551 = vmatprep.mubr.msk.bf16.mxu1 %vm836_vm2, %v5907_v51 }
  0xcb   : > { %5484 = vmatmul.mubr.msk.bf16.gmra.mxu0 %vm836_vm2, %v5908_v52  ;;  %5552 = vmatmul.mubr.msk.bf16.gmra.mxu1 %vm836_vm2, %v5909_v53 }
  0xcc   : > { %5487 = vmatprep.mubr.msk.bf16.mxu0 %vm836_vm2, %v5910_v54  ;;  %5555 = vmatprep.mubr.msk.bf16.mxu1 %vm836_vm2, %v5911_v55 }
  0xd3   : > { %5488 = vmatmul.mubr.msk.bf16.gmra.mxu0 %vm836_vm2, %v5912_v56  ;;  %5556 = vmatmul.mubr.msk.bf16.gmra.mxu1 %vm836_vm2, %v5913_v57 }
  0xd4   : > { %5491 = vmatprep.mubr.msk.bf16.mxu0 %vm836_vm2, %v5914_v58  ;;  %5559 = vmatprep.mubr.msk.bf16.mxu1 %vm836_vm2, %v5915_v59 }
  0xdb   : > { %5492 = vmatmul.mubr.msk.bf16.gmra.mxu0 %vm836_vm2, %v5916_v60  ;;  %5560 = vmatmul.mubr.msk.bf16.gmra.mxu1 %vm836_vm2, %v5917_v61  ;;  %v5968_v61 = vld [vmem:[%s6424_s14 + $0x298] sm:$0xff]  }
  0xdc   : > { %5495 = vmatprep.mubr.msk.bf16.mxu0 %vm836_vm2, %v5918_v62  ;;  %5563 = vmatprep.mubr.msk.bf16.mxu1 %vm836_vm2, %v5919_v63  ;;  %v5969_v62 = vld [vmem:[%s6424_s14 + $0x398] sm:$0xff]  }
  0xe3   : > { %5496 = vmatmul.mubr.msk.bf16.gmra.mxu0 %vm836_vm2, %v5920_v0  ;;  %5564 = vmatmul.mubr.msk.bf16.gmra.mxu1 %vm836_vm2, %v5921_v1 }
  0xe4   : > { %5499 = vmatprep.mubr.msk.bf16.mxu0 %vm836_vm2, %v5922_v2  ;;  %5567 = vmatprep.mubr.msk.bf16.mxu1 %vm836_vm2, %v5923_v3  ;;  %v5970_v3 = vld [vmem:[%s6424_s14 + $0x2a0] sm:$0xff]  }
  0xeb   : > { %5500 = vmatmul.mubr.msk.bf16.gmra.mxu0 %vm836_vm2, %v5924_v4  ;;  %5568 = vmatmul.mubr.msk.bf16.gmra.mxu1 %vm836_vm2, %v5925_v5  ;;  %v5971_v4 = vld [vmem:[%s6424_s14 + $0x3a0] sm:$0xff]  }
  0xec   : > { %5503 = vmatprep.mubr.msk.bf16.mxu0 %vm836_vm2, %v5926_v6  ;;  %5571 = vmatprep.mubr.msk.bf16.mxu1 %vm836_vm2, %v5927_v7 }
  0xf3   : > { %5504 = vmatmul.mubr.msk.bf16.gmra.mxu0 %vm836_vm2, %v5928_v8  ;;  %5572 = vmatmul.mubr.msk.bf16.gmra.mxu1 %vm836_vm2, %v5929_v9 }
  0xf4   : > { %5579 = vmatprep.mubr.msk.bf16.mxu0 %vm836_vm2, %v5930_v10  ;;  %5647 = vmatprep.mubr.msk.bf16.mxu1 %vm836_vm2, %v5931_v11 }
  0xfb   : > { %5580 = vmatmul.mubr.msk.bf16.vlgmr.msra.gmra.mxu0 %vm836_vm2, %v5932_v12  ;;  %5648 = vmatmul.mubr.msk.bf16.vlgmr.msra.gmra.mxu1 %vm836_vm2, %v5933_v13 }
  0xfc   : > { %5583 = vmatprep.mubr.msk.bf16.mxu0 %vm836_vm2, %v5934_v14  ;;  %5651 = vmatprep.mubr.msk.bf16.mxu1 %vm836_vm2, %v5935_v15 }
 0x103   : > { %5584 = vmatmul.mubr.msk.bf16.gmra.mxu0 %vm836_vm2, %v5936_v16  ;;  %5652 = vmatmul.mubr.msk.bf16.gmra.mxu1 %vm836_vm2, %v5937_v17 }
 0x104   : > { %5587 = vmatprep.mubr.msk.bf16.mxu0 %vm836_vm2, %v5938_v18  ;;  %5655 = vmatprep.mubr.msk.bf16.mxu1 %vm836_vm2, %v5939_v19 }
 0x10b   : > { %5588 = vmatmul.mubr.msk.bf16.gmra.mxu0 %vm836_vm2, %v5940_v20  ;;  %5656 = vmatmul.mubr.msk.bf16.gmra.mxu1 %vm836_vm2, %v5941_v21 }
 0x10c   : > { %5591 = vmatprep.mubr.msk.bf16.mxu0 %vm836_vm2, %v5942_v22  ;;  %5659 = vmatprep.mubr.msk.bf16.mxu1 %vm836_vm2, %v5943_v23 }
 0x113   : > { %5592 = vmatmul.mubr.msk.bf16.gmra.mxu0 %vm836_vm2, %v5944_v24  ;;  %5660 = vmatmul.mubr.msk.bf16.gmra.mxu1 %vm836_vm2, %v5945_v25 }
 0x114   : > { %5595 = vmatprep.mubr.msk.bf16.mxu0 %vm836_vm2, %v5946_v26  ;;  %5663 = vmatprep.mubr.msk.bf16.mxu1 %vm836_vm2, %v5947_v27 }
 0x11b   : > { %5596 = vmatmul.mubr.msk.bf16.gmra.mxu0 %vm836_vm2, %v5948_v28  ;;  %5664 = vmatmul.mubr.msk.bf16.gmra.mxu1 %vm836_vm2, %v5949_v29  ;;  %v5972_v29 = vld [vmem:[%s6424_s14 + $0x2a8] sm:$0xff]  }
 0x11c   : > { %5599 = vmatprep.mubr.msk.bf16.mxu0 %vm836_vm2, %v5950_v30  ;;  %5667 = vmatprep.mubr.msk.bf16.mxu1 %vm836_vm2, %v5951_v31  ;;  %v5973_v30 = vld [vmem:[%s6424_s14 + $0x3a8] sm:$0xff]  }
 0x123   : > { %5600 = vmatmul.mubr.msk.bf16.gmra.mxu0 %vm836_vm2, %v5952_v32  ;;  %5668 = vmatmul.mubr.msk.bf16.gmra.mxu1 %vm836_vm2, %v5953_v33 }
 0x124   : > { %5603 = vmatprep.mubr.msk.bf16.mxu0 %vm836_vm2, %v5954_v34  ;;  %5671 = vmatprep.mubr.msk.bf16.mxu1 %vm836_vm2, %v5955_v35  ;;  %v5974_v35 = vld [vmem:[%s6424_s14 + $0x2b0] sm:$0xff]  }
 0x12b   : > { %5604 = vmatmul.mubr.msk.bf16.gmra.mxu0 %vm836_vm2, %v5956_v36  ;;  %5672 = vmatmul.mubr.msk.bf16.gmra.mxu1 %vm836_vm2, %v5957_v37  ;;  %v5975_v36 = vld [vmem:[%s6424_s14 + $0x3b0] sm:$0xff]  }
 0x12c   : > { %5607 = vmatprep.mubr.msk.bf16.mxu0 %vm836_vm2, %v5958_v38  ;;  %5675 = vmatprep.mubr.msk.bf16.mxu1 %vm836_vm2, %v5959_v39 }
 0x133   : > { %5608 = vmatmul.mubr.msk.bf16.gmra.mxu0 %vm836_vm2, %v5960_v40  ;;  %5676 = vmatmul.mubr.msk.bf16.gmra.mxu1 %vm836_vm2, %v5961_v41 }
 0x134   : > { %5611 = vmatprep.mubr.msk.bf16.mxu0 %vm836_vm2, %v5962_v42  ;;  %5679 = vmatprep.mubr.msk.bf16.mxu1 %vm836_vm2, %v5963_v43 }
 0x13b   : > { %v5445_v49 = vpop.f32.mrf.mxu0  ;;  %v5513_v50 = vpop.f32.mrf.mxu1  ;;  %5612 = vmatmul.mubr.msk.bf16.gmra.mxu0 %vm836_vm2, %v5964_v44  ;;  %5680 = vmatmul.mubr.msk.bf16.gmra.mxu1 %vm836_vm2, %v5965_v45 }
 0x13c   : > { %v983_v51 = vadd.f32 %v5445_v49, %v6629_v48  ;;  %v1721_v52 = vadd.f32 %v5513_v50, %v6629_v48  ;;  %5615 = vmatprep.mubr.msk.bf16.mxu0 %vm836_vm2, %v5966_v46  ;;  %5683 = vmatprep.mubr.msk.bf16.mxu1 %vm836_vm2, %v5967_v47 }
 0x13d   : > { %v974_v53 = vpop.f32.mrf.mxu0  ;;  %v1712_v54 = vpop.f32.mrf.mxu1 }
 0x13e   : > { %v1231_v55 = vmax.f32 %v983_v51, 0.0  ;;  %v1969_v56 = vmax.f32 %v1721_v52, 0.0  ;;  %v975_v57 = vadd.f32 %v6629_v48, %v974_v53  ;;  %v1713_v58 = vadd.f32 %v6629_v48, %v1712_v54 }
 0x13f   : > { %v5446_v59 = vpop.f32.mrf.mxu0  ;;  %v5514_v60 = vpop.f32.mrf.mxu1 }
 0x140   : > { %v6641_v63 = vadd.f32 %v1969_v56, %v1231_v55  ;;  %v1229_v0 = vmax.f32 %v975_v57, 0.0  ;;  %v1967_v1 = vmax.f32 %v1713_v58, 0.0  ;;  %v986_v2 = vadd.f32 %v5446_v59, %v6629_v48 }
 0x141   : > { %v1724_v5 = vadd.f32 %v5514_v60, %v6629_v48  ;;  %v977_v6 = vpop.f32.mrf.mxu0  ;;  %v1715_v7 = vpop.f32.mrf.mxu1 }
 0x142   : > { %v6647_v8 = vadd.f32 %v1967_v1, %v1229_v0  ;;  %v1232_v9 = vmax.f32 %v986_v2, 0.0  ;;  %v978_v10 = vadd.f32 %v6629_v48, %v977_v6  ;;  %v1716_v11 = vadd.f32 %v6629_v48, %v1715_v7  ;;  %v5977_v0 = vld [vmem:[%s6424_s14 + $0x3b8] sm:$0xff]   ;;  %v5979_v6 = vld [vmem:[%s6424_s14 + $0x3c0] sm:$0xff]  }
 0x143   : > { %v1970_v12 = vmax.f32 %v1724_v5, 0.0  ;;  %v5449_v13 = vpop.f32.mrf.mxu0  ;;  %v5517_v14 = vpop.f32.mrf.mxu1  ;;  %5616 = vmatmul.mubr.msk.bf16.gmra.mxu0 %vm836_vm2, %v5968_v61  ;;  %5684 = vmatmul.mubr.msk.bf16.gmra.mxu1 %vm836_vm2, %v5969_v62  ;;  %v5976_v62 = vld [vmem:[%s6424_s14 + $0x2b8] sm:$0xff]   ;;  %v5978_v5 = vld [vmem:[%s6424_s14 + $0x2c0] sm:$0xff]  }
 0x144   : > { %v1230_v15 = vmax.f32 %v978_v10, 0.0  ;;  %v1968_v16 = vmax.f32 %v1716_v11, 0.0  ;;  %v999_v17 = vadd.f32 %v5449_v13, %v6629_v48  ;;  %v1737_v18 = vadd.f32 %v5517_v14, %v6629_v48  ;;  %5619 = vmatprep.mubr.msk.bf16.mxu0 %vm836_vm2, %v5970_v3  ;;  %5687 = vmatprep.mubr.msk.bf16.mxu1 %vm836_vm2, %v5971_v4 }
 0x145   : > { %v6657_v19 = vadd.f32 %v1970_v12, %v1232_v9  ;;  %v990_v20 = vpop.f32.mrf.mxu0  ;;  %v1728_v21 = vpop.f32.mrf.mxu1 }
 0x146   : > { %v6659_v22 = vadd.f32 %v1968_v16, %v1230_v15  ;;  %v1235_v23 = vmax.f32 %v999_v17, 0.0  ;;  %v1973_v24 = vmax.f32 %v1737_v18, 0.0  ;;  %v991_v25 = vadd.f32 %v6629_v48, %v990_v20 }
 0x147   : > { %v1729_v26 = vadd.f32 %v6629_v48, %v1728_v21  ;;  %v5450_v27 = vpop.f32.mrf.mxu0  ;;  %v5518_v28 = vpop.f32.mrf.mxu1 }
 0x148   : > { %v6665_v31 = vadd.f32 %v1973_v24, %v1235_v23  ;;  %v1233_v32 = vmax.f32 %v991_v25, 0.0  ;;  %v1002_v33 = vadd.f32 %v5450_v27, %v6629_v48  ;;  %v1740_v34 = vadd.f32 %v5518_v28, %v6629_v48 }
 0x149   : > { %v1971_v37 = vmax.f32 %v1729_v26, 0.0  ;;  %v993_v38 = vpop.f32.mrf.mxu0  ;;  %v1731_v39 = vpop.f32.mrf.mxu1 }
 0x14a   : > { %v1236_v40 = vmax.f32 %v1002_v33, 0.0  ;;  %v1974_v41 = vmax.f32 %v1740_v34, 0.0  ;;  %v994_v42 = vadd.f32 %v6629_v48, %v993_v38  ;;  %v1732_v43 = vadd.f32 %v6629_v48, %v1731_v39 }
 0x14b   : > { %v6673_v44 = vadd.f32 %v1971_v37, %v1233_v32  ;;  %v5453_v45 = vpop.f32.mrf.mxu0  ;;  %v5521_v46 = vpop.f32.mrf.mxu1  ;;  %5620 = vmatmul.mubr.msk.bf16.gmra.mxu0 %vm836_vm2, %v5972_v29  ;;  %5688 = vmatmul.mubr.msk.bf16.gmra.mxu1 %vm836_vm2, %v5973_v30 }
 0x14c   : > { %v6677_v47 = vadd.f32 %v1974_v41, %v1236_v40  ;;  %v1234_v49 = vmax.f32 %v994_v42, 0.0  ;;  %v1972_v50 = vmax.f32 %v1732_v43, 0.0  ;;  %v1015_v51 = vadd.f32 %v5453_v45, %v6629_v48  ;;  %5623 = vmatprep.mubr.msk.bf16.mxu0 %vm836_vm2, %v5974_v35  ;;  %5691 = vmatprep.mubr.msk.bf16.mxu1 %vm836_vm2, %v5975_v36  ;;  %v5980_v35 = vld [vmem:[%s6424_s14 + $0x2c8] sm:$0xff]   ;;  %v5982_v41 = vld [vmem:[%s6424_s14 + $0x2d0] sm:$0xff]  }
 0x14d   : > { %v1753_v52 = vadd.f32 %v5521_v46, %v6629_v48  ;;  %v1006_v53 = vpop.f32.mrf.mxu0  ;;  %v1744_v54 = vpop.f32.mrf.mxu1  ;;  %v5981_v36 = vld [vmem:[%s6424_s14 + $0x3c8] sm:$0xff]   ;;  %v5983_v42 = vld [vmem:[%s6424_s14 + $0x3d0] sm:$0xff]  }
 0x14e   : > { %v6683_v55 = vadd.f32 %v1972_v50, %v1234_v49  ;;  %v1239_v56 = vmax.f32 %v1015_v51, 0.0  ;;  %v1007_v57 = vadd.f32 %v6629_v48, %v1006_v53  ;;  %v1745_v58 = vadd.f32 %v6629_v48, %v1744_v54 }
 0x14f   : > { %v1977_v59 = vmax.f32 %v1753_v52, 0.0  ;;  %v5454_v60 = vpop.f32.mrf.mxu0  ;;  %v5522_v61 = vpop.f32.mrf.mxu1 }
 0x150   : > { %v1237_v1 = vmax.f32 %v1007_v57, 0.0  ;;  %v1975_v2 = vmax.f32 %v1745_v58, 0.0  ;;  %v1018_v3 = vadd.f32 %v5454_v60, %v6629_v48  ;;  %v1756_v4 = vadd.f32 %v5522_v61, %v6629_v48 }
 0x151   : > { %v6693_v7 = vadd.f32 %v1977_v59, %v1239_v56  ;;  %v1009_v9 = vpop.f32.mrf.mxu0  ;;  %v1747_v10 = vpop.f32.mrf.mxu1 }
 0x152   : > { %v6695_v11 = vadd.f32 %v1975_v2, %v1237_v1  ;;  %v1240_v12 = vmax.f32 %v1018_v3, 0.0  ;;  %v1978_v13 = vmax.f32 %v1756_v4, 0.0  ;;  %v1010_v14 = vadd.f32 %v6629_v48, %v1009_v9 }
 0x153   : > { %v1748_v15 = vadd.f32 %v6629_v48, %v1747_v10  ;;  %v5457_v16 = vpop.f32.mrf.mxu0  ;;  %v5525_v17 = vpop.f32.mrf.mxu1  ;;  %5624 = vmatmul.mubr.msk.bf16.gmra.mxu0 %vm836_vm2, %v5976_v62  ;;  %5692 = vmatmul.mubr.msk.bf16.gmra.mxu1 %vm836_vm2, %v5977_v0  ;;  %v5984_v10 = vld [vmem:[%s6424_s14 + $0x2d8] sm:$0xff]  }
 0x154   : > { %v6701_v18 = vadd.f32 %v1978_v13, %v1240_v12  ;;  %v1238_v20 = vmax.f32 %v1010_v14, 0.0  ;;  %v1031_v21 = vadd.f32 %v5457_v16, %v6629_v48  ;;  %v1769_v23 = vadd.f32 %v5525_v17, %v6629_v48  ;;  %5627 = vmatprep.mubr.msk.bf16.mxu0 %vm836_vm2, %v5978_v5  ;;  %5695 = vmatprep.mubr.msk.bf16.mxu1 %vm836_vm2, %v5979_v6  ;;  %v5985_v12 = vld [vmem:[%s6424_s14 + $0x3d8] sm:$0xff]   ;;  %v5986_v17 = vld [vmem:[%s6424_s14 + $0x2e0] sm:$0xff]  }
 0x155   : > { %v1976_v24 = vmax.f32 %v1748_v15, 0.0  ;;  %v1022_v25 = vpop.f32.mrf.mxu0  ;;  %v1760_v26 = vpop.f32.mrf.mxu1 }
 0x156   : > { %v1243_v27 = vmax.f32 %v1031_v21, 0.0  ;;  %v1981_v28 = vmax.f32 %v1769_v23, 0.0  ;;  %v1023_v29 = vadd.f32 %v6629_v48, %v1022_v25  ;;  %v1761_v30 = vadd.f32 %v6629_v48, %v1760_v26 }
 0x157   : > { %v6709_v32 = vadd.f32 %v1976_v24, %v1238_v20  ;;  %v5458_v33 = vpop.f32.mrf.mxu0  ;;  %v5526_v34 = vpop.f32.mrf.mxu1  ;;  %v5987_v20 = vld [vmem:[%s6424_s14 + $0x3e0] sm:$0xff]  }
 0x158   : > { %v6713_v37 = vadd.f32 %v1981_v28, %v1243_v27  ;;  %v1241_v38 = vmax.f32 %v1023_v29, 0.0  ;;  %v1979_v39 = vmax.f32 %v1761_v30, 0.0  ;;  %v1034_v40 = vadd.f32 %v5458_v33, %v6629_v48 }
 0x159   : > { %v1772_v43 = vadd.f32 %v5526_v34, %v6629_v48  ;;  %v1025_v45 = vpop.f32.mrf.mxu0  ;;  %v1763_v46 = vpop.f32.mrf.mxu1 }
 0x15a   : > { %v6719_v49 = vadd.f32 %v1979_v39, %v1241_v38  ;;  %v1244_v50 = vmax.f32 %v1034_v40, 0.0  ;;  %v1026_v51 = vadd.f32 %v6629_v48, %v1025_v45  ;;  %v1764_v52 = vadd.f32 %v6629_v48, %v1763_v46 }
 0x15b   : > { %v1982_v53 = vmax.f32 %v1772_v43, 0.0  ;;  %v5461_v54 = vpop.f32.mrf.mxu0  ;;  %v5529_v56 = vpop.f32.mrf.mxu1  ;;  %5628 = vmatmul.mubr.msk.bf16.gmra.mxu0 %vm836_vm2, %v5980_v35  ;;  %5696 = vmatmul.mubr.msk.bf16.gmra.mxu1 %vm836_vm2, %v5981_v36 }
 0x15c   : > { %v1242_v57 = vmax.f32 %v1026_v51, 0.0  ;;  %v1980_v58 = vmax.f32 %v1764_v52, 0.0  ;;  %v1047_v59 = vadd.f32 %v5461_v54, %v6629_v48  ;;  %v1785_v60 = vadd.f32 %v5529_v56, %v6629_v48  ;;  %5631 = vmatprep.mubr.msk.bf16.mxu0 %vm836_vm2, %v5982_v41  ;;  %5699 = vmatprep.mubr.msk.bf16.mxu1 %vm836_vm2, %v5983_v42  ;;  %v5989_v54 = vld [vmem:[%s6424_s14 + $0x3e8] sm:$0xff]  }
 0x15d   : > { %v6729_v61 = vadd.f32 %v1982_v53, %v1244_v50  ;;  %v1038_v62 = vpop.f32.mrf.mxu0  ;;  %v1776_v0 = vpop.f32.mrf.mxu1  ;;  %v5988_v53 = vld [vmem:[%s6424_s14 + $0x2e8] sm:$0xff]  }
 0x15e   : > { %v6731_v1 = vadd.f32 %v1980_v58, %v1242_v57  ;;  %v1247_v2 = vmax.f32 %v1047_v59, 0.0  ;;  %v1985_v3 = vmax.f32 %v1785_v60, 0.0  ;;  %v1039_v4 = vadd.f32 %v6629_v48, %v1038_v62  ;;  %v5990_v60 = vld [vmem:[%s6424_s14 + $0x2f0] sm:$0xff]  }
 0x15f   : > { %v1777_v5 = vadd.f32 %v6629_v48, %v1776_v0  ;;  %v5462_v6 = vpop.f32.mrf.mxu0  ;;  %v5530_v9 = vpop.f32.mrf.mxu1  ;;  %v5991_v62 = vld [vmem:[%s6424_s14 + $0x3f0] sm:$0xff]  }
 0x160   : > { %v6737_v13 = vadd.f32 %v1985_v3, %v1247_v2  ;;  %v1245_v14 = vmax.f32 %v1039_v4, 0.0  ;;  %v1050_v15 = vadd.f32 %v5462_v6, %v6629_v48  ;;  %v1788_v16 = vadd.f32 %v5530_v9, %v6629_v48 }
 0x161   : > { %v1983_v21 = vmax.f32 %v1777_v5, 0.0  ;;  %v1041_v23 = vpop.f32.mrf.mxu0  ;;  %v1779_v24 = vpop.f32.mrf.mxu1 }
 0x162   : > { %v1248_v25 = vmax.f32 %v1050_v15, 0.0  ;;  %v1986_v26 = vmax.f32 %v1788_v16, 0.0  ;;  %v1042_v27 = vadd.f32 %v6629_v48, %v1041_v23  ;;  %v1780_v28 = vadd.f32 %v6629_v48, %v1779_v24 }
 0x163   : > { %v6745_v29 = vadd.f32 %v1983_v21, %v1245_v14  ;;  %v5465_v30 = vpop.f32.mrf.mxu0  ;;  %v5533_v33 = vpop.f32.mrf.mxu1  ;;  %5632 = vmatmul.mubr.msk.bf16.gmra.mxu0 %vm836_vm2, %v5984_v10  ;;  %5700 = vmatmul.mubr.msk.bf16.gmra.mxu1 %vm836_vm2, %v5985_v12 }
 0x164   : > { %v6749_v34 = vadd.f32 %v1986_v26, %v1248_v25  ;;  %v1246_v35 = vmax.f32 %v1042_v27, 0.0  ;;  %v1984_v36 = vmax.f32 %v1780_v28, 0.0  ;;  %v1063_v38 = vadd.f32 %v5465_v30, %v6629_v48  ;;  %5635 = vmatprep.mubr.msk.bf16.mxu0 %vm836_vm2, %v5986_v17  ;;  %5703 = vmatprep.mubr.msk.bf16.mxu1 %vm836_vm2, %v5987_v20 }
 0x165   : > { %v1801_v39 = vadd.f32 %v5533_v33, %v6629_v48  ;;  %v1054_v40 = vpop.f32.mrf.mxu0  ;;  %v1792_v41 = vpop.f32.mrf.mxu1 }
 0x166   : > { %v6755_v42 = vadd.f32 %v1984_v36, %v1246_v35  ;;  %v1251_v43 = vmax.f32 %v1063_v38, 0.0  ;;  %v1055_v45 = vadd.f32 %v6629_v48, %v1054_v40  ;;  %v1793_v46 = vadd.f32 %v6629_v48, %v1792_v41  ;;  %v5992_v36 = vld [vmem:[%s6424_s14 + $0x2f8] sm:$0xff]  }
 0x167   : > { %v1989_v50 = vmax.f32 %v1801_v39, 0.0  ;;  %v5466_v51 = vpop.f32.mrf.mxu0  ;;  %v5534_v52 = vpop.f32.mrf.mxu1  ;;  %v5993_v38 = vld [vmem:[%s6424_s14 + $0x3f8] sm:$0xff]  }
 0x168   : > { %v1249_v56 = vmax.f32 %v1055_v45, 0.0  ;;  %v1987_v57 = vmax.f32 %v1793_v46, 0.0  ;;  %v1066_v58 = vadd.f32 %v5466_v51, %v6629_v48  ;;  %v1804_v59 = vadd.f32 %v5534_v52, %v6629_v48 }
 0x169   : > { %v6765_v0 = vadd.f32 %v1989_v50, %v1251_v43  ;;  %v1057_v2 = vpop.f32.mrf.mxu0  ;;  %v1795_v3 = vpop.f32.mrf.mxu1 }
 0x16a   : > { %v6767_v4 = vadd.f32 %v1987_v57, %v1249_v56  ;;  %v1252_v5 = vmax.f32 %v1066_v58, 0.0  ;;  %v1990_v6 = vmax.f32 %v1804_v59, 0.0  ;;  %v1058_v9 = vadd.f32 %v6629_v48, %v1057_v2 }
 0x16b   : > { %v1796_v10 = vadd.f32 %v6629_v48, %v1795_v3  ;;  %v5469_v12 = vpop.f32.mrf.mxu0  ;;  %v5537_v14 = vpop.f32.mrf.mxu1  ;;  %5636 = vmatmul.mubr.msk.bf16.gmra.mxu0 %vm836_vm2, %v5988_v53  ;;  %5704 = vmatmul.mubr.msk.bf16.gmra.mxu1 %vm836_vm2, %v5989_v54 }
 0x16c   : > { %v6773_v15 = vadd.f32 %v1990_v6, %v1252_v5  ;;  %v1250_v16 = vmax.f32 %v1058_v9, 0.0  ;;  %v1079_v17 = vadd.f32 %v5469_v12, %v6629_v48  ;;  %v1817_v20 = vadd.f32 %v5537_v14, %v6629_v48  ;;  %5639 = vmatprep.mubr.msk.bf16.mxu0 %vm836_vm2, %v5990_v60  ;;  %5707 = vmatprep.mubr.msk.bf16.mxu1 %vm836_vm2, %v5991_v62 }
 0x16d   : > { %v1988_v21 = vmax.f32 %v1796_v10, 0.0  ;;  %v1070_v23 = vpop.f32.mrf.mxu0  ;;  %v1808_v24 = vpop.f32.mrf.mxu1 }
 0x16e   : > { %v1255_v25 = vmax.f32 %v1079_v17, 0.0  ;;  %v1993_v26 = vmax.f32 %v1817_v20, 0.0  ;;  %v1071_v27 = vadd.f32 %v6629_v48, %v1070_v23  ;;  %v1809_v28 = vadd.f32 %v6629_v48, %v1808_v24 }
 0x16f   : > { %v6781_v30 = vadd.f32 %v1988_v21, %v1250_v16  ;;  %v5470_v33 = vpop.f32.mrf.mxu0  ;;  %v5538_v35 = vpop.f32.mrf.mxu1 }
 0x170   : > { %v6785_v39 = vadd.f32 %v1993_v26, %v1255_v25  ;;  %v1253_v40 = vmax.f32 %v1071_v27, 0.0  ;;  %v1991_v41 = vmax.f32 %v1809_v28, 0.0  ;;  %v1082_v43 = vadd.f32 %v5470_v33, %v6629_v48 }
 0x171   : > { %v1820_v45 = vadd.f32 %v5538_v35, %v6629_v48  ;;  %v1073_v46 = vpop.f32.mrf.mxu0  ;;  %v1811_v50 = vpop.f32.mrf.mxu1 }
 0x172   : > { %v6789_v51 = vadd.f32 %v1991_v41, %v1253_v40  ;;  %v1256_v52 = vmax.f32 %v1082_v43, 0.0  ;;  %v1074_v53 = vadd.f32 %v6629_v48, %v1073_v46  ;;  %v1812_v54 = vadd.f32 %v6629_v48, %v1811_v50 }
 0x173   : > { %v1994_v56 = vmax.f32 %v1820_v45, 0.0  ;;  %v5473_v57 = vpop.f32.mrf.mxu0  ;;  %v5541_v58 = vpop.f32.mrf.mxu1  ;;  %5640 = vmatmul.mubr.msk.bf16.gmra.mxu0 %vm836_vm2, %v5992_v36  ;;  %5708 = vmatmul.mubr.msk.bf16.gmra.mxu1 %vm836_vm2, %v5993_v38 }
 0x174   : > { %v1254_v59 = vmax.f32 %v1074_v53, 0.0  ;;  %v1992_v60 = vmax.f32 %v1812_v54, 0.0  ;;  %v1095_v62 = vadd.f32 %v5473_v57, %v6629_v48  ;;  %v1833_v2 = vadd.f32 %v5541_v58, %v6629_v48 }
 0x175   : > { %v6797_v3 = vadd.f32 %v1994_v56, %v1256_v52  ;;  %v1086_v5 = vpop.f32.mrf.mxu0  ;;  %v1824_v6 = vpop.f32.mrf.mxu1 }
 0x176   : > { %v6799_v9 = vadd.f32 %v1992_v60, %v1254_v59  ;;  %v1259_v10 = vmax.f32 %v1095_v62, 0.0  ;;  %v1997_v12 = vmax.f32 %v1833_v2, 0.0  ;;  %v1087_v14 = vadd.f32 %v6629_v48, %v1086_v5 }
 0x177   : > { %v1825_v16 = vadd.f32 %v6629_v48, %v1824_v6  ;;  %v5474_v17 = vpop.f32.mrf.mxu0  ;;  %v5542_v20 = vpop.f32.mrf.mxu1 }
 0x178   : > { %v6803_v21 = vadd.f32 %v1997_v12, %v1259_v10  ;;  %v1257_v23 = vmax.f32 %v1087_v14, 0.0  ;;  %v1098_v24 = vadd.f32 %v5474_v17, %v6629_v48  ;;  %v1836_v25 = vadd.f32 %v5542_v20, %v6629_v48 }
 0x179   : > { %v1995_v26 = vmax.f32 %v1825_v16, 0.0  ;;  %v1089_v27 = vpop.f32.mrf.mxu0  ;;  %v1827_v28 = vpop.f32.mrf.mxu1 }
 0x17a   : > { %v1260_v33 = vmax.f32 %v1098_v24, 0.0  ;;  %v1998_v35 = vmax.f32 %v1836_v25, 0.0  ;;  %v1090_v36 = vadd.f32 %v6629_v48, %v1089_v27  ;;  %v1828_v38 = vadd.f32 %v6629_v48, %v1827_v28 }
 0x17b   : > { %v6809_v40 = vadd.f32 %v1995_v26, %v1257_v23  ;;  %v5477_v41 = vpop.f32.mrf.mxu0  ;;  %v5545_v43 = vpop.f32.mrf.mxu1 }
 0x17c   : > { %v6811_v45 = vadd.f32 %v1998_v35, %v1260_v33  ;;  %v1258_v46 = vmax.f32 %v1090_v36, 0.0  ;;  %v1996_v50 = vmax.f32 %v1828_v38, 0.0  ;;  %v1111_v52 = vadd.f32 %v5477_v41, %v6629_v48 }
 0x17d   : > { %v1849_v53 = vadd.f32 %v5545_v43, %v6629_v48  ;;  %v1102_v54 = vpop.f32.mrf.mxu0  ;;  %v1840_v56 = vpop.f32.mrf.mxu1 }
 0x17e   : > { %v6815_v57 = vadd.f32 %v1996_v50, %v1258_v46  ;;  %v1263_v58 = vmax.f32 %v1111_v52, 0.0  ;;  %v1103_v59 = vadd.f32 %v6629_v48, %v1102_v54  ;;  %v1841_v60 = vadd.f32 %v6629_v48, %v1840_v56 }
 0x17f   : > { %v2001_v62 = vmax.f32 %v1849_v53, 0.0  ;;  %v5478_v2 = vpop.f32.mrf.mxu0  ;;  %v5546_v5 = vpop.f32.mrf.mxu1 }
 0x180   : > { %v1261_v6 = vmax.f32 %v1103_v59, 0.0  ;;  %v1999_v10 = vmax.f32 %v1841_v60, 0.0  ;;  %v1114_v12 = vadd.f32 %v5478_v2, %v6629_v48  ;;  %v1852_v14 = vadd.f32 %v5546_v5, %v6629_v48 }
 0x181   : > { %v6821_v16 = vadd.f32 %v2001_v62, %v1263_v58  ;;  %v1105_v17 = vpop.f32.mrf.mxu0  ;;  %v1843_v20 = vpop.f32.mrf.mxu1 }
 0x182   : > { %v6823_v23 = vadd.f32 %v1999_v10, %v1261_v6  ;;  %v1264_v24 = vmax.f32 %v1114_v12, 0.0  ;;  %v2002_v25 = vmax.f32 %v1852_v14, 0.0  ;;  %v1106_v26 = vadd.f32 %v6629_v48, %v1105_v17 }
 0x183   : > { %v1844_v27 = vadd.f32 %v6629_v48, %v1843_v20  ;;  %v5481_v28 = vpop.f32.mrf.mxu0  ;;  %v5549_v33 = vpop.f32.mrf.mxu1 }
 0x184   : > { %v6827_v35 = vadd.f32 %v2002_v25, %v1264_v24  ;;  %v1262_v36 = vmax.f32 %v1106_v26, 0.0  ;;  %v1127_v38 = vadd.f32 %v5481_v28, %v6629_v48  ;;  %v1865_v41 = vadd.f32 %v5549_v33, %v6629_v48 }
 0x185   : > { %v2000_v43 = vmax.f32 %v1844_v27, 0.0  ;;  %v1118_v46 = vpop.f32.mrf.mxu0  ;;  %v1856_v50 = vpop.f32.mrf.mxu1 }
 0x186   : > { %v1267_v52 = vmax.f32 %v1127_v38, 0.0  ;;  %v2005_v53 = vmax.f32 %v1865_v41, 0.0  ;;  %v1119_v54 = vadd.f32 %v6629_v48, %v1118_v46  ;;  %v1857_v56 = vadd.f32 %v6629_v48, %v1856_v50 }
 0x187   : > { %v6833_v58 = vadd.f32 %v2000_v43, %v1262_v36  ;;  %v5482_v59 = vpop.f32.mrf.mxu0  ;;  %v5550_v60 = vpop.f32.mrf.mxu1 }
 0x188   : > { %v6835_v62 = vadd.f32 %v2005_v53, %v1267_v52  ;;  %v1265_v2 = vmax.f32 %v1119_v54, 0.0  ;;  %v2003_v5 = vmax.f32 %v1857_v56, 0.0  ;;  %v1130_v6 = vadd.f32 %v5482_v59, %v6629_v48 }
 0x189   : > { %v1868_v10 = vadd.f32 %v5550_v60, %v6629_v48  ;;  %v1121_v12 = vpop.f32.mrf.mxu0  ;;  %v1859_v14 = vpop.f32.mrf.mxu1 }
 0x18a   : > { %v6839_v17 = vadd.f32 %v2003_v5, %v1265_v2  ;;  %v1268_v20 = vmax.f32 %v1130_v6, 0.0  ;;  %v1122_v24 = vadd.f32 %v6629_v48, %v1121_v12  ;;  %v1860_v25 = vadd.f32 %v6629_v48, %v1859_v14 }
 0x18b   : > { %v2006_v26 = vmax.f32 %v1868_v10, 0.0  ;;  %v5485_v27 = vpop.f32.mrf.mxu0  ;;  %v5553_v28 = vpop.f32.mrf.mxu1 }
 0x18c   : > { %v1266_v33 = vmax.f32 %v1122_v24, 0.0  ;;  %v2004_v36 = vmax.f32 %v1860_v25, 0.0  ;;  %v1143_v38 = vadd.f32 %v5485_v27, %v6629_v48  ;;  %v1881_v41 = vadd.f32 %v5553_v28, %v6629_v48 }
 0x18d   : > { %v6845_v43 = vadd.f32 %v2006_v26, %v1268_v20  ;;  %v1134_v46 = vpop.f32.mrf.mxu0  ;;  %v1872_v50 = vpop.f32.mrf.mxu1 }
 0x18e   : > { %v6847_v52 = vadd.f32 %v2004_v36, %v1266_v33  ;;  %v1271_v53 = vmax.f32 %v1143_v38, 0.0  ;;  %v2009_v54 = vmax.f32 %v1881_v41, 0.0  ;;  %v1135_v56 = vadd.f32 %v6629_v48, %v1134_v46 }
 0x18f   : > { %v1873_v59 = vadd.f32 %v6629_v48, %v1872_v50  ;;  %v5486_v60 = vpop.f32.mrf.mxu0  ;;  %v5554_v2 = vpop.f32.mrf.mxu1 }
 0x190   : > { %v6851_v5 = vadd.f32 %v2009_v54, %v1271_v53  ;;  %v1269_v6 = vmax.f32 %v1135_v56, 0.0  ;;  %v1146_v10 = vadd.f32 %v5486_v60, %v6629_v48  ;;  %v1884_v12 = vadd.f32 %v5554_v2, %v6629_v48 }
 0x191   : > { %v2007_v14 = vmax.f32 %v1873_v59, 0.0  ;;  %v1137_v20 = vpop.f32.mrf.mxu0  ;;  %v1875_v24 = vpop.f32.mrf.mxu1 }
 0x192   : > { %v1272_v25 = vmax.f32 %v1146_v10, 0.0  ;;  %v2010_v26 = vmax.f32 %v1884_v12, 0.0  ;;  %v1138_v27 = vadd.f32 %v6629_v48, %v1137_v20  ;;  %v1876_v28 = vadd.f32 %v6629_v48, %v1875_v24 }
 0x193   : > { %v6857_v33 = vadd.f32 %v2007_v14, %v1269_v6  ;;  %v5489_v36 = vpop.f32.mrf.mxu0  ;;  %v5557_v38 = vpop.f32.mrf.mxu1 }
 0x194   : > { %v6859_v41 = vadd.f32 %v2010_v26, %v1272_v25  ;;  %v1270_v46 = vmax.f32 %v1138_v27, 0.0  ;;  %v2008_v50 = vmax.f32 %v1876_v28, 0.0  ;;  %v1159_v53 = vadd.f32 %v5489_v36, %v6629_v48 }
 0x195   : > { %7390 = vst [vmem:[#allocation4_spill] sm:$0xff] %v6857_v33  ;;  %v1897_v54 = vadd.f32 %v5557_v38, %v6629_v48  ;;  %v1150_v56 = vpop.f32.mrf.mxu0  ;;  %v1888_v59 = vpop.f32.mrf.mxu1 }
 0x196   : > { %7391 = vst [vmem:[#allocation5_spill] sm:$0xff] %v6859_v41  ;;  %v6863_v60 = vadd.f32 %v2008_v50, %v1270_v46  ;;  %v1275_v2 = vmax.f32 %v1159_v53, 0.0  ;;  %v1151_v10 = vadd.f32 %v6629_v48, %v1150_v56  ;;  %v1889_v6 = vadd.f32 %v6629_v48, %v1888_v59 }
 0x197   : > { %v2013_v12 = vmax.f32 %v1897_v54, 0.0  ;;  %v5490_v14 = vpop.f32.mrf.mxu0  ;;  %v5558_v20 = vpop.f32.mrf.mxu1 }
 0x198   : > { %7392 = vst [vmem:[#allocation6_spill] sm:$0xff] %v6863_v60  ;;  %v1273_v24 = vmax.f32 %v1151_v10, 0.0  ;;  %v2011_v25 = vmax.f32 %v1889_v6, 0.0  ;;  %v1162_v26 = vadd.f32 %v5490_v14, %v6629_v48  ;;  %v1900_v27 = vadd.f32 %v5558_v20, %v6629_v48 }
 0x199   : > { %v6869_v28 = vadd.f32 %v2013_v12, %v1275_v2  ;;  %v1153_v36 = vpop.f32.mrf.mxu0  ;;  %v1891_v38 = vpop.f32.mrf.mxu1 }
 0x19a   : > { %v6871_v46 = vadd.f32 %v2011_v25, %v1273_v24  ;;  %v1276_v50 = vmax.f32 %v1162_v26, 0.0  ;;  %v2014_v53 = vmax.f32 %v1900_v27, 0.0  ;;  %v1154_v56 = vadd.f32 %v6629_v48, %v1153_v36 }
 0x19b   : > { %7393 = vst [vmem:[#allocation7_spill] sm:$0xff] %v6869_v28  ;;  %v1892_v54 = vadd.f32 %v6629_v48, %v1891_v38  ;;  %v5493_v59 = vpop.f32.mrf.mxu0  ;;  %v5561_v60 = vpop.f32.mrf.mxu1 }
 0x19c   : > { %7394 = vst [vmem:[#allocation8_spill] sm:$0xff] %v6871_v46  ;;  %v6875_v10 = vadd.f32 %v2014_v53, %v1276_v50  ;;  %v1274_v6 = vmax.f32 %v1154_v56, 0.0  ;;  %v1175_v14 = vadd.f32 %v5493_v59, %v6629_v48  ;;  %v1913_v2 = vadd.f32 %v5561_v60, %v6629_v48 }
 0x19d   : > { %v2012_v12 = vmax.f32 %v1892_v54, 0.0  ;;  %v1166_v20 = vpop.f32.mrf.mxu0  ;;  %v1904_v28 = vpop.f32.mrf.mxu1 }
 0x19e   : > { %7395 = vst [vmem:[#allocation9_spill] sm:$0xff] %v6875_v10  ;;  %v1279_v24 = vmax.f32 %v1175_v14, 0.0  ;;  %v2017_v25 = vmax.f32 %v1913_v2, 0.0  ;;  %v1167_v26 = vadd.f32 %v6629_v48, %v1166_v20  ;;  %v1905_v27 = vadd.f32 %v6629_v48, %v1904_v28 }
 0x19f   : > { %v6881_v36 = vadd.f32 %v2012_v12, %v1274_v6  ;;  %v5494_v38 = vpop.f32.mrf.mxu0  ;;  %v5562_v46 = vpop.f32.mrf.mxu1 }
 0x1a0   : > { %v6883_v50 = vadd.f32 %v2017_v25, %v1279_v24  ;;  %v1277_v53 = vmax.f32 %v1167_v26, 0.0  ;;  %v2015_v56 = vmax.f32 %v1905_v27, 0.0  ;;  %v1178_v59 = vadd.f32 %v5494_v38, %v6629_v48 }
 0x1a1   : > { %7396 = vst [vmem:[#allocation10_spill] sm:$0xff] %v6881_v36  ;;  %v1916_v60 = vadd.f32 %v5562_v46, %v6629_v48  ;;  %v1169_v54 = vpop.f32.mrf.mxu0  ;;  %v1907_v10 = vpop.f32.mrf.mxu1 }
 0x1a2   : > { %7397 = vst [vmem:[#allocation11_spill] sm:$0xff] %v6883_v50  ;;  %v6887_v14 = vadd.f32 %v2015_v56, %v1277_v53  ;;  %v1280_v2 = vmax.f32 %v1178_v59, 0.0  ;;  %v1170_v20 = vadd.f32 %v6629_v48, %v1169_v54  ;;  %v1908_v28 = vadd.f32 %v6629_v48, %v1907_v10 }
 0x1a3   : > { %v2018_v6 = vmax.f32 %v1916_v60, 0.0  ;;  %v5497_v12 = vpop.f32.mrf.mxu0  ;;  %v5565_v36 = vpop.f32.mrf.mxu1 }
 0x1a4   : > { %7398 = vst [vmem:[#allocation12_spill] sm:$0xff] %v6887_v14  ;;  %v1278_v24 = vmax.f32 %v1170_v20, 0.0  ;;  %v2016_v25 = vmax.f32 %v1908_v28, 0.0  ;;  %v1191_v26 = vadd.f32 %v5497_v12, %v6629_v48  ;;  %v1929_v27 = vadd.f32 %v5565_v36, %v6629_v48 }
 0x1a5   : > { %v6893_v38 = vadd.f32 %v2018_v6, %v1280_v2  ;;  %v1182_v46 = vpop.f32.mrf.mxu0  ;;  %v1920_v50 = vpop.f32.mrf.mxu1 }
 0x1a6   : > { %v6895_v53 = vadd.f32 %v2016_v25, %v1278_v24  ;;  %v1283_v56 = vmax.f32 %v1191_v26, 0.0  ;;  %v2021_v59 = vmax.f32 %v1929_v27, 0.0  ;;  %v1183_v54 = vadd.f32 %v6629_v48, %v1182_v46 }
 0x1a7   : > { %7399 = vst [vmem:[#allocation13_spill] sm:$0xff] %v6893_v38  ;;  %v1921_v10 = vadd.f32 %v6629_v48, %v1920_v50  ;;  %v5498_v60 = vpop.f32.mrf.mxu0  ;;  %v5566_v14 = vpop.f32.mrf.mxu1 }
 0x1a8   : > { %7400 = vst [vmem:[#allocation14_spill] sm:$0xff] %v6895_v53  ;;  %v6899_v20 = vadd.f32 %v2021_v59, %v1283_v56  ;;  %v1281_v28 = vmax.f32 %v1183_v54, 0.0  ;;  %v1194_v12 = vadd.f32 %v5498_v60, %v6629_v48  ;;  %v1932_v36 = vadd.f32 %v5566_v14, %v6629_v48 }
 0x1a9   : > { %v2019_v2 = vmax.f32 %v1921_v10, 0.0  ;;  %v1185_v6 = vpop.f32.mrf.mxu0  ;;  %v1923_v38 = vpop.f32.mrf.mxu1 }
 0x1aa   : > { %7401 = vst [vmem:[#allocation15_spill] sm:$0xff] %v6899_v20  ;;  %v1284_v24 = vmax.f32 %v1194_v12, 0.0  ;;  %v2022_v25 = vmax.f32 %v1932_v36, 0.0  ;;  %v1186_v26 = vadd.f32 %v6629_v48, %v1185_v6  ;;  %v1924_v27 = vadd.f32 %v6629_v48, %v1923_v38 }
 0x1ab   : > { %v6905_v46 = vadd.f32 %v2019_v2, %v1281_v28  ;;  %v5501_v50 = vpop.f32.mrf.mxu0  ;;  %v5569_v53 = vpop.f32.mrf.mxu1 }
 0x1ac   : > { %v6907_v56 = vadd.f32 %v2022_v25, %v1284_v24  ;;  %v1282_v59 = vmax.f32 %v1186_v26, 0.0  ;;  %v2020_v54 = vmax.f32 %v1924_v27, 0.0  ;;  %v1207_v60 = vadd.f32 %v5501_v50, %v6629_v48 }
 0x1ad   : > { %7402 = vst [vmem:[#allocation16_spill] sm:$0xff] %v6905_v46  ;;  %v1945_v14 = vadd.f32 %v5569_v53, %v6629_v48  ;;  %v1198_v10 = vpop.f32.mrf.mxu0  ;;  %v1936_v20 = vpop.f32.mrf.mxu1 }
 0x1ae   : > { %7403 = vst [vmem:[#allocation17_spill] sm:$0xff] %v6907_v56  ;;  %v6911_v12 = vadd.f32 %v2020_v54, %v1282_v59  ;;  %v1287_v36 = vmax.f32 %v1207_v60, 0.0  ;;  %v1199_v6 = vadd.f32 %v6629_v48, %v1198_v10  ;;  %v1937_v38 = vadd.f32 %v6629_v48, %v1936_v20 }
 0x1af   : > { %v2025_v28 = vmax.f32 %v1945_v14, 0.0  ;;  %v5502_v2 = vpop.f32.mrf.mxu0  ;;  %v5570_v46 = vpop.f32.mrf.mxu1 }
 0x1b0   : > { %7404 = vst [vmem:[#allocation18_spill] sm:$0xff] %v6911_v12  ;;  %v1285_v24 = vmax.f32 %v1199_v6, 0.0  ;;  %v2023_v25 = vmax.f32 %v1937_v38, 0.0  ;;  %v1210_v26 = vadd.f32 %v5502_v2, %v6629_v48  ;;  %v1948_v27 = vadd.f32 %v5570_v46, %v6629_v48 }
 0x1b1   : > { %v6917_v50 = vadd.f32 %v2025_v28, %v1287_v36  ;;  %v1201_v53 = vpop.f32.mrf.mxu0  ;;  %v1939_v56 = vpop.f32.mrf.mxu1 }
 0x1b2   : > { %v6919_v59 = vadd.f32 %v2023_v25, %v1285_v24  ;;  %v1288_v54 = vmax.f32 %v1210_v26, 0.0  ;;  %v2026_v60 = vmax.f32 %v1948_v27, 0.0  ;;  %v1202_v10 = vadd.f32 %v6629_v48, %v1201_v53 }
 0x1b3   : > { %7405 = vst [vmem:[#allocation19_spill] sm:$0xff] %v6917_v50  ;;  %v1940_v20 = vadd.f32 %v6629_v48, %v1939_v56  ;;  %v5505_v14 = vpop.f32.mrf.mxu0  ;;  %v5573_v12 = vpop.f32.mrf.mxu1 }
 0x1b4   : > { %7406 = vst [vmem:[#allocation20_spill] sm:$0xff] %v6919_v59  ;;  %v6923_v6 = vadd.f32 %v2026_v60, %v1288_v54  ;;  %v1286_v38 = vmax.f32 %v1202_v10, 0.0  ;;  %v1223_v2 = vadd.f32 %v5505_v14, %v6629_v48  ;;  %v1961_v46 = vadd.f32 %v5573_v12, %v6629_v48 }
 0x1b5   : > { %v2024_v36 = vmax.f32 %v1940_v20, 0.0  ;;  %v1214_v28 = vpop.f32.mrf.mxu0  ;;  %v1952_v50 = vpop.f32.mrf.mxu1 }
 0x1b6   : > { %7407 = vst [vmem:[#allocation21_spill] sm:$0xff] %v6923_v6  ;;  %v1291_v24 = vmax.f32 %v1223_v2, 0.0  ;;  %v2029_v25 = vmax.f32 %v1961_v46, 0.0  ;;  %v1215_v26 = vadd.f32 %v6629_v48, %v1214_v28  ;;  %v1953_v27 = vadd.f32 %v6629_v48, %v1952_v50 }
 0x1b7   : > { %v6929_v53 = vadd.f32 %v2024_v36, %v1286_v38  ;;  %v5506_v56 = vpop.f32.mrf.mxu0  ;;  %v5574_v59 = vpop.f32.mrf.mxu1 }
 0x1b8   : > { %v6931_v54 = vadd.f32 %v2029_v25, %v1291_v24  ;;  %v1289_v60 = vmax.f32 %v1215_v26, 0.0  ;;  %v2027_v10 = vmax.f32 %v1953_v27, 0.0  ;;  %v1226_v14 = vadd.f32 %v5506_v56, %v6629_v48 }
 0x1b9   : > { %7408 = vst [vmem:[#allocation22_spill] sm:$0xff] %v6929_v53  ;;  %v1964_v12 = vadd.f32 %v5574_v59, %v6629_v48  ;;  %v1217_v20 = vpop.f32.mrf.mxu0  ;;  %v1955_v6 = vpop.f32.mrf.mxu1 }
 0x1ba   : > { %7409 = vst [vmem:[#allocation23_spill] sm:$0xff] %v6931_v54  ;;  %v6935_v2 = vadd.f32 %v2027_v10, %v1289_v60  ;;  %v1292_v46 = vmax.f32 %v1226_v14, 0.0  ;;  %v1218_v28 = vadd.f32 %v6629_v48, %v1217_v20  ;;  %v1956_v50 = vadd.f32 %v6629_v48, %v1955_v6  ;;  %v6948_v6 = vld [vmem:[%s7382_s2] ss:$0 sm:$0xff] }
 0x1bb   : > { %v2030_v38 = vmax.f32 %v1964_v12, 0.0  ;;  %v5581_v36 = vpop.f32.mrf.mxu0  ;;  %v5649_v53 = vpop.f32.mrf.mxu1 }
 0x1bc   : > { %7410 = vst [vmem:[#allocation24_spill] sm:$0xff] %v6935_v2  ;;  %v1290_v24 = vmax.f32 %v1218_v28, 0.0  ;;  %v2028_v25 = vmax.f32 %v1956_v50, 0.0  ;;  %v2459_v26 = vadd.f32 %v5581_v36, %v6629_v48  ;;  %v3197_v27 = vadd.f32 %v5649_v53, %v6629_v48 }
 0x1bd   : > { %v6941_v56 = vadd.f32 %v2030_v38, %v1292_v46  ;;  %v2450_v59 = vpop.f32.mrf.mxu0  ;;  %v3188_v54 = vpop.f32.mrf.mxu1 }
 0x1be   : > { %v6943_v60 = vadd.f32 %v2028_v25, %v1290_v24  ;;  %v2707_v10 = vmax.f32 %v2459_v26, 0.0  ;;  %v3445_v14 = vmax.f32 %v3197_v27, 0.0  ;;  %v2451_v12 = vadd.f32 %v6948_v6, %v2450_v59 }
 0x1bf   : > { %7411 = vst [vmem:[#allocation25_spill] sm:$0xff] %v6941_v56  ;;  %v3189_v20 = vadd.f32 %v6948_v6, %v3188_v54  ;;  %v5582_v28 = vpop.f32.mrf.mxu0  ;;  %v5650_v50 = vpop.f32.mrf.mxu1 }
 0x1c0   : > { %7412 = vst [vmem:[#allocation26_spill] sm:$0xff] %v6943_v60  ;;  %v2771_v48 = vadd.f32 %v2707_v10, %v6641_v63  ;;  %v2705_v53 = vmax.f32 %v2451_v12, 0.0  ;;  %v2462_v46 = vadd.f32 %v6948_v6, %v5582_v28  ;;  %v3200_v38 = vadd.f32 %v6948_v6, %v5650_v50 }
 0x1c1   : > { %v2453_v36 = vpop.f32.mrf.mxu0  ;;  %v3191_v24 = vpop.f32.mrf.mxu1  ;;  %v3443_v2 = vmax.f32 %v3189_v20, 0.0 }
 0x1c2   : > { %v3509_v25 = vadd.f32 %v3445_v14, %v2771_v48  ;;  %v2769_v26 = vadd.f32 %v2705_v53, %v6647_v8  ;;  %v2708_v27 = vmax.f32 %v2462_v46, 0.0  ;;  %v2454_v59 = vadd.f32 %v6948_v6, %v2453_v36 }
 0x1c3   : > { %v3192_v54 = vadd.f32 %v6948_v6, %v3191_v24  ;;  %v5585_v60 = vpop.f32.mrf.mxu0  ;;  %v5653_v56 = vpop.f32.mrf.mxu1  ;;  %v3446_v10 = vmax.f32 %v3200_v38, 0.0 }
 0x1c4   : > { %v2772_v63 = vadd.f32 %v2708_v27, %v6657_v19  ;;  %v2475_v12 = vadd.f32 %v6948_v6, %v5585_v60  ;;  %v3573_v28 = vmul.f32 0.25, %v3509_v25  ;;  %v2706_v50 = vmax.f32 %v2454_v59, 0.0 }
 0x1c5   : > { %v3213_v14 = vadd.f32 %v6948_v6, %v5653_v56  ;;  %v2466_v48 = vpop.f32.mrf.mxu0  ;;  %v3204_v8 = vpop.f32.mrf.mxu1  ;;  %v3507_v53 = vadd.f32 %v3443_v2, %v2769_v26  ;;  %v3444_v41 = vmax.f32 %v3192_v54, 0.0 }
 0x1c6   : > { %v3510_v46 = vadd.f32 %v3446_v10, %v2772_v63  ;;  %v2711_v36 = vmax.f32 %v2475_v12, 0.0  ;;  %v2467_v24 = vadd.f32 %v6948_v6, %v2466_v48  ;;  %v2770_v20 = vadd.f32 %v2706_v50, %v6659_v22 }
 0x1c7   : > { %v3449_v19 = vmax.f32 %v3213_v14, 0.0  ;;  %v3205_v38 = vadd.f32 %v6948_v6, %v3204_v8  ;;  %v5586_v60 = vpop.f32.mrf.mxu0  ;;  %v5654_v25 = vpop.f32.mrf.mxu1  ;;  %v3571_v50 = vmul.f32 0.25, %v3507_v53 }
 0x1c8   : > { %v3574_v27 = vmul.f32 0.25, %v3510_v46  ;;  %v2775_v56 = vadd.f32 %v2711_v36, %v6665_v31  ;;  %v2709_v59 = vmax.f32 %v2467_v24, 0.0  ;;  %v2478_v2 = vadd.f32 %v6948_v6, %v5586_v60 }
 0x1c9   : > { %v3508_v26 = vadd.f32 %v3444_v41, %v2770_v20  ;;  %v3216_v63 = vadd.f32 %v6948_v6, %v5654_v25  ;;  %v2469_v10 = vpop.f32.mrf.mxu0  ;;  %v3207_v12 = vpop.f32.mrf.mxu1  ;;  %v3447_v41 = vmax.f32 %v3205_v38, 0.0 }
 0x1ca   : > { %v5120_v48 = vpack.c.bf16 %v3574_v27, %v3573_v28  ;;  %v3513_v33 = vadd.f32 %v3449_v19, %v2775_v56  ;;  %v2773_v22 = vadd.f32 %v2709_v59, %v6673_v44  ;;  %v2712_v54 = vmax.f32 %v2478_v2, 0.0 }
 0x1cb   : > { %v3572_v14 = vmul.f32 0.25, %v3508_v26  ;;  %v2470_v8 = vadd.f32 %v6948_v6, %v2469_v10  ;;  %v3208_v46 = vadd.f32 %v6948_v6, %v3207_v12  ;;  %v5589_v31 = vpop.f32.mrf.mxu0  ;;  %v5657_v36 = vpop.f32.mrf.mxu1  ;;  %v3450_v24 = vmax.f32 %v3216_v63, 0.0 }
 0x1cc   : > { %5272 = vst [vmem:[%s6972_s12 + $0x8] sm:$0xff] %v5120_v48   ;;  %v2776_v28 = vadd.f32 %v2712_v54, %v6677_v47  ;;  %v2491_v44 = vadd.f32 %v6948_v6, %v5589_v31  ;;  %v3577_v53 = vmul.f32 0.25, %v3513_v33  ;;  %v3229_v60 = vadd.f32 %v6948_v6, %v5657_v36 }
 0x1cd   : > { %v5115_v20 = vpack.c.bf16 %v3572_v14, %v3571_v50  ;;  %v2710_v19 = vmax.f32 %v2470_v8, 0.0  ;;  %v2482_v25 = vpop.f32.mrf.mxu0  ;;  %v3220_v27 = vpop.f32.mrf.mxu1  ;;  %v3511_v56 = vadd.f32 %v3447_v41, %v2773_v22  ;;  %v3448_v10 = vmax.f32 %v3208_v46, 0.0 }
 0x1ce   : > { %v3514_v59 = vadd.f32 %v3450_v24, %v2776_v28  ;;  %v2715_v2 = vmax.f32 %v2491_v44, 0.0  ;;  %v2483_v26 = vadd.f32 %v6948_v6, %v2482_v25  ;;  %v3453_v47 = vmax.f32 %v3229_v60, 0.0 }
 0x1cf   : > { %5116 = vst [vmem:[%s6972_s12] sm:$0xff] %v5115_v20   ;;  %v2774_v38 = vadd.f32 %v2710_v19, %v6683_v55  ;;  %v3221_v63 = vadd.f32 %v6948_v6, %v3220_v27  ;;  %v5590_v12 = vpop.f32.mrf.mxu0  ;;  %v5658_v48 = vpop.f32.mrf.mxu1  ;;  %v3575_v24 = vmul.f32 0.25, %v3511_v56 }
 0x1d0   : > { %v3578_v33 = vmul.f32 0.25, %v3514_v59  ;;  %v2779_v54 = vadd.f32 %v2715_v2, %v6693_v7  ;;  %v2713_v50 = vmax.f32 %v2483_v26, 0.0  ;;  %v2494_v22 = vadd.f32 %v6948_v6, %v5590_v12 }
 0x1d1   : > { %v3512_v14 = vadd.f32 %v3448_v10, %v2774_v38  ;;  %v3232_v8 = vadd.f32 %v6948_v6, %v5658_v48  ;;  %v2485_v31 = vpop.f32.mrf.mxu0  ;;  %v3223_v36 = vpop.f32.mrf.mxu1  ;;  %v3451_v25 = vmax.f32 %v3221_v63, 0.0 }
 0x1d2   : > { %v5130_v41 = vpack.c.bf16 %v3578_v33, %v3577_v53  ;;  %v3517_v55 = vadd.f32 %v3453_v47, %v2779_v54  ;;  %v2777_v46 = vadd.f32 %v2713_v50, %v6695_v11  ;;  %v2716_v28 = vmax.f32 %v2494_v22, 0.0 }
 0x1d3   : > { %v3576_v44 = vmul.f32 0.25, %v3512_v14  ;;  %v2486_v20 = vadd.f32 %v6948_v6, %v2485_v31  ;;  %v3224_v7 = vadd.f32 %v6948_v6, %v3223_v36  ;;  %v5593_v19 = vpop.f32.mrf.mxu0  ;;  %v5661_v60 = vpop.f32.mrf.mxu1  ;;  %v3454_v59 = vmax.f32 %v3232_v8, 0.0 }
 0x1d4   : > { %5274 = vst [vmem:[%s6972_s12 + $0x18] sm:$0xff] %v5130_v41   ;;  %v2780_v27 = vadd.f32 %v2716_v28, %v6701_v18  ;;  %v2507_v53 = vadd.f32 %v6948_v6, %v5593_v19  ;;  %v3581_v26 = vmul.f32 0.25, %v3517_v55  ;;  %v3245_v56 = vadd.f32 %v6948_v6, %v5661_v60 }
 0x1d5   : > { %v5125_v2 = vpack.c.bf16 %v3576_v44, %v3575_v24  ;;  %v2714_v11 = vmax.f32 %v2486_v20, 0.0  ;;  %v2498_v38 = vpop.f32.mrf.mxu0  ;;  %v3236_v10 = vpop.f32.mrf.mxu1  ;;  %v3515_v47 = vadd.f32 %v3451_v25, %v2777_v46  ;;  %v3452_v54 = vmax.f32 %v3224_v7, 0.0 }
 0x1d6   : > { %v3518_v12 = vadd.f32 %v3454_v59, %v2780_v27  ;;  %v2719_v48 = vmax.f32 %v2507_v53, 0.0  ;;  %v2499_v33 = vadd.f32 %v6948_v6, %v2498_v38  ;;  %v3457_v18 = vmax.f32 %v3245_v56, 0.0 }
 0x1d7   : > { %5273 = vst [vmem:[%s6972_s12 + $0x10] sm:$0xff] %v5125_v2   ;;  %v2778_v63 = vadd.f32 %v2714_v11, %v6709_v32  ;;  %v3237_v50 = vadd.f32 %v6948_v6, %v3236_v10  ;;  %v5594_v22 = vpop.f32.mrf.mxu0  ;;  %v5662_v14 = vpop.f32.mrf.mxu1  ;;  %v3579_v19 = vmul.f32 0.25, %v3515_v47 }
 0x1d8   : > { %v3582_v8 = vmul.f32 0.25, %v3518_v12  ;;  %v2783_v31 = vadd.f32 %v2719_v48, %v6713_v37  ;;  %v2717_v36 = vmax.f32 %v2499_v33, 0.0  ;;  %v2510_v41 = vadd.f32 %v6948_v6, %v5594_v22 }
 0x1d9   : > { %v3516_v55 = vadd.f32 %v3452_v54, %v2778_v63  ;;  %v3248_v46 = vadd.f32 %v6948_v6, %v5662_v14  ;;  %v2501_v28 = vpop.f32.mrf.mxu0  ;;  %v3239_v24 = vpop.f32.mrf.mxu1  ;;  %v3455_v53 = vmax.f32 %v3237_v50, 0.0 }
 0x1da   : > { %v5140_v44 = vpack.c.bf16 %v3582_v8, %v3581_v26  ;;  %v3521_v32 = vadd.f32 %v3457_v18, %v2783_v31  ;;  %v2781_v20 = vadd.f32 %v2717_v36, %v6719_v49  ;;  %v2720_v7 = vmax.f32 %v2510_v41, 0.0 }
 0x1db   : > { %v3580_v60 = vmul.f32 0.25, %v3516_v55  ;;  %v2502_v25 = vadd.f32 %v6948_v6, %v2501_v28  ;;  %v3240_v37 = vadd.f32 %v6948_v6, %v3239_v24  ;;  %v5597_v27 = vpop.f32.mrf.mxu0  ;;  %v5665_v59 = vpop.f32.mrf.mxu1  ;;  %v3458_v11 = vmax.f32 %v3248_v46, 0.0 }
 0x1dc   : > { %5276 = vst [vmem:[%s6972_s12 + $0x28] sm:$0xff] %v5140_v44   ;;  %v2784_v2 = vadd.f32 %v2720_v7, %v6729_v61  ;;  %v2523_v26 = vadd.f32 %v6948_v6, %v5597_v27  ;;  %v3585_v38 = vmul.f32 0.25, %v3521_v32  ;;  %v3261_v10 = vadd.f32 %v6948_v6, %v5665_v59 }
 0x1dd   : > { %v5135_v56 = vpack.c.bf16 %v3580_v60, %v3579_v19  ;;  %v2718_v49 = vmax.f32 %v2502_v25, 0.0  ;;  %v2514_v47 = vpop.f32.mrf.mxu0  ;;  %v3252_v12 = vpop.f32.mrf.mxu1  ;;  %v3519_v48 = vadd.f32 %v3455_v53, %v2781_v20  ;;  %v3456_v50 = vmax.f32 %v3240_v37, 0.0 }
 0x1de   : > { %v3522_v33 = vadd.f32 %v3458_v11, %v2784_v2  ;;  %v2723_v63 = vmax.f32 %v2523_v26, 0.0  ;;  %v2515_v54 = vadd.f32 %v6948_v6, %v2514_v47  ;;  %v3461_v61 = vmax.f32 %v3261_v10, 0.0 }
 0x1df   : > { %5275 = vst [vmem:[%s6972_s12 + $0x20] sm:$0xff] %v5135_v56   ;;  %v2782_v18 = vadd.f32 %v2718_v49, %v6731_v1  ;;  %v3253_v22 = vadd.f32 %v6948_v6, %v3252_v12  ;;  %v5598_v14 = vpop.f32.mrf.mxu0  ;;  %v5666_v8 = vpop.f32.mrf.mxu1  ;;  %v3583_v19 = vmul.f32 0.25, %v3519_v48 }
 0x1e0   : > { %v3586_v31 = vmul.f32 0.25, %v3522_v33  ;;  %v2787_v36 = vadd.f32 %v2723_v63, %v6737_v13  ;;  %v2721_v41 = vmax.f32 %v2515_v54, 0.0  ;;  %v2526_v55 = vadd.f32 %v6948_v6, %v5598_v14 }
 0x1e1   : > { %v3520_v46 = vadd.f32 %v3456_v50, %v2782_v18  ;;  %v3264_v28 = vadd.f32 %v6948_v6, %v5666_v8  ;;  %v2517_v24 = vpop.f32.mrf.mxu0  ;;  %v3255_v44 = vpop.f32.mrf.mxu1  ;;  %v3459_v59 = vmax.f32 %v3253_v22, 0.0 }
 0x1e2   : > { %v5150_v32 = vpack.c.bf16 %v3586_v31, %v3585_v38  ;;  %v3525_v1 = vadd.f32 %v3461_v61, %v2787_v36  ;;  %v2785_v20 = vadd.f32 %v2721_v41, %v6745_v29  ;;  %v2724_v7 = vmax.f32 %v2526_v55, 0.0 }
 0x1e3   : > { %v3584_v60 = vmul.f32 0.25, %v3520_v46  ;;  %v2518_v25 = vadd.f32 %v6948_v6, %v2517_v24  ;;  %v3256_v13 = vadd.f32 %v6948_v6, %v3255_v44  ;;  %v5601_v37 = vpop.f32.mrf.mxu0  ;;  %v5669_v27 = vpop.f32.mrf.mxu1  ;;  %v3462_v2 = vmax.f32 %v3264_v28, 0.0 }
 0x1e4   : > { %5278 = vst [vmem:[%s6972_s12 + $0x38] sm:$0xff] %v5150_v32   ;;  %v2788_v53 = vadd.f32 %v2724_v7, %v6749_v34  ;;  %v2539_v11 = vadd.f32 %v6948_v6, %v5601_v37  ;;  %v3589_v56 = vmul.f32 0.25, %v3525_v1  ;;  %v3277_v38 = vadd.f32 %v6948_v6, %v5669_v27 }
 0x1e5   : > { %v5145_v26 = vpack.c.bf16 %v3584_v60, %v3583_v19  ;;  %v2722_v29 = vmax.f32 %v2518_v25, 0.0  ;;  %v2530_v49 = vpop.f32.mrf.mxu0  ;;  %v3268_v10 = vpop.f32.mrf.mxu1  ;;  %v3523_v47 = vadd.f32 %v3459_v59, %v2785_v20  ;;  %v3460_v54 = vmax.f32 %v3256_v13, 0.0 }
 0x1e6   : > { %v3526_v12 = vadd.f32 %v3462_v2, %v2788_v53  ;;  %v2727_v48 = vmax.f32 %v2539_v11, 0.0  ;;  %v2531_v33 = vadd.f32 %v6948_v6, %v2530_v49  ;;  %v3465_v34 = vmax.f32 %v3277_v38, 0.0 }
 0x1e7   : > { %5277 = vst [vmem:[%s6972_s12 + $0x30] sm:$0xff] %v5145_v26   ;;  %v2786_v63 = vadd.f32 %v2722_v29, %v6755_v42  ;;  %v3269_v18 = vadd.f32 %v6948_v6, %v3268_v10  ;;  %v5602_v50 = vpop.f32.mrf.mxu0  ;;  %v5670_v61 = vpop.f32.mrf.mxu1  ;;  %v3587_v32 = vmul.f32 0.25, %v3523_v47 }
 0x1e8   : > { %v3590_v22 = vmul.f32 0.25, %v3526_v12  ;;  %v2791_v14 = vadd.f32 %v2727_v48, %v6765_v0  ;;  %v2725_v8 = vmax.f32 %v2531_v33, 0.0  ;;  %v2542_v31 = vadd.f32 %v6948_v6, %v5602_v50 }
 0x1e9   : > { %v3524_v36 = vadd.f32 %v3460_v54, %v2786_v63  ;;  %v3280_v41 = vadd.f32 %v6948_v6, %v5670_v61  ;;  %v2533_v55 = vpop.f32.mrf.mxu0  ;;  %v3271_v46 = vpop.f32.mrf.mxu1  ;;  %v3463_v60 = vmax.f32 %v3269_v18, 0.0 }
 0x1ea   : > { %v5160_v28 = vpack.c.bf16 %v3590_v22, %v3589_v56  ;;  %v3529_v42 = vadd.f32 %v3465_v34, %v2791_v14  ;;  %v2789_v24 = vadd.f32 %v2725_v8, %v6767_v4  ;;  %v2728_v44 = vmax.f32 %v2542_v31, 0.0 }
 0x1eb   : > { %v3588_v1 = vmul.f32 0.25, %v3524_v36  ;;  %v2534_v20 = vadd.f32 %v6948_v6, %v2533_v55  ;;  %v3272_v0 = vadd.f32 %v6948_v6, %v3271_v46  ;;  %v5605_v7 = vpop.f32.mrf.mxu0  ;;  %v5673_v19 = vpop.f32.mrf.mxu1  ;;  %v3466_v13 = vmax.f32 %v3280_v41, 0.0 }
 0x1ec   : > { %5280 = vst [vmem:[%s6972_s12 + $0x48] sm:$0xff] %v5160_v28   ;;  %v2792_v25 = vadd.f32 %v2728_v44, %v6773_v15  ;;  %v2555_v37 = vadd.f32 %v6948_v6, %v5605_v7  ;;  %v3593_v59 = vmul.f32 0.25, %v3529_v42  ;;  %v3293_v53 = vadd.f32 %v6948_v6, %v5673_v19 }
 0x1ed   : > { %v5155_v27 = vpack.c.bf16 %v3588_v1, %v3587_v32  ;;  %v2726_v4 = vmax.f32 %v2534_v20, 0.0  ;;  %v2546_v2 = vpop.f32.mrf.mxu0  ;;  %v3284_v11 = vpop.f32.mrf.mxu1  ;;  %v3527_v26 = vadd.f32 %v3463_v60, %v2789_v24  ;;  %v3464_v10 = vmax.f32 %v3272_v0, 0.0 }
 0x1ee   : > { %v3530_v56 = vadd.f32 %v3466_v13, %v2792_v25  ;;  %v2731_v29 = vmax.f32 %v2555_v37, 0.0  ;;  %v2547_v38 = vadd.f32 %v6948_v6, %v2546_v2  ;;  %v3469_v15 = vmax.f32 %v3293_v53, 0.0 }
 0x1ef   : > { %5279 = vst [vmem:[%s6972_s12 + $0x40] sm:$0xff] %v5155_v27   ;;  %v2790_v49 = vadd.f32 %v2726_v4, %v6781_v30  ;;  %v3285_v47 = vadd.f32 %v6948_v6, %v3284_v11  ;;  %v5606_v12 = vpop.f32.mrf.mxu0  ;;  %v5674_v48 = vpop.f32.mrf.mxu1  ;;  %v3591_v36 = vmul.f32 0.25, %v3527_v26 }
 0x1f0   : > { %v3594_v33 = vmul.f32 0.25, %v3530_v56  ;;  %v2795_v63 = vadd.f32 %v2731_v29, %v6785_v39  ;;  %v2729_v54 = vmax.f32 %v2547_v38, 0.0  ;;  %v2558_v34 = vadd.f32 %v6948_v6, %v5606_v12 }
 0x1f1   : > { %v3528_v18 = vadd.f32 %v3464_v10, %v2790_v49  ;;  %v3296_v50 = vadd.f32 %v6948_v6, %v5674_v48  ;;  %v2549_v61 = vpop.f32.mrf.mxu0  ;;  %v3287_v22 = vpop.f32.mrf.mxu1  ;;  %v3467_v42 = vmax.f32 %v3285_v47, 0.0 }
 0x1f2   : > { %v5170_v14 = vpack.c.bf16 %v3594_v33, %v3593_v59  ;;  %v3533_v30 = vadd.f32 %v3469_v15, %v2795_v63  ;;  %v2793_v8 = vadd.f32 %v2729_v54, %v6789_v51  ;;  %v2732_v31 = vmax.f32 %v2558_v34, 0.0 }
 0x1f3   : > { %v3592_v41 = vmul.f32 0.25, %v3528_v18  ;;  %v2550_v55 = vadd.f32 %v6948_v6, %v2549_v61  ;;  %v3288_v39 = vadd.f32 %v6948_v6, %v3287_v22  ;;  %v5609_v46 = vpop.f32.mrf.mxu0  ;;  %v5677_v28 = vpop.f32.mrf.mxu1  ;;  %v3470_v44 = vmax.f32 %v3296_v50, 0.0 }
 0x1f4   : > { %5282 = vst [vmem:[%s6972_s12 + $0x58] sm:$0xff] %v5170_v14   ;;  %v2796_v24 = vadd.f32 %v2732_v31, %v6797_v3  ;;  %v2571_v32 = vadd.f32 %v6948_v6, %v5609_v46  ;;  %v3597_v20 = vmul.f32 0.25, %v3533_v30  ;;  %v3309_v0 = vadd.f32 %v6948_v6, %v5677_v28 }
 0x1f5   : > { %v5165_v1 = vpack.c.bf16 %v3592_v41, %v3591_v36  ;;  %v2730_v51 = vmax.f32 %v2550_v55, 0.0  ;;  %v2562_v7 = vpop.f32.mrf.mxu0  ;;  %v3300_v19 = vpop.f32.mrf.mxu1  ;;  %v3531_v60 = vadd.f32 %v3467_v42, %v2793_v8  ;;  %v3468_v59 = vmax.f32 %v3288_v39, 0.0 }
 0x1f6   : > { %v3534_v25 = vadd.f32 %v3470_v44, %v2796_v24  ;;  %v2735_v13 = vmax.f32 %v2571_v32, 0.0  ;;  %v2563_v37 = vadd.f32 %v6948_v6, %v2562_v7  ;;  %v3473_v3 = vmax.f32 %v3309_v0, 0.0 }
 0x1f7   : > { %5281 = vst [vmem:[%s6972_s12 + $0x50] sm:$0xff] %v5165_v1   ;;  %v2794_v27 = vadd.f32 %v2730_v51, %v6799_v9  ;;  %v3301_v4 = vadd.f32 %v6948_v6, %v3300_v19  ;;  %v5610_v53 = vpop.f32.mrf.mxu0  ;;  %v5678_v2 = vpop.f32.mrf.mxu1  ;;  %v3595_v33 = vmul.f32 0.25, %v3531_v60 }
 0x1f8   : > { %v3598_v11 = vmul.f32 0.25, %v3534_v25  ;;  %v2799_v26 = vadd.f32 %v2735_v13, %v6803_v21  ;;  %v2733_v56 = vmax.f32 %v2563_v37, 0.0  ;;  %v2574_v29 = vadd.f32 %v6948_v6, %v5610_v53 }
 0x1f9   : > { %v3532_v38 = vadd.f32 %v3468_v59, %v2794_v27  ;;  %v3312_v49 = vadd.f32 %v6948_v6, %v5678_v2  ;;  %v2565_v10 = vpop.f32.mrf.mxu0  ;;  %v3303_v15 = vpop.f32.mrf.mxu1  ;;  %v3471_v50 = vmax.f32 %v3301_v4, 0.0 }
 0x1fa   : > { %v5180_v47 = vpack.c.bf16 %v3598_v11, %v3597_v20  ;;  %v3537_v9 = vadd.f32 %v3473_v3, %v2799_v26  ;;  %v2797_v12 = vadd.f32 %v2733_v56, %v6809_v40  ;;  %v2736_v48 = vmax.f32 %v2574_v29, 0.0 }
 0x1fb   : > { %v3596_v63 = vmul.f32 0.25, %v3532_v38  ;;  %v2566_v54 = vadd.f32 %v6948_v6, %v2565_v10  ;;  %v3304_v21 = vadd.f32 %v6948_v6, %v3303_v15  ;;  %v5613_v34 = vpop.f32.mrf.mxu0  ;;  %v5681_v18 = vpop.f32.mrf.mxu1  ;;  %v3474_v22 = vmax.f32 %v3312_v49, 0.0 }
 0x1fc   : > { %5284 = vst [vmem:[%s6972_s12 + $0x68] sm:$0xff] %v5180_v47   ;;  %v2800_v61 = vadd.f32 %v2736_v48, %v6811_v45  ;;  %v2587_v14 = vadd.f32 %v6948_v6, %v5613_v34  ;;  %v3601_v8 = vmul.f32 0.25, %v3537_v9  ;;  %v3325_v31 = vadd.f32 %v6948_v6, %v5681_v18 }
 0x1fd   : > { %v5175_v30 = vpack.c.bf16 %v3596_v63, %v3595_v33  ;;  %v2734_v40 = vmax.f32 %v2566_v54, 0.0  ;;  %v2578_v36 = vpop.f32.mrf.mxu0  ;;  %v3316_v41 = vpop.f32.mrf.mxu1  ;;  %v3535_v55 = vadd.f32 %v3471_v50, %v2797_v12  ;;  %v3472_v24 = vmax.f32 %v3304_v21, 0.0 }
 0x1fe   : > { %v3538_v39 = vadd.f32 %v3474_v22, %v2800_v61  ;;  %v2739_v46 = vmax.f32 %v2587_v14, 0.0  ;;  %v2579_v28 = vadd.f32 %v6948_v6, %v2578_v36  ;;  %v3477_v45 = vmax.f32 %v3325_v31, 0.0 }
 0x1ff   : > { %5283 = vst [vmem:[%s6972_s12 + $0x60] sm:$0xff] %v5175_v30   ;;  %v2798_v42 = vadd.f32 %v2734_v40, %v6815_v57  ;;  %v3317_v44 = vadd.f32 %v6948_v6, %v3316_v41  ;;  %v5614_v32 = vpop.f32.mrf.mxu0  ;;  %v5682_v1 = vpop.f32.mrf.mxu1  ;;  %v3599_v3 = vmul.f32 0.25, %v3535_v55 }
 0x200   : > { %v3602_v20 = vmul.f32 0.25, %v3538_v39  ;;  %v2803_v51 = vadd.f32 %v2739_v46, %v6821_v16  ;;  %v2737_v0 = vmax.f32 %v2579_v28, 0.0  ;;  %v2590_v7 = vadd.f32 %v6948_v6, %v5614_v32 }
 0x201   : > { %v3536_v19 = vadd.f32 %v3472_v24, %v2798_v42  ;;  %v3328_v60 = vadd.f32 %v6948_v6, %v5682_v1  ;;  %v2581_v25 = vpop.f32.mrf.mxu0  ;;  %v3319_v13 = vpop.f32.mrf.mxu1  ;;  %v3475_v26 = vmax.f32 %v3317_v44, 0.0 }
 0x202   : > { %v5190_v37 = vpack.c.bf16 %v3602_v20, %v3601_v8  ;;  %v3541_v57 = vadd.f32 %v3477_v45, %v2803_v51  ;;  %v2801_v27 = vadd.f32 %v2737_v0, %v6823_v23  ;;  %v2740_v59 = vmax.f32 %v2590_v7, 0.0 }
 0x203   : > { %v3600_v4 = vmul.f32 0.25, %v3536_v19  ;;  %v2582_v53 = vadd.f32 %v6948_v6, %v2581_v25  ;;  %v3320_v16 = vadd.f32 %v6948_v6, %v3319_v13  ;;  %v5617_v2 = vpop.f32.mrf.mxu0  ;;  %v5685_v11 = vpop.f32.mrf.mxu1  ;;  %v3478_v29 = vmax.f32 %v3328_v60, 0.0 }
 0x204   : > { %5286 = vst [vmem:[%s6972_s12 + $0x78] sm:$0xff] %v5190_v37   ;;  %v2804_v56 = vadd.f32 %v2740_v59, %v6827_v35  ;;  %v2603_v38 = vadd.f32 %v6948_v6, %v5617_v2  ;;  %v3605_v10 = vmul.f32 0.25, %v3541_v57  ;;  %v3341_v15 = vadd.f32 %v6948_v6, %v5685_v11 }
 0x205   : > { %v5185_v49 = vpack.c.bf16 %v3600_v4, %v3599_v3  ;;  %v2738_v23 = vmax.f32 %v2582_v53, 0.0  ;;  %v2594_v47 = vpop.f32.mrf.mxu0  ;;  %v3332_v9 = vpop.f32.mrf.mxu1  ;;  %v3539_v12 = vadd.f32 %v3475_v26, %v2801_v27  ;;  %v3476_v21 = vmax.f32 %v3320_v16, 0.0 }
 0x206   : > { %v3542_v48 = vadd.f32 %v3478_v29, %v2804_v56  ;;  %v2743_v33 = vmax.f32 %v2603_v38, 0.0  ;;  %v2595_v63 = vadd.f32 %v6948_v6, %v2594_v47  ;;  %v3481_v35 = vmax.f32 %v3341_v15, 0.0 }
 0x207   : > { %5285 = vst [vmem:[%s6972_s12 + $0x70] sm:$0xff] %v5185_v49   ;;  %v2802_v54 = vadd.f32 %v2738_v23, %v6833_v58  ;;  %v3333_v34 = vadd.f32 %v6948_v6, %v3332_v9  ;;  %v5618_v18 = vpop.f32.mrf.mxu0  ;;  %v5686_v50 = vpop.f32.mrf.mxu1  ;;  %v3603_v46 = vmul.f32 0.25, %v3539_v12  ;;  %v7413_v23 = vld [vmem:[#allocation4_spill] sm:$0xff] }
 0x208   : > { %v3606_v61 = vmul.f32 0.25, %v3542_v48  ;;  %v2807_v22 = vadd.f32 %v2743_v33, %v6835_v62  ;;  %v2741_v14 = vmax.f32 %v2595_v63, 0.0  ;;  %v2606_v30 = vadd.f32 %v6948_v6, %v5618_v18 }
 0x209   : > { %v3540_v8 = vadd.f32 %v3476_v21, %v2802_v54  ;;  %v3344_v40 = vadd.f32 %v6948_v6, %v5686_v50  ;;  %v2597_v31 = vpop.f32.mrf.mxu0  ;;  %v3335_v36 = vpop.f32.mrf.mxu1  ;;  %v3479_v44 = vmax.f32 %v3333_v34, 0.0  ;;  %v7414_v21 = vld [vmem:[#allocation5_spill] sm:$0xff] }
 0x20a   : > { %v5200_v41 = vpack.c.bf16 %v3606_v61, %v3605_v10  ;;  %v3545_v58 = vadd.f32 %v3481_v35, %v2807_v22  ;;  %v2805_v55 = vadd.f32 %v2741_v14, %v6839_v17  ;;  %v2744_v39 = vmax.f32 %v2606_v30, 0.0 }
 0x20b   : > { %v3604_v28 = vmul.f32 0.25, %v3540_v8  ;;  %v2598_v42 = vadd.f32 %v6948_v6, %v2597_v31  ;;  %v3336_v62 = vadd.f32 %v6948_v6, %v3335_v36  ;;  %v5621_v24 = vpop.f32.mrf.mxu0  ;;  %v5689_v45 = vpop.f32.mrf.mxu1  ;;  %v3482_v1 = vmax.f32 %v3344_v40, 0.0 }
 0x20c   : > { %5288 = vst [vmem:[%s6972_s12 + $0x88] sm:$0xff] %v5200_v41   ;;  %v2808_v32 = vadd.f32 %v2744_v39, %v6845_v43  ;;  %v2619_v20 = vadd.f32 %v6948_v6, %v5621_v24  ;;  %v3609_v0 = vmul.f32 0.25, %v3545_v58  ;;  %v3357_v7 = vadd.f32 %v6948_v6, %v5689_v45  ;;  %v7415_v58 = vld [vmem:[#allocation6_spill] sm:$0xff]  ;;  %v7416_v45 = vld [vmem:[#allocation7_spill] sm:$0xff] }
 0x20d   : > { %v5195_v51 = vpack.c.bf16 %v3604_v28, %v3603_v46  ;;  %v2742_v17 = vmax.f32 %v2598_v42, 0.0  ;;  %v2610_v19 = vpop.f32.mrf.mxu0  ;;  %v3348_v60 = vpop.f32.mrf.mxu1  ;;  %v3543_v25 = vadd.f32 %v3479_v44, %v2805_v55  ;;  %v3480_v59 = vmax.f32 %v3336_v62, 0.0 }
 0x20e   : > { %v3546_v13 = vadd.f32 %v3482_v1, %v2808_v32  ;;  %v2747_v37 = vmax.f32 %v2619_v20, 0.0  ;;  %v2611_v57 = vadd.f32 %v6948_v6, %v2610_v19  ;;  %v3485_v43 = vmax.f32 %v3357_v7, 0.0 }
 0x20f   : > { %5287 = vst [vmem:[%s6972_s12 + $0x80] sm:$0xff] %v5195_v51   ;;  %v2806_v27 = vadd.f32 %v2742_v17, %v6847_v52  ;;  %v3349_v3 = vadd.f32 %v6948_v6, %v3348_v60  ;;  %v5622_v4 = vpop.f32.mrf.mxu0  ;;  %v5690_v53 = vpop.f32.mrf.mxu1  ;;  %v3607_v9 = vmul.f32 0.25, %v3543_v25  ;;  %v7417_v60 = vld [vmem:[#allocation8_spill] sm:$0xff] }
 0x210   : > { %v3610_v16 = vmul.f32 0.25, %v3546_v13  ;;  %v2811_v2 = vadd.f32 %v2747_v37, %v6851_v5  ;;  %v2745_v11 = vmax.f32 %v2611_v57, 0.0  ;;  %v2622_v26 = vadd.f32 %v6948_v6, %v5622_v4 }
 0x211   : > { %v3544_v56 = vadd.f32 %v3480_v59, %v2806_v27  ;;  %v3360_v29 = vadd.f32 %v6948_v6, %v5690_v53  ;;  %v2613_v38 = vpop.f32.mrf.mxu0  ;;  %v3351_v49 = vpop.f32.mrf.mxu1  ;;  %v3483_v54 = vmax.f32 %v3349_v3, 0.0  ;;  %v7418_v53 = vld [vmem:[#allocation9_spill] sm:$0xff] }
 0x212   : > { %v5210_v10 = vpack.c.bf16 %v3610_v16, %v3609_v0  ;;  %v3549_v52 = vadd.f32 %v3485_v43, %v2811_v2  ;;  %v2809_v15 = vadd.f32 %v2745_v11, %v7413_v23  ;;  %v2748_v47 = vmax.f32 %v2622_v26, 0.0 }
 0x213   : > { %v3608_v12 = vmul.f32 0.25, %v3544_v56  ;;  %v2614_v48 = vadd.f32 %v6948_v6, %v2613_v38  ;;  %v3352_v5 = vadd.f32 %v6948_v6, %v3351_v49  ;;  %v5625_v33 = vpop.f32.mrf.mxu0  ;;  %v5693_v63 = vpop.f32.mrf.mxu1  ;;  %v3486_v34 = vmax.f32 %v3360_v29, 0.0 }
 0x214   : > { %5290 = vst [vmem:[%s6972_s12 + $0x98] sm:$0xff] %v5210_v10   ;;  %v2812_v35 = vadd.f32 %v2748_v47, %v7414_v21  ;;  %v2635_v18 = vadd.f32 %v6948_v6, %v5625_v33  ;;  %v3613_v61 = vmul.f32 0.25, %v3549_v52  ;;  %v3373_v14 = vadd.f32 %v6948_v6, %v5693_v63 }
 0x215   : > { %v5205_v50 = vpack.c.bf16 %v3608_v12, %v3607_v9  ;;  %v2746_v22 = vmax.f32 %v2614_v48, 0.0  ;;  %v2626_v30 = vpop.f32.mrf.mxu0  ;;  %v3364_v8 = vpop.f32.mrf.mxu1  ;;  %v3547_v40 = vadd.f32 %v3483_v54, %v2809_v15  ;;  %v3484_v39 = vmax.f32 %v3352_v5, 0.0  ;;  %v7419_v9 = vld [vmem:[#allocation10_spill] sm:$0xff] }
 0x216   : > { %v3550_v31 = vadd.f32 %v3486_v34, %v2812_v35  ;;  %v2751_v36 = vmax.f32 %v2635_v18, 0.0  ;;  %v2627_v41 = vadd.f32 %v6948_v6, %v2626_v30  ;;  %v3489_v46 = vmax.f32 %v3373_v14, 0.0  ;;  %v7420_v35 = vld [vmem:[#allocation11_spill] sm:$0xff] }
 0x217   : > { %5289 = vst [vmem:[%s6972_s12 + $0x90] sm:$0xff] %v5205_v50   ;;  %v2810_v55 = vadd.f32 %v2746_v22, %v7415_v58  ;;  %v3365_v28 = vadd.f32 %v6948_v6, %v3364_v8  ;;  %v5626_v42 = vpop.f32.mrf.mxu0  ;;  %v5694_v62 = vpop.f32.mrf.mxu1  ;;  %v3611_v37 = vmul.f32 0.25, %v3547_v40 }
 0x218   : > { %v3614_v24 = vmul.f32 0.25, %v3550_v31  ;;  %v2815_v44 = vadd.f32 %v2751_v36, %v7416_v45  ;;  %v2749_v32 = vmax.f32 %v2627_v41, 0.0  ;;  %v2638_v1 = vadd.f32 %v6948_v6, %v5626_v42  ;;  %v7421_v31 = vld [vmem:[#allocation12_spill] sm:$0xff] }
 0x219   : > { %v3548_v20 = vadd.f32 %v3484_v39, %v2810_v55  ;;  %v3376_v51 = vadd.f32 %v6948_v6, %v5694_v62  ;;  %v2629_v0 = vpop.f32.mrf.mxu0  ;;  %v3367_v17 = vpop.f32.mrf.mxu1  ;;  %v3487_v4 = vmax.f32 %v3365_v28, 0.0 }
 0x21a   : > { %v5220_v7 = vpack.c.bf16 %v3614_v24, %v3613_v61  ;;  %v3553_v19 = vadd.f32 %v3489_v46, %v2815_v44  ;;  %v2813_v25 = vadd.f32 %v2749_v32, %v7417_v60  ;;  %v2752_v13 = vmax.f32 %v2638_v1, 0.0  ;;  %v7422_v24 = vld [vmem:[#allocation13_spill] sm:$0xff] }
 0x21b   : > { %v3612_v57 = vmul.f32 0.25, %v3548_v20  ;;  %v2630_v27 = vadd.f32 %v6948_v6, %v2629_v0  ;;  %v3368_v59 = vadd.f32 %v6948_v6, %v3367_v17  ;;  %v5629_v43 = vpop.f32.mrf.mxu0  ;;  %v5697_v3 = vpop.f32.mrf.mxu1  ;;  %v3490_v2 = vmax.f32 %v3376_v51, 0.0 }
 0x21c   : > { %5292 = vst [vmem:[%s6972_s12 + $0xa8] sm:$0xff] %v5220_v7   ;;  %v2816_v16 = vadd.f32 %v2752_v13, %v7418_v53  ;;  %v2651_v11 = vadd.f32 %v6948_v6, %v5629_v43  ;;  %v3617_v56 = vmul.f32 0.25, %v3553_v19  ;;  %v3389_v38 = vadd.f32 %v6948_v6, %v5697_v3  ;;  %v7138_v43 = vld [vmem:[%s7382_s2] ss:$0 sm:$0xff] }
 0x21d   : > { %v5215_v26 = vpack.c.bf16 %v3612_v57, %v3611_v37  ;;  %v2750_v29 = vmax.f32 %v2630_v27, 0.0  ;;  %v2642_v49 = vpop.f32.mrf.mxu0  ;;  %v3380_v10 = vpop.f32.mrf.mxu1  ;;  %v3551_v52 = vadd.f32 %v3487_v4, %v2813_v25  ;;  %v3488_v48 = vmax.f32 %v3368_v59, 0.0  ;;  %v7423_v37 = vld [vmem:[#allocation14_spill] sm:$0xff] }
 0x21e   : > { %v3554_v23 = vadd.f32 %v3490_v2, %v2816_v16  ;;  %v2755_v15 = vmax.f32 %v2651_v11, 0.0  ;;  %v2643_v47 = vadd.f32 %v6948_v6, %v2642_v49  ;;  %v3493_v5 = vmax.f32 %v3389_v38, 0.0  ;;  %v7424_v2 = vld [vmem:[#allocation15_spill] sm:$0xff] }
 0x21f   : > { %5291 = vst [vmem:[%s6972_s12 + $0xa0] sm:$0xff] %v5215_v26   ;;  %v2814_v12 = vadd.f32 %v2750_v29, %v7419_v9  ;;  %v3381_v33 = vadd.f32 %v6948_v6, %v3380_v10  ;;  %v5630_v63 = vpop.f32.mrf.mxu0  ;;  %v5698_v54 = vpop.f32.mrf.mxu1  ;;  %v3615_v58 = vmul.f32 0.25, %v3551_v52 }
 0x220   : > { %v3618_v21 = vmul.f32 0.25, %v3554_v23  ;;  %v2819_v34 = vadd.f32 %v2755_v15, %v7420_v35  ;;  %v2753_v18 = vmax.f32 %v2643_v47, 0.0  ;;  %v2654_v50 = vadd.f32 %v6948_v6, %v5630_v63  ;;  %v7425_v23 = vld [vmem:[#allocation16_spill] sm:$0xff] }
 0x221   : > { %v3552_v61 = vadd.f32 %v3488_v48, %v2814_v12  ;;  %v3392_v22 = vadd.f32 %v6948_v6, %v5698_v54  ;;  %v2645_v14 = vpop.f32.mrf.mxu0  ;;  %v3383_v30 = vpop.f32.mrf.mxu1  ;;  %v3491_v62 = vmax.f32 %v3381_v33, 0.0 }
 0x222   : > { %v5230_v8 = vpack.c.bf16 %v3618_v21, %v3617_v56  ;;  %v3557_v40 = vadd.f32 %v3493_v5, %v2819_v34  ;;  %v2817_v36 = vadd.f32 %v2753_v18, %v7421_v31  ;;  %v2756_v41 = vmax.f32 %v2654_v50, 0.0  ;;  %v7426_v21 = vld [vmem:[#allocation17_spill] sm:$0xff] }
 0x223   : > { %v3616_v55 = vmul.f32 0.25, %v3552_v61  ;;  %v2646_v39 = vadd.f32 %v6948_v6, %v2645_v14  ;;  %v3384_v46 = vadd.f32 %v6948_v6, %v3383_v30  ;;  %v5633_v28 = vpop.f32.mrf.mxu0  ;;  %v5701_v42 = vpop.f32.mrf.mxu1  ;;  %v3494_v44 = vmax.f32 %v3392_v22, 0.0 }
 0x224   : > { %5294 = vst [vmem:[%s6972_s12 + $0xb8] sm:$0xff] %v5230_v8   ;;  %v2820_v45 = vadd.f32 %v2756_v41, %v7422_v24  ;;  %v2667_v32 = vadd.f32 %v6948_v6, %v5633_v28  ;;  %v3621_v20 = vmul.f32 0.25, %v3557_v40  ;;  %v3405_v0 = vadd.f32 %v6948_v6, %v5701_v42 }
 0x225   : > { %v5225_v1 = vpack.c.bf16 %v3616_v55, %v3615_v58  ;;  %v2754_v51 = vmax.f32 %v2646_v39, 0.0  ;;  %v2658_v17 = vpop.f32.mrf.mxu0  ;;  %v3396_v7 = vpop.f32.mrf.mxu1  ;;  %v3555_v19 = vadd.f32 %v3491_v62, %v2817_v36  ;;  %v3492_v27 = vmax.f32 %v3384_v46, 0.0  ;;  %v7427_v58 = vld [vmem:[#allocation18_spill] sm:$0xff] }
 0x226   : > { %v3558_v60 = vadd.f32 %v3494_v44, %v2820_v45  ;;  %v2759_v25 = vmax.f32 %v2667_v32, 0.0  ;;  %v2659_v13 = vadd.f32 %v6948_v6, %v2658_v17  ;;  %v3497_v59 = vmax.f32 %v3405_v0, 0.0  ;;  %v7428_v45 = vld [vmem:[#allocation19_spill] sm:$0xff] }
 0x227   : > { %5293 = vst [vmem:[%s6972_s12 + $0xb0] sm:$0xff] %v5225_v1   ;;  %v2818_v57 = vadd.f32 %v2754_v51, %v7423_v37  ;;  %v3397_v3 = vadd.f32 %v7138_v43, %v3396_v7  ;;  %v5634_v4 = vpop.f32.mrf.mxu0  ;;  %v5702_v53 = vpop.f32.mrf.mxu1  ;;  %v3619_v9 = vmul.f32 0.25, %v3555_v19 }
 0x228   : > { %v3622_v16 = vmul.f32 0.25, %v3558_v60  ;;  %v2823_v11 = vadd.f32 %v2759_v25, %v7424_v2  ;;  %v2757_v26 = vmax.f32 %v2659_v13, 0.0  ;;  %v2670_v6 = vadd.f32 %v7138_v43, %v5634_v4  ;;  %v7429_v60 = vld [vmem:[#allocation20_spill] sm:$0xff] }
 0x229   : > { %v3556_v56 = vadd.f32 %v3492_v27, %v2818_v57  ;;  %v3408_v29 = vadd.f32 %v7138_v43, %v5702_v53  ;;  %v2661_v38 = vpop.f32.mrf.mxu0  ;;  %v3399_v49 = vpop.f32.mrf.mxu1  ;;  %v3495_v54 = vmax.f32 %v3397_v3, 0.0 }
 0x22a   : > { %v5240_v10 = vpack.c.bf16 %v3622_v16, %v3621_v20  ;;  %v3561_v52 = vadd.f32 %v3497_v59, %v2823_v11  ;;  %v2821_v15 = vadd.f32 %v2757_v26, %v7425_v23  ;;  %v2760_v47 = vmax.f32 %v2670_v6, 0.0  ;;  %v7430_v16 = vld [vmem:[#allocation21_spill] sm:$0xff] }
 0x22b   : > { %v3620_v12 = vmul.f32 0.25, %v3556_v56  ;;  %v2662_v48 = vadd.f32 %v7138_v43, %v2661_v38  ;;  %v3400_v5 = vadd.f32 %v7138_v43, %v3399_v49  ;;  %v5637_v33 = vpop.f32.mrf.mxu0  ;;  %v5705_v63 = vpop.f32.mrf.mxu1  ;;  %v3498_v34 = vmax.f32 %v3408_v29, 0.0 }
 0x22c   : > { %5296 = vst [vmem:[%s6972_s12 + $0xc8] sm:$0xff] %v5240_v10   ;;  %v2824_v35 = vadd.f32 %v2760_v47, %v7426_v21  ;;  %v2683_v18 = vadd.f32 %v7138_v43, %v5637_v33  ;;  %v3625_v61 = vmul.f32 0.25, %v3561_v52  ;;  %v3421_v14 = vadd.f32 %v7138_v43, %v5705_v63  ;;  %v7432_v21 = vld [vmem:[#allocation23_spill] sm:$0xff] }
 0x22d   : > { %v5235_v50 = vpack.c.bf16 %v3620_v12, %v3619_v9  ;;  %v2758_v22 = vmax.f32 %v2662_v48, 0.0  ;;  %v2674_v30 = vpop.f32.mrf.mxu0  ;;  %v3412_v8 = vpop.f32.mrf.mxu1  ;;  %v3559_v40 = vadd.f32 %v3495_v54, %v2821_v15  ;;  %v3496_v39 = vmax.f32 %v3400_v5, 0.0  ;;  %v7431_v9 = vld [vmem:[#allocation22_spill] sm:$0xff] }
 0x22e   : > { %v3562_v31 = vadd.f32 %v3498_v34, %v2824_v35  ;;  %v2763_v36 = vmax.f32 %v2683_v18, 0.0  ;;  %v2675_v41 = vadd.f32 %v7138_v43, %v2674_v30  ;;  %v3501_v46 = vmax.f32 %v3421_v14, 0.0 }
 0x22f   : > { %5295 = vst [vmem:[%s6972_s12 + $0xc0] sm:$0xff] %v5235_v50   ;;  %v2822_v55 = vadd.f32 %v2758_v22, %v7427_v58  ;;  %v3413_v28 = vadd.f32 %v7138_v43, %v3412_v8  ;;  %v5638_v42 = vpop.f32.mrf.mxu0  ;;  %v5706_v62 = vpop.f32.mrf.mxu1  ;;  %v3623_v7 = vmul.f32 0.25, %v3559_v40 }
 0x230   : > { %v3626_v24 = vmul.f32 0.25, %v3562_v31  ;;  %v2827_v44 = vadd.f32 %v2763_v36, %v7428_v45  ;;  %v2761_v32 = vmax.f32 %v2675_v41, 0.0  ;;  %v2686_v1 = vadd.f32 %v7138_v43, %v5638_v42  ;;  %v7433_v41 = vld [vmem:[#allocation24_spill] sm:$0xff] }
 0x231   : > { %v3560_v20 = vadd.f32 %v3496_v39, %v2822_v55  ;;  %v3424_v51 = vadd.f32 %v7138_v43, %v5706_v62  ;;  %v2677_v0 = vpop.f32.mrf.mxu0  ;;  %v3415_v17 = vpop.f32.mrf.mxu1  ;;  %v3499_v53 = vmax.f32 %v3413_v28, 0.0  ;;  %v7434_v28 = vld [vmem:[#allocation25_spill] sm:$0xff] }
 0x232   : > { %v5250_v19 = vpack.c.bf16 %v3626_v24, %v3625_v61  ;;  %v2825_v25 = vadd.f32 %v2761_v32, %v7429_v60  ;;  %v2764_v13 = vmax.f32 %v2686_v1, 0.0  ;;  %v3565_v57 = vadd.f32 %v3501_v46, %v2827_v44 }
 0x233   : > { %v3624_v37 = vmul.f32 0.25, %v3560_v20  ;;  %v2678_v27 = vadd.f32 %v7138_v43, %v2677_v0  ;;  %v3416_v59 = vadd.f32 %v7138_v43, %v3415_v17  ;;  %v5641_v3 = vpop.f32.mrf.mxu0  ;;  %v5709_v4 = vpop.f32.mrf.mxu1  ;;  %v3502_v11 = vmax.f32 %v3424_v51, 0.0  ;;  %v7435_v20 = vld [vmem:[#allocation26_spill] sm:$0xff] }
 0x234   : > { %5298 = vst [vmem:[%s6972_s12 + $0xd8] sm:$0xff] %v5250_v19   ;;  %v2828_v2 = vadd.f32 %v2764_v13, %v7430_v16  ;;  %v2699_v26 = vadd.f32 %v7138_v43, %v5641_v3  ;;  %v3437_v29 = vadd.f32 %v7138_v43, %v5709_v4  ;;  %v3563_v10 = vadd.f32 %v3499_v53, %v2825_v25 }
 0x235   : > { %v5245_v6 = vpack.c.bf16 %v3624_v37, %v3623_v7  ;;  %v2762_v56 = vmax.f32 %v2678_v27, 0.0  ;;  %v2690_v38 = vpop.f32.mrf.mxu0  ;;  %v3428_v49 = vpop.f32.mrf.mxu1  ;;  %v3629_v47 = vmul.f32 0.25, %v3565_v57  ;;  %v3500_v48 = vmax.f32 %v3416_v59, 0.0 }
 0x236   : > { %v3566_v52 = vadd.f32 %v3502_v11, %v2828_v2  ;;  %v2767_v23 = vmax.f32 %v2699_v26, 0.0  ;;  %v2691_v15 = vadd.f32 %v7138_v43, %v2690_v38  ;;  %v3505_v5 = vmax.f32 %v3437_v29, 0.0 }
 0x237   : > { %5297 = vst [vmem:[%s6972_s12 + $0xd0] sm:$0xff] %v5245_v6   ;;  %v2826_v12 = vadd.f32 %v2762_v56, %v7431_v9  ;;  %v5642_v33 = vpop.f32.mrf.mxu0  ;;  %v5710_v63 = vpop.f32.mrf.mxu1  ;;  %v3429_v61 = vadd.f32 %v7138_v43, %v3428_v49  ;;  %v3627_v8 = vmul.f32 0.25, %v3563_v10 }
 0x238   : > { %v3630_v54 = vmul.f32 0.25, %v3566_v52  ;;  %v2831_v35 = vadd.f32 %v2767_v23, %v7432_v21  ;;  %v2765_v34 = vmax.f32 %v2691_v15, 0.0  ;;  %v2702_v18 = vadd.f32 %v7138_v43, %v5642_v33 }
 0x239   : > { %v3564_v50 = vadd.f32 %v3500_v48, %v2826_v12  ;;  %v3440_v22 = vadd.f32 %v7138_v43, %v5710_v63  ;;  %v2693_v14 = vpop.f32.mrf.mxu0  ;;  %v3431_v30 = vpop.f32.mrf.mxu1  ;;  %v3503_v45 = vmax.f32 %v3429_v61, 0.0 }
 0x23a   : > { %v5260_v40 = vpack.c.bf16 %v3630_v54, %v3629_v47  ;;  %v2768_v31 = vmax.f32 %v2702_v18, 0.0  ;;  %v2829_v58 = vadd.f32 %v2765_v34, %v7433_v41  ;;  %v2694_v55 = vadd.f32 %v7138_v43, %v2693_v14 }
 0x23b   : > { %v3628_v36 = vmul.f32 0.25, %v3564_v50  ;;  %v3432_v39 = vadd.f32 %v7138_v43, %v3431_v30  ;;  %v3569_v46 = vadd.f32 %v3505_v5, %v2831_v35  ;;  %v3506_v62 = vmax.f32 %v3440_v22, 0.0 }
 0x23c   : > { %5300 = vst [vmem:[%s6972_s12 + $0xe8] sm:$0xff] %v5260_v40   ;;  %v2832_v42 = vadd.f32 %v2768_v31, %v7434_v28  ;;  %v2766_v44 = vmax.f32 %v2694_v55, 0.0  ;;  %v3567_v1 = vadd.f32 %v3503_v45, %v2829_v58 }
 0x23d   : > { %v5255_v24 = vpack.c.bf16 %v3628_v36, %v3627_v8  ;;  %v3504_v0 = vmax.f32 %v3432_v39, 0.0  ;;  %v3633_v17 = vmul.f32 0.25, %v3569_v46 }
 0x23e   : > { %v3570_v32 = vadd.f32 %v3506_v62, %v2832_v42  ;;  %v2830_v51 = vadd.f32 %v2766_v44, %v7435_v20  ;;  %v3631_v60 = vmul.f32 0.25, %v3567_v1 }
 0x23f   : > { %5299 = vst [vmem:[%s6972_s12 + $0xe0] sm:$0xff] %v5255_v24  }
 0x240   : > { %v3634_v7 = vmul.f32 0.25, %v3570_v32  ;;  %v3568_v19 = vadd.f32 %v3504_v0, %v2830_v51 }
 0x242   : > { %v5270_v43 = vpack.c.bf16 %v3634_v7, %v3633_v17  ;;  %v3632_v25 = vmul.f32 0.25, %v3568_v19  ;;  %3961 = sbr.rel (!%p6200_p5) target bundleno = 664 (0x298), region = 98 }
 0x244   : > { %5302 = vst [vmem:[%s6972_s12 + $0xf8] sm:$0xff] %v5270_v43   ;;  %v5265_v13 = vpack.c.bf16 %v3632_v25, %v3631_v60 }
 0x246   : > { %5301 = vst [vmem:[%s6972_s12 + $0xf0] sm:$0xff] %v5265_v13  }
 0x247   : > { %s7449_s23 = smov (!%p3964_p4, %s3963_s23), 64 }
 0x248   : > { %s5027_s27 = sshll.u32 %s7449_s23, 6 }
 0x249   : > { %p5030_p6 = scmp.eq.s32.totalorder %s5027_s27, 0 }
 0x24a   : > { %s7194_s20 = sshrl.u32 (!%p5030_p6), %s7449_s23, 6 }
 0x24b   : > { %3972 = sbr.rel (%p5030_p6) target bundleno = 664 (0x298), region = 102  ;;  %p5031_p5 = scmp.le.s32.totalorder (!%p5030_p6), %s7194_s20, 0 }
 0x250   : > { %4445 = sbr.rel (%p5031_p5) target bundleno = 647 (0x287), region = 218  ;;  %s7436_s15 = smov (!%p5031_p5), %s7188_s24 }
 0x251   : > { %s7437_s28 = smov (!%p5031_p5), %s6972_s12  ;;  %s7203_s29 = smov (!%p5031_p5), 0  }
 0x252   : > { %s7205_s30 = smov (!%p5031_p5), 0  }
 0x255 LB: >> { %v3989_v37 = vld [vmem:[%s6122_s28] sm:$0xf]  ;;  %v3991_v57 = vld [vmem:[%s6122_s28 + $0x4] sm:$0xf]  ;;  %v3993_v27 = vld [vmem:[%s6122_s28 + $0x8] sm:$0xf]  ;;  %s6130_s30 = sphi %s7205_s30, %s3983_s30   ;;  %s6126_s29 = sphi %s7203_s29, %s7438_s29   ;;  %s6122_s28 = sphi %s7437_s28, %s4122_s28   ;;  %s6118_s15 = sphi %s7436_s15, %s4123_s15  }
 0x256   : >> { %3990 = vst [vmem:[%s6118_s15] sm:$0xf] %v3989_v37  ;;  %3992 = vst [vmem:[%s6118_s15 + $0x4] sm:$0xf] %v3991_v57  ;;  %v3995_v59 = vld [vmem:[%s6122_s28 + $0xc] sm:$0xf]  ;;  %s4117_s4 = sadd.s32 1, %s6126_s29 }
 0x257   : >> { %3994 = vst [vmem:[%s6118_s15 + $0x8] sm:$0xf] %v3993_v27  ;;  %v3997_v3 = vld [vmem:[%s6122_s28 + $0x10] sm:$0xf]  ;;  %v3999_v4 = vld [vmem:[%s6122_s28 + $0x14] sm:$0xf]  ;;  %p4118_p7 = scmp.ge.s32.totalorder %s4117_s4, %s7194_s20 }
 0x258   : >> { %3996 = vst [vmem:[%s6118_s15 + $0xc] sm:$0xf] %v3995_v59  ;;  %3998 = vst [vmem:[%s6118_s15 + $0x10] sm:$0xf] %v3997_v3  ;;  %v4001_v53 = vld [vmem:[%s6122_s28 + $0x18] sm:$0xf] }
 0x259   : >> { %4000 = vst [vmem:[%s6118_s15 + $0x14] sm:$0xf] %v3999_v4  ;;  %v4003_v16 = vld [vmem:[%s6122_s28 + $0x1c] sm:$0xf]  ;;  %v4005_v2 = vld [vmem:[%s6122_s28 + $0x20] sm:$0xf] }
 0x25a   : >> { %4002 = vst [vmem:[%s6118_s15 + $0x18] sm:$0xf] %v4001_v53  ;;  %4004 = vst [vmem:[%s6118_s15 + $0x1c] sm:$0xf] %v4003_v16  ;;  %v4007_v11 = vld [vmem:[%s6122_s28 + $0x24] sm:$0xf] }
 0x25b   : >> { %4006 = vst [vmem:[%s6118_s15 + $0x20] sm:$0xf] %v4005_v2  ;;  %v4009_v26 = vld [vmem:[%s6122_s28 + $0x28] sm:$0xf]  ;;  %v4011_v6 = vld [vmem:[%s6122_s28 + $0x2c] sm:$0xf] }
 0x25c   : >> { %4008 = vst [vmem:[%s6118_s15 + $0x24] sm:$0xf] %v4007_v11  ;;  %4010 = vst [vmem:[%s6118_s15 + $0x28] sm:$0xf] %v4009_v26  ;;  %v4013_v56 = vld [vmem:[%s6122_s28 + $0x30] sm:$0xf] }
 0x25d   : >> { %4012 = vst [vmem:[%s6118_s15 + $0x2c] sm:$0xf] %v4011_v6  ;;  %v4015_v29 = vld [vmem:[%s6122_s28 + $0x34] sm:$0xf]  ;;  %v4017_v38 = vld [vmem:[%s6122_s28 + $0x38] sm:$0xf] }
 0x25e   : >> { %4014 = vst [vmem:[%s6118_s15 + $0x30] sm:$0xf] %v4013_v56  ;;  %4016 = vst [vmem:[%s6118_s15 + $0x34] sm:$0xf] %v4015_v29  ;;  %v4019_v49 = vld [vmem:[%s6122_s28 + $0x3c] sm:$0xf] }
 0x25f   : >> { %4018 = vst [vmem:[%s6118_s15 + $0x38] sm:$0xf] %v4017_v38  ;;  %v4021_v10 = vld [vmem:[%s6122_s28 + $0x40] sm:$0xf]  ;;  %v4023_v52 = vld [vmem:[%s6122_s28 + $0x44] sm:$0xf] }
 0x260   : >> { %4020 = vst [vmem:[%s6118_s15 + $0x3c] sm:$0xf] %v4019_v49  ;;  %4022 = vst [vmem:[%s6118_s15 + $0x40] sm:$0xf] %v4021_v10  ;;  %v4025_v23 = vld [vmem:[%s6122_s28 + $0x48] sm:$0xf] }
 0x261   : >> { %4024 = vst [vmem:[%s6118_s15 + $0x44] sm:$0xf] %v4023_v52  ;;  %v4027_v15 = vld [vmem:[%s6122_s28 + $0x4c] sm:$0xf]  ;;  %v4029_v47 = vld [vmem:[%s6122_s28 + $0x50] sm:$0xf] }
 0x262   : >> { %4026 = vst [vmem:[%s6118_s15 + $0x48] sm:$0xf] %v4025_v23  ;;  %4028 = vst [vmem:[%s6118_s15 + $0x4c] sm:$0xf] %v4027_v15  ;;  %v4031_v9 = vld [vmem:[%s6122_s28 + $0x54] sm:$0xf] }
 0x263   : >> { %4030 = vst [vmem:[%s6118_s15 + $0x50] sm:$0xf] %v4029_v47  ;;  %v4033_v12 = vld [vmem:[%s6122_s28 + $0x58] sm:$0xf]  ;;  %v4035_v48 = vld [vmem:[%s6122_s28 + $0x5c] sm:$0xf] }
 0x264   : >> { %4032 = vst [vmem:[%s6118_s15 + $0x54] sm:$0xf] %v4031_v9  ;;  %4034 = vst [vmem:[%s6118_s15 + $0x58] sm:$0xf] %v4033_v12  ;;  %v4037_v5 = vld [vmem:[%s6122_s28 + $0x60] sm:$0xf] }
 0x265   : >> { %4036 = vst [vmem:[%s6118_s15 + $0x5c] sm:$0xf] %v4035_v48  ;;  %v4039_v33 = vld [vmem:[%s6122_s28 + $0x64] sm:$0xf]  ;;  %v4041_v63 = vld [vmem:[%s6122_s28 + $0x68] sm:$0xf] }
 0x266   : >> { %4038 = vst [vmem:[%s6118_s15 + $0x60] sm:$0xf] %v4037_v5  ;;  %4040 = vst [vmem:[%s6118_s15 + $0x64] sm:$0xf] %v4039_v33  ;;  %v4043_v54 = vld [vmem:[%s6122_s28 + $0x6c] sm:$0xf] }
 0x267   : >> { %4042 = vst [vmem:[%s6118_s15 + $0x68] sm:$0xf] %v4041_v63  ;;  %v4045_v21 = vld [vmem:[%s6122_s28 + $0x70] sm:$0xf]  ;;  %v4047_v35 = vld [vmem:[%s6122_s28 + $0x74] sm:$0xf] }
 0x268   : >> { %4044 = vst [vmem:[%s6118_s15 + $0x6c] sm:$0xf] %v4043_v54  ;;  %4046 = vst [vmem:[%s6118_s15 + $0x70] sm:$0xf] %v4045_v21  ;;  %v4049_v34 = vld [vmem:[%s6122_s28 + $0x78] sm:$0xf] }
 0x269   : >> { %4048 = vst [vmem:[%s6118_s15 + $0x74] sm:$0xf] %v4047_v35  ;;  %v4051_v18 = vld [vmem:[%s6122_s28 + $0x7c] sm:$0xf]  ;;  %v4053_v50 = vld [vmem:[%s6122_s28 + $0x80] sm:$0xf] }
 0x26a   : >> { %4050 = vst [vmem:[%s6118_s15 + $0x78] sm:$0xf] %v4049_v34  ;;  %4052 = vst [vmem:[%s6118_s15 + $0x7c] sm:$0xf] %v4051_v18  ;;  %v4055_v61 = vld [vmem:[%s6122_s28 + $0x84] sm:$0xf] }
 0x26b   : >> { %4054 = vst [vmem:[%s6118_s15 + $0x80] sm:$0xf] %v4053_v50  ;;  %v4057_v22 = vld [vmem:[%s6122_s28 + $0x88] sm:$0xf]  ;;  %v4059_v14 = vld [vmem:[%s6122_s28 + $0x8c] sm:$0xf] }
 0x26c   : >> { %4056 = vst [vmem:[%s6118_s15 + $0x84] sm:$0xf] %v4055_v61  ;;  %4058 = vst [vmem:[%s6118_s15 + $0x88] sm:$0xf] %v4057_v22  ;;  %v4061_v30 = vld [vmem:[%s6122_s28 + $0x90] sm:$0xf] }
 0x26d   : >> { %4060 = vst [vmem:[%s6118_s15 + $0x8c] sm:$0xf] %v4059_v14  ;;  %v4063_v8 = vld [vmem:[%s6122_s28 + $0x94] sm:$0xf]  ;;  %v4065_v40 = vld [vmem:[%s6122_s28 + $0x98] sm:$0xf] }
 0x26e   : >> { %4062 = vst [vmem:[%s6118_s15 + $0x90] sm:$0xf] %v4061_v30  ;;  %4064 = vst [vmem:[%s6118_s15 + $0x94] sm:$0xf] %v4063_v8  ;;  %v4067_v31 = vld [vmem:[%s6122_s28 + $0x9c] sm:$0xf] }
 0x26f   : >> { %4066 = vst [vmem:[%s6118_s15 + $0x98] sm:$0xf] %v4065_v40  ;;  %v4069_v36 = vld [vmem:[%s6122_s28 + $0xa0] sm:$0xf]  ;;  %v4071_v41 = vld [vmem:[%s6122_s28 + $0xa4] sm:$0xf] }
 0x270   : >> { %4068 = vst [vmem:[%s6118_s15 + $0x9c] sm:$0xf] %v4067_v31  ;;  %4070 = vst [vmem:[%s6118_s15 + $0xa0] sm:$0xf] %v4069_v36  ;;  %v4073_v58 = vld [vmem:[%s6122_s28 + $0xa8] sm:$0xf] }
 0x271   : >> { %4072 = vst [vmem:[%s6118_s15 + $0xa4] sm:$0xf] %v4071_v41  ;;  %v4075_v55 = vld [vmem:[%s6122_s28 + $0xac] sm:$0xf]  ;;  %v4077_v39 = vld [vmem:[%s6122_s28 + $0xb0] sm:$0xf] }
 0x272   : >> { %4074 = vst [vmem:[%s6118_s15 + $0xa8] sm:$0xf] %v4073_v58  ;;  %4076 = vst [vmem:[%s6118_s15 + $0xac] sm:$0xf] %v4075_v55  ;;  %v4079_v46 = vld [vmem:[%s6122_s28 + $0xb4] sm:$0xf] }
 0x273   : >> { %4078 = vst [vmem:[%s6118_s15 + $0xb0] sm:$0xf] %v4077_v39  ;;  %v4081_v28 = vld [vmem:[%s6122_s28 + $0xb8] sm:$0xf]  ;;  %v4083_v42 = vld [vmem:[%s6122_s28 + $0xbc] sm:$0xf] }
 0x274   : >> { %4080 = vst [vmem:[%s6118_s15 + $0xb4] sm:$0xf] %v4079_v46  ;;  %4082 = vst [vmem:[%s6118_s15 + $0xb8] sm:$0xf] %v4081_v28  ;;  %v4085_v62 = vld [vmem:[%s6122_s28 + $0xc0] sm:$0xf] }
 0x275   : >> { %4084 = vst [vmem:[%s6118_s15 + $0xbc] sm:$0xf] %v4083_v42  ;;  %v4087_v24 = vld [vmem:[%s6122_s28 + $0xc4] sm:$0xf]  ;;  %v4089_v45 = vld [vmem:[%s6122_s28 + $0xc8] sm:$0xf] }
 0x276   : >> { %4086 = vst [vmem:[%s6118_s15 + $0xc0] sm:$0xf] %v4085_v62  ;;  %4088 = vst [vmem:[%s6118_s15 + $0xc4] sm:$0xf] %v4087_v24  ;;  %v4091_v44 = vld [vmem:[%s6122_s28 + $0xcc] sm:$0xf] }
 0x277   : >> { %4090 = vst [vmem:[%s6118_s15 + $0xc8] sm:$0xf] %v4089_v45  ;;  %v4093_v32 = vld [vmem:[%s6122_s28 + $0xd0] sm:$0xf]  ;;  %v4095_v1 = vld [vmem:[%s6122_s28 + $0xd4] sm:$0xf] }
 0x278   : >> { %4092 = vst [vmem:[%s6118_s15 + $0xcc] sm:$0xf] %v4091_v44  ;;  %4094 = vst [vmem:[%s6118_s15 + $0xd0] sm:$0xf] %v4093_v32  ;;  %v4097_v20 = vld [vmem:[%s6122_s28 + $0xd8] sm:$0xf] }
 0x279   : >> { %4096 = vst [vmem:[%s6118_s15 + $0xd4] sm:$0xf] %v4095_v1  ;;  %v4099_v51 = vld [vmem:[%s6122_s28 + $0xdc] sm:$0xf]  ;;  %v4101_v0 = vld [vmem:[%s6122_s28 + $0xe0] sm:$0xf] }
 0x27a   : >> { %4098 = vst [vmem:[%s6118_s15 + $0xd8] sm:$0xf] %v4097_v20  ;;  %4100 = vst [vmem:[%s6118_s15 + $0xdc] sm:$0xf] %v4099_v51  ;;  %v4103_v17 = vld [vmem:[%s6122_s28 + $0xe4] sm:$0xf] }
 0x27b   : >> { %4102 = vst [vmem:[%s6118_s15 + $0xe0] sm:$0xf] %v4101_v0  ;;  %v4105_v7 = vld [vmem:[%s6122_s28 + $0xe8] sm:$0xf]  ;;  %v4107_v19 = vld [vmem:[%s6122_s28 + $0xec] sm:$0xf] }
 0x27c   : >> { %4104 = vst [vmem:[%s6118_s15 + $0xe4] sm:$0xf] %v4103_v17  ;;  %4106 = vst [vmem:[%s6118_s15 + $0xe8] sm:$0xf] %v4105_v7  ;;  %v4109_v43 = vld [vmem:[%s6122_s28 + $0xf0] sm:$0xf] }
 0x27d   : >> { %4108 = vst [vmem:[%s6118_s15 + $0xec] sm:$0xf] %v4107_v19  ;;  %v4111_v60 = vld [vmem:[%s6122_s28 + $0xf4] sm:$0xf]  ;;  %v4113_v25 = vld [vmem:[%s6122_s28 + $0xf8] sm:$0xf] }
 0x27e   : >> { %4110 = vst [vmem:[%s6118_s15 + $0xf0] sm:$0xf] %v4109_v43  ;;  %4112 = vst [vmem:[%s6118_s15 + $0xf4] sm:$0xf] %v4111_v60  ;;  %v4115_v13 = vld [vmem:[%s6122_s28 + $0xfc] sm:$0xf] }
 0x27f   : >> { %4114 = vst [vmem:[%s6118_s15 + $0xf8] sm:$0xf] %v4113_v25  ;;  %4116 = vst [vmem:[%s6118_s15 + $0xfc] sm:$0xf] %v4115_v13  ;;  %s7451_s4 = smov (%p4118_p7, %s4117_s4), 0  ;;  %s3983_s30 = sadd.s32 1, %s6130_s30  }
 0x280   : >> { %s5032_s5 = sshll.u32 %s7451_s4, 8  ;;  %p3982_p8 = scmp.ge.s32.totalorder %s3983_s30, %s7194_s20 }
 0x281   : >> { %s4122_s28 = scalar_lea.vmem %s6972_s12, %s5032_s5 [#allocation3]   ;;  %s4123_s15 = scalar_lea.vmem %s7188_s24, %s5032_s5  }
 0x282   : >> { %s7438_s29 = smov %s7451_s4  ;;  %3985 = sbr.rel (!%p3982_p8) target bundleno = 597 (0x255), region = 224 }
 0x287 PF: > { %s7362_s6 = sand.u32 63, %s7449_s23   ;;  %s5110_s14 = sshll.u32 %s7194_s20, 8 }
 0x288   : > { %s4128_s7 = scalar_lea.vmem %s6972_s12, %s5110_s14 [#allocation3]   ;;  %s4130_s8 = scalar_lea.vmem %s7188_s24, %s5110_s14  }
 0x289   : > { %p5037_p9 = scmp.le.s32.totalorder %s7362_s6, 0 }
 0x28a   : > { %s6132_s9 = smov (!%p5037_p9), %s4130_s8   ;;  %s6136_s10 = smov (!%p5037_p9), %s4128_s7  }
 0x28b   : > { %4459 = sbr.rel (%p5037_p9) target bundleno = 664 (0x298), region = 229  ;;  %s6140_s11 = smov (!%p5037_p9), 0  }
 0x28c   : > { %s6144_s17 = smov (!%p5037_p9), 0  }
 0x290 LB: >> { %v4140_v37 = vld [vmem:[%s6138_s10] sm:$0xf]  ;;  %s4142_s18 = sadd.s32 1, %s6142_s11  ;;  %s4134_s17 = sadd.s32 1, %s6146_s17   ;;  %s6146_s17 = sphi %s6144_s17, %s4134_s17   ;;  %s6142_s11 = sphi %s6140_s11, %s6141_s11   ;;  %s6138_s10 = sphi %s6136_s10, %s4147_s10   ;;  %s6134_s9 = sphi %s6132_s9, %s4148_s9  }
 0x291   : >> { %4141 = vst [vmem:[%s6134_s9] sm:$0xf] %v4140_v37  ;;  %p4143_p10 = scmp.ge.s32.totalorder %s4142_s18, %s7362_s6  ;;  %p4133_p11 = scmp.ge.s32.totalorder %s4134_s17, %s7362_s6 }
 0x293   : >> { %s7453_s18 = smov (%p4143_p10, %s4142_s18), 0  ;;  %4136 = sbr.rel (!%p4133_p11) target bundleno = 656 (0x290), region = 235 }
 0x294   : >> { %s5038_s12 = sshll.u32 %s7453_s18, 2  ;;  %s6141_s11 = smov %s7453_s18  }
 0x295   : >> { %s4147_s10 = scalar_lea.vmem %s4128_s7, %s5038_s12 [#allocation3]   ;;  %s4148_s9 = scalar_lea.vmem %s4130_s8, %s5038_s12  }
 0x298 PF: > { %p10_p12 = scmp.ge.s32.totalorder %s6188_s16, 4   ;;  %s7439_s12 = smov %s6078_s13 }
 0x299   : > { %s7440_s13 = smov %s6198_s19  ;;  %s7441_s14 = smov %s6188_s16 }
 0x29a   :  { %12 = sbr.rel (!%p10_p12) target bundleno = 2 (0x2), region = 246 }

// kernel: fashion_cnn_forward.4
= control target key start
LH: loop header
LB: loop body
LE: loop exit
PB: predicated region body
PF: predicated region fallthrough
CT: control target
= control target key end

     0   :  { %vm594_vm0 = vcmask 261120   ;;  %s4545_s1 = inlined_call_operand.vmem [shape: bf16[800,128], index: 1, kind: input, shape index: {}]   ;;  %s4546_s0 = inlined_call_operand.vmem [shape: bf16[4,64,800], index: 0, kind: input, shape index: {}]   ;;  %s4547_s2 = inlined_call_operand.vmem [shape: f32[1,128], index: 2, kind: input, shape index: {}]   ;;  %s4548_s3 = inlined_call_operand.vmem [shape: bf16[64,128], index: 3, kind: output, shape index: {}]  }
   0x1   :  { %v3474_v0 = vld [vmem:[%s4545_s1 + $0x78] sm:$0xff]   ;;  %v3497_v4 = vld [vmem:[%s4545_s1 + $0x70] sm:$0xff]   ;;  %v3521_v8 = vld [vmem:[%s4545_s1 + $0x68] sm:$0xff]  }
   0x2   :  { %v3479_v1 = vld [vmem:[%s4545_s1 + $0xf8] sm:$0xff]   ;;  %2632 = vmatprep.subr.bf16.mxu0 %v3474_v0  ;;  %v3503_v5 = vld [vmem:[%s4545_s1 + $0xf0] sm:$0xff]   ;;  %v3527_v9 = vld [vmem:[%s4545_s1 + $0xe8] sm:$0xff]  }
   0x3   :  { %v3485_v2 = vld [vmem:[%s4545_s1 + $0x38] sm:$0xff]   ;;  %2672 = vmatprep.subr.bf16.mxu1 %v3479_v1  ;;  %v3509_v6 = vld [vmem:[%s4545_s1 + $0x30] sm:$0xff]   ;;  %v3533_v10 = vld [vmem:[%s4545_s1 + $0x28] sm:$0xff]  }
   0x4   :  { %v3491_v3 = vld [vmem:[%s4545_s1 + $0xb8] sm:$0xff]   ;;  %2633 = vmatpush3.bf16.msra.mxu0 %v3485_v2  ;;  %v3515_v7 = vld [vmem:[%s4545_s1 + $0xb0] sm:$0xff]   ;;  %v3539_v11 = vld [vmem:[%s4545_s1 + $0xa8] sm:$0xff]  }
   0x5   :  { %2673 = vmatpush3.bf16.msra.mxu1 %v3491_v3  ;;  %2634 = vmatprep.subr.bf16.mxu0 %v3497_v4  ;;  %v3545_v12 = vld [vmem:[%s4545_s1 + $0x60] sm:$0xff]   ;;  %v3569_v16 = vld [vmem:[%s4545_s1 + $0x58] sm:$0xff]   ;;  %v3593_v20 = vld [vmem:[%s4545_s1 + $0x50] sm:$0xff]  }
   0x6   :  { %2674 = vmatprep.subr.bf16.mxu1 %v3503_v5  ;;  %v3551_v13 = vld [vmem:[%s4545_s1 + $0xe0] sm:$0xff]   ;;  %v3575_v17 = vld [vmem:[%s4545_s1 + $0xd8] sm:$0xff]   ;;  %v3599_v21 = vld [vmem:[%s4545_s1 + $0xd0] sm:$0xff]  }
   0x7   :  { %v3557_v14 = vld [vmem:[%s4545_s1 + $0x20] sm:$0xff]   ;;  %v3581_v18 = vld [vmem:[%s4545_s1 + $0x18] sm:$0xff]   ;;  %v3605_v22 = vld [vmem:[%s4545_s1 + $0x10] sm:$0xff]  }
   0x8   :  { %2635 = vmatpush3.bf16.msra.mxu0 %v3509_v6  ;;  %v3563_v15 = vld [vmem:[%s4545_s1 + $0xa0] sm:$0xff]   ;;  %v3587_v19 = vld [vmem:[%s4545_s1 + $0x98] sm:$0xff]   ;;  %v3611_v23 = vld [vmem:[%s4545_s1 + $0x90] sm:$0xff]  }
   0x9   :  { %2675 = vmatpush3.bf16.msra.mxu1 %v3515_v7  ;;  %2636 = vmatprep.subr.bf16.mxu0 %v3521_v8  ;;  %v3617_v24 = vld [vmem:[%s4545_s1 + $0x48] sm:$0xff]   ;;  %v3641_v28 = vld [vmem:[%s4545_s1 + $0x40] sm:$0xff]   ;;  %v3678_v36 = vld [vmem:[%s4545_s1 + $0x178] sm:$0xff]  }
   0xa   :  { %2676 = vmatprep.subr.bf16.mxu1 %v3527_v9  ;;  %v3623_v25 = vld [vmem:[%s4545_s1 + $0xc8] sm:$0xff]   ;;  %v3647_v29 = vld [vmem:[%s4545_s1 + $0xc0] sm:$0xff]   ;;  %v3683_v37 = vld [vmem:[%s4545_s1 + $0x138] sm:$0xff]  }
   0xb   :  { %v3629_v26 = vld [vmem:[%s4545_s1 + $0x8] sm:$0xff]   ;;  %v3653_v30 = vld [vmem:[%s4545_s1] sm:$0xff]   ;;  %v3689_v38 = vld [vmem:[%s4545_s1 + $0x170] sm:$0xff]  }
   0xc   :  { %2637 = vmatpush3.bf16.msra.mxu0 %v3533_v10  ;;  %v3635_v27 = vld [vmem:[%s4545_s1 + $0x88] sm:$0xff]   ;;  %v3659_v31 = vld [vmem:[%s4545_s1 + $0x80] sm:$0xff]   ;;  %v3695_v39 = vld [vmem:[%s4545_s1 + $0x130] sm:$0xff]  }
   0xd   :  { %2677 = vmatpush3.bf16.msra.mxu1 %v3539_v11  ;;  %2638 = vmatprep.subr.bf16.mxu0 %v3545_v12  ;;  %v3232_v32 = vld [vmem:[%s4546_s0] ss:$28 sps:$4 sm:$0xff]   ;;  %v3235_v34 = vld [vmem:[%s4546_s0 + $0x8] ss:$28 sps:$4 sm:$0xff]   ;;  %v3247_v43 = vld [vmem:[%s4546_s0 + $0x38] ss:$28 sps:$4 sm:$0xff]  }
   0xe   :  { %2678 = vmatprep.subr.bf16.mxu1 %v3551_v13  ;;  %v3234_v33 = vld [vmem:[%s4546_s0 + $0x4] ss:$28 sps:$4 sm:$0xff]   ;;  %v3237_v35 = vld [vmem:[%s4546_s0 + $0xc] ss:$28 sps:$4 sm:$0xff]   ;;  %v3242_v40 = vld [vmem:[%s4546_s0 + $0x3c] ss:$28 sps:$4 sm:$0xff]  }
   0xf   :  { %639 = vmatprep.mubr.bf16.mxu0 %v3234_v33  ;;  %704 = vmatprep.mubr.bf16.mxu1 %v3237_v35  ;;  %v3244_v41 = vld [vmem:[%s4546_s0 + $0x44] ss:$28 sps:$4 sm:$0xff]   ;;  %v3707_v42 = vld [vmem:[%s4545_s1 + $0x188] sm:$0xff]   ;;  %v3253_v49 = vld [vmem:[%s4546_s0 + $0x74] ss:$28 sps:$4 sm:$0xff]  }
  0x10   :  { %2639 = vmatpush3.bf16.msra.mxu0 %v3557_v14  ;;  %v3248_v44 = vld [vmem:[%s4546_s0 + $0x40] ss:$28 sps:$4 sm:$0xff]   ;;  %v3720_v45 = vld [vmem:[%s4545_s1 + $0x168] sm:$0xff]   ;;  %v3258_v52 = vld [vmem:[%s4546_s0 + $0x78] ss:$28 sps:$4 sm:$0xff]  }
  0x11   :  { %2679 = vmatpush3.bf16.msra.mxu1 %v3563_v15  ;;  %2640 = vmatprep.subr.bf16.mxu0 %v3569_v16  ;;  %v3726_v46 = vld [vmem:[%s4545_s1 + $0x128] sm:$0xff]   ;;  %v3732_v47 = vld [vmem:[%s4545_s1 + $0x160] sm:$0xff]   ;;  %v3255_v50 = vld [vmem:[%s4546_s0 + $0x7c] ss:$28 sps:$4 sm:$0xff]  }
  0x12   :  { %2680 = vmatprep.subr.bf16.mxu1 %v3575_v17  ;;  %v3738_v48 = vld [vmem:[%s4545_s1 + $0x120] sm:$0xff]   ;;  %v3257_v51 = vld [vmem:[%s4546_s0 + $0x70] ss:$28 sps:$4 sm:$0xff]   ;;  %v3756_v53 = vld [vmem:[%s4545_s1 + $0x158] sm:$0xff]  }
  0x13   :  { %v3762_v54 = vld [vmem:[%s4545_s1 + $0x118] sm:$0xff]   ;;  %v3768_v55 = vld [vmem:[%s4545_s1 + $0x150] sm:$0xff]   ;;  %v3263_v57 = vld [vmem:[%s4546_s0 + $0xac] ss:$28 sps:$4 sm:$0xff]  }
  0x14   :  { %2641 = vmatpush3.bf16.msra.mxu0 %v3581_v18  ;;  %v3773_v56 = vld [vmem:[%s4545_s1 + $0x110] sm:$0xff]   ;;  %v3786_v59 = vld [vmem:[%s4545_s1 + $0x180] sm:$0xff]   ;;  %v3798_v62 = vld [vmem:[%s4545_s1 + $0x148] sm:$0xff]  }
  0x15   :  { %2681 = vmatpush3.bf16.msra.mxu1 %v3587_v19  ;;  %2642 = vmatprep.subr.bf16.mxu0 %v3593_v20  ;;  %v3265_v58 = vld [vmem:[%s4546_s0 + $0xb4] ss:$28 sps:$4 sm:$0xff]   ;;  %v3268_v60 = vld [vmem:[%s4546_s0 + $0xa8] ss:$28 sps:$4 sm:$0xff]  }
  0x16   :  { %2682 = vmatprep.subr.bf16.mxu1 %v3599_v21  ;;  %v3269_v61 = vld [vmem:[%s4546_s0 + $0xb0] ss:$28 sps:$4 sm:$0xff]   ;;  %v3817_v33 = vld [vmem:[%s4545_s1 + $0x100] sm:$0xff]   ;;  %v3277_v35 = vld [vmem:[%s4546_s0 + $0x18] ss:$28 sps:$4 sm:$0xff]  }
  0x17   :  { %v3805_v63 = vld [vmem:[%s4545_s1 + $0x108] sm:$0xff]  }
  0x18   :  { %2643 = vmatpush3.bf16.msra.mxu0 %v3605_v22 }
  0x19   :  { %2683 = vmatpush3.bf16.msra.mxu1 %v3611_v23  ;;  %2644 = vmatprep.subr.bf16.mxu0 %v3617_v24 }
  0x1a   :  { %2684 = vmatprep.subr.bf16.mxu1 %v3623_v25 }
  0x1c   :  { %2645 = vmatpush3.bf16.msra.mxu0 %v3629_v26 }
  0x1d   :  { %2685 = vmatpush3.bf16.msra.mxu1 %v3635_v27  ;;  %2646 = vmatprep.subr.bf16.mxu0 %v3641_v28 }
  0x1e   :  { %2686 = vmatprep.subr.bf16.mxu1 %v3647_v29 }
  0x20   :  { %2647 = vmatpush3.bf16.msra.mxu0 %v3653_v30 }
  0x21   :  { %2687 = vmatpush3.bf16.msra.mxu1 %v3659_v31  ;;  %2712 = vmatprep.subr.bf16.mxu0 %v3678_v36 }
  0x22   :  { %3136 = vmatprep.subr.bf16.mxu1 %v3707_v42 }
  0x23   :  { %640 = vmatmul.mubr.bf16.vlgmr.msra.gmra.mxu0 %v3232_v32  ;;  %v3811_v32 = vld [vmem:[%s4545_s1 + $0x140] sm:$0xff]  }
  0x24   :  { %705 = vmatmul.mubr.bf16.vlgmr.msra.gmra.mxu1 %v3235_v34  ;;  %2713 = vmatpush3.bf16.msra.mxu0 %v3683_v37  ;;  %v3276_v34 = vld [vmem:[%s4546_s0 + $0x14] ss:$28 sps:$4 sm:$0xff]  }
  0x25   :  { %2714 = vmatprep.subr.bf16.mxu0 %v3689_v38  ;;  %647 = vmatprep.mubr.bf16.mxu0 %v3242_v40  ;;  %v3274_v40 = vld [vmem:[%s4546_s0 + $0x10] ss:$28 sps:$4 sm:$0xff]  }
  0x26   :  { %712 = vmatprep.mubr.bf16.mxu1 %v3244_v41  ;;  %3137 = vmatpush3.bf16.msra.mxu1 %v3707_v42  ;;  %v3278_v41 = vld [vmem:[%s4546_s0 + $0x50] ss:$28 sps:$4 sm:$0xff]  }
  0x27   :  { %3138 = vmatprep.subr.bf16.mxu1 %v3786_v59 }
  0x28   :  { %2715 = vmatpush3.bf16.msra.mxu0 %v3695_v39 }
  0x29   :  { %2716 = vmatprep.subr.bf16.mxu0 %v3720_v45 }
  0x2a   :  { %3139 = vmatpush3.bf16.msra.mxu1 %v3786_v59 }
  0x2b   :  { %648 = vmatmul.mubr.bf16.gmra.mxu0 %v3247_v43  ;;  %2798 = vmatprep.subr.bf16.mxu1 %v3479_v1  ;;  %v3279_v43 = vld [vmem:[%s4546_s0 + $0x4c] ss:$28 sps:$4 sm:$0xff]  }
  0x2c   :  { %713 = vmatmul.mubr.bf16.gmra.mxu1 %v3248_v44  ;;  %2717 = vmatpush3.bf16.msra.mxu0 %v3726_v46  ;;  %v3285_v44 = vld [vmem:[%s4546_s0 + $0x88] ss:$28 sps:$4 sm:$0xff]  }
  0x2d   :  { %2718 = vmatprep.subr.bf16.mxu0 %v3732_v47  ;;  %655 = vmatprep.mubr.bf16.mxu0 %v3253_v49  ;;  %v3281_v49 = vld [vmem:[%s4546_s0 + $0x48] ss:$28 sps:$4 sm:$0xff]  }
  0x2e   :  { %720 = vmatprep.mubr.bf16.mxu1 %v3255_v50  ;;  %v3286_v50 = vld [vmem:[%s4546_s0 + $0xc0] ss:$28 sps:$4 sm:$0xff]  }
  0x30   :  { %2719 = vmatpush3.bf16.msra.mxu0 %v3738_v48 }
  0x31   :  { %2720 = vmatprep.subr.bf16.mxu0 %v3756_v53 }
  0x33   :  { %656 = vmatmul.mubr.bf16.gmra.mxu0 %v3257_v51  ;;  %v3282_v51 = vld [vmem:[%s4546_s0 + $0x84] ss:$28 sps:$4 sm:$0xff]  }
  0x34   :  { %721 = vmatmul.mubr.bf16.gmra.mxu1 %v3258_v52  ;;  %2721 = vmatpush3.bf16.msra.mxu0 %v3762_v54  ;;  %v3292_v52 = vld [vmem:[%s4546_s0 + $0xec] ss:$28 sps:$4 sm:$0xff]  }
  0x35   :  { %2722 = vmatprep.subr.bf16.mxu0 %v3768_v55  ;;  %663 = vmatprep.mubr.bf16.mxu0 %v3263_v57  ;;  %v3284_v57 = vld [vmem:[%s4546_s0 + $0x80] ss:$28 sps:$4 sm:$0xff]  }
  0x36   :  { %728 = vmatprep.mubr.bf16.mxu1 %v3265_v58  ;;  %v3287_v58 = vld [vmem:[%s4546_s0 + $0xbc] ss:$28 sps:$4 sm:$0xff]  }
  0x38   :  { %2723 = vmatpush3.bf16.msra.mxu0 %v3773_v56 }
  0x39   :  { %2724 = vmatprep.subr.bf16.mxu0 %v3798_v62 }
  0x3b   :  { %664 = vmatmul.mubr.bf16.gmra.mxu0 %v3268_v60  ;;  %v3289_v60 = vld [vmem:[%s4546_s0 + $0xb8] ss:$28 sps:$4 sm:$0xff]  }
  0x3c   :  { %729 = vmatmul.mubr.bf16.gmra.mxu1 %v3269_v61  ;;  %2725 = vmatpush3.bf16.msra.mxu0 %v3805_v63  ;;  %v3295_v61 = vld [vmem:[%s4546_s0 + $0xe4] ss:$28 sps:$4 sm:$0xff]  }
  0x3d   :  { %2726 = vmatprep.subr.bf16.mxu0 %v3811_v32  ;;  %769 = vmatprep.mubr.bf16.mxu0 %v3276_v34  ;;  %v3290_v34 = vld [vmem:[%s4546_s0 + $0xe8] ss:$28 sps:$4 sm:$0xff]  }
  0x3e   :  { %3140 = vmatprep.mubr.msk.bf16.mxu1 %vm594_vm0, %v3277_v35  ;;  %v3293_v35 = vld [vmem:[%s4546_s0 + $0xe0] ss:$28 sps:$4 sm:$0xff]  }
  0x40   :  { %2727 = vmatpush3.bf16.msra.mxu0 %v3817_v33 }
  0x41   :  { %2758 = vmatprep.subr.bf16.mxu0 %v3474_v0 }
  0x43   :  { %770 = vmatmul.mubr.bf16.vlgmr.msra.gmra.mxu0 %v3274_v40  ;;  %v3296_v40 = vld [vmem:[%s4546_s0 + $0x124] ss:$28 sps:$4 sm:$0xff]  }
  0x44   :  { %3141 = vmatmul.mubr.msk.bf16.vlgmr.msra.gmra.mxu1 %vm594_vm0, %v3278_v41  ;;  %2759 = vmatpush3.bf16.msra.mxu0 %v3485_v2  ;;  %v3298_v41 = vld [vmem:[%s4546_s0 + $0x11c] ss:$28 sps:$4 sm:$0xff]  }
  0x45   :  { %2799 = vmatpush3.bf16.msra.mxu1 %v3491_v3  ;;  %2760 = vmatprep.subr.bf16.mxu0 %v3497_v4 }
  0x46   :  { %2800 = vmatprep.subr.bf16.mxu1 %v3503_v5  ;;  %777 = vmatprep.mubr.bf16.mxu0 %v3279_v43  ;;  %v3300_v43 = vld [vmem:[%s4546_s0 + $0x120] ss:$28 sps:$4 sm:$0xff]  }
  0x47   :  { %3144 = vmatprep.mubr.msk.bf16.mxu1 %vm594_vm0, %v3285_v44  ;;  %v3301_v44 = vld [vmem:[%s4546_s0 + $0x118] ss:$28 sps:$4 sm:$0xff]  }
  0x48   :  { %2761 = vmatpush3.bf16.msra.mxu0 %v3509_v6 }
  0x49   :  { %2801 = vmatpush3.bf16.msra.mxu1 %v3515_v7  ;;  %2762 = vmatprep.subr.bf16.mxu0 %v3521_v8 }
  0x4a   :  { %2802 = vmatprep.subr.bf16.mxu1 %v3527_v9 }
  0x4b   :  { %778 = vmatmul.mubr.bf16.gmra.mxu0 %v3281_v49  ;;  %v3302_v49 = vld [vmem:[%s4546_s0 + $0x15c] ss:$28 sps:$4 sm:$0xff]  }
  0x4c   :  { %3145 = vmatmul.mubr.msk.bf16.gmra.mxu1 %vm594_vm0, %v3286_v50  ;;  %2763 = vmatpush3.bf16.msra.mxu0 %v3533_v10  ;;  %v3304_v50 = vld [vmem:[%s4546_s0 + $0x154] ss:$28 sps:$4 sm:$0xff]  }
  0x4d   :  { %2803 = vmatpush3.bf16.msra.mxu1 %v3539_v11  ;;  %2764 = vmatprep.subr.bf16.mxu0 %v3545_v12 }
  0x4e   :  { %2804 = vmatprep.subr.bf16.mxu1 %v3551_v13  ;;  %785 = vmatprep.mubr.bf16.mxu0 %v3282_v51  ;;  %v3306_v51 = vld [vmem:[%s4546_s0 + $0x158] ss:$28 sps:$4 sm:$0xff]  }
  0x4f   :  { %1165 = vmatprep.mubr.bf16.mxu1 %v3292_v52  ;;  %v3307_v52 = vld [vmem:[%s4546_s0 + $0x150] ss:$28 sps:$4 sm:$0xff]  }
  0x50   :  { %2765 = vmatpush3.bf16.msra.mxu0 %v3557_v14 }
  0x51   :  { %2805 = vmatpush3.bf16.msra.mxu1 %v3563_v15  ;;  %2766 = vmatprep.subr.bf16.mxu0 %v3569_v16 }
  0x52   :  { %2806 = vmatprep.subr.bf16.mxu1 %v3575_v17 }
  0x53   :  { %786 = vmatmul.mubr.bf16.gmra.mxu0 %v3284_v57  ;;  %v3308_v57 = vld [vmem:[%s4546_s0 + $0x194] ss:$28 sps:$4 sm:$0xff]  }
  0x54   :  { %2767 = vmatpush3.bf16.msra.mxu0 %v3581_v18  ;;  %793 = vmatprep.mubr.bf16.mxu0 %v3287_v58  ;;  %v3310_v58 = vld [vmem:[%s4546_s0 + $0x18c] ss:$28 sps:$4 sm:$0xff]  }
  0x55   :  { %2807 = vmatpush3.bf16.msra.mxu1 %v3587_v19  ;;  %2768 = vmatprep.subr.bf16.mxu0 %v3593_v20 }
  0x56   :  { %2808 = vmatprep.subr.bf16.mxu1 %v3599_v21 }
  0x58   :  { %2769 = vmatpush3.bf16.msra.mxu0 %v3605_v22 }
  0x59   :  { %2809 = vmatpush3.bf16.msra.mxu1 %v3611_v23  ;;  %2770 = vmatprep.subr.bf16.mxu0 %v3617_v24 }
  0x5a   :  { %2810 = vmatprep.subr.bf16.mxu1 %v3623_v25 }
  0x5b   :  { %794 = vmatmul.mubr.bf16.gmra.mxu0 %v3289_v60  ;;  %v3313_v60 = vld [vmem:[%s4546_s0 + $0x188] ss:$28 sps:$4 sm:$0xff]  }
  0x5c   :  { %2771 = vmatpush3.bf16.msra.mxu0 %v3629_v26  ;;  %1100 = vmatprep.mubr.bf16.mxu0 %v3295_v61  ;;  %v3314_v61 = vld [vmem:[%s4546_s0 + $0xf8] ss:$28 sps:$4 sm:$0xff]  }
  0x5d   :  { %2811 = vmatpush3.bf16.msra.mxu1 %v3635_v27  ;;  %2772 = vmatprep.subr.bf16.mxu0 %v3641_v28 }
  0x5e   :  { %2812 = vmatprep.subr.bf16.mxu1 %v3647_v29 }
  0x60   :  { %2773 = vmatpush3.bf16.msra.mxu0 %v3653_v30 }
  0x61   :  { %2813 = vmatpush3.bf16.msra.mxu1 %v3659_v31  ;;  %2838 = vmatprep.subr.bf16.mxu0 %v3678_v36 }
  0x62   :  { %3148 = vmatprep.subr.bf16.mxu1 %v3707_v42 }
  0x63   :  { %1101 = vmatmul.mubr.bf16.vlgmr.msra.gmra.mxu0 %v3293_v35  ;;  %v3315_v35 = vld [vmem:[%s4546_s0 + $0xf0] ss:$28 sps:$4 sm:$0xff]  }
  0x64   :  { %1166 = vmatmul.mubr.bf16.vlgmr.msra.gmra.mxu1 %v3290_v34  ;;  %2839 = vmatpush3.bf16.msra.mxu0 %v3683_v37  ;;  %v3317_v34 = vld [vmem:[%s4546_s0 + $0xf4] ss:$28 sps:$4 sm:$0xff]  }
  0x65   :  { %1173 = vmatprep.mubr.bf16.mxu1 %v3296_v40  ;;  %2840 = vmatprep.subr.bf16.mxu0 %v3689_v38  ;;  %v3318_v40 = vld [vmem:[%s4546_s0 + $0x130] ss:$28 sps:$4 sm:$0xff]  }
  0x66   :  { %1108 = vmatprep.mubr.bf16.mxu0 %v3298_v41  ;;  %3149 = vmatpush3.bf16.msra.mxu1 %v3707_v42  ;;  %v3319_v41 = vld [vmem:[%s4546_s0 + $0x12c] ss:$28 sps:$4 sm:$0xff]  }
  0x67   :  { %3150 = vmatprep.subr.bf16.mxu1 %v3786_v59 }
  0x68   :  { %2841 = vmatpush3.bf16.msra.mxu0 %v3695_v39 }
  0x69   :  { %2842 = vmatprep.subr.bf16.mxu0 %v3720_v45 }
  0x6a   :  { %3151 = vmatpush3.bf16.msra.mxu1 %v3786_v59 }
  0x6b   :  { %1109 = vmatmul.mubr.bf16.gmra.mxu0 %v3301_v44  ;;  %2924 = vmatprep.subr.bf16.mxu1 %v3479_v1  ;;  %v3312_v1 = vld [vmem:[%s4546_s0 + $0x190] ss:$28 sps:$4 sm:$0xff]   ;;  %v3326_v44 = vld [vmem:[%s4546_s0 + $0x1a0] ss:$28 sps:$4 sm:$0xff]  }
  0x6c   :  { %1174 = vmatmul.mubr.bf16.gmra.mxu1 %v3300_v43  ;;  %2843 = vmatpush3.bf16.msra.mxu0 %v3726_v46  ;;  %v3325_v43 = vld [vmem:[%s4546_s0 + $0x168] ss:$28 sps:$4 sm:$0xff]  }
  0x6d   :  { %1181 = vmatprep.mubr.bf16.mxu1 %v3302_v49  ;;  %2844 = vmatprep.subr.bf16.mxu0 %v3732_v47  ;;  %v3418_v49 = vld [vmem:[%s4545_s1 + $0xe8] sm:$0xff]  }
  0x6e   :  { %1116 = vmatprep.mubr.bf16.mxu0 %v3304_v50  ;;  %v3419_v50 = vld [vmem:[%s4545_s1 + $0x68] sm:$0xff]  }
  0x70   :  { %2845 = vmatpush3.bf16.msra.mxu0 %v3738_v48 }
  0x71   :  { %2846 = vmatprep.subr.bf16.mxu0 %v3756_v53 }
  0x73   :  { %1117 = vmatmul.mubr.bf16.gmra.mxu0 %v3307_v52  ;;  %v3372_v52 = vld [vmem:[%s4546_s0 + $0x2ac] ss:$28 sps:$4 sm:$0xff]  }
  0x74   :  { %1182 = vmatmul.mubr.bf16.gmra.mxu1 %v3306_v51  ;;  %2847 = vmatpush3.bf16.msra.mxu0 %v3762_v54  ;;  %v3362_v51 = vld [vmem:[%s4546_s0 + $0x244] ss:$28 sps:$4 sm:$0xff]  }
  0x75   :  { %1189 = vmatprep.mubr.bf16.mxu1 %v3308_v57  ;;  %2848 = vmatprep.subr.bf16.mxu0 %v3768_v55  ;;  %v3420_v57 = vld [vmem:[%s4545_s1 + $0xa8] sm:$0xff]  }
  0x76   :  { %1124 = vmatprep.mubr.bf16.mxu0 %v3310_v58  ;;  %v3421_v58 = vld [vmem:[%s4545_s1 + $0x28] sm:$0xff]  }
  0x78   :  { %2849 = vmatpush3.bf16.msra.mxu0 %v3773_v56 }
  0x79   :  { %2850 = vmatprep.subr.bf16.mxu0 %v3798_v62 }
  0x7b   :  { %1125 = vmatmul.mubr.bf16.gmra.mxu0 %v3313_v60  ;;  %v3423_v60 = vld [vmem:[%s4545_s1 + $0x60] sm:$0xff]  }
  0x7c   :  { %1190 = vmatmul.mubr.bf16.gmra.mxu1 %v3312_v1  ;;  %2851 = vmatpush3.bf16.msra.mxu0 %v3805_v63  ;;  %v3422_v1 = vld [vmem:[%s4545_s1 + $0xe0] sm:$0xff]  }
  0x7d   :  { %3152 = vmatprep.mubr.msk.bf16.mxu1 %vm594_vm0, %v3314_v61  ;;  %2852 = vmatprep.subr.bf16.mxu0 %v3811_v32  ;;  %v3364_v61 = vld [vmem:[%s4546_s0 + $0x240] ss:$28 sps:$4 sm:$0xff]  }
  0x7e   :  { %1230 = vmatprep.mubr.bf16.mxu0 %v3317_v34  ;;  %v3424_v34 = vld [vmem:[%s4545_s1 + $0xa0] sm:$0xff]  }
  0x80   :  { %2853 = vmatpush3.bf16.msra.mxu0 %v3817_v33 }
  0x81   :  { %2884 = vmatprep.subr.bf16.mxu0 %v3474_v0  ;;  %v3321_v0 = vld [vmem:[%s4546_s0 + $0x128] ss:$28 sps:$4 sm:$0xff]  }
  0x83   :  { %1231 = vmatmul.mubr.bf16.vlgmr.msra.gmra.mxu0 %v3315_v35  ;;  %v3425_v35 = vld [vmem:[%s4545_s1 + $0x20] sm:$0xff]  }
  0x84   :  { %3153 = vmatmul.mubr.msk.bf16.vlgmr.msra.gmra.mxu1 %vm594_vm0, %v3318_v40  ;;  %2885 = vmatpush3.bf16.msra.mxu0 %v3485_v2  ;;  %v3322_v2 = vld [vmem:[%s4546_s0 + $0x164] ss:$28 sps:$4 sm:$0xff]   ;;  %v3426_v40 = vld [vmem:[%s4545_s1 + $0xd8] sm:$0xff]  }
  0x85   :  { %2925 = vmatpush3.bf16.msra.mxu1 %v3491_v3  ;;  %2886 = vmatprep.subr.bf16.mxu0 %v3497_v4  ;;  %v3332_v3 = vld [vmem:[%s4546_s0 + $0x1cc] ss:$28 sps:$4 sm:$0xff]   ;;  %v3324_v4 = vld [vmem:[%s4546_s0 + $0x160] ss:$28 sps:$4 sm:$0xff]  }
  0x86   :  { %2926 = vmatprep.subr.bf16.mxu1 %v3503_v5  ;;  %1238 = vmatprep.mubr.bf16.mxu0 %v3319_v41  ;;  %v3327_v5 = vld [vmem:[%s4546_s0 + $0x19c] ss:$28 sps:$4 sm:$0xff]  }
  0x87   :  { %3156 = vmatprep.mubr.msk.bf16.mxu1 %vm594_vm0, %v3325_v43  ;;  %v3427_v41 = vld [vmem:[%s4545_s1 + $0x58] sm:$0xff]  }
  0x88   :  { %2887 = vmatpush3.bf16.msra.mxu0 %v3509_v6  ;;  %v3329_v6 = vld [vmem:[%s4546_s0 + $0x198] ss:$28 sps:$4 sm:$0xff]  }
  0x89   :  { %2927 = vmatpush3.bf16.msra.mxu1 %v3515_v7  ;;  %2888 = vmatprep.subr.bf16.mxu0 %v3521_v8  ;;  %v3335_v7 = vld [vmem:[%s4546_s0 + $0x1c4] ss:$28 sps:$4 sm:$0xff]   ;;  %v3367_v43 = vld [vmem:[%s4546_s0 + $0x27c] ss:$28 sps:$4 sm:$0xff]  }
  0x8a   :  { %2928 = vmatprep.subr.bf16.mxu1 %v3527_v9  ;;  %v3330_v8 = vld [vmem:[%s4546_s0 + $0x1c8] ss:$28 sps:$4 sm:$0xff]   ;;  %v3333_v9 = vld [vmem:[%s4546_s0 + $0x1c0] ss:$28 sps:$4 sm:$0xff]  }
  0x8b   :  { %1239 = vmatmul.mubr.bf16.gmra.mxu0 %v3321_v0  ;;  %v3428_v0 = vld [vmem:[%s4545_s1 + $0x98] sm:$0xff]  }
  0x8c   :  { %3157 = vmatmul.mubr.msk.bf16.gmra.mxu1 %vm594_vm0, %v3326_v44  ;;  %2889 = vmatpush3.bf16.msra.mxu0 %v3533_v10  ;;  %v3336_v10 = vld [vmem:[%s4546_s0 + $0x204] ss:$28 sps:$4 sm:$0xff]   ;;  %v3429_v44 = vld [vmem:[%s4545_s1 + $0x18] sm:$0xff]  }
  0x8d   :  { %2929 = vmatpush3.bf16.msra.mxu1 %v3539_v11  ;;  %2890 = vmatprep.subr.bf16.mxu0 %v3545_v12  ;;  %v3339_v11 = vld [vmem:[%s4546_s0 + $0x1fc] ss:$28 sps:$4 sm:$0xff]  }
  0x8e   :  { %2930 = vmatprep.subr.bf16.mxu1 %v3551_v13  ;;  %1246 = vmatprep.mubr.bf16.mxu0 %v3322_v2  ;;  %v3338_v12 = vld [vmem:[%s4546_s0 + $0x200] ss:$28 sps:$4 sm:$0xff]   ;;  %v3341_v13 = vld [vmem:[%s4546_s0 + $0x1f8] ss:$28 sps:$4 sm:$0xff]  }
  0x8f   :  { %1626 = vmatprep.mubr.bf16.mxu1 %v3332_v3  ;;  %v3430_v2 = vld [vmem:[%s4545_s1 + $0xd0] sm:$0xff]  }
  0x90   :  { %2891 = vmatpush3.bf16.msra.mxu0 %v3557_v14  ;;  %v3342_v14 = vld [vmem:[%s4546_s0 + $0x23c] ss:$28 sps:$4 sm:$0xff]   ;;  %v3431_v3 = vld [vmem:[%s4545_s1 + $0x50] sm:$0xff]  }
  0x91   :  { %2931 = vmatpush3.bf16.msra.mxu1 %v3563_v15  ;;  %2892 = vmatprep.subr.bf16.mxu0 %v3569_v16  ;;  %v3345_v15 = vld [vmem:[%s4546_s0 + $0x234] ss:$28 sps:$4 sm:$0xff]   ;;  %v3410_v16 = vld [vmem:[%s4545_s1 + $0xf8] sm:$0xff]  }
  0x92   :  { %2932 = vmatprep.subr.bf16.mxu1 %v3575_v17  ;;  %v3344_v17 = vld [vmem:[%s4546_s0 + $0x238] ss:$28 sps:$4 sm:$0xff]  }
  0x93   :  { %1247 = vmatmul.mubr.bf16.gmra.mxu0 %v3324_v4  ;;  %v3369_v4 = vld [vmem:[%s4546_s0 + $0x278] ss:$28 sps:$4 sm:$0xff]  }
  0x94   :  { %2893 = vmatpush3.bf16.msra.mxu0 %v3581_v18  ;;  %1254 = vmatprep.mubr.bf16.mxu0 %v3327_v5  ;;  %v3347_v18 = vld [vmem:[%s4546_s0 + $0x230] ss:$28 sps:$4 sm:$0xff]  }
  0x95   :  { %2933 = vmatpush3.bf16.msra.mxu1 %v3587_v19  ;;  %2894 = vmatprep.subr.bf16.mxu0 %v3593_v20  ;;  %v3348_v19 = vld [vmem:[%s4546_s0 + $0x274] ss:$28 sps:$4 sm:$0xff]   ;;  %v3351_v20 = vld [vmem:[%s4546_s0 + $0x26c] ss:$28 sps:$4 sm:$0xff]  }
  0x96   :  { %2934 = vmatprep.subr.bf16.mxu1 %v3599_v21  ;;  %v3350_v21 = vld [vmem:[%s4546_s0 + $0x270] ss:$28 sps:$4 sm:$0xff]  }
  0x97   :  { %v3432_v5 = vld [vmem:[%s4545_s1 + $0x90] sm:$0xff]  }
  0x98   :  { %2895 = vmatpush3.bf16.msra.mxu0 %v3605_v22  ;;  %v3353_v22 = vld [vmem:[%s4546_s0 + $0x268] ss:$28 sps:$4 sm:$0xff]  }
  0x99   :  { %2935 = vmatpush3.bf16.msra.mxu1 %v3611_v23  ;;  %2896 = vmatprep.subr.bf16.mxu0 %v3617_v24  ;;  %v3354_v23 = vld [vmem:[%s4546_s0 + $0x1d8] ss:$28 sps:$4 sm:$0xff]  }
  0x9a   :  { %2936 = vmatprep.subr.bf16.mxu1 %v3623_v25  ;;  %v3358_v24 = vld [vmem:[%s4546_s0 + $0x1d4] ss:$28 sps:$4 sm:$0xff]  }
  0x9b   :  { %1255 = vmatmul.mubr.bf16.gmra.mxu0 %v3329_v6  ;;  %v3355_v25 = vld [vmem:[%s4546_s0 + $0x210] ss:$28 sps:$4 sm:$0xff]  }
  0x9c   :  { %2897 = vmatpush3.bf16.msra.mxu0 %v3629_v26  ;;  %1561 = vmatprep.mubr.bf16.mxu0 %v3335_v7  ;;  %v3356_v26 = vld [vmem:[%s4546_s0 + $0x1d0] ss:$28 sps:$4 sm:$0xff]  }
  0x9d   :  { %2937 = vmatpush3.bf16.msra.mxu1 %v3635_v27  ;;  %2898 = vmatprep.subr.bf16.mxu0 %v3641_v28  ;;  %v3411_v27 = vld [vmem:[%s4545_s1 + $0x78] sm:$0xff]   ;;  %v3359_v28 = vld [vmem:[%s4546_s0 + $0x20c] ss:$28 sps:$4 sm:$0xff]   ;;  %v3433_v6 = vld [vmem:[%s4545_s1 + $0x10] sm:$0xff]  }
  0x9e   :  { %2938 = vmatprep.subr.bf16.mxu1 %v3647_v29  ;;  %v3365_v29 = vld [vmem:[%s4546_s0 + $0x248] ss:$28 sps:$4 sm:$0xff]  }
  0x9f   :  { %v3434_v7 = vld [vmem:[%s4545_s1 + $0xc8] sm:$0xff]  }
  0xa0   :  { %2899 = vmatpush3.bf16.msra.mxu0 %v3653_v30  ;;  %v3412_v30 = vld [vmem:[%s4545_s1 + $0xb8] sm:$0xff]  }
  0xa1   :  { %2939 = vmatpush3.bf16.msra.mxu1 %v3659_v31  ;;  %2964 = vmatprep.subr.bf16.mxu0 %v3678_v36  ;;  %v3413_v31 = vld [vmem:[%s4545_s1 + $0x38] sm:$0xff]  }
  0xa2   :  { %3160 = vmatprep.subr.bf16.mxu1 %v3707_v42 }
  0xa3   :  { %1562 = vmatmul.mubr.bf16.vlgmr.msra.gmra.mxu0 %v3333_v9  ;;  %v3375_v9 = vld [vmem:[%s4546_s0 + $0x2a4] ss:$28 sps:$4 sm:$0xff]  }
  0xa4   :  { %1627 = vmatmul.mubr.bf16.vlgmr.msra.gmra.mxu1 %v3330_v8  ;;  %2965 = vmatpush3.bf16.msra.mxu0 %v3683_v37  ;;  %v3435_v8 = vld [vmem:[%s4545_s1 + $0x48] sm:$0xff]  }
  0xa5   :  { %1634 = vmatprep.mubr.bf16.mxu1 %v3336_v10  ;;  %2966 = vmatprep.subr.bf16.mxu0 %v3689_v38  ;;  %v3436_v10 = vld [vmem:[%s4545_s1 + $0x88] sm:$0xff]  }
  0xa6   :  { %3161 = vmatpush3.bf16.msra.mxu1 %v3707_v42  ;;  %1569 = vmatprep.mubr.bf16.mxu0 %v3339_v11  ;;  %v3415_v42 = vld [vmem:[%s4545_s1 + $0x70] sm:$0xff]   ;;  %v3437_v11 = vld [vmem:[%s4545_s1 + $0x8] sm:$0xff]  }
  0xa7   :  { %3162 = vmatprep.subr.bf16.mxu1 %v3786_v59 }
  0xa8   :  { %2967 = vmatpush3.bf16.msra.mxu0 %v3695_v39  ;;  %v3414_v39 = vld [vmem:[%s4545_s1 + $0xf0] sm:$0xff]  }
  0xa9   :  { %2968 = vmatprep.subr.bf16.mxu0 %v3720_v45 }
  0xaa   :  { %3163 = vmatpush3.bf16.msra.mxu1 %v3786_v59  ;;  %v3416_v59 = vld [vmem:[%s4545_s1 + $0xb0] sm:$0xff]  }
  0xab   :  { %3050 = vmatprep.subr.bf16.mxu1 %v3410_v16  ;;  %1570 = vmatmul.mubr.bf16.gmra.mxu0 %v3341_v13  ;;  %v3439_v13 = vld [vmem:[%s4545_s1 + $0x40] sm:$0xff]  }
  0xac   :  { %1635 = vmatmul.mubr.bf16.gmra.mxu1 %v3338_v12  ;;  %2969 = vmatpush3.bf16.msra.mxu0 %v3726_v46  ;;  %v3438_v12 = vld [vmem:[%s4545_s1 + $0xc0] sm:$0xff]  }
  0xad   :  { %1642 = vmatprep.mubr.bf16.mxu1 %v3342_v14  ;;  %2970 = vmatprep.subr.bf16.mxu0 %v3732_v47  ;;  %v3370_v14 = vld [vmem:[%s4546_s0 + $0x2a8] ss:$28 sps:$4 sm:$0xff]  }
  0xae   :  { %1577 = vmatprep.mubr.bf16.mxu0 %v3345_v15  ;;  %v3373_v15 = vld [vmem:[%s4546_s0 + $0x2a0] ss:$28 sps:$4 sm:$0xff]  }
  0xaf   :  { %v3440_v16 = vld [vmem:[%s4545_s1 + $0x80] sm:$0xff]  }
  0xb0   :  { %2971 = vmatpush3.bf16.msra.mxu0 %v3738_v48  ;;  %v3361_v48 = vld [vmem:[%s4546_s0 + $0x208] ss:$28 sps:$4 sm:$0xff]  }
  0xb1   :  { %2972 = vmatprep.subr.bf16.mxu0 %v3756_v53 }
  0xb3   :  { %1578 = vmatmul.mubr.bf16.gmra.mxu0 %v3347_v18  ;;  %v3376_v18 = vld [vmem:[%s4546_s0 + $0x2e4] ss:$28 sps:$4 sm:$0xff]  }
  0xb4   :  { %1643 = vmatmul.mubr.bf16.gmra.mxu1 %v3344_v17  ;;  %2973 = vmatpush3.bf16.msra.mxu0 %v3762_v54  ;;  %v3441_v17 = vld [vmem:[%s4545_s1] sm:$0xff]  }
  0xb5   :  { %1650 = vmatprep.mubr.bf16.mxu1 %v3348_v19  ;;  %2974 = vmatprep.subr.bf16.mxu0 %v3768_v55 }
  0xb6   :  { %1585 = vmatprep.mubr.bf16.mxu0 %v3351_v20  ;;  %v3379_v20 = vld [vmem:[%s4546_s0 + $0x2dc] ss:$28 sps:$4 sm:$0xff]  }
  0xb8   :  { %2975 = vmatpush3.bf16.msra.mxu0 %v3773_v56  ;;  %v3366_v56 = vld [vmem:[%s4546_s0 + $0x280] ss:$28 sps:$4 sm:$0xff]  }
  0xb9   :  { %2976 = vmatprep.subr.bf16.mxu0 %v3798_v62 }
  0xbb   :  { %1586 = vmatmul.mubr.bf16.gmra.mxu0 %v3353_v22 }
  0xbc   :  { %1651 = vmatmul.mubr.bf16.gmra.mxu1 %v3350_v21  ;;  %2977 = vmatpush3.bf16.msra.mxu0 %v3805_v63 }
  0xbd   :  { %3164 = vmatprep.mubr.msk.bf16.mxu1 %vm594_vm0, %v3354_v23  ;;  %2978 = vmatprep.subr.bf16.mxu0 %v3811_v32 }
  0xbe   :  { %1691 = vmatprep.mubr.bf16.mxu0 %v3358_v24 }
  0xc0   :  { %2979 = vmatpush3.bf16.msra.mxu0 %v3817_v33  ;;  %v3417_v33 = vld [vmem:[%s4545_s1 + $0x30] sm:$0xff]  }
  0xc1   :  { %3010 = vmatprep.subr.bf16.mxu0 %v3411_v27 }
  0xc3   :  { %1692 = vmatmul.mubr.bf16.vlgmr.msra.gmra.mxu0 %v3356_v26 }
  0xc4   :  { %3165 = vmatmul.mubr.msk.bf16.vlgmr.msra.gmra.mxu1 %vm594_vm0, %v3355_v25  ;;  %3011 = vmatpush3.bf16.msra.mxu0 %v3413_v31 }
  0xc5   :  { %3051 = vmatpush3.bf16.msra.mxu1 %v3412_v30  ;;  %3012 = vmatprep.subr.bf16.mxu0 %v3415_v42  ;;  %v3442_v30 = vld [vmem:[%s4545_s1 + $0x130] sm:$0xff]  }
  0xc6   :  { %3052 = vmatprep.subr.bf16.mxu1 %v3414_v39  ;;  %1699 = vmatprep.mubr.bf16.mxu0 %v3359_v28 }
  0xc7   :  { %3168 = vmatprep.mubr.msk.bf16.mxu1 %vm594_vm0, %v3365_v29  ;;  %v3381_v29 = vld [vmem:[%s4546_s0 + $0x2d8] ss:$28 sps:$4 sm:$0xff]  }
  0xc8   :  { %3013 = vmatpush3.bf16.msra.mxu0 %v3417_v33  ;;  %v3385_v33 = vld [vmem:[%s4546_s0 + $0x314] ss:$28 sps:$4 sm:$0xff]  }
  0xc9   :  { %3053 = vmatpush3.bf16.msra.mxu1 %v3416_v59  ;;  %3014 = vmatprep.subr.bf16.mxu0 %v3419_v50 }
  0xca   :  { %3054 = vmatprep.subr.bf16.mxu1 %v3418_v49 }
  0xcb   :  { %1700 = vmatmul.mubr.bf16.gmra.mxu0 %v3361_v48  ;;  %v3382_v48 = vld [vmem:[%s4546_s0 + $0x31c] ss:$28 sps:$4 sm:$0xff]  }
  0xcc   :  { %3169 = vmatmul.mubr.msk.bf16.gmra.mxu1 %vm594_vm0, %v3366_v56  ;;  %3015 = vmatpush3.bf16.msra.mxu0 %v3421_v58 }
  0xcd   :  { %3055 = vmatpush3.bf16.msra.mxu1 %v3420_v57  ;;  %3016 = vmatprep.subr.bf16.mxu0 %v3423_v60 }
  0xce   :  { %3056 = vmatprep.subr.bf16.mxu1 %v3422_v1  ;;  %1707 = vmatprep.mubr.bf16.mxu0 %v3362_v51 }
  0xcf   :  { %2087 = vmatprep.mubr.bf16.mxu1 %v3372_v52 }
  0xd0   :  { %3017 = vmatpush3.bf16.msra.mxu0 %v3425_v35  ;;  %v3443_v35 = vld [vmem:[%s4545_s1 + $0x120] sm:$0xff]  }
  0xd1   :  { %3057 = vmatpush3.bf16.msra.mxu1 %v3424_v34  ;;  %3018 = vmatprep.subr.bf16.mxu0 %v3427_v41  ;;  %v3387_v34 = vld [vmem:[%s4546_s0 + $0x310] ss:$28 sps:$4 sm:$0xff]  }
  0xd2   :  { %3058 = vmatprep.subr.bf16.mxu1 %v3426_v40 }
  0xd3   :  { %1708 = vmatmul.mubr.bf16.gmra.mxu0 %v3364_v61 }
  0xd4   :  { %3019 = vmatpush3.bf16.msra.mxu0 %v3429_v44  ;;  %1715 = vmatprep.mubr.bf16.mxu0 %v3367_v43 }
  0xd5   :  { %3059 = vmatpush3.bf16.msra.mxu1 %v3428_v0  ;;  %3020 = vmatprep.subr.bf16.mxu0 %v3431_v3  ;;  %v3388_v0 = vld [vmem:[%s4546_s0 + $0x354] ss:$28 sps:$4 sm:$0xff]   ;;  %v3391_v3 = vld [vmem:[%s4546_s0 + $0x34c] ss:$28 sps:$4 sm:$0xff]  }
  0xd6   :  { %3060 = vmatprep.subr.bf16.mxu1 %v3430_v2 }
  0xd8   :  { %3021 = vmatpush3.bf16.msra.mxu0 %v3433_v6 }
  0xd9   :  { %3061 = vmatpush3.bf16.msra.mxu1 %v3432_v5  ;;  %3022 = vmatprep.subr.bf16.mxu0 %v3435_v8 }
  0xda   :  { %3062 = vmatprep.subr.bf16.mxu1 %v3434_v7 }
  0xdb   :  { %1716 = vmatmul.mubr.bf16.gmra.mxu0 %v3369_v4 }
  0xdc   :  { %3023 = vmatpush3.bf16.msra.mxu0 %v3437_v11  ;;  %2022 = vmatprep.mubr.bf16.mxu0 %v3375_v9  ;;  %v3444_v11 = vld [vmem:[%s4545_s1 + $0x150] sm:$0xff]  }
  0xdd   :  { %3063 = vmatpush3.bf16.msra.mxu1 %v3436_v10  ;;  %3024 = vmatprep.subr.bf16.mxu0 %v3439_v13 }
  0xde   :  { %3064 = vmatprep.subr.bf16.mxu1 %v3438_v12 }
  0xe0   :  { %3025 = vmatpush3.bf16.msra.mxu0 %v3441_v17 }
  0xe1   :  { %3065 = vmatpush3.bf16.msra.mxu1 %v3440_v16  ;;  %3090 = vmatprep.subr.bf16.mxu0 %v3678_v36 }
  0xe2   :  { %3184 = vmatprep.subr.bf16.mxu1 %v3678_v36  ;;  %v4262_v36 = vld [vmem:[%s4547_s2] ss:$0 sm:$0xff] }
  0xe3   :  { %v2648_v19 = vpop.f32.mrf.mxu0  ;;  %2023 = vmatmul.mubr.bf16.vlgmr.msra.gmra.mxu0 %v3373_v15 }
  0xe4   :  { %2088 = vmatmul.mubr.bf16.vlgmr.msra.gmra.mxu1 %v3370_v14  ;;  %v2688_v21 = vpop.f32.mrf.mxu1  ;;  %3091 = vmatpush3.bf16.msra.mxu0 %v3683_v37  ;;  %v3445_v14 = vld [vmem:[%s4545_s1 + $0x110] sm:$0xff]  }
  0xe5   :  { %3192 = vmatpush3.bf16.msra.mxu1 %v3683_v37  ;;  %v2649_v22 = vpop.f32.mrf.mxu0  ;;  %2095 = vmatprep.mubr.bf16.mxu1 %v3376_v18  ;;  %v3378_v37 = vld [vmem:[%s4546_s0 + $0x2e0] ss:$28 sps:$4 sm:$0xff]  }
  0xe6   :  { %3185 = vmatprep.subr.bf16.mxu1 %v3689_v38  ;;  %v2650_v23 = vadd.f32 %v2649_v22, %v2648_v19  ;;  %v2689_v24 = vpop.f32.mrf.mxu1  ;;  %3092 = vmatprep.subr.bf16.mxu0 %v3689_v38  ;;  %v3399_v22 = vld [vmem:[%s4546_s0 + $0x2b4] ss:$28 sps:$4 sm:$0xff]  }
  0xe7   :  { %v2690_v25 = vadd.f32 %v2689_v24, %v2688_v21  ;;  %v2651_v26 = vpop.f32.mrf.mxu0  ;;  %2030 = vmatprep.mubr.bf16.mxu0 %v3379_v20  ;;  %v3396_v21 = vld [vmem:[%s4546_s0 + $0x35c] ss:$28 sps:$4 sm:$0xff]  }
  0xe8   :  { %v642_v27 = vadd.f32 %v2650_v23, %v4262_v36  ;;  %v2691_v28 = vpop.f32.mrf.mxu1  ;;  %3093 = vmatpush3.bf16.msra.mxu0 %v3442_v30 }
  0xe9   :  { %3193 = vmatpush3.bf16.msra.mxu1 %v3442_v30  ;;  %v2652_v31 = vpop.f32.mrf.mxu0  ;;  %3094 = vmatprep.subr.bf16.mxu0 %v3720_v45 }
  0xea   :  { %v4276_v38 = vadd.f32 %v2690_v25, %v642_v27  ;;  %3186 = vmatprep.subr.bf16.mxu1 %v3720_v45  ;;  %v2653_v39 = vadd.f32 %v2652_v31, %v2651_v26  ;;  %v2692_v42 = vpop.f32.mrf.mxu1 }
  0xeb   :  { %v2693_v56 = vadd.f32 %v2692_v42, %v2691_v28  ;;  %v2654_v59 = vpop.f32.mrf.mxu0  ;;  %2031 = vmatmul.mubr.bf16.gmra.mxu0 %v3381_v29  ;;  %v3446_v28 = vld [vmem:[%s4545_s1 + $0x140] sm:$0xff]  }
  0xec   :  { %2096 = vmatmul.mubr.bf16.gmra.mxu1 %v3378_v37  ;;  %v645_v49 = vadd.f32 %v2653_v39, %v4262_v36  ;;  %v2694_v50 = vpop.f32.mrf.mxu1  ;;  %3095 = vmatpush3.bf16.msra.mxu0 %v3726_v46  ;;  %v3447_v39 = vld [vmem:[%s4545_s1 + $0x100] sm:$0xff]  }
  0xed   :  { %3194 = vmatpush3.bf16.msra.mxu1 %v3726_v46  ;;  %v2655_v45 = vpop.f32.mrf.mxu0  ;;  %2103 = vmatprep.mubr.bf16.mxu1 %v3382_v48  ;;  %v3384_v46 = vld [vmem:[%s4546_s0 + $0x318] ss:$28 sps:$4 sm:$0xff]  }
  0xee   :  { %v4289_v51 = vadd.f32 %v2693_v56, %v645_v49  ;;  %3187 = vmatprep.subr.bf16.mxu1 %v3732_v47  ;;  %v2656_v52 = vadd.f32 %v2655_v45, %v2654_v59  ;;  %v2695_v57 = vpop.f32.mrf.mxu1  ;;  %3096 = vmatprep.subr.bf16.mxu0 %v3732_v47  ;;  %v3400_v48 = vld [vmem:[%s4546_s0 + $0x2b8] ss:$28 sps:$4 sm:$0xff]   ;;  %v3448_v59 = vld [vmem:[%s4545_s1 + $0x188] sm:$0xff]  }
  0xef   :  { %v2696_v58 = vadd.f32 %v2695_v57, %v2694_v50  ;;  %v2657_v1 = vpop.f32.mrf.mxu0  ;;  %2038 = vmatprep.mubr.bf16.mxu0 %v3385_v33  ;;  %v3404_v50 = vld [vmem:[%s4546_s0 + $0x2ec] ss:$28 sps:$4 sm:$0xff]  }
  0xf0   :  { %v650_v60 = vadd.f32 %v2656_v52, %v4262_v36  ;;  %v2697_v61 = vpop.f32.mrf.mxu1  ;;  %3097 = vmatpush3.bf16.msra.mxu0 %v3443_v35 }
  0xf1   :  { %3195 = vmatpush3.bf16.msra.mxu1 %v3443_v35  ;;  %v2658_v40 = vpop.f32.mrf.mxu0  ;;  %3098 = vmatprep.subr.bf16.mxu0 %v3756_v53 }
  0xf2   :  { %v4303_v47 = vadd.f32 %v2696_v58, %v650_v60  ;;  %3188 = vmatprep.subr.bf16.mxu1 %v3756_v53  ;;  %v2659_v41 = vadd.f32 %v2658_v40, %v2657_v1  ;;  %v2698_v43 = vpop.f32.mrf.mxu1  ;;  %v3449_v60 = vld [vmem:[%s4545_s1 + $0x180] sm:$0xff]   ;;  %v3401_v40 = vld [vmem:[%s4546_s0 + $0x2f0] ss:$28 sps:$4 sm:$0xff]  }
  0xf3   :  { %v2699_v44 = vadd.f32 %v2698_v43, %v2697_v61  ;;  %v2660_v2 = vpop.f32.mrf.mxu0  ;;  %2039 = vmatmul.mubr.bf16.gmra.mxu0 %v3387_v34 }
  0xf4   :  { %2104 = vmatmul.mubr.bf16.gmra.mxu1 %v3384_v46  ;;  %v653_v4 = vadd.f32 %v2659_v41, %v4262_v36  ;;  %v2700_v5 = vpop.f32.mrf.mxu1  ;;  %3099 = vmatpush3.bf16.msra.mxu0 %v3762_v54  ;;  %v3402_v41 = vld [vmem:[%s4546_s0 + $0x2e8] ss:$28 sps:$4 sm:$0xff]  }
  0xf5   :  { %3196 = vmatpush3.bf16.msra.mxu1 %v3762_v54  ;;  %v2661_v53 = vpop.f32.mrf.mxu0  ;;  %2111 = vmatprep.mubr.bf16.mxu1 %v3388_v0  ;;  %v3390_v54 = vld [vmem:[%s4546_s0 + $0x350] ss:$28 sps:$4 sm:$0xff]   ;;  %v3405_v0 = vld [vmem:[%s4546_s0 + $0x328] ss:$28 sps:$4 sm:$0xff]  }
  0xf6   :  { %v4316_v6 = vadd.f32 %v2699_v44, %v653_v4  ;;  %3189 = vmatprep.subr.bf16.mxu1 %v3768_v55  ;;  %v2662_v7 = vadd.f32 %v2661_v53, %v2660_v2  ;;  %v2701_v8 = vpop.f32.mrf.mxu1  ;;  %3100 = vmatprep.subr.bf16.mxu0 %v3444_v11  ;;  %v3393_v55 = vld [vmem:[%s4546_s0 + $0x348] ss:$28 sps:$4 sm:$0xff]  }
  0xf7   :  { %v2702_v9 = vadd.f32 %v2701_v8, %v2700_v5  ;;  %v2663_v10 = vpop.f32.mrf.mxu0  ;;  %2046 = vmatprep.mubr.bf16.mxu0 %v3391_v3  ;;  %v3409_v44 = vld [vmem:[%s4546_s0 + $0x324] ss:$28 sps:$4 sm:$0xff]  }
  0xf8   :  { %v658_v12 = vadd.f32 %v2662_v7, %v4262_v36  ;;  %v2703_v13 = vpop.f32.mrf.mxu1  ;;  %3101 = vmatpush3.bf16.msra.mxu0 %v3445_v14 }
  0xf9   :  { %3197 = vmatpush3.bf16.msra.mxu1 %v3445_v14  ;;  %v2664_v15 = vpop.f32.mrf.mxu0  ;;  %3102 = vmatprep.subr.bf16.mxu0 %v3798_v62 }
  0xfa   :  { %v4332_v16 = vadd.f32 %v2702_v9, %v658_v12  ;;  %3190 = vmatprep.subr.bf16.mxu1 %v3798_v62  ;;  %v2665_v17 = vadd.f32 %v2664_v15, %v2663_v10  ;;  %v2704_v18 = vpop.f32.mrf.mxu1  ;;  %v3406_v12 = vld [vmem:[%s4546_s0 + $0x360] ss:$28 sps:$4 sm:$0xff]  }
  0xfb   :  { %v2705_v19 = vadd.f32 %v2704_v18, %v2703_v13  ;;  %v2666_v20 = vpop.f32.mrf.mxu0  ;;  %2047 = vmatmul.mubr.bf16.gmra.mxu0 %v3393_v55  ;;  %v3407_v13 = vld [vmem:[%s4546_s0 + $0x320] ss:$28 sps:$4 sm:$0xff]  }
  0xfc   :  { %2112 = vmatmul.mubr.bf16.gmra.mxu1 %v3390_v54  ;;  %v661_v23 = vadd.f32 %v2665_v17, %v4262_v36  ;;  %v2706_v24 = vpop.f32.mrf.mxu1  ;;  %3103 = vmatpush3.bf16.msra.mxu0 %v3805_v63 }
  0xfd   :  { %3198 = vmatpush3.bf16.msra.mxu1 %v3805_v63  ;;  %v2667_v62 = vpop.f32.mrf.mxu0  ;;  %3104 = vmatprep.subr.bf16.mxu0 %v3446_v28  ;;  %v3394_v63 = vld [vmem:[%s4546_s0 + $0x358] ss:$28 sps:$4 sm:$0xff]  }
  0xfe   :  { %v4345_v25 = vadd.f32 %v2705_v19, %v661_v23  ;;  %3191 = vmatprep.subr.bf16.mxu1 %v3811_v32  ;;  %v2668_v26 = vadd.f32 %v2667_v62, %v2666_v20  ;;  %v2707_v27 = vpop.f32.mrf.mxu1  ;;  %2176 = vmatprep.mubr.bf16.mxu1 %v3396_v21  ;;  %v3397_v32 = vld [vmem:[%s4546_s0 + $0x2b0] ss:$28 sps:$4 sm:$0xff]  }
  0xff   :  { %v2708_v37 = vadd.f32 %v2707_v27, %v2706_v24  ;;  %v2669_v29 = vpop.f32.mrf.mxu0  ;;  %2152 = vmatprep.mubr.bf16.mxu0 %v3399_v22 }
 0x100   :  { %v666_v30 = vadd.f32 %v2668_v26, %v4262_v36  ;;  %v2709_v31 = vpop.f32.mrf.mxu1  ;;  %3105 = vmatpush3.bf16.msra.mxu0 %v3447_v39 }
 0x101   :  { %3199 = vmatpush3.bf16.msra.mxu1 %v3447_v39  ;;  %v2670_v42 = vpop.f32.mrf.mxu0 }
 0x102   :  { %v4364_v56 = vadd.f32 %v2708_v37, %v666_v30  ;;  %3172 = vmatprep.subr.bf16.mxu1 %v3448_v59  ;;  %v2671_v33 = vadd.f32 %v2670_v42, %v2669_v29  ;;  %v2710_v49 = vpop.f32.mrf.mxu1 }
 0x103   :  { %v2711_v45 = vadd.f32 %v2710_v49, %v2709_v31  ;;  %v2728_v57 = vpop.f32.mrf.mxu0  ;;  %2153 = vmatmul.mubr.bf16.vlgmr.msra.gmra.mxu0 %v3397_v32 }
 0x104   :  { %2177 = vmatmul.mubr.bf16.vlgmr.msra.gmra.mxu1 %v3394_v63  ;;  %v669_v52 = vadd.f32 %v2671_v33, %v4262_v36  ;;  %v3142_v58 = vpop.f32.mrf.mxu1  ;;  %2160 = vmatprep.mubr.bf16.mxu0 %v3404_v50 }
 0x105   :  { %3173 = vmatpush3.bf16.msra.mxu1 %v3448_v59  ;;  %3176 = vmatprep.mubr.msk.bf16.mxu1 %vm594_vm0, %v3400_v48  ;;  %v2729_v61 = vpop.f32.mrf.mxu0 }
 0x106   :  { %v4374_v1 = vadd.f32 %v2711_v45, %v669_v52  ;;  %3174 = vmatprep.subr.bf16.mxu1 %v3449_v60  ;;  %v836_v46 = vpop.f32.mrf.mxu1  ;;  %v2730_v34 = vadd.f32 %v2729_v61, %v2728_v57 }
 0x107   :  { %v2731_v35 = vpop.f32.mrf.mxu0 }
 0x108   :  { %v772_v43 = vadd.f32 %v2730_v34, %v4276_v38  ;;  %v3143_v2 = vpop.f32.mrf.mxu1 }
 0x109   :  { %3175 = vmatpush3.bf16.msra.mxu1 %v3449_v60  ;;  %v2732_v3 = vpop.f32.mrf.mxu0 }
 0x10a   :  { %v4392_v4 = vadd.f32 %v836_v46, %v772_v43  ;;  %v2733_v5 = vadd.f32 %v2732_v3, %v2731_v35  ;;  %v839_v38 = vpop.f32.mrf.mxu1 }
 0x10b   :  { %v2734_v53 = vpop.f32.mrf.mxu0  ;;  %2161 = vmatmul.mubr.bf16.gmra.mxu0 %v3402_v41 }
 0x10c   :  { %3177 = vmatmul.mubr.msk.bf16.vlgmr.msra.gmra.mxu1 %vm594_vm0, %v3401_v40  ;;  %v775_v7 = vadd.f32 %v2733_v5, %v4289_v51  ;;  %2168 = vmatprep.mubr.bf16.mxu0 %v3409_v44  ;;  %v3146_v54 = vpop.f32.mrf.mxu1 }
 0x10d   :  { %3180 = vmatprep.mubr.msk.bf16.mxu1 %vm594_vm0, %v3405_v0  ;;  %v2735_v8 = vpop.f32.mrf.mxu0 }
 0x10e   :  { %v4397_v9 = vadd.f32 %v839_v38, %v775_v7  ;;  %v2736_v10 = vadd.f32 %v2735_v8, %v2734_v53  ;;  %v852_v18 = vpop.f32.mrf.mxu1 }
 0x10f   :  { %v2737_v11 = vpop.f32.mrf.mxu0 }
 0x110   :  { %v780_v51 = vadd.f32 %v2736_v10, %v4303_v47  ;;  %v3147_v24 = vpop.f32.mrf.mxu1 }
 0x111   :  { %v2738_v55 = vpop.f32.mrf.mxu0 }
 0x112   :  { %v4406_v14 = vadd.f32 %v3142_v58, %v780_v51  ;;  %v2739_v15 = vadd.f32 %v2738_v55, %v2737_v11  ;;  %v855_v37 = vpop.f32.mrf.mxu1 }
 0x113   :  { %v2740_v17 = vpop.f32.mrf.mxu0  ;;  %2169 = vmatmul.mubr.bf16.gmra.mxu0 %v3407_v13 }
 0x114   :  { %3181 = vmatmul.mubr.msk.bf16.gmra.mxu1 %vm594_vm0, %v3406_v12  ;;  %v783_v19 = vadd.f32 %v2739_v15, %v4316_v6 }
 0x115   :  { %v2741_v20 = vpop.f32.mrf.mxu0 }
 0x116   :  { %v4410_v21 = vadd.f32 %v3143_v2, %v783_v19  ;;  %v2742_v22 = vadd.f32 %v2741_v20, %v2740_v17 }
 0x117   :  { %v2743_v23 = vpop.f32.mrf.mxu0 }
 0x118   :  { %v788_v62 = vadd.f32 %v2742_v22, %v4332_v16 }
 0x119   :  { %v2744_v47 = vpop.f32.mrf.mxu0 }
 0x11a   :  { %v2745_v26 = vadd.f32 %v2744_v47, %v2743_v23  ;;  %v4413_v27 = vadd.f32 %v852_v18, %v788_v62 }
 0x11b   :  { %v2746_v28 = vpop.f32.mrf.mxu0 }
 0x11c   :  { %v791_v29 = vadd.f32 %v2745_v26, %v4345_v25 }
 0x11d   :  { %v2747_v30 = vpop.f32.mrf.mxu0 }
 0x11e   :  { %v2748_v63 = vadd.f32 %v2747_v30, %v2746_v28  ;;  %v4416_v31 = vadd.f32 %v855_v37, %v791_v29 }
 0x11f   :  { %v2749_v6 = vpop.f32.mrf.mxu0 }
 0x120   :  { %v796_v32 = vadd.f32 %v2748_v63, %v4364_v56 }
 0x121   :  { %v2750_v39 = vpop.f32.mrf.mxu0 }
 0x122   :  { %v4419_v42 = vadd.f32 %v3146_v54, %v796_v32  ;;  %v2751_v48 = vadd.f32 %v2750_v39, %v2749_v6 }
 0x123   :  { %v2774_v16 = vpop.f32.mrf.mxu0 }
 0x124   :  { %v2814_v59 = vpop.f32.mrf.mxu1  ;;  %v799_v33 = vadd.f32 %v2751_v48, %v4374_v1 }
 0x125   :  { %v2775_v49 = vpop.f32.mrf.mxu0 }
 0x126   :  { %v2815_v50 = vpop.f32.mrf.mxu1  ;;  %v4422_v45 = vadd.f32 %v3147_v24, %v799_v33  ;;  %v2776_v25 = vadd.f32 %v2775_v49, %v2774_v16 }
 0x127   :  { %v2816_v52 = vadd.f32 %v2815_v50, %v2814_v59  ;;  %v2777_v57 = vpop.f32.mrf.mxu0 }
 0x128   :  { %v2817_v58 = vpop.f32.mrf.mxu1  ;;  %v1103_v60 = vadd.f32 %v2776_v25, %v4262_v36 }
 0x129   :  { %v2778_v61 = vpop.f32.mrf.mxu0 }
 0x12a   :  { %v2818_v56 = vpop.f32.mrf.mxu1  ;;  %v1168_v46 = vadd.f32 %v2816_v52, %v1103_v60  ;;  %v2779_v34 = vadd.f32 %v2778_v61, %v2777_v57 }
 0x12b   :  { %v2819_v35 = vadd.f32 %v2818_v56, %v2817_v58  ;;  %v2780_v40 = vpop.f32.mrf.mxu0 }
 0x12c   :  { %v2820_v41 = vpop.f32.mrf.mxu1  ;;  %v1106_v43 = vadd.f32 %v2779_v34, %v4262_v36 }
 0x12d   :  { %v2781_v1 = vpop.f32.mrf.mxu0 }
 0x12e   :  { %v2821_v0 = vpop.f32.mrf.mxu1  ;;  %v1171_v44 = vadd.f32 %v2819_v35, %v1106_v43  ;;  %v2782_v2 = vadd.f32 %v2781_v1, %v2780_v40 }
 0x12f   :  { %v2822_v3 = vadd.f32 %v2821_v0, %v2820_v41  ;;  %v2783_v5 = vpop.f32.mrf.mxu0 }
 0x130   :  { %v2823_v53 = vpop.f32.mrf.mxu1  ;;  %v1111_v7 = vadd.f32 %v2782_v2, %v4262_v36 }
 0x131   :  { %v2784_v38 = vpop.f32.mrf.mxu0 }
 0x132   :  { %v2824_v8 = vpop.f32.mrf.mxu1  ;;  %v1176_v10 = vadd.f32 %v2822_v3, %v1111_v7  ;;  %v2785_v11 = vadd.f32 %v2784_v38, %v2783_v5 }
 0x133   :  { %v2825_v12 = vadd.f32 %v2824_v8, %v2823_v53  ;;  %v2786_v13 = vpop.f32.mrf.mxu0  ;;  %v867_v53 = vmax.f32 %v4392_v4, 0.0 }
 0x134   :  { %v2826_v54 = vpop.f32.mrf.mxu1  ;;  %v1114_v51 = vadd.f32 %v2785_v11, %v4262_v36 }
 0x135   :  { %v2787_v55 = vpop.f32.mrf.mxu0 }
 0x136   :  { %v2827_v15 = vpop.f32.mrf.mxu1  ;;  %v1179_v17 = vadd.f32 %v2825_v12, %v1114_v51  ;;  %v2788_v18 = vadd.f32 %v2787_v55, %v2786_v13 }
 0x137   :  { %v2828_v19 = vadd.f32 %v2827_v15, %v2826_v54  ;;  %v2789_v20 = vpop.f32.mrf.mxu0  ;;  %v868_v15 = vmax.f32 %v4397_v9, 0.0 }
 0x138   :  { %v2829_v22 = vpop.f32.mrf.mxu1  ;;  %v1119_v23 = vadd.f32 %v2788_v18, %v4262_v36 }
 0x139   :  { %v2790_v24 = vpop.f32.mrf.mxu0 }
 0x13a   :  { %v2830_v62 = vpop.f32.mrf.mxu1  ;;  %v4429_v47 = vadd.f32 %v2828_v19, %v1119_v23  ;;  %v2791_v26 = vadd.f32 %v2790_v24, %v2789_v20 }
 0x13b   :  { %v2831_v28 = vadd.f32 %v2830_v62, %v2829_v22  ;;  %v2792_v37 = vpop.f32.mrf.mxu0 }
 0x13c   :  { %v2832_v29 = vpop.f32.mrf.mxu1  ;;  %v1122_v30 = vadd.f32 %v2791_v26, %v4262_v36 }
 0x13d   :  { %v2793_v63 = vpop.f32.mrf.mxu0 }
 0x13e   :  { %v2833_v6 = vpop.f32.mrf.mxu1  ;;  %v4432_v32 = vadd.f32 %v2831_v28, %v1122_v30  ;;  %v2794_v39 = vadd.f32 %v2793_v63, %v2792_v37 }
 0x13f   :  { %v2834_v48 = vadd.f32 %v2833_v6, %v2832_v29  ;;  %v2795_v16 = vpop.f32.mrf.mxu0 }
 0x140   :  { %v2835_v59 = vpop.f32.mrf.mxu1  ;;  %v1127_v33 = vadd.f32 %v2794_v39, %v4262_v36 }
 0x141   :  { %v2796_v49 = vpop.f32.mrf.mxu0 }
 0x142   :  { %v2836_v50 = vpop.f32.mrf.mxu1  ;;  %v4435_v25 = vadd.f32 %v2834_v48, %v1127_v33  ;;  %v2797_v52 = vadd.f32 %v2796_v49, %v2795_v16 }
 0x143   :  { %v2837_v57 = vadd.f32 %v2836_v50, %v2835_v59  ;;  %v2854_v58 = vpop.f32.mrf.mxu0 }
 0x144   :  { %v3154_v60 = vpop.f32.mrf.mxu1  ;;  %v1130_v61 = vadd.f32 %v2797_v52, %v4262_v36 }
 0x145   :  { %v2855_v56 = vpop.f32.mrf.mxu0 }
 0x146   :  { %v1297_v34 = vpop.f32.mrf.mxu1  ;;  %v4438_v35 = vadd.f32 %v2837_v57, %v1130_v61  ;;  %v2856_v40 = vadd.f32 %v2855_v56, %v2854_v58 }
 0x147   :  { %v2857_v41 = vpop.f32.mrf.mxu0 }
 0x148   :  { %v1233_v43 = vadd.f32 %v2856_v40, %v1168_v46  ;;  %v3155_v1 = vpop.f32.mrf.mxu1 }
 0x149   :  { %v2858_v0 = vpop.f32.mrf.mxu0 }
 0x14a   :  { %v1298_v2 = vadd.f32 %v1297_v34, %v1233_v43  ;;  %v2859_v3 = vadd.f32 %v2858_v0, %v2857_v41  ;;  %v1300_v8 = vpop.f32.mrf.mxu1 }
 0x14b   :  { %v2860_v5 = vpop.f32.mrf.mxu0 }
 0x14c   :  { %v1328_v7 = vmax.f32 %v1298_v2, 0.0  ;;  %v1236_v38 = vadd.f32 %v2859_v3, %v1171_v44  ;;  %v3158_v55 = vpop.f32.mrf.mxu1  ;;  %v869_v44 = vmax.f32 %v4406_v14, 0.0 }
 0x14d   :  { %v2861_v11 = vpop.f32.mrf.mxu0 }
 0x14e   :  { %v4441_v12 = vadd.f32 %v1328_v7, %v867_v53  ;;  %v1301_v13 = vadd.f32 %v1300_v8, %v1236_v38  ;;  %v2862_v54 = vadd.f32 %v2861_v11, %v2860_v5  ;;  %v1313_v24 = vpop.f32.mrf.mxu1 }
 0x14f   :  { %v2863_v51 = vpop.f32.mrf.mxu0 }
 0x150   :  { %v1329_v46 = vmax.f32 %v1301_v13, 0.0  ;;  %v1241_v18 = vadd.f32 %v2862_v54, %v1176_v10  ;;  %v3159_v9 = vpop.f32.mrf.mxu1  ;;  %v870_v10 = vmax.f32 %v4410_v21, 0.0  ;;  %v874_v13 = vmax.f32 %v4422_v45, 0.0 }
 0x151   :  { %v2864_v19 = vpop.f32.mrf.mxu0 }
 0x152   :  { %v4444_v20 = vadd.f32 %v1329_v46, %v868_v15  ;;  %v1306_v22 = vadd.f32 %v3154_v60, %v1241_v18  ;;  %v2865_v23 = vadd.f32 %v2864_v19, %v2863_v51  ;;  %v1316_v49 = vpop.f32.mrf.mxu1 }
 0x153   :  { %v2866_v4 = vpop.f32.mrf.mxu0 }
 0x154   :  { %v1330_v62 = vmax.f32 %v1306_v22, 0.0  ;;  %v1244_v26 = vadd.f32 %v2865_v23, %v1179_v17  ;;  %v871_v17 = vmax.f32 %v4413_v27, 0.0 }
 0x155   :  { %v2867_v28 = vpop.f32.mrf.mxu0 }
 0x156   :  { %v4447_v37 = vadd.f32 %v1330_v62, %v869_v44  ;;  %v1309_v29 = vadd.f32 %v3155_v1, %v1244_v26  ;;  %v2868_v30 = vadd.f32 %v2867_v28, %v2866_v4 }
 0x157   :  { %v2869_v63 = vpop.f32.mrf.mxu0 }
 0x158   :  { %v1331_v6 = vmax.f32 %v1309_v29, 0.0  ;;  %v1249_v39 = vadd.f32 %v2868_v30, %v4429_v47  ;;  %v872_v47 = vmax.f32 %v4416_v31, 0.0 }
 0x159   :  { %v2870_v48 = vpop.f32.mrf.mxu0 }
 0x15a   :  { %v4451_v16 = vadd.f32 %v1331_v6, %v870_v10  ;;  %v2871_v59 = vadd.f32 %v2870_v48, %v2869_v63  ;;  %v1314_v33 = vadd.f32 %v1313_v24, %v1249_v39 }
 0x15b   :  { %v2872_v14 = vpop.f32.mrf.mxu0 }
 0x15c   :  { %v1332_v50 = vmax.f32 %v1314_v33, 0.0  ;;  %v1252_v52 = vadd.f32 %v2871_v59, %v4432_v32  ;;  %v873_v32 = vmax.f32 %v4419_v42, 0.0 }
 0x15d   :  { %v2873_v57 = vpop.f32.mrf.mxu0 }
 0x15e   :  { %v4455_v58 = vadd.f32 %v1332_v50, %v871_v17  ;;  %v2874_v60 = vadd.f32 %v2873_v57, %v2872_v14  ;;  %v1317_v21 = vadd.f32 %v1316_v49, %v1252_v52 }
 0x15f   :  { %v2875_v61 = vpop.f32.mrf.mxu0 }
 0x160   :  { %v1257_v56 = vadd.f32 %v2874_v60, %v4435_v25  ;;  %v1333_v34 = vmax.f32 %v1317_v21, 0.0 }
 0x161   :  { %v2876_v40 = vpop.f32.mrf.mxu0 }
 0x162   :  { %v1322_v41 = vadd.f32 %v3158_v55, %v1257_v56  ;;  %v4459_v43 = vadd.f32 %v1333_v34, %v872_v47  ;;  %v2877_v1 = vadd.f32 %v2876_v40, %v2875_v61 }
 0x163   :  { %v2900_v0 = vpop.f32.mrf.mxu0 }
 0x164   :  { %v2940_v27 = vpop.f32.mrf.mxu1  ;;  %v1334_v2 = vmax.f32 %v1322_v41, 0.0  ;;  %v1260_v3 = vadd.f32 %v2877_v1, %v4438_v35 }
 0x165   :  { %v2901_v53 = vpop.f32.mrf.mxu0 }
 0x166   :  { %v2941_v5 = vpop.f32.mrf.mxu1  ;;  %v1325_v7 = vadd.f32 %v3159_v9, %v1260_v3  ;;  %v2902_v31 = vadd.f32 %v2901_v53, %v2900_v0  ;;  %v4463_v8 = vadd.f32 %v1334_v2, %v873_v32 }
 0x167   :  { %v2942_v38 = vadd.f32 %v2941_v5, %v2940_v27  ;;  %v2903_v11 = vpop.f32.mrf.mxu0 }
 0x168   :  { %v2943_v25 = vpop.f32.mrf.mxu1  ;;  %v1335_v54 = vmax.f32 %v1325_v7, 0.0  ;;  %v1564_v51 = vadd.f32 %v2902_v31, %v4262_v36 }
 0x169   :  { %v2904_v15 = vpop.f32.mrf.mxu0 }
 0x16a   :  { %v2944_v55 = vpop.f32.mrf.mxu1  ;;  %v2905_v46 = vadd.f32 %v2904_v15, %v2903_v11  ;;  %v1629_v18 = vadd.f32 %v2942_v38, %v1564_v51  ;;  %v4467_v35 = vadd.f32 %v1335_v54, %v874_v13 }
 0x16b   :  { %v2945_v42 = vadd.f32 %v2944_v55, %v2943_v25  ;;  %v2906_v22 = vpop.f32.mrf.mxu0 }
 0x16c   :  { %v2946_v19 = vpop.f32.mrf.mxu1  ;;  %v1567_v23 = vadd.f32 %v2905_v46, %v4262_v36 }
 0x16d   :  { %v2907_v24 = vpop.f32.mrf.mxu0 }
 0x16e   :  { %v2947_v4 = vpop.f32.mrf.mxu1  ;;  %v2908_v62 = vadd.f32 %v2907_v24, %v2906_v22  ;;  %v1632_v26 = vadd.f32 %v2945_v42, %v1567_v23 }
 0x16f   :  { %v2948_v44 = vadd.f32 %v2947_v4, %v2946_v19  ;;  %v2909_v28 = vpop.f32.mrf.mxu0 }
 0x170   :  { %v2949_v45 = vpop.f32.mrf.mxu1  ;;  %v1572_v29 = vadd.f32 %v2908_v62, %v4262_v36 }
 0x171   :  { %v2910_v63 = vpop.f32.mrf.mxu0 }
 0x172   :  { %v2950_v30 = vpop.f32.mrf.mxu1  ;;  %v2911_v10 = vadd.f32 %v2910_v63, %v2909_v28  ;;  %v1637_v6 = vadd.f32 %v2948_v44, %v1572_v29 }
 0x173   :  { %v2951_v9 = vadd.f32 %v2950_v30, %v2949_v45  ;;  %v2912_v48 = vpop.f32.mrf.mxu0 }
 0x174   :  { %v2952_v39 = vpop.f32.mrf.mxu1  ;;  %v1575_v59 = vadd.f32 %v2911_v10, %v4262_v36 }
 0x175   :  { %v2913_v14 = vpop.f32.mrf.mxu0 }
 0x176   :  { %v2953_v33 = vpop.f32.mrf.mxu1  ;;  %v2914_v17 = vadd.f32 %v2913_v14, %v2912_v48  ;;  %v1640_v50 = vadd.f32 %v2951_v9, %v1575_v59 }
 0x177   :  { %v2954_v49 = vadd.f32 %v2953_v33, %v2952_v39  ;;  %v2915_v57 = vpop.f32.mrf.mxu0 }
 0x178   :  { %v2955_v52 = vpop.f32.mrf.mxu1  ;;  %v1580_v60 = vadd.f32 %v2914_v17, %v4262_v36 }
 0x179   :  { %v2916_v61 = vpop.f32.mrf.mxu0 }
 0x17a   :  { %v2956_v21 = vpop.f32.mrf.mxu1  ;;  %v2917_v56 = vadd.f32 %v2916_v61, %v2915_v57  ;;  %v1645_v34 = vadd.f32 %v2954_v49, %v1580_v60 }
 0x17b   :  { %v2957_v47 = vadd.f32 %v2956_v21, %v2955_v52  ;;  %v2918_v41 = vpop.f32.mrf.mxu0 }
 0x17c   :  { %v2958_v40 = vpop.f32.mrf.mxu1  ;;  %v1583_v1 = vadd.f32 %v2917_v56, %v4262_v36 }
 0x17d   :  { %v2919_v0 = vpop.f32.mrf.mxu0 }
 0x17e   :  { %v2959_v27 = vpop.f32.mrf.mxu1  ;;  %v2920_v2 = vadd.f32 %v2919_v0, %v2918_v41  ;;  %v1648_v3 = vadd.f32 %v2957_v47, %v1583_v1 }
 0x17f   :  { %v2960_v32 = vadd.f32 %v2959_v27, %v2958_v40  ;;  %v2921_v53 = vpop.f32.mrf.mxu0 }
 0x180   :  { %v2961_v5 = vpop.f32.mrf.mxu1  ;;  %v1588_v7 = vadd.f32 %v2920_v2, %v4262_v36 }
 0x181   :  { %v2922_v31 = vpop.f32.mrf.mxu0 }
 0x182   :  { %v2962_v38 = vpop.f32.mrf.mxu1  ;;  %v2923_v25 = vadd.f32 %v2922_v31, %v2921_v53  ;;  %v1653_v11 = vadd.f32 %v2960_v32, %v1588_v7 }
 0x183   :  { %v2980_v54 = vpop.f32.mrf.mxu0  ;;  %v2963_v51 = vadd.f32 %v2962_v38, %v2961_v5 }
 0x184   :  { %v3166_v13 = vpop.f32.mrf.mxu1  ;;  %v1591_v55 = vadd.f32 %v2923_v25, %v4262_v36 }
 0x185   :  { %v2981_v42 = vpop.f32.mrf.mxu0 }
 0x186   :  { %v1758_v15 = vpop.f32.mrf.mxu1  ;;  %v2982_v46 = vadd.f32 %v2981_v42, %v2980_v54  ;;  %v1656_v19 = vadd.f32 %v2963_v51, %v1591_v55 }
 0x187   :  { %v2983_v22 = vpop.f32.mrf.mxu0 }
 0x188   :  { %v1694_v23 = vadd.f32 %v2982_v46, %v1629_v18  ;;  %v3167_v4 = vpop.f32.mrf.mxu1 }
 0x189   :  { %v2984_v24 = vpop.f32.mrf.mxu0 }
 0x18a   :  { %v1759_v44 = vadd.f32 %v1758_v15, %v1694_v23  ;;  %v2985_v62 = vadd.f32 %v2984_v24, %v2983_v22  ;;  %v1761_v30 = vpop.f32.mrf.mxu1 }
 0x18b   :  { %v2986_v45 = vpop.f32.mrf.mxu0 }
 0x18c   :  { %v1789_v28 = vmax.f32 %v1759_v44, 0.0  ;;  %v1697_v29 = vadd.f32 %v2985_v62, %v1632_v26  ;;  %v3170_v59 = vpop.f32.mrf.mxu1 }
 0x18d   :  { %v2987_v63 = vpop.f32.mrf.mxu0 }
 0x18e   :  { %v1762_v9 = vadd.f32 %v1761_v30, %v1697_v29  ;;  %v2988_v10 = vadd.f32 %v2987_v63, %v2986_v45  ;;  %v4477_v39 = vadd.f32 %v1789_v28, %v4441_v12  ;;  %v1774_v60 = vpop.f32.mrf.mxu1 }
 0x18f   :  { %v2989_v48 = vpop.f32.mrf.mxu0 }
 0x190   :  { %v1790_v33 = vmax.f32 %v1762_v9, 0.0  ;;  %v1702_v14 = vadd.f32 %v2988_v10, %v1637_v6  ;;  %v3171_v41 = vpop.f32.mrf.mxu1 }
 0x191   :  { %v2990_v49 = vpop.f32.mrf.mxu0 }
 0x192   :  { %v1767_v18 = vadd.f32 %v3166_v13, %v1702_v14  ;;  %v2991_v17 = vadd.f32 %v2990_v49, %v2989_v48  ;;  %v4480_v52 = vadd.f32 %v1790_v33, %v4444_v20  ;;  %v1777_v5 = vpop.f32.mrf.mxu1 }
 0x193   :  { %v2992_v57 = vpop.f32.mrf.mxu0 }
 0x194   :  { %v1791_v26 = vmax.f32 %v1767_v18, 0.0  ;;  %v1705_v21 = vadd.f32 %v2991_v17, %v1640_v50 }
 0x195   :  { %v2993_v61 = vpop.f32.mrf.mxu0 }
 0x196   :  { %v4483_v47 = vadd.f32 %v1791_v26, %v4447_v37  ;;  %v1770_v12 = vadd.f32 %v3167_v4, %v1705_v21  ;;  %v2994_v56 = vadd.f32 %v2993_v61, %v2992_v57 }
 0x197   :  { %v2995_v40 = vpop.f32.mrf.mxu0 }
 0x198   :  { %v1792_v1 = vmax.f32 %v1770_v12, 0.0  ;;  %v1710_v6 = vadd.f32 %v2994_v56, %v1645_v34 }
 0x199   :  { %v2996_v27 = vpop.f32.mrf.mxu0 }
 0x19a   :  { %v4486_v0 = vadd.f32 %v1792_v1, %v4451_v16  ;;  %v2997_v20 = vadd.f32 %v2996_v27, %v2995_v40  ;;  %v1775_v32 = vadd.f32 %v1774_v60, %v1710_v6 }
 0x19b   :  { %v2998_v2 = vpop.f32.mrf.mxu0 }
 0x19c   :  { %v1793_v53 = vmax.f32 %v1775_v32, 0.0  ;;  %v1713_v50 = vadd.f32 %v2997_v20, %v1648_v3 }
 0x19d   :  { %v2999_v7 = vpop.f32.mrf.mxu0 }
 0x19e   :  { %v4489_v37 = vadd.f32 %v1793_v53, %v4455_v58  ;;  %v3000_v38 = vadd.f32 %v2999_v7, %v2998_v2  ;;  %v1778_v31 = vadd.f32 %v1777_v5, %v1713_v50 }
 0x19f   :  { %v3001_v25 = vpop.f32.mrf.mxu0 }
 0x1a0   :  { %v1718_v13 = vadd.f32 %v3000_v38, %v1653_v11  ;;  %v1794_v54 = vmax.f32 %v1778_v31, 0.0 }
 0x1a1   :  { %v3002_v34 = vpop.f32.mrf.mxu0 }
 0x1a2   :  { %v1783_v51 = vadd.f32 %v3170_v59, %v1718_v13  ;;  %v4492_v16 = vadd.f32 %v1794_v54, %v4459_v43  ;;  %v3003_v55 = vadd.f32 %v3002_v34, %v3001_v25 }
 0x1a3   :  { %v3026_v42 = vpop.f32.mrf.mxu0 }
 0x1a4   :  { %v3066_v15 = vpop.f32.mrf.mxu1  ;;  %v1795_v46 = vmax.f32 %v1783_v51, 0.0  ;;  %v1721_v22 = vadd.f32 %v3003_v55, %v1656_v19 }
 0x1a5   :  { %v3027_v23 = vpop.f32.mrf.mxu0 }
 0x1a6   :  { %v3067_v3 = vpop.f32.mrf.mxu1  ;;  %v1786_v4 = vadd.f32 %v3171_v41, %v1721_v22  ;;  %v4495_v58 = vadd.f32 %v1795_v46, %v4463_v8  ;;  %v3028_v56 = vadd.f32 %v3027_v23, %v3026_v42 }
 0x1a7   :  { %v3029_v44 = vpop.f32.mrf.mxu0  ;;  %v3068_v27 = vadd.f32 %v3067_v3, %v3066_v15 }
 0x1a8   :  { %v3069_v24 = vpop.f32.mrf.mxu1  ;;  %v1796_v11 = vmax.f32 %v1786_v4, 0.0  ;;  %v2025_v20 = vadd.f32 %v3028_v56, %v4262_v36 }
 0x1a9   :  { %v3030_v45 = vpop.f32.mrf.mxu0 }
 0x1aa   :  { %v3070_v62 = vpop.f32.mrf.mxu1  ;;  %v4498_v28 = vadd.f32 %v1796_v11, %v4467_v35  ;;  %v3031_v32 = vadd.f32 %v3030_v45, %v3029_v44  ;;  %v2090_v13 = vadd.f32 %v3068_v27, %v2025_v20 }
 0x1ab   :  { %v3032_v29 = vpop.f32.mrf.mxu0  ;;  %v3071_v54 = vadd.f32 %v3070_v62, %v3069_v24 }
 0x1ac   :  { %v3072_v43 = vpop.f32.mrf.mxu1  ;;  %v2028_v25 = vadd.f32 %v3031_v32, %v4262_v36 }
 0x1ad   :  { %v3033_v63 = vpop.f32.mrf.mxu0 }
 0x1ae   :  { %v3073_v30 = vpop.f32.mrf.mxu1  ;;  %v3034_v50 = vadd.f32 %v3033_v63, %v3032_v29  ;;  %v2093_v45 = vadd.f32 %v3071_v54, %v2028_v25  ;;  %v3450_v29 = vld [vmem:[%s4547_s2] ss:$0 sm:$0xff] }
 0x1af   :  { %v3035_v19 = vpop.f32.mrf.mxu0  ;;  %v3074_v46 = vadd.f32 %v3073_v30, %v3072_v43 }
 0x1b0   :  { %v4500_v9 = vpop.f32.mrf.mxu1  ;;  %v2033_v22 = vadd.f32 %v3034_v50, %v4262_v36 }
 0x1b1   :  { %v3036_v48 = vpop.f32.mrf.mxu0 }
 0x1b2   :  { %v4502_v10 = vpop.f32.mrf.mxu1  ;;  %v3037_v4 = vadd.f32 %v3036_v48, %v3035_v19 }
 0x1b3   :  { %v3038_v59 = vpop.f32.mrf.mxu0  ;;  %v3077_v27 = vadd.f32 %v4502_v10, %v4500_v9 }
 0x1b4   :  { %v4504_v8 = vpop.f32.mrf.mxu1 }
 0x1b5   :  { %v3039_v14 = vpop.f32.mrf.mxu0 }
 0x1b6   :  { %v4506_v33 = vpop.f32.mrf.mxu1 }
 0x1b7   :  { %v3041_v35 = vpop.f32.mrf.mxu0 }
 0x1b8   :  { %v4508_v49 = vpop.f32.mrf.mxu1 }
 0x1b9   :  { %v3042_v17 = vpop.f32.mrf.mxu0 }
 0x1ba   :  { %v4510_v18 = vpop.f32.mrf.mxu1  ;;  %v3043_v20 = vadd.f32 %v3042_v17, %v3041_v35 }
 0x1bb   :  { %v3044_v60 = vpop.f32.mrf.mxu0 }
 0x1bc   :  { %v3084_v57 = vpop.f32.mrf.mxu1  ;;  %v2044_v10 = vadd.f32 %v3450_v29, %v3043_v20 }
 0x1bd   :  { %v3045_v21 = vpop.f32.mrf.mxu0 }
 0x1be   :  { %v3085_v26 = vpop.f32.mrf.mxu1  ;;  %v3046_v2 = vadd.f32 %v3045_v21, %v3044_v60  ;;  %v2098_v21 = vadd.f32 %v3074_v46, %v2033_v22 }
 0x1bf   :  { %v3047_v12 = vpop.f32.mrf.mxu0  ;;  %v3086_v34 = vadd.f32 %v3085_v26, %v3084_v57 }
 0x1c0   :  { %v3087_v61 = vpop.f32.mrf.mxu1  ;;  %v2049_v51 = vadd.f32 %v3046_v2, %v4262_v36  ;;  %v2036_v36 = vadd.f32 %v3450_v29, %v3037_v4 }
 0x1c1   :  { %v3048_v41 = vpop.f32.mrf.mxu0 }
 0x1c2   :  { %v3088_v40 = vpop.f32.mrf.mxu1  ;;  %v3049_v55 = vadd.f32 %v3048_v41, %v3047_v12  ;;  %v2114_v60 = vadd.f32 %v3086_v34, %v2049_v51  ;;  %v3040_v12 = vadd.f32 %v3039_v14, %v3038_v59  ;;  %v3080_v59 = vadd.f32 %v4506_v33, %v4504_v8 }
 0x1c3   :  { %v3106_v6 = vpop.f32.mrf.mxu0  ;;  %v3089_v56 = vadd.f32 %v3088_v40, %v3087_v61  ;;  %v2101_v40 = vadd.f32 %v3077_v27, %v2036_v36  ;;  %v3083_v8 = vadd.f32 %v4510_v18, %v4508_v49 }
 0x1c4   :  { %v3124_v1 = vpop.f32.mrf.mxu1  ;;  %v2052_v24 = vadd.f32 %v3450_v29, %v3049_v55  ;;  %v2041_v14 = vadd.f32 %v3450_v29, %v3040_v12 }
 0x1c5   :  { %v3107_v53 = vpop.f32.mrf.mxu0  ;;  %v2109_v29 = vadd.f32 %v3083_v8, %v2044_v10 }
 0x1c6   :  { %v3125_v5 = vpop.f32.mrf.mxu1  ;;  %v3108_v7 = vadd.f32 %v3107_v53, %v3106_v6  ;;  %v2106_v22 = vadd.f32 %v3080_v59, %v2041_v14 }
 0x1c7   :  { %v3109_v31 = vpop.f32.mrf.mxu0  ;;  %v3126_v62 = vadd.f32 %v3125_v5, %v3124_v1  ;;  %v2117_v5 = vadd.f32 %v3089_v56, %v2052_v24 }
 0x1c8   :  { %v3127_v38 = vpop.f32.mrf.mxu1  ;;  %v2155_v23 = vadd.f32 %v3108_v7, %v2090_v13 }
 0x1c9   :  { %v3110_v15 = vpop.f32.mrf.mxu0  ;;  %v2179_v1 = vadd.f32 %v3126_v62, %v2114_v60 }
 0x1ca   :  { %v3128_v42 = vpop.f32.mrf.mxu1  ;;  %v3111_v3 = vadd.f32 %v3110_v15, %v3109_v31 }
 0x1cb   :  { %v3112_v11 = vpop.f32.mrf.mxu0  ;;  %v3129_v53 = vadd.f32 %v3128_v42, %v3127_v38 }
 0x1cc   :  { %v3178_v44 = vpop.f32.mrf.mxu1  ;;  %v2158_v30 = vadd.f32 %v3111_v3, %v2093_v45 }
 0x1cd   :  { %v3113_v57 = vpop.f32.mrf.mxu0  ;;  %v2182_v42 = vadd.f32 %v3129_v53, %v2117_v5 }
 0x1ce   :  { %v2219_v63 = vpop.f32.mrf.mxu1  ;;  %v3114_v43 = vadd.f32 %v3113_v57, %v3112_v11 }
 0x1cf   :  { %v2220_v26 = vadd.f32 %v2219_v63, %v2155_v23  ;;  %v3115_v48 = vpop.f32.mrf.mxu0 }
 0x1d0   :  { %v3179_v19 = vpop.f32.mrf.mxu1  ;;  %v2163_v6 = vadd.f32 %v3114_v43, %v2098_v21 }
 0x1d1   :  { %v2250_v41 = vmax.f32 %v2220_v26, 0.0  ;;  %v3116_v2 = vpop.f32.mrf.mxu0 }
 0x1d2   :  { %v2222_v32 = vpop.f32.mrf.mxu1  ;;  %v2228_v50 = vadd.f32 %v3178_v44, %v2163_v6  ;;  %v3117_v31 = vadd.f32 %v3116_v2, %v3115_v48 }
 0x1d3   :  { %v2223_v7 = vadd.f32 %v2222_v32, %v2158_v30  ;;  %v3118_v25 = vpop.f32.mrf.mxu0  ;;  %v2258_v13 = vadd.f32 %v2250_v41, %v4477_v39 }
 0x1d4   :  { %v3182_v61 = vpop.f32.mrf.mxu1  ;;  %v2252_v35 = vmax.f32 %v2228_v50, 0.0  ;;  %v2166_v17 = vadd.f32 %v3117_v31, %v2101_v40 }
 0x1d5   :  { %v2251_v54 = vmax.f32 %v2223_v7, 0.0  ;;  %v2244_v9 = vadd.f32 %v3182_v61, %v2179_v1  ;;  %v3119_v51 = vpop.f32.mrf.mxu0  ;;  %v2266_v39 = vmul.f32 0.25, %v2258_v13 }
 0x1d6   :  { %v2235_v34 = vpop.f32.mrf.mxu1  ;;  %v3120_v15 = vadd.f32 %v3119_v51, %v3118_v25  ;;  %v2231_v33 = vadd.f32 %v3179_v19, %v2166_v17  ;;  %v2260_v44 = vadd.f32 %v2252_v35, %v4483_v47 }
 0x1d7   :  { %v2259_v38 = vadd.f32 %v2251_v54, %v4480_v52  ;;  %v2256_v55 = vmax.f32 %v2244_v9, 0.0  ;;  %v3121_v3 = vpop.f32.mrf.mxu0 }
 0x1d8   :  { %v3183_v46 = vpop.f32.mrf.mxu1  ;;  %v2253_v11 = vmax.f32 %v2231_v33, 0.0  ;;  %v2171_v45 = vadd.f32 %v3120_v15, %v2106_v22  ;;  %v2268_v47 = vmul.f32 0.25, %v2260_v44 }
 0x1d9   :  { %v2267_v23 = vmul.f32 0.25, %v2259_v38  ;;  %v2247_v4 = vadd.f32 %v3183_v46, %v2182_v42  ;;  %v3122_v24 = vpop.f32.mrf.mxu0  ;;  %v2264_v62 = vadd.f32 %v2256_v55, %v4495_v58 }
 0x1da   :  { %v3123_v57 = vadd.f32 %v3122_v24, %v3121_v3  ;;  %v2261_v49 = vadd.f32 %v2253_v11, %v4486_v0  ;;  %v2236_v18 = vadd.f32 %v2235_v34, %v2171_v45  ;;  %v2238_v30 = vpop.f32.mrf.mxu1 }
 0x1db   :  { %v2612_v52 = vpack.c.bf16 %v2267_v23, %v2266_v39  ;;  %v2257_v63 = vmax.f32 %v2247_v4, 0.0  ;;  %v2272_v36 = vmul.f32 0.25, %v2264_v62 }
 0x1dc   :  { %v2174_v26 = vadd.f32 %v3123_v57, %v2109_v29  ;;  %v2269_v21 = vmul.f32 0.25, %v2261_v49  ;;  %v2254_v43 = vmax.f32 %v2236_v18, 0.0 }
 0x1dd   :  { %2613 = vst [vmem:[%s4548_s3] sm:$0xff] %v2612_v52   ;;  %v2265_v60 = vadd.f32 %v2257_v63, %v4498_v28 }
 0x1de   :  { %v2239_v56 = vadd.f32 %v2238_v30, %v2174_v26  ;;  %v2617_v58 = vpack.c.bf16 %v2269_v21, %v2268_v47  ;;  %v2262_v48 = vadd.f32 %v2254_v43, %v4489_v37 }
 0x1df   :  { %v2273_v12 = vmul.f32 0.25, %v2265_v60 }
 0x1e0   :  { %v2255_v0 = vmax.f32 %v2239_v56, 0.0  ;;  %2629 = vst [vmem:[%s4548_s3 + $0x8] sm:$0xff] %v2617_v58   ;;  %v2270_v41 = vmul.f32 0.25, %v2262_v48 }
 0x1e1   :  { %v2627_v19 = vpack.c.bf16 %v2273_v12, %v2272_v36 }
 0x1e2   :  { %v2263_v28 = vadd.f32 %v2255_v0, %v4492_v16 }
 0x1e3   :  { %2631 = vst [vmem:[%s4548_s3 + $0x18] sm:$0xff] %v2627_v19  }
 0x1e4   :  { %v2271_v6 = vmul.f32 0.25, %v2263_v28 }
 0x1e6   :  { %v2622_v27 = vpack.c.bf16 %v2271_v6, %v2270_v41 }
 0x1e8   :  { %2630 = vst [vmem:[%s4548_s3 + $0x10] sm:$0xff] %v2622_v27  }

// kernel: fashion_cnn_forward.5
= control target key start
LH: loop header
LB: loop body
LE: loop exit
PB: predicated region body
PF: predicated region fallthrough
CT: control target
= control target key end

     0   :  { %v530_v32 = vlaneseq  ;;  %v4370_v33 = vmov 1983009808   ;;  %s6054_s1 = inlined_call_operand.vmem [shape: bf16[1024,1024], index: 1, kind: input, shape index: {}]   ;;  %s6055_s0 = inlined_call_operand.vmem [shape: bf16[4,1024], index: 0, kind: input, shape index: {}]   ;;  %s6056_s2 = inlined_call_operand.vmem [shape: f32[1,1024], index: 2, kind: input, shape index: {}]   ;;  %s6057_s3 = inlined_call_operand.vmem [shape: f32[4,1024], index: 3, kind: output, shape index: {}]  }
   0x1   :  { %v72_v0 = vld [vmem:[%s6054_s1 + $0x1c0] sm:$0xff]  ;;  %v574_v34 = vunpack.c.l.s4 %v4370_v33 }
   0x2   :  { %v76_v1 = vld [vmem:[%s6054_s1 + $0x1e0] sm:$0xff]  ;;  %v4457_v43 = vshrl.u32 %v530_v32, 7 }
   0x3   :  { %v200_v2 = vld [vmem:[%s6054_s1 + $0x5c0] sm:$0xff]  ;;  %v3911_v3 = vcombine.high %v72_v0, %v76_v1  ;;  %v3910_v5 = vcombine.low %v72_v0, %v76_v1  ;;  %v575_v44 = vunpack.c.0.s8 %v574_v34 }
   0x4   :  { %v204_v4 = vld [vmem:[%s6054_s1 + $0x5e0] sm:$0xff] }
   0x5   :  { %v64_v6 = vld [vmem:[%s6054_s1 + $0x180] sm:$0xff]  ;;  %v4039_v8 = vcombine.high %v200_v2, %v204_v4  ;;  %v4038_v9 = vcombine.low %v200_v2, %v204_v4  ;;  %3174 = vmatprep.subr.bf16.mxu0 %v3911_v3  ;;  %v4472_v53 = vsub.s32 %v575_v44, %v4457_v43 }
   0x6   :  { %v68_v7 = vld [vmem:[%s6054_s1 + $0x1a0] sm:$0xff]  ;;  %3175 = vmatpush1.bf16.msra.mxu0 %v3910_v5 }
   0x7   :  { %v3903_v10 = vcombine.high %v64_v6, %v68_v7  ;;  %v192_v11 = vld [vmem:[%s6054_s1 + $0x580] sm:$0xff]  ;;  %3215 = vmatprep.subr.bf16.mxu1 %v4039_v8  ;;  %v3902_v18 = vcombine.low %v64_v6, %v68_v7 }
   0x8   :  { %v196_v12 = vld [vmem:[%s6054_s1 + $0x5a0] sm:$0xff]  ;;  %3216 = vmatpush1.bf16.msra.mxu1 %v4038_v9 }
   0x9   :  { %v56_v13 = vld [vmem:[%s6054_s1 + $0x140] sm:$0xff]  ;;  %v4031_v14 = vcombine.high %v192_v11, %v196_v12  ;;  %3176 = vmatprep.subr.bf16.mxu0 %v3903_v10  ;;  %v4030_v19 = vcombine.low %v192_v11, %v196_v12 }
   0xa   :  { %v60_v15 = vld [vmem:[%s6054_s1 + $0x160] sm:$0xff]  ;;  %3177 = vmatpush1.bf16.msra.mxu0 %v3902_v18 }
   0xb   :  { %v184_v16 = vld [vmem:[%s6054_s1 + $0x540] sm:$0xff]  ;;  %v3895_v20 = vcombine.high %v56_v13, %v60_v15  ;;  %3217 = vmatprep.subr.bf16.mxu1 %v4031_v14  ;;  %v3894_v26 = vcombine.low %v56_v13, %v60_v15 }
   0xc   :  { %v188_v17 = vld [vmem:[%s6054_s1 + $0x560] sm:$0xff]  ;;  %3218 = vmatpush1.bf16.msra.mxu1 %v4030_v19 }
   0xd   :  { %v4023_v21 = vcombine.high %v184_v16, %v188_v17  ;;  %v48_v22 = vld [vmem:[%s6054_s1 + $0x100] sm:$0xff]  ;;  %3178 = vmatprep.subr.bf16.mxu0 %v3895_v20  ;;  %v4022_v27 = vcombine.low %v184_v16, %v188_v17 }
   0xe   :  { %v52_v23 = vld [vmem:[%s6054_s1 + $0x120] sm:$0xff]  ;;  %3179 = vmatpush1.bf16.msra.mxu0 %v3894_v26 }
   0xf   :  { %v176_v24 = vld [vmem:[%s6054_s1 + $0x500] sm:$0xff]  ;;  %v3887_v28 = vcombine.high %v48_v22, %v52_v23  ;;  %3219 = vmatprep.subr.bf16.mxu1 %v4023_v21  ;;  %v3886_v37 = vcombine.low %v48_v22, %v52_v23 }
  0x10   :  { %v180_v25 = vld [vmem:[%s6054_s1 + $0x520] sm:$0xff]  ;;  %3220 = vmatpush1.bf16.msra.mxu1 %v4022_v27 }
  0x11   :  { %v4015_v29 = vcombine.high %v176_v24, %v180_v25  ;;  %v40_v30 = vld [vmem:[%s6054_s1 + $0xc0] sm:$0xff]  ;;  %3180 = vmatprep.subr.bf16.mxu0 %v3887_v28  ;;  %v4014_v38 = vcombine.low %v176_v24, %v180_v25 }
  0x12   :  { %v44_v31 = vld [vmem:[%s6054_s1 + $0xe0] sm:$0xff]  ;;  %3181 = vmatpush1.bf16.msra.mxu0 %v3886_v37 }
  0x13   :  { %v168_v35 = vld [vmem:[%s6054_s1 + $0x4c0] sm:$0xff]  ;;  %v3879_v39 = vcombine.high %v40_v30, %v44_v31  ;;  %3221 = vmatprep.subr.bf16.mxu1 %v4015_v29  ;;  %v3878_v47 = vcombine.low %v40_v30, %v44_v31 }
  0x14   :  { %v172_v36 = vld [vmem:[%s6054_s1 + $0x4e0] sm:$0xff]  ;;  %3222 = vmatpush1.bf16.msra.mxu1 %v4014_v38 }
  0x15   :  { %v4007_v40 = vcombine.high %v168_v35, %v172_v36  ;;  %v32_v41 = vld [vmem:[%s6054_s1 + $0x80] sm:$0xff]  ;;  %3182 = vmatprep.subr.bf16.mxu0 %v3879_v39  ;;  %v4006_v48 = vcombine.low %v168_v35, %v172_v36 }
  0x16   :  { %v36_v42 = vld [vmem:[%s6054_s1 + $0xa0] sm:$0xff]  ;;  %3183 = vmatpush1.bf16.msra.mxu0 %v3878_v47 }
  0x17   :  { %v160_v45 = vld [vmem:[%s6054_s1 + $0x480] sm:$0xff]  ;;  %v3871_v49 = vcombine.high %v32_v41, %v36_v42  ;;  %3223 = vmatprep.subr.bf16.mxu1 %v4007_v40  ;;  %v3870_v56 = vcombine.low %v32_v41, %v36_v42 }
  0x18   :  { %v164_v46 = vld [vmem:[%s6054_s1 + $0x4a0] sm:$0xff]  ;;  %3224 = vmatpush1.bf16.msra.mxu1 %v4006_v48 }
  0x19   :  { %v3999_v50 = vcombine.high %v160_v45, %v164_v46  ;;  %v24_v51 = vld [vmem:[%s6054_s1 + $0x40] sm:$0xff]  ;;  %3184 = vmatprep.subr.bf16.mxu0 %v3871_v49  ;;  %v3998_v57 = vcombine.low %v160_v45, %v164_v46 }
  0x1a   :  { %v28_v52 = vld [vmem:[%s6054_s1 + $0x60] sm:$0xff]  ;;  %3185 = vmatpush1.bf16.msra.mxu0 %v3870_v56 }
  0x1b   :  { %v152_v54 = vld [vmem:[%s6054_s1 + $0x440] sm:$0xff]  ;;  %v3863_v58 = vcombine.high %v24_v51, %v28_v52  ;;  %3225 = vmatprep.subr.bf16.mxu1 %v3999_v50  ;;  %v3862_v3 = vcombine.low %v24_v51, %v28_v52 }
  0x1c   :  { %v156_v55 = vld [vmem:[%s6054_s1 + $0x460] sm:$0xff]  ;;  %3226 = vmatpush1.bf16.msra.mxu1 %v3998_v57 }
  0x1d   :  { %v14_v59 = vld [vmem:[%s6055_s0] sm:$0xff]  ;;  %v3991_v60 = vcombine.high %v152_v54, %v156_v55  ;;  %3186 = vmatprep.subr.bf16.mxu0 %v3863_v58  ;;  %v3990_v6 = vcombine.low %v152_v54, %v156_v55 }
  0x1e   :  { %v16_v61 = vld [vmem:[%s6054_s1] sm:$0xff]  ;;  %v4490_v63 = vrot.slane %v14_v59, %v4472_v53  ;;  %v572_v0 = vcombine.high %v14_v59, %v14_v59  ;;  %3187 = vmatpush1.bf16.msra.mxu0 %v3862_v3 }
  0x1f   :  { %v20_v62 = vld [vmem:[%s6054_s1 + $0x20] sm:$0xff]  ;;  %3227 = vmatprep.subr.bf16.mxu1 %v3991_v60 }
  0x20   :  { %v144_v1 = vld [vmem:[%s6054_s1 + $0x400] sm:$0xff]  ;;  %v4500_v4 = vcombine.high %v4490_v63, %v4490_v63  ;;  %v4503_v5 = vrot.slane %v572_v0, %v4472_v53  ;;  %v3855_v7 = vcombine.high %v16_v61, %v20_v62  ;;  %v3854_v14 = vcombine.low %v16_v61, %v20_v62  ;;  %3228 = vmatpush1.bf16.msra.mxu1 %v3990_v6 }
  0x21   :  { %v148_v2 = vld [vmem:[%s6054_s1 + $0x420] sm:$0xff] }
  0x22   :  { %v3983_v8 = vcombine.high %v144_v1, %v148_v2  ;;  %v136_v9 = vld [vmem:[%s6054_s1 + $0x3c0] sm:$0xff]  ;;  %3206 = vmatprep.mubr.bf16.mxu0 %v4500_v4  ;;  %v4514_v11 = vcombine.high %v4503_v5, %v4503_v5  ;;  %3188 = vmatprep.subr.bf16.mxu0 %v3855_v7  ;;  %v3982_v15 = vcombine.low %v144_v1, %v148_v2 }
  0x23   :  { %v140_v10 = vld [vmem:[%s6054_s1 + $0x3e0] sm:$0xff]  ;;  %3189 = vmatpush1.bf16.msra.mxu0 %v3854_v14 }
  0x24   :  { %v264_v12 = vld [vmem:[%s6054_s1 + $0x7c0] sm:$0xff]  ;;  %3247 = vmatprep.mubr.bf16.mxu1 %v4514_v11  ;;  %v3975_v16 = vcombine.high %v136_v9, %v140_v10  ;;  %3229 = vmatprep.subr.bf16.mxu1 %v3983_v8  ;;  %v3974_v22 = vcombine.low %v136_v9, %v140_v10 }
  0x25   :  { %v268_v13 = vld [vmem:[%s6054_s1 + $0x7e0] sm:$0xff]  ;;  %3230 = vmatpush1.bf16.msra.mxu1 %v3982_v15 }
  0x26   :  { %v4103_v17 = vcombine.high %v264_v12, %v268_v13  ;;  %v128_v18 = vld [vmem:[%s6054_s1 + $0x380] sm:$0xff]  ;;  %3190 = vmatprep.subr.bf16.mxu0 %v3975_v16  ;;  %v4102_v23 = vcombine.low %v264_v12, %v268_v13  ;;  %v15_v13 = vld [vmem:[%s6055_s0 + $0x8] sm:$0xff] }
  0x27   :  { %v132_v19 = vld [vmem:[%s6054_s1 + $0x3a0] sm:$0xff]  ;;  %3191 = vmatpush2.bf16.msra.mxu0 %v3974_v22 }
  0x28   :  { %v256_v20 = vld [vmem:[%s6054_s1 + $0x780] sm:$0xff]  ;;  %v3967_v24 = vcombine.high %v128_v18, %v132_v19  ;;  %3231 = vmatprep.subr.bf16.mxu1 %v4103_v17  ;;  %v3966_v30 = vcombine.low %v128_v18, %v132_v19 }
  0x29   :  { %v260_v21 = vld [vmem:[%s6054_s1 + $0x7a0] sm:$0xff]  ;;  %3232 = vmatpush2.bf16.msra.mxu1 %v4102_v23 }
  0x2a   :  { %v4095_v25 = vcombine.high %v256_v20, %v260_v21  ;;  %v120_v26 = vld [vmem:[%s6054_s1 + $0x340] sm:$0xff]  ;;  %3192 = vmatprep.subr.bf16.mxu0 %v3967_v24  ;;  %v4094_v31 = vcombine.low %v256_v20, %v260_v21  ;;  %v589_v21 = vcombine.high %v15_v13, %v15_v13 }
  0x2b   :  { %v124_v27 = vld [vmem:[%s6054_s1 + $0x360] sm:$0xff]  ;;  %3193 = vmatpush2.bf16.msra.mxu0 %v3966_v30 }
  0x2c   :  { %v248_v28 = vld [vmem:[%s6054_s1 + $0x740] sm:$0xff]  ;;  %v3959_v32 = vcombine.high %v120_v26, %v124_v27  ;;  %3233 = vmatprep.subr.bf16.mxu1 %v4095_v25  ;;  %v3958_v38 = vcombine.low %v120_v26, %v124_v27 }
  0x2d   :  { %v252_v29 = vld [vmem:[%s6054_s1 + $0x760] sm:$0xff]  ;;  %3234 = vmatpush2.bf16.msra.mxu1 %v4094_v31  ;;  %v4638_v31 = vrot.slane %v589_v21, %v4472_v53 }
  0x2e   :  { %v4087_v33 = vcombine.high %v248_v28, %v252_v29  ;;  %v112_v34 = vld [vmem:[%s6054_s1 + $0x300] sm:$0xff]  ;;  %3194 = vmatprep.subr.bf16.mxu0 %v3959_v32  ;;  %v4086_v39 = vcombine.low %v248_v28, %v252_v29  ;;  %v4629_v28 = vrot.slane %v15_v13, %v4472_v53 }
  0x2f   :  { %v116_v35 = vld [vmem:[%s6054_s1 + $0x320] sm:$0xff]  ;;  %3195 = vmatpush2.bf16.msra.mxu0 %v3958_v38 }
  0x30   :  { %v240_v36 = vld [vmem:[%s6054_s1 + $0x700] sm:$0xff]  ;;  %v3951_v40 = vcombine.high %v112_v34, %v116_v35  ;;  %3235 = vmatprep.subr.bf16.mxu1 %v4087_v33  ;;  %v3950_v47 = vcombine.low %v112_v34, %v116_v35  ;;  %v4648_v53 = vcombine.high %v4629_v28, %v4629_v28 }
  0x31   :  { %v244_v37 = vld [vmem:[%s6054_s1 + $0x720] sm:$0xff]  ;;  %3236 = vmatpush2.bf16.msra.mxu1 %v4086_v39 }
  0x32   :  { %v4079_v41 = vcombine.high %v240_v36, %v244_v37  ;;  %v104_v42 = vld [vmem:[%s6054_s1 + $0x2c0] sm:$0xff]  ;;  %3196 = vmatprep.subr.bf16.mxu0 %v3951_v40  ;;  %v4078_v48 = vcombine.low %v240_v36, %v244_v37  ;;  %v4659_v40 = vcombine.high %v4638_v31, %v4638_v31 }
  0x33   :  { %v108_v44 = vld [vmem:[%s6054_s1 + $0x2e0] sm:$0xff]  ;;  %3197 = vmatpush2.bf16.msra.mxu0 %v3950_v47 }
  0x34   :  { %v232_v45 = vld [vmem:[%s6054_s1 + $0x6c0] sm:$0xff]  ;;  %v3943_v49 = vcombine.high %v104_v42, %v108_v44  ;;  %3237 = vmatprep.subr.bf16.mxu1 %v4079_v41  ;;  %v3942_v56 = vcombine.low %v104_v42, %v108_v44 }
  0x35   :  { %v236_v46 = vld [vmem:[%s6054_s1 + $0x6e0] sm:$0xff]  ;;  %3238 = vmatpush2.bf16.msra.mxu1 %v4078_v48 }
  0x36   :  { %v4071_v50 = vcombine.high %v232_v45, %v236_v46  ;;  %v96_v51 = vld [vmem:[%s6054_s1 + $0x280] sm:$0xff]  ;;  %3198 = vmatprep.subr.bf16.mxu0 %v3943_v49  ;;  %v4070_v57 = vcombine.low %v232_v45, %v236_v46 }
  0x37   :  { %v100_v52 = vld [vmem:[%s6054_s1 + $0x2a0] sm:$0xff]  ;;  %3199 = vmatpush2.bf16.msra.mxu0 %v3942_v56 }
  0x38   :  { %v224_v54 = vld [vmem:[%s6054_s1 + $0x680] sm:$0xff]  ;;  %v3935_v58 = vcombine.high %v96_v51, %v100_v52  ;;  %3239 = vmatprep.subr.bf16.mxu1 %v4071_v50  ;;  %v3934_v1 = vcombine.low %v96_v51, %v100_v52 }
  0x39   :  { %v228_v55 = vld [vmem:[%s6054_s1 + $0x6a0] sm:$0xff]  ;;  %3240 = vmatpush2.bf16.msra.mxu1 %v4070_v57 }
  0x3a   :  { %v4063_v59 = vcombine.high %v224_v54, %v228_v55  ;;  %v88_v60 = vld [vmem:[%s6054_s1 + $0x240] sm:$0xff]  ;;  %3200 = vmatprep.subr.bf16.mxu0 %v3935_v58  ;;  %v4062_v2 = vcombine.low %v224_v54, %v228_v55 }
  0x3b   :  { %v92_v61 = vld [vmem:[%s6054_s1 + $0x260] sm:$0xff]  ;;  %3201 = vmatpush2.bf16.msra.mxu0 %v3934_v1 }
  0x3c   :  { %v216_v62 = vld [vmem:[%s6054_s1 + $0x640] sm:$0xff]  ;;  %v3927_v3 = vcombine.high %v88_v60, %v92_v61  ;;  %3241 = vmatprep.subr.bf16.mxu1 %v4063_v59  ;;  %v3926_v12 = vcombine.low %v88_v60, %v92_v61 }
  0x3d   :  { %v220_v0 = vld [vmem:[%s6054_s1 + $0x660] sm:$0xff]  ;;  %3242 = vmatpush2.bf16.msra.mxu1 %v4062_v2 }
  0x3e   :  { %v4055_v6 = vcombine.high %v216_v62, %v220_v0  ;;  %v80_v7 = vld [vmem:[%s6054_s1 + $0x200] sm:$0xff]  ;;  %3202 = vmatprep.subr.bf16.mxu0 %v3927_v3  ;;  %v4054_v14 = vcombine.low %v216_v62, %v220_v0 }
  0x3f   :  { %v84_v8 = vld [vmem:[%s6054_s1 + $0x220] sm:$0xff]  ;;  %3203 = vmatpush2.bf16.msra.mxu0 %v3926_v12 }
  0x40   :  { %v208_v9 = vld [vmem:[%s6054_s1 + $0x600] sm:$0xff]  ;;  %v3919_v15 = vcombine.high %v80_v7, %v84_v8  ;;  %3243 = vmatprep.subr.bf16.mxu1 %v4055_v6  ;;  %v3918_v22 = vcombine.low %v80_v7, %v84_v8 }
  0x41   :  { %v212_v10 = vld [vmem:[%s6054_s1 + $0x620] sm:$0xff]  ;;  %3244 = vmatpush2.bf16.msra.mxu1 %v4054_v14 }
  0x42   :  { %v4047_v16 = vcombine.high %v208_v9, %v212_v10  ;;  %v328_v17 = vld [vmem:[%s6054_s1 + $0x9c0] sm:$0xff]  ;;  %3204 = vmatprep.subr.bf16.mxu0 %v3919_v15  ;;  %v4046_v23 = vcombine.low %v208_v9, %v212_v10 }
  0x43   :  { %v332_v18 = vld [vmem:[%s6054_s1 + $0x9e0] sm:$0xff]  ;;  %3205 = vmatpush2.bf16.msra.mxu0 %v3918_v22 }
  0x44   :  { %v456_v19 = vld [vmem:[%s6054_s1 + $0xdc0] sm:$0xff]  ;;  %v4167_v24 = vcombine.high %v328_v17, %v332_v18  ;;  %3245 = vmatprep.subr.bf16.mxu1 %v4047_v16  ;;  %v4166_v32 = vcombine.low %v328_v17, %v332_v18 }
  0x45   :  { %v460_v20 = vld [vmem:[%s6054_s1 + $0xde0] sm:$0xff]  ;;  %3246 = vmatpush2.bf16.msra.mxu1 %v4046_v23 }
  0x46   :  { %v4295_v25 = vcombine.high %v456_v19, %v460_v20  ;;  %v320_v26 = vld [vmem:[%s6054_s1 + $0x980] sm:$0xff]  ;;  %3256 = vmatprep.subr.bf16.mxu0 %v4167_v24  ;;  %v4294_v33 = vcombine.low %v456_v19, %v460_v20  ;;  %3207 = vmatmul.mubr.bf16.vlgmr.msra.gmra.mxu0 %v4490_v63 }
  0x47   :  { %v324_v27 = vld [vmem:[%s6054_s1 + $0x9a0] sm:$0xff]  ;;  %3257 = vmatpush1.bf16.msra.mxu0 %v4166_v32  ;;  %3288 = vmatprep.mubr.bf16.mxu0 %v4648_v53 }
  0x48   :  { %v448_v29 = vld [vmem:[%s6054_s1 + $0xd80] sm:$0xff]  ;;  %v4159_v34 = vcombine.high %v320_v26, %v324_v27  ;;  %3297 = vmatprep.subr.bf16.mxu1 %v4295_v25  ;;  %3248 = vmatmul.mubr.bf16.vlgmr.msra.gmra.mxu1 %v4503_v5  ;;  %v4158_v41 = vcombine.low %v320_v26, %v324_v27 }
  0x49   :  { %v452_v30 = vld [vmem:[%s6054_s1 + $0xda0] sm:$0xff]  ;;  %3298 = vmatpush1.bf16.msra.mxu1 %v4294_v33  ;;  %3329 = vmatprep.mubr.bf16.mxu1 %v4659_v40 }
  0x4a   :  { %v4287_v35 = vcombine.high %v448_v29, %v452_v30  ;;  %v312_v36 = vld [vmem:[%s6054_s1 + $0x940] sm:$0xff]  ;;  %3258 = vmatprep.subr.bf16.mxu0 %v4159_v34  ;;  %v4286_v42 = vcombine.low %v448_v29, %v452_v30 }
  0x4b   :  { %v316_v37 = vld [vmem:[%s6054_s1 + $0x960] sm:$0xff]  ;;  %3259 = vmatpush1.bf16.msra.mxu0 %v4158_v41 }
  0x4c   :  { %v440_v38 = vld [vmem:[%s6054_s1 + $0xd40] sm:$0xff]  ;;  %v4151_v44 = vcombine.high %v312_v36, %v316_v37  ;;  %3299 = vmatprep.subr.bf16.mxu1 %v4287_v35  ;;  %v4150_v50 = vcombine.low %v312_v36, %v316_v37 }
  0x4d   :  { %v444_v39 = vld [vmem:[%s6054_s1 + $0xd60] sm:$0xff]  ;;  %3300 = vmatpush1.bf16.msra.mxu1 %v4286_v42 }
  0x4e   :  { %v4279_v45 = vcombine.high %v440_v38, %v444_v39  ;;  %v304_v46 = vld [vmem:[%s6054_s1 + $0x900] sm:$0xff]  ;;  %3260 = vmatprep.subr.bf16.mxu0 %v4151_v44  ;;  %v4278_v51 = vcombine.low %v440_v38, %v444_v39 }
  0x4f   :  { %v308_v47 = vld [vmem:[%s6054_s1 + $0x920] sm:$0xff]  ;;  %3261 = vmatpush1.bf16.msra.mxu0 %v4150_v50 }
  0x50   :  { %v432_v48 = vld [vmem:[%s6054_s1 + $0xd00] sm:$0xff]  ;;  %v4143_v52 = vcombine.high %v304_v46, %v308_v47  ;;  %3301 = vmatprep.subr.bf16.mxu1 %v4279_v45  ;;  %v4142_v59 = vcombine.low %v304_v46, %v308_v47 }
  0x51   :  { %v436_v49 = vld [vmem:[%s6054_s1 + $0xd20] sm:$0xff]  ;;  %3302 = vmatpush1.bf16.msra.mxu1 %v4278_v51 }
  0x52   :  { %v4271_v54 = vcombine.high %v432_v48, %v436_v49  ;;  %v296_v55 = vld [vmem:[%s6054_s1 + $0x8c0] sm:$0xff]  ;;  %3262 = vmatprep.subr.bf16.mxu0 %v4143_v52  ;;  %v4270_v60 = vcombine.low %v432_v48, %v436_v49 }
  0x53   :  { %v300_v56 = vld [vmem:[%s6054_s1 + $0x8e0] sm:$0xff]  ;;  %3263 = vmatpush1.bf16.msra.mxu0 %v4142_v59 }
  0x54   :  { %v424_v57 = vld [vmem:[%s6054_s1 + $0xcc0] sm:$0xff]  ;;  %v4135_v61 = vcombine.high %v296_v55, %v300_v56  ;;  %3303 = vmatprep.subr.bf16.mxu1 %v4271_v54  ;;  %v4134_v6 = vcombine.low %v296_v55, %v300_v56 }
  0x55   :  { %v428_v58 = vld [vmem:[%s6054_s1 + $0xce0] sm:$0xff]  ;;  %3304 = vmatpush1.bf16.msra.mxu1 %v4270_v60 }
  0x56   :  { %v4263_v62 = vcombine.high %v424_v57, %v428_v58  ;;  %v288_v0 = vld [vmem:[%s6054_s1 + $0x880] sm:$0xff]  ;;  %3264 = vmatprep.subr.bf16.mxu0 %v4135_v61  ;;  %v4262_v7 = vcombine.low %v424_v57, %v428_v58 }
  0x57   :  { %v292_v1 = vld [vmem:[%s6054_s1 + $0x8a0] sm:$0xff]  ;;  %3265 = vmatpush1.bf16.msra.mxu0 %v4134_v6 }
  0x58   :  { %v416_v2 = vld [vmem:[%s6054_s1 + $0xc80] sm:$0xff]  ;;  %v4127_v8 = vcombine.high %v288_v0, %v292_v1  ;;  %3305 = vmatprep.subr.bf16.mxu1 %v4263_v62  ;;  %v4126_v15 = vcombine.low %v288_v0, %v292_v1 }
  0x59   :  { %v420_v3 = vld [vmem:[%s6054_s1 + $0xca0] sm:$0xff]  ;;  %3306 = vmatpush1.bf16.msra.mxu1 %v4262_v7 }
  0x5a   :  { %v4255_v9 = vcombine.high %v416_v2, %v420_v3  ;;  %v280_v10 = vld [vmem:[%s6054_s1 + $0x840] sm:$0xff]  ;;  %3266 = vmatprep.subr.bf16.mxu0 %v4127_v8  ;;  %v4254_v16 = vcombine.low %v416_v2, %v420_v3 }
  0x5b   :  { %v284_v12 = vld [vmem:[%s6054_s1 + $0x860] sm:$0xff]  ;;  %3267 = vmatpush1.bf16.msra.mxu0 %v4126_v15 }
  0x5c   :  { %v408_v13 = vld [vmem:[%s6054_s1 + $0xc40] sm:$0xff]  ;;  %v4119_v17 = vcombine.high %v280_v10, %v284_v12  ;;  %3307 = vmatprep.subr.bf16.mxu1 %v4255_v9  ;;  %v4118_v23 = vcombine.low %v280_v10, %v284_v12 }
  0x5d   :  { %v412_v14 = vld [vmem:[%s6054_s1 + $0xc60] sm:$0xff]  ;;  %3308 = vmatpush1.bf16.msra.mxu1 %v4254_v16 }
  0x5e   :  { %v4247_v18 = vcombine.high %v408_v13, %v412_v14  ;;  %v272_v19 = vld [vmem:[%s6054_s1 + $0x800] sm:$0xff]  ;;  %3268 = vmatprep.subr.bf16.mxu0 %v4119_v17  ;;  %v4246_v24 = vcombine.low %v408_v13, %v412_v14 }
  0x5f   :  { %v276_v20 = vld [vmem:[%s6054_s1 + $0x820] sm:$0xff]  ;;  %3269 = vmatpush1.bf16.msra.mxu0 %v4118_v23 }
  0x60   :  { %v400_v21 = vld [vmem:[%s6054_s1 + $0xc00] sm:$0xff]  ;;  %v4111_v25 = vcombine.high %v272_v19, %v276_v20  ;;  %3309 = vmatprep.subr.bf16.mxu1 %v4247_v18  ;;  %v4110_v33 = vcombine.low %v272_v19, %v276_v20 }
  0x61   :  { %v404_v22 = vld [vmem:[%s6054_s1 + $0xc20] sm:$0xff]  ;;  %3310 = vmatpush1.bf16.msra.mxu1 %v4246_v24 }
  0x62   :  { %v4239_v26 = vcombine.high %v400_v21, %v404_v22  ;;  %v392_v27 = vld [vmem:[%s6054_s1 + $0xbc0] sm:$0xff]  ;;  %3270 = vmatprep.subr.bf16.mxu0 %v4111_v25  ;;  %v4238_v34 = vcombine.low %v400_v21, %v404_v22 }
  0x63   :  { %v396_v29 = vld [vmem:[%s6054_s1 + $0xbe0] sm:$0xff]  ;;  %3271 = vmatpush1.bf16.msra.mxu0 %v4110_v33 }
  0x64   :  { %v520_v30 = vld [vmem:[%s6054_s1 + $0xfc0] sm:$0xff]  ;;  %v4231_v35 = vcombine.high %v392_v27, %v396_v29  ;;  %3311 = vmatprep.subr.bf16.mxu1 %v4239_v26  ;;  %v4230_v42 = vcombine.low %v392_v27, %v396_v29 }
  0x65   :  { %v524_v32 = vld [vmem:[%s6054_s1 + $0xfe0] sm:$0xff]  ;;  %3312 = vmatpush1.bf16.msra.mxu1 %v4238_v34 }
  0x66   :  { %v4359_v36 = vcombine.high %v520_v30, %v524_v32  ;;  %v384_v37 = vld [vmem:[%s6054_s1 + $0xb80] sm:$0xff]  ;;  %3272 = vmatprep.subr.bf16.mxu0 %v4231_v35  ;;  %v4358_v44 = vcombine.low %v520_v30, %v524_v32 }
  0x67   :  { %v388_v38 = vld [vmem:[%s6054_s1 + $0xba0] sm:$0xff]  ;;  %3273 = vmatpush2.bf16.msra.mxu0 %v4230_v42  ;;  %v205_v42 = vld [vmem:[%s6054_s1 + $0x5e8] sm:$0xff] }
  0x68   :  { %v512_v39 = vld [vmem:[%s6054_s1 + $0xf80] sm:$0xff]  ;;  %v4223_v45 = vcombine.high %v384_v37, %v388_v38  ;;  %3313 = vmatprep.subr.bf16.mxu1 %v4359_v36  ;;  %v4222_v51 = vcombine.low %v384_v37, %v388_v38  ;;  %v73_v38 = vld [vmem:[%s6054_s1 + $0x1c8] sm:$0xff] }
  0x69   :  { %v516_v41 = vld [vmem:[%s6054_s1 + $0xfa0] sm:$0xff]  ;;  %3314 = vmatpush2.bf16.msra.mxu1 %v4358_v44 }
  0x6a   :  { %v4351_v46 = vcombine.high %v512_v39, %v516_v41  ;;  %v376_v47 = vld [vmem:[%s6054_s1 + $0xb40] sm:$0xff]  ;;  %3274 = vmatprep.subr.bf16.mxu0 %v4223_v45  ;;  %v4350_v52 = vcombine.low %v512_v39, %v516_v41  ;;  %v77_v39 = vld [vmem:[%s6054_s1 + $0x1e8] sm:$0xff] }
  0x6b   :  { %v380_v48 = vld [vmem:[%s6054_s1 + $0xb60] sm:$0xff]  ;;  %3275 = vmatpush2.bf16.msra.mxu0 %v4222_v51  ;;  %v201_v41 = vld [vmem:[%s6054_s1 + $0x5c8] sm:$0xff] }
  0x6c   :  { %v504_v49 = vld [vmem:[%s6054_s1 + $0xf40] sm:$0xff]  ;;  %v4215_v54 = vcombine.high %v376_v47, %v380_v48  ;;  %3315 = vmatprep.subr.bf16.mxu1 %v4351_v46  ;;  %v4214_v60 = vcombine.low %v376_v47, %v380_v48  ;;  %v3913_v46 = vcombine.high %v73_v38, %v77_v39  ;;  %v4041_v47 = vcombine.high %v201_v41, %v205_v42  ;;  %v65_v48 = vld [vmem:[%s6054_s1 + $0x188] sm:$0xff] }
  0x6d   :  { %v508_v50 = vld [vmem:[%s6054_s1 + $0xf60] sm:$0xff]  ;;  %3316 = vmatpush2.bf16.msra.mxu1 %v4350_v52  ;;  %v197_v51 = vld [vmem:[%s6054_s1 + $0x5a8] sm:$0xff]  ;;  %v3912_v52 = vcombine.low %v73_v38, %v77_v39 }
  0x6e   :  { %v4343_v55 = vcombine.high %v504_v49, %v508_v50  ;;  %v368_v56 = vld [vmem:[%s6054_s1 + $0xb00] sm:$0xff]  ;;  %3276 = vmatprep.subr.bf16.mxu0 %v4215_v54  ;;  %v4342_v61 = vcombine.low %v504_v49, %v508_v50  ;;  %v69_v49 = vld [vmem:[%s6054_s1 + $0x1a8] sm:$0xff]  ;;  %v4040_v54 = vcombine.low %v201_v41, %v205_v42 }
  0x6f   :  { %v372_v57 = vld [vmem:[%s6054_s1 + $0xb20] sm:$0xff]  ;;  %3277 = vmatpush2.bf16.msra.mxu0 %v4214_v60  ;;  %v193_v50 = vld [vmem:[%s6054_s1 + $0x588] sm:$0xff] }
  0x70   :  { %v496_v58 = vld [vmem:[%s6054_s1 + $0xf00] sm:$0xff]  ;;  %v4207_v62 = vcombine.high %v368_v56, %v372_v57  ;;  %3317 = vmatprep.subr.bf16.mxu1 %v4343_v55  ;;  %v4206_v7 = vcombine.low %v368_v56, %v372_v57  ;;  %v3905_v55 = vcombine.high %v65_v48, %v69_v49  ;;  %v4033_v56 = vcombine.high %v193_v50, %v197_v51  ;;  %v57_v57 = vld [vmem:[%s6054_s1 + $0x148] sm:$0xff] }
  0x71   :  { %v500_v59 = vld [vmem:[%s6054_s1 + $0xf20] sm:$0xff]  ;;  %3318 = vmatpush2.bf16.msra.mxu1 %v4342_v61  ;;  %v189_v60 = vld [vmem:[%s6054_s1 + $0x568] sm:$0xff]  ;;  %v3904_v61 = vcombine.low %v65_v48, %v69_v49 }
  0x72   :  { %v4335_v0 = vcombine.high %v496_v58, %v500_v59  ;;  %v360_v1 = vld [vmem:[%s6054_s1 + $0xac0] sm:$0xff]  ;;  %3278 = vmatprep.subr.bf16.mxu0 %v4207_v62  ;;  %v4334_v8 = vcombine.low %v496_v58, %v500_v59  ;;  %v61_v58 = vld [vmem:[%s6054_s1 + $0x168] sm:$0xff]  ;;  %v4032_v62 = vcombine.low %v193_v50, %v197_v51 }
  0x73   :  { %v364_v2 = vld [vmem:[%s6054_s1 + $0xae0] sm:$0xff]  ;;  %3279 = vmatpush2.bf16.msra.mxu0 %v4206_v7  ;;  %v185_v59 = vld [vmem:[%s6054_s1 + $0x548] sm:$0xff] }
  0x74   :  { %v488_v3 = vld [vmem:[%s6054_s1 + $0xec0] sm:$0xff]  ;;  %v4199_v9 = vcombine.high %v360_v1, %v364_v2  ;;  %3319 = vmatprep.subr.bf16.mxu1 %v4335_v0  ;;  %v4198_v16 = vcombine.low %v360_v1, %v364_v2  ;;  %v3897_v0 = vcombine.high %v57_v57, %v61_v58  ;;  %v4025_v1 = vcombine.high %v185_v59, %v189_v60  ;;  %v49_v2 = vld [vmem:[%s6054_s1 + $0x108] sm:$0xff] }
  0x75   :  { %v492_v6 = vld [vmem:[%s6054_s1 + $0xee0] sm:$0xff]  ;;  %3320 = vmatpush2.bf16.msra.mxu1 %v4334_v8  ;;  %v181_v7 = vld [vmem:[%s6054_s1 + $0x528] sm:$0xff]  ;;  %v3896_v8 = vcombine.low %v57_v57, %v61_v58 }
  0x76   :  { %v4327_v10 = vcombine.high %v488_v3, %v492_v6  ;;  %v352_v12 = vld [vmem:[%s6054_s1 + $0xa80] sm:$0xff]  ;;  %3280 = vmatprep.subr.bf16.mxu0 %v4199_v9  ;;  %v4326_v17 = vcombine.low %v488_v3, %v492_v6  ;;  %v53_v3 = vld [vmem:[%s6054_s1 + $0x128] sm:$0xff]  ;;  %v4024_v9 = vcombine.low %v185_v59, %v189_v60 }
  0x77   :  { %v356_v13 = vld [vmem:[%s6054_s1 + $0xaa0] sm:$0xff]  ;;  %3281 = vmatpush2.bf16.msra.mxu0 %v4198_v16  ;;  %v177_v6 = vld [vmem:[%s6054_s1 + $0x508] sm:$0xff] }
  0x78   :  { %v480_v14 = vld [vmem:[%s6054_s1 + $0xe80] sm:$0xff]  ;;  %v4191_v18 = vcombine.high %v352_v12, %v356_v13  ;;  %3321 = vmatprep.subr.bf16.mxu1 %v4327_v10  ;;  %v4190_v24 = vcombine.low %v352_v12, %v356_v13  ;;  %v3889_v10 = vcombine.high %v49_v2, %v53_v3  ;;  %v4017_v12 = vcombine.high %v177_v6, %v181_v7  ;;  %v41_v13 = vld [vmem:[%s6054_s1 + $0xc8] sm:$0xff] }
  0x79   :  { %v484_v15 = vld [vmem:[%s6054_s1 + $0xea0] sm:$0xff]  ;;  %3322 = vmatpush2.bf16.msra.mxu1 %v4326_v17  ;;  %v173_v16 = vld [vmem:[%s6054_s1 + $0x4e8] sm:$0xff]  ;;  %v3888_v17 = vcombine.low %v49_v2, %v53_v3 }
  0x7a   :  { %v4319_v19 = vcombine.high %v480_v14, %v484_v15  ;;  %v344_v20 = vld [vmem:[%s6054_s1 + $0xa40] sm:$0xff]  ;;  %3282 = vmatprep.subr.bf16.mxu0 %v4191_v18  ;;  %v4318_v25 = vcombine.low %v480_v14, %v484_v15  ;;  %v45_v14 = vld [vmem:[%s6054_s1 + $0xe8] sm:$0xff]  ;;  %v4016_v18 = vcombine.low %v177_v6, %v181_v7 }
  0x7b   :  { %v348_v21 = vld [vmem:[%s6054_s1 + $0xa60] sm:$0xff]  ;;  %3283 = vmatpush2.bf16.msra.mxu0 %v4190_v24  ;;  %v169_v15 = vld [vmem:[%s6054_s1 + $0x4c8] sm:$0xff] }
  0x7c   :  { %v472_v22 = vld [vmem:[%s6054_s1 + $0xe40] sm:$0xff]  ;;  %v4183_v26 = vcombine.high %v344_v20, %v348_v21  ;;  %3323 = vmatprep.subr.bf16.mxu1 %v4319_v19  ;;  %v4182_v34 = vcombine.low %v344_v20, %v348_v21  ;;  %v3881_v19 = vcombine.high %v41_v13, %v45_v14  ;;  %v4009_v20 = vcombine.high %v169_v15, %v173_v16  ;;  %v33_v21 = vld [vmem:[%s6054_s1 + $0x88] sm:$0xff] }
  0x7d   :  { %v476_v23 = vld [vmem:[%s6054_s1 + $0xe60] sm:$0xff]  ;;  %3324 = vmatpush2.bf16.msra.mxu1 %v4318_v25  ;;  %v165_v24 = vld [vmem:[%s6054_s1 + $0x4a8] sm:$0xff]  ;;  %v3880_v25 = vcombine.low %v41_v13, %v45_v14 }
  0x7e   :  { %v4311_v27 = vcombine.high %v472_v22, %v476_v23  ;;  %v336_v29 = vld [vmem:[%s6054_s1 + $0xa00] sm:$0xff]  ;;  %3284 = vmatprep.subr.bf16.mxu0 %v4183_v26  ;;  %v4310_v35 = vcombine.low %v472_v22, %v476_v23  ;;  %v37_v22 = vld [vmem:[%s6054_s1 + $0xa8] sm:$0xff]  ;;  %v4008_v26 = vcombine.low %v169_v15, %v173_v16 }
  0x7f   :  { %v340_v30 = vld [vmem:[%s6054_s1 + $0xa20] sm:$0xff]  ;;  %3285 = vmatpush2.bf16.msra.mxu0 %v4182_v34  ;;  %v161_v23 = vld [vmem:[%s6054_s1 + $0x488] sm:$0xff] }
  0x80   :  { %v464_v32 = vld [vmem:[%s6054_s1 + $0xe00] sm:$0xff]  ;;  %v4175_v36 = vcombine.high %v336_v29, %v340_v30  ;;  %3325 = vmatprep.subr.bf16.mxu1 %v4311_v27  ;;  %v4174_v44 = vcombine.low %v336_v29, %v340_v30  ;;  %v3873_v27 = vcombine.high %v33_v21, %v37_v22  ;;  %v4001_v29 = vcombine.high %v161_v23, %v165_v24  ;;  %v25_v30 = vld [vmem:[%s6054_s1 + $0x48] sm:$0xff] }
  0x81   :  { %v468_v33 = vld [vmem:[%s6054_s1 + $0xe20] sm:$0xff]  ;;  %3326 = vmatpush2.bf16.msra.mxu1 %v4310_v35  ;;  %v157_v34 = vld [vmem:[%s6054_s1 + $0x468] sm:$0xff]  ;;  %v3872_v35 = vcombine.low %v33_v21, %v37_v22 }
  0x82   :  { %v4303_v37 = vcombine.high %v464_v32, %v468_v33  ;;  %3286 = vmatprep.subr.bf16.mxu0 %v4175_v36  ;;  %v4302_v45 = vcombine.low %v464_v32, %v468_v33  ;;  %v29_v32 = vld [vmem:[%s6054_s1 + $0x68] sm:$0xff]  ;;  %v4000_v36 = vcombine.low %v161_v23, %v165_v24 }
  0x83   :  { %3287 = vmatpush2.bf16.msra.mxu0 %v4174_v44  ;;  %v153_v33 = vld [vmem:[%s6054_s1 + $0x448] sm:$0xff] }
  0x84   :  { %3327 = vmatprep.subr.bf16.mxu1 %v4303_v37  ;;  %3338 = vmatprep.subr.bf16.mxu0 %v3913_v46  ;;  %v3865_v37 = vcombine.high %v25_v30, %v29_v32  ;;  %v3993_v38 = vcombine.high %v153_v33, %v157_v34  ;;  %v17_v39 = vld [vmem:[%s6054_s1 + $0x8] sm:$0xff]  ;;  %v3992_v46 = vcombine.low %v153_v33, %v157_v34 }
  0x85   :  { %3328 = vmatpush2.bf16.msra.mxu1 %v4302_v45  ;;  %v21_v41 = vld [vmem:[%s6054_s1 + $0x28] sm:$0xff]  ;;  %v3864_v45 = vcombine.low %v25_v30, %v29_v32 }
  0x86   :  { %3379 = vmatprep.subr.bf16.mxu1 %v4041_v47  ;;  %3289 = vmatmul.mubr.bf16.vlgmr.msra.gmra.mxu0 %v4629_v28  ;;  %v145_v42 = vld [vmem:[%s6054_s1 + $0x408] sm:$0xff]  ;;  %v3857_v47 = vcombine.high %v17_v39, %v21_v41 }
  0x87   :  { %3339 = vmatpush1.bf16.msra.mxu0 %v3912_v52  ;;  %3370 = vmatprep.mubr.bf16.mxu0 %v4500_v4  ;;  %v149_v44 = vld [vmem:[%s6054_s1 + $0x428] sm:$0xff] }
  0x88   :  { %3330 = vmatmul.mubr.bf16.vlgmr.msra.gmra.mxu1 %v4638_v31  ;;  %3340 = vmatprep.subr.bf16.mxu0 %v3905_v55  ;;  %v3985_v48 = vcombine.high %v145_v42, %v149_v44  ;;  %v137_v49 = vld [vmem:[%s6054_s1 + $0x3c8] sm:$0xff]  ;;  %v3984_v55 = vcombine.low %v145_v42, %v149_v44 }
  0x89   :  { %3380 = vmatpush1.bf16.msra.mxu1 %v4040_v54  ;;  %3411 = vmatprep.mubr.bf16.mxu1 %v4514_v11  ;;  %v141_v50 = vld [vmem:[%s6054_s1 + $0x3e8] sm:$0xff]  ;;  %v3856_v54 = vcombine.low %v17_v39, %v21_v41 }
  0x8a   :  { %3381 = vmatprep.subr.bf16.mxu1 %v4033_v56  ;;  %v265_v51 = vld [vmem:[%s6054_s1 + $0x7c8] sm:$0xff]  ;;  %v3977_v56 = vcombine.high %v137_v49, %v141_v50 }
  0x8b   :  { %3341 = vmatpush1.bf16.msra.mxu0 %v3904_v61  ;;  %v269_v52 = vld [vmem:[%s6054_s1 + $0x7e8] sm:$0xff] }
  0x8c   :  { %3342 = vmatprep.subr.bf16.mxu0 %v3897_v0  ;;  %v4105_v57 = vcombine.high %v265_v51, %v269_v52  ;;  %v129_v58 = vld [vmem:[%s6054_s1 + $0x388] sm:$0xff]  ;;  %v4104_v0 = vcombine.low %v265_v51, %v269_v52 }
  0x8d   :  { %3382 = vmatpush1.bf16.msra.mxu1 %v4032_v62  ;;  %v133_v59 = vld [vmem:[%s6054_s1 + $0x3a8] sm:$0xff]  ;;  %v3976_v62 = vcombine.low %v137_v49, %v141_v50 }
  0x8e   :  { %3383 = vmatprep.subr.bf16.mxu1 %v4025_v1  ;;  %v257_v60 = vld [vmem:[%s6054_s1 + $0x788] sm:$0xff]  ;;  %v3969_v1 = vcombine.high %v129_v58, %v133_v59 }
  0x8f   :  { %3343 = vmatpush1.bf16.msra.mxu0 %v3896_v8  ;;  %v261_v61 = vld [vmem:[%s6054_s1 + $0x7a8] sm:$0xff] }
  0x90   :  { %3344 = vmatprep.subr.bf16.mxu0 %v3889_v10  ;;  %v4097_v2 = vcombine.high %v257_v60, %v261_v61  ;;  %v121_v3 = vld [vmem:[%s6054_s1 + $0x348] sm:$0xff]  ;;  %v4096_v10 = vcombine.low %v257_v60, %v261_v61 }
  0x91   :  { %3384 = vmatpush1.bf16.msra.mxu1 %v4024_v9  ;;  %v125_v6 = vld [vmem:[%s6054_s1 + $0x368] sm:$0xff]  ;;  %v3968_v9 = vcombine.low %v129_v58, %v133_v59 }
  0x92   :  { %3385 = vmatprep.subr.bf16.mxu1 %v4017_v12  ;;  %v249_v7 = vld [vmem:[%s6054_s1 + $0x748] sm:$0xff]  ;;  %v3961_v12 = vcombine.high %v121_v3, %v125_v6 }
  0x93   :  { %3345 = vmatpush1.bf16.msra.mxu0 %v3888_v17  ;;  %v253_v8 = vld [vmem:[%s6054_s1 + $0x768] sm:$0xff] }
  0x94   :  { %3346 = vmatprep.subr.bf16.mxu0 %v3881_v19  ;;  %v4089_v13 = vcombine.high %v249_v7, %v253_v8  ;;  %v113_v14 = vld [vmem:[%s6054_s1 + $0x308] sm:$0xff]  ;;  %v4088_v19 = vcombine.low %v249_v7, %v253_v8 }
  0x95   :  { %3386 = vmatpush1.bf16.msra.mxu1 %v4016_v18  ;;  %v117_v15 = vld [vmem:[%s6054_s1 + $0x328] sm:$0xff]  ;;  %v3960_v18 = vcombine.low %v121_v3, %v125_v6 }
  0x96   :  { %3387 = vmatprep.subr.bf16.mxu1 %v4009_v20  ;;  %v241_v16 = vld [vmem:[%s6054_s1 + $0x708] sm:$0xff]  ;;  %v3953_v20 = vcombine.high %v113_v14, %v117_v15 }
  0x97   :  { %3347 = vmatpush1.bf16.msra.mxu0 %v3880_v25  ;;  %v245_v17 = vld [vmem:[%s6054_s1 + $0x728] sm:$0xff] }
  0x98   :  { %3348 = vmatprep.subr.bf16.mxu0 %v3873_v27  ;;  %v4081_v21 = vcombine.high %v241_v16, %v245_v17  ;;  %v105_v22 = vld [vmem:[%s6054_s1 + $0x2c8] sm:$0xff]  ;;  %v4080_v27 = vcombine.low %v241_v16, %v245_v17 }
  0x99   :  { %3388 = vmatpush1.bf16.msra.mxu1 %v4008_v26  ;;  %v109_v23 = vld [vmem:[%s6054_s1 + $0x2e8] sm:$0xff]  ;;  %v3952_v26 = vcombine.low %v113_v14, %v117_v15 }
  0x9a   :  { %3389 = vmatprep.subr.bf16.mxu1 %v4001_v29  ;;  %v233_v24 = vld [vmem:[%s6054_s1 + $0x6c8] sm:$0xff]  ;;  %v3945_v29 = vcombine.high %v105_v22, %v109_v23 }
  0x9b   :  { %3349 = vmatpush1.bf16.msra.mxu0 %v3872_v35  ;;  %v237_v25 = vld [vmem:[%s6054_s1 + $0x6e8] sm:$0xff] }
  0x9c   :  { %3350 = vmatprep.subr.bf16.mxu0 %v3865_v37  ;;  %v4073_v30 = vcombine.high %v233_v24, %v237_v25  ;;  %v97_v32 = vld [vmem:[%s6054_s1 + $0x288] sm:$0xff]  ;;  %v4072_v37 = vcombine.low %v233_v24, %v237_v25 }
  0x9d   :  { %3390 = vmatpush1.bf16.msra.mxu1 %v4000_v36  ;;  %v101_v33 = vld [vmem:[%s6054_s1 + $0x2a8] sm:$0xff]  ;;  %v3944_v36 = vcombine.low %v105_v22, %v109_v23 }
  0x9e   :  { %3391 = vmatprep.subr.bf16.mxu1 %v3993_v38  ;;  %v225_v34 = vld [vmem:[%s6054_s1 + $0x688] sm:$0xff]  ;;  %v3937_v38 = vcombine.high %v97_v32, %v101_v33 }
  0x9f   :  { %3351 = vmatpush1.bf16.msra.mxu0 %v3864_v45  ;;  %v229_v35 = vld [vmem:[%s6054_s1 + $0x6a8] sm:$0xff] }
  0xa0   :  { %3352 = vmatprep.subr.bf16.mxu0 %v3857_v47  ;;  %v4065_v39 = vcombine.high %v225_v34, %v229_v35  ;;  %v89_v41 = vld [vmem:[%s6054_s1 + $0x248] sm:$0xff]  ;;  %v4064_v47 = vcombine.low %v225_v34, %v229_v35 }
  0xa1   :  { %3392 = vmatpush1.bf16.msra.mxu1 %v3992_v46  ;;  %v93_v42 = vld [vmem:[%s6054_s1 + $0x268] sm:$0xff]  ;;  %v3936_v46 = vcombine.low %v97_v32, %v101_v33 }
  0xa2   :  { %3393 = vmatprep.subr.bf16.mxu1 %v3985_v48  ;;  %v217_v44 = vld [vmem:[%s6054_s1 + $0x648] sm:$0xff]  ;;  %v3929_v48 = vcombine.high %v89_v41, %v93_v42 }
  0xa3   :  { %3353 = vmatpush1.bf16.msra.mxu0 %v3856_v54  ;;  %v221_v45 = vld [vmem:[%s6054_s1 + $0x668] sm:$0xff] }
  0xa4   :  { %3354 = vmatprep.subr.bf16.mxu0 %v3977_v56  ;;  %v4057_v49 = vcombine.high %v217_v44, %v221_v45  ;;  %v81_v50 = vld [vmem:[%s6054_s1 + $0x208] sm:$0xff]  ;;  %v4056_v56 = vcombine.low %v217_v44, %v221_v45 }
  0xa5   :  { %3394 = vmatpush1.bf16.msra.mxu1 %v3984_v55  ;;  %v85_v51 = vld [vmem:[%s6054_s1 + $0x228] sm:$0xff]  ;;  %v3928_v55 = vcombine.low %v89_v41, %v93_v42 }
  0xa6   :  { %3395 = vmatprep.subr.bf16.mxu1 %v4105_v57  ;;  %v209_v52 = vld [vmem:[%s6054_s1 + $0x608] sm:$0xff]  ;;  %v3921_v57 = vcombine.high %v81_v50, %v85_v51 }
  0xa7   :  { %3355 = vmatpush2.bf16.msra.mxu0 %v3976_v62  ;;  %v213_v54 = vld [vmem:[%s6054_s1 + $0x628] sm:$0xff] }
  0xa8   :  { %3356 = vmatprep.subr.bf16.mxu0 %v3969_v1  ;;  %v4049_v58 = vcombine.high %v209_v52, %v213_v54  ;;  %v329_v59 = vld [vmem:[%s6054_s1 + $0x9c8] sm:$0xff]  ;;  %v4048_v1 = vcombine.low %v209_v52, %v213_v54 }
  0xa9   :  { %3396 = vmatpush2.bf16.msra.mxu1 %v4104_v0  ;;  %v333_v60 = vld [vmem:[%s6054_s1 + $0x9e8] sm:$0xff]  ;;  %v3920_v0 = vcombine.low %v81_v50, %v85_v51 }
  0xaa   :  { %3397 = vmatprep.subr.bf16.mxu1 %v4097_v2  ;;  %v457_v61 = vld [vmem:[%s6054_s1 + $0xdc8] sm:$0xff]  ;;  %v4169_v2 = vcombine.high %v329_v59, %v333_v60 }
  0xab   :  { %3357 = vmatpush2.bf16.msra.mxu0 %v3968_v9  ;;  %v461_v62 = vld [vmem:[%s6054_s1 + $0xde8] sm:$0xff] }
  0xac   :  { %3358 = vmatprep.subr.bf16.mxu0 %v3961_v12  ;;  %v4297_v3 = vcombine.high %v457_v61, %v461_v62  ;;  %v321_v6 = vld [vmem:[%s6054_s1 + $0x988] sm:$0xff]  ;;  %v4296_v12 = vcombine.low %v457_v61, %v461_v62 }
  0xad   :  { %3398 = vmatpush2.bf16.msra.mxu1 %v4096_v10  ;;  %v325_v7 = vld [vmem:[%s6054_s1 + $0x9a8] sm:$0xff]  ;;  %v4168_v10 = vcombine.low %v329_v59, %v333_v60 }
  0xae   :  { %3399 = vmatprep.subr.bf16.mxu1 %v4089_v13  ;;  %v449_v8 = vld [vmem:[%s6054_s1 + $0xd88] sm:$0xff]  ;;  %v4161_v13 = vcombine.high %v321_v6, %v325_v7 }
  0xaf   :  { %3359 = vmatpush2.bf16.msra.mxu0 %v3960_v18  ;;  %v453_v9 = vld [vmem:[%s6054_s1 + $0xda8] sm:$0xff] }
  0xb0   :  { %3360 = vmatprep.subr.bf16.mxu0 %v3953_v20  ;;  %v4289_v14 = vcombine.high %v449_v8, %v453_v9  ;;  %v313_v15 = vld [vmem:[%s6054_s1 + $0x948] sm:$0xff]  ;;  %v4288_v20 = vcombine.low %v449_v8, %v453_v9 }
  0xb1   :  { %3400 = vmatpush2.bf16.msra.mxu1 %v4088_v19  ;;  %v317_v16 = vld [vmem:[%s6054_s1 + $0x968] sm:$0xff]  ;;  %v4160_v19 = vcombine.low %v321_v6, %v325_v7 }
  0xb2   :  { %3401 = vmatprep.subr.bf16.mxu1 %v4081_v21  ;;  %v441_v17 = vld [vmem:[%s6054_s1 + $0xd48] sm:$0xff]  ;;  %v4153_v21 = vcombine.high %v313_v15, %v317_v16 }
  0xb3   :  { %3361 = vmatpush2.bf16.msra.mxu0 %v3952_v26  ;;  %v445_v18 = vld [vmem:[%s6054_s1 + $0xd68] sm:$0xff] }
  0xb4   :  { %3362 = vmatprep.subr.bf16.mxu0 %v3945_v29  ;;  %v4281_v22 = vcombine.high %v441_v17, %v445_v18  ;;  %v305_v23 = vld [vmem:[%s6054_s1 + $0x908] sm:$0xff]  ;;  %v4280_v29 = vcombine.low %v441_v17, %v445_v18 }
  0xb5   :  { %3402 = vmatpush2.bf16.msra.mxu1 %v4080_v27  ;;  %v309_v24 = vld [vmem:[%s6054_s1 + $0x928] sm:$0xff]  ;;  %v4152_v27 = vcombine.low %v313_v15, %v317_v16 }
  0xb6   :  { %3403 = vmatprep.subr.bf16.mxu1 %v4073_v30  ;;  %v433_v25 = vld [vmem:[%s6054_s1 + $0xd08] sm:$0xff]  ;;  %v4145_v30 = vcombine.high %v305_v23, %v309_v24 }
  0xb7   :  { %3363 = vmatpush2.bf16.msra.mxu0 %v3944_v36  ;;  %v437_v26 = vld [vmem:[%s6054_s1 + $0xd28] sm:$0xff] }
  0xb8   :  { %3364 = vmatprep.subr.bf16.mxu0 %v3937_v38  ;;  %v4273_v32 = vcombine.high %v433_v25, %v437_v26  ;;  %v297_v33 = vld [vmem:[%s6054_s1 + $0x8c8] sm:$0xff]  ;;  %v4272_v38 = vcombine.low %v433_v25, %v437_v26 }
  0xb9   :  { %3404 = vmatpush2.bf16.msra.mxu1 %v4072_v37  ;;  %v301_v34 = vld [vmem:[%s6054_s1 + $0x8e8] sm:$0xff]  ;;  %v4144_v37 = vcombine.low %v305_v23, %v309_v24 }
  0xba   :  { %3405 = vmatprep.subr.bf16.mxu1 %v4065_v39  ;;  %v425_v35 = vld [vmem:[%s6054_s1 + $0xcc8] sm:$0xff]  ;;  %v4137_v39 = vcombine.high %v297_v33, %v301_v34 }
  0xbb   :  { %3365 = vmatpush2.bf16.msra.mxu0 %v3936_v46  ;;  %v429_v36 = vld [vmem:[%s6054_s1 + $0xce8] sm:$0xff] }
  0xbc   :  { %3366 = vmatprep.subr.bf16.mxu0 %v3929_v48  ;;  %v4265_v41 = vcombine.high %v425_v35, %v429_v36  ;;  %v289_v42 = vld [vmem:[%s6054_s1 + $0x888] sm:$0xff]  ;;  %v4264_v48 = vcombine.low %v425_v35, %v429_v36 }
  0xbd   :  { %3406 = vmatpush2.bf16.msra.mxu1 %v4064_v47  ;;  %v293_v44 = vld [vmem:[%s6054_s1 + $0x8a8] sm:$0xff]  ;;  %v4136_v47 = vcombine.low %v297_v33, %v301_v34 }
  0xbe   :  { %3407 = vmatprep.subr.bf16.mxu1 %v4057_v49  ;;  %v417_v45 = vld [vmem:[%s6054_s1 + $0xc88] sm:$0xff]  ;;  %v4129_v49 = vcombine.high %v289_v42, %v293_v44 }
  0xbf   :  { %3367 = vmatpush2.bf16.msra.mxu0 %v3928_v55  ;;  %v421_v46 = vld [vmem:[%s6054_s1 + $0xca8] sm:$0xff] }
  0xc0   :  { %3368 = vmatprep.subr.bf16.mxu0 %v3921_v57  ;;  %v4257_v50 = vcombine.high %v417_v45, %v421_v46  ;;  %v281_v51 = vld [vmem:[%s6054_s1 + $0x848] sm:$0xff]  ;;  %v4256_v57 = vcombine.low %v417_v45, %v421_v46 }
  0xc1   :  { %3408 = vmatpush2.bf16.msra.mxu1 %v4056_v56  ;;  %v285_v52 = vld [vmem:[%s6054_s1 + $0x868] sm:$0xff]  ;;  %v4128_v56 = vcombine.low %v289_v42, %v293_v44 }
  0xc2   :  { %3409 = vmatprep.subr.bf16.mxu1 %v4049_v58  ;;  %v409_v54 = vld [vmem:[%s6054_s1 + $0xc48] sm:$0xff]  ;;  %v4121_v58 = vcombine.high %v281_v51, %v285_v52 }
  0xc3   :  { %3369 = vmatpush2.bf16.msra.mxu0 %v3920_v0  ;;  %v413_v55 = vld [vmem:[%s6054_s1 + $0xc68] sm:$0xff] }
  0xc4   :  { %3420 = vmatprep.subr.bf16.mxu0 %v4169_v2  ;;  %v4249_v59 = vcombine.high %v409_v54, %v413_v55  ;;  %v273_v60 = vld [vmem:[%s6054_s1 + $0x808] sm:$0xff]  ;;  %v4248_v2 = vcombine.low %v409_v54, %v413_v55 }
  0xc5   :  { %3410 = vmatpush2.bf16.msra.mxu1 %v4048_v1  ;;  %v277_v61 = vld [vmem:[%s6054_s1 + $0x828] sm:$0xff]  ;;  %v4120_v1 = vcombine.low %v281_v51, %v285_v52 }
  0xc6   :  { %3461 = vmatprep.subr.bf16.mxu1 %v4297_v3  ;;  %3371 = vmatmul.mubr.bf16.vlgmr.msra.gmra.mxu0 %v4490_v63  ;;  %v401_v62 = vld [vmem:[%s6054_s1 + $0xc08] sm:$0xff]  ;;  %v4113_v3 = vcombine.high %v273_v60, %v277_v61 }
  0xc7   :  { %3421 = vmatpush1.bf16.msra.mxu0 %v4168_v10  ;;  %3452 = vmatprep.mubr.bf16.mxu0 %v4648_v53  ;;  %v405_v0 = vld [vmem:[%s6054_s1 + $0xc28] sm:$0xff] }
  0xc8   :  { %3412 = vmatmul.mubr.bf16.vlgmr.msra.gmra.mxu1 %v4503_v5  ;;  %3422 = vmatprep.subr.bf16.mxu0 %v4161_v13  ;;  %v4241_v6 = vcombine.high %v401_v62, %v405_v0  ;;  %v393_v7 = vld [vmem:[%s6054_s1 + $0xbc8] sm:$0xff]  ;;  %v4240_v13 = vcombine.low %v401_v62, %v405_v0 }
  0xc9   :  { %3462 = vmatpush1.bf16.msra.mxu1 %v4296_v12  ;;  %3493 = vmatprep.mubr.bf16.mxu1 %v4659_v40  ;;  %v397_v8 = vld [vmem:[%s6054_s1 + $0xbe8] sm:$0xff]  ;;  %v4112_v12 = vcombine.low %v273_v60, %v277_v61 }
  0xca   :  { %3463 = vmatprep.subr.bf16.mxu1 %v4289_v14  ;;  %v521_v9 = vld [vmem:[%s6054_s1 + $0xfc8] sm:$0xff]  ;;  %v4233_v14 = vcombine.high %v393_v7, %v397_v8 }
  0xcb   :  { %3423 = vmatpush1.bf16.msra.mxu0 %v4160_v19  ;;  %v525_v10 = vld [vmem:[%s6054_s1 + $0xfe8] sm:$0xff] }
  0xcc   :  { %3424 = vmatprep.subr.bf16.mxu0 %v4153_v21  ;;  %v4361_v15 = vcombine.high %v521_v9, %v525_v10  ;;  %v385_v16 = vld [vmem:[%s6054_s1 + $0xb88] sm:$0xff]  ;;  %v4360_v21 = vcombine.low %v521_v9, %v525_v10 }
  0xcd   :  { %3464 = vmatpush1.bf16.msra.mxu1 %v4288_v20  ;;  %v389_v17 = vld [vmem:[%s6054_s1 + $0xba8] sm:$0xff]  ;;  %v4232_v20 = vcombine.low %v393_v7, %v397_v8 }
  0xce   :  { %3465 = vmatprep.subr.bf16.mxu1 %v4281_v22  ;;  %v513_v18 = vld [vmem:[%s6054_s1 + $0xf88] sm:$0xff]  ;;  %v4225_v22 = vcombine.high %v385_v16, %v389_v17 }
  0xcf   :  { %3425 = vmatpush1.bf16.msra.mxu0 %v4152_v27  ;;  %v517_v19 = vld [vmem:[%s6054_s1 + $0xfa8] sm:$0xff] }
  0xd0   :  { %3426 = vmatprep.subr.bf16.mxu0 %v4145_v30  ;;  %v4353_v23 = vcombine.high %v513_v18, %v517_v19  ;;  %v377_v24 = vld [vmem:[%s6054_s1 + $0xb48] sm:$0xff]  ;;  %v4352_v30 = vcombine.low %v513_v18, %v517_v19  ;;  %v78_v18 = vld [vmem:[%s6054_s1 + $0x1f0] sm:$0xff] }
  0xd1   :  { %3466 = vmatpush1.bf16.msra.mxu1 %v4280_v29  ;;  %v381_v25 = vld [vmem:[%s6054_s1 + $0xb68] sm:$0xff]  ;;  %v4224_v29 = vcombine.low %v385_v16, %v389_v17  ;;  %v74_v17 = vld [vmem:[%s6054_s1 + $0x1d0] sm:$0xff] }
  0xd2   :  { %3467 = vmatprep.subr.bf16.mxu1 %v4273_v32  ;;  %v505_v26 = vld [vmem:[%s6054_s1 + $0xf48] sm:$0xff]  ;;  %v4217_v32 = vcombine.high %v377_v24, %v381_v25  ;;  %v202_v19 = vld [vmem:[%s6054_s1 + $0x5d0] sm:$0xff] }
  0xd3   :  { %3427 = vmatpush1.bf16.msra.mxu0 %v4144_v37  ;;  %v509_v27 = vld [vmem:[%s6054_s1 + $0xf68] sm:$0xff] }
  0xd4   :  { %3428 = vmatprep.subr.bf16.mxu0 %v4137_v39  ;;  %v4345_v33 = vcombine.high %v505_v26, %v509_v27  ;;  %v369_v34 = vld [vmem:[%s6054_s1 + $0xb08] sm:$0xff]  ;;  %v4344_v39 = vcombine.low %v505_v26, %v509_v27  ;;  %v70_v26 = vld [vmem:[%s6054_s1 + $0x1b0] sm:$0xff] }
  0xd5   :  { %3468 = vmatpush1.bf16.msra.mxu1 %v4272_v38  ;;  %v373_v35 = vld [vmem:[%s6054_s1 + $0xb28] sm:$0xff]  ;;  %v4216_v38 = vcombine.low %v377_v24, %v381_v25  ;;  %v66_v25 = vld [vmem:[%s6054_s1 + $0x190] sm:$0xff] }
  0xd6   :  { %3469 = vmatprep.subr.bf16.mxu1 %v4265_v41  ;;  %v497_v36 = vld [vmem:[%s6054_s1 + $0xf08] sm:$0xff]  ;;  %v4209_v41 = vcombine.high %v369_v34, %v373_v35  ;;  %v194_v27 = vld [vmem:[%s6054_s1 + $0x590] sm:$0xff] }
  0xd7   :  { %3429 = vmatpush1.bf16.msra.mxu0 %v4136_v47  ;;  %v501_v37 = vld [vmem:[%s6054_s1 + $0xf28] sm:$0xff] }
  0xd8   :  { %3430 = vmatprep.subr.bf16.mxu0 %v4129_v49  ;;  %v4337_v42 = vcombine.high %v497_v36, %v501_v37  ;;  %v361_v44 = vld [vmem:[%s6054_s1 + $0xac8] sm:$0xff]  ;;  %v4336_v49 = vcombine.low %v497_v36, %v501_v37  ;;  %v62_v36 = vld [vmem:[%s6054_s1 + $0x170] sm:$0xff] }
  0xd9   :  { %3470 = vmatpush1.bf16.msra.mxu1 %v4264_v48  ;;  %v365_v45 = vld [vmem:[%s6054_s1 + $0xae8] sm:$0xff]  ;;  %v4208_v48 = vcombine.low %v369_v34, %v373_v35  ;;  %v58_v35 = vld [vmem:[%s6054_s1 + $0x150] sm:$0xff] }
  0xda   :  { %3471 = vmatprep.subr.bf16.mxu1 %v4257_v50  ;;  %v489_v46 = vld [vmem:[%s6054_s1 + $0xec8] sm:$0xff]  ;;  %v4201_v50 = vcombine.high %v361_v44, %v365_v45 }
  0xdb   :  { %3431 = vmatpush1.bf16.msra.mxu0 %v4128_v56  ;;  %v493_v47 = vld [vmem:[%s6054_s1 + $0xee8] sm:$0xff] }
  0xdc   :  { %3432 = vmatprep.subr.bf16.mxu0 %v4121_v58  ;;  %v4329_v51 = vcombine.high %v489_v46, %v493_v47  ;;  %v353_v52 = vld [vmem:[%s6054_s1 + $0xa88] sm:$0xff]  ;;  %v4328_v58 = vcombine.low %v489_v46, %v493_v47  ;;  %v3899_v46 = vcombine.high %v58_v35, %v62_v36 }
  0xdd   :  { %3472 = vmatpush1.bf16.msra.mxu1 %v4256_v57  ;;  %v357_v54 = vld [vmem:[%s6054_s1 + $0xaa8] sm:$0xff]  ;;  %v4200_v57 = vcombine.low %v361_v44, %v365_v45 }
  0xde   :  { %3473 = vmatprep.subr.bf16.mxu1 %v4249_v59  ;;  %v481_v55 = vld [vmem:[%s6054_s1 + $0xe88] sm:$0xff]  ;;  %v4193_v59 = vcombine.high %v353_v52, %v357_v54 }
  0xdf   :  { %3433 = vmatpush1.bf16.msra.mxu0 %v4120_v1  ;;  %v485_v56 = vld [vmem:[%s6054_s1 + $0xea8] sm:$0xff] }
  0xe0   :  { %3434 = vmatprep.subr.bf16.mxu0 %v4113_v3  ;;  %v4321_v60 = vcombine.high %v481_v55, %v485_v56  ;;  %v345_v61 = vld [vmem:[%s6054_s1 + $0xa48] sm:$0xff]  ;;  %v4320_v3 = vcombine.low %v481_v55, %v485_v56  ;;  %v3898_v56 = vcombine.low %v58_v35, %v62_v36  ;;  %v138_v36 = vld [vmem:[%s6054_s1 + $0x3d0] sm:$0xff] }
  0xe1   :  { %3474 = vmatpush1.bf16.msra.mxu1 %v4248_v2  ;;  %v349_v62 = vld [vmem:[%s6054_s1 + $0xa68] sm:$0xff]  ;;  %v4192_v2 = vcombine.low %v353_v52, %v357_v54  ;;  %v178_v52 = vld [vmem:[%s6054_s1 + $0x510] sm:$0xff] }
  0xe2   :  { %3475 = vmatprep.subr.bf16.mxu1 %v4241_v6  ;;  %v473_v0 = vld [vmem:[%s6054_s1 + $0xe48] sm:$0xff]  ;;  %v4185_v6 = vcombine.high %v345_v61, %v349_v62  ;;  %v182_v54 = vld [vmem:[%s6054_s1 + $0x530] sm:$0xff] }
  0xe3   :  { %3435 = vmatpush1.bf16.msra.mxu0 %v4112_v12  ;;  %v477_v1 = vld [vmem:[%s6054_s1 + $0xe68] sm:$0xff] }
  0xe4   :  { %3436 = vmatprep.subr.bf16.mxu0 %v4233_v14  ;;  %v4313_v7 = vcombine.high %v473_v0, %v477_v1  ;;  %v337_v8 = vld [vmem:[%s6054_s1 + $0xa08] sm:$0xff]  ;;  %v4312_v14 = vcombine.low %v473_v0, %v477_v1  ;;  %v46_v0 = vld [vmem:[%s6054_s1 + $0xf0] sm:$0xff] }
  0xe5   :  { %3476 = vmatpush1.bf16.msra.mxu1 %v4240_v13  ;;  %v341_v9 = vld [vmem:[%s6054_s1 + $0xa28] sm:$0xff]  ;;  %v4184_v13 = vcombine.low %v345_v61, %v349_v62  ;;  %v4019_v61 = vcombine.high %v178_v52, %v182_v54  ;;  %v42_v62 = vld [vmem:[%s6054_s1 + $0xd0] sm:$0xff] }
  0xe6   :  { %3477 = vmatprep.subr.bf16.mxu1 %v4361_v15  ;;  %v465_v10 = vld [vmem:[%s6054_s1 + $0xe08] sm:$0xff]  ;;  %v4177_v15 = vcombine.high %v337_v8, %v341_v9  ;;  %v170_v1 = vld [vmem:[%s6054_s1 + $0x4d0] sm:$0xff] }
  0xe7   :  { %3437 = vmatpush2.bf16.msra.mxu0 %v4232_v20  ;;  %v469_v12 = vld [vmem:[%s6054_s1 + $0xe28] sm:$0xff]  ;;  %v206_v20 = vld [vmem:[%s6054_s1 + $0x5f0] sm:$0xff] }
  0xe8   :  { %3438 = vmatprep.subr.bf16.mxu0 %v4225_v22  ;;  %v4305_v16 = vcombine.high %v465_v10, %v469_v12  ;;  %v4304_v22 = vcombine.low %v465_v10, %v469_v12  ;;  %v4043_v24 = vcombine.high %v202_v19, %v206_v20  ;;  %v38_v10 = vld [vmem:[%s6054_s1 + $0xb0] sm:$0xff] }
  0xe9   :  { %3478 = vmatpush2.bf16.msra.mxu1 %v4360_v21  ;;  %v4176_v21 = vcombine.low %v337_v8, %v341_v9  ;;  %v34_v9 = vld [vmem:[%s6054_s1 + $0x90] sm:$0xff] }
  0xea   :  { %3479 = vmatprep.subr.bf16.mxu1 %v4353_v23  ;;  %v3915_v23 = vcombine.high %v74_v17, %v78_v18  ;;  %v162_v12 = vld [vmem:[%s6054_s1 + $0x490] sm:$0xff] }
  0xeb   :  { %3439 = vmatpush2.bf16.msra.mxu0 %v4224_v29  ;;  %v198_v29 = vld [vmem:[%s6054_s1 + $0x5b0] sm:$0xff] }
  0xec   :  { %3440 = vmatprep.subr.bf16.mxu0 %v4217_v32  ;;  %v4042_v32 = vcombine.low %v202_v19, %v206_v20  ;;  %v4035_v34 = vcombine.high %v194_v27, %v198_v29  ;;  %v4034_v45 = vcombine.low %v194_v27, %v198_v29  ;;  %v30_v19 = vld [vmem:[%s6054_s1 + $0x70] sm:$0xff] }
  0xed   :  { %3480 = vmatpush2.bf16.msra.mxu1 %v4352_v30  ;;  %v3914_v30 = vcombine.low %v74_v17, %v78_v18  ;;  %v26_v18 = vld [vmem:[%s6054_s1 + $0x50] sm:$0xff] }
  0xee   :  { %3481 = vmatprep.subr.bf16.mxu1 %v4345_v33  ;;  %v3907_v33 = vcombine.high %v66_v25, %v70_v26  ;;  %v154_v20 = vld [vmem:[%s6054_s1 + $0x450] sm:$0xff] }
  0xef   :  { %3441 = vmatpush2.bf16.msra.mxu0 %v4216_v38  ;;  %v186_v38 = vld [vmem:[%s6054_s1 + $0x550] sm:$0xff] }
  0xf0   :  { %3442 = vmatprep.subr.bf16.mxu0 %v4209_v41  ;;  %v22_v27 = vld [vmem:[%s6054_s1 + $0x30] sm:$0xff] }
  0xf1   :  { %3482 = vmatpush2.bf16.msra.mxu1 %v4344_v39  ;;  %v190_v39 = vld [vmem:[%s6054_s1 + $0x570] sm:$0xff] }
  0xf2   :  { %3483 = vmatprep.subr.bf16.mxu1 %v4337_v42  ;;  %v3906_v42 = vcombine.low %v66_v25, %v70_v26  ;;  %v18_v26 = vld [vmem:[%s6054_s1 + $0x10] sm:$0xff] }
  0xf3   :  { %3443 = vmatpush2.bf16.msra.mxu0 %v4208_v48  ;;  %v4027_v48 = vcombine.high %v186_v38, %v190_v39  ;;  %v146_v29 = vld [vmem:[%s6054_s1 + $0x410] sm:$0xff] }
  0xf4   :  { %3444 = vmatprep.subr.bf16.mxu0 %v4201_v50  ;;  %v54_v50 = vld [vmem:[%s6054_s1 + $0x130] sm:$0xff] }
  0xf5   :  { %3484 = vmatpush2.bf16.msra.mxu1 %v4336_v49  ;;  %v50_v49 = vld [vmem:[%s6054_s1 + $0x110] sm:$0xff] }
  0xf6   :  { %3485 = vmatprep.subr.bf16.mxu1 %v4329_v51 }
  0xf7   :  { %3445 = vmatpush2.bf16.msra.mxu0 %v4200_v57 }
  0xf8   :  { %3446 = vmatprep.subr.bf16.mxu0 %v4193_v59  ;;  %v3891_v59 = vcombine.high %v50_v49, %v54_v50 }
  0xf9   :  { %3486 = vmatpush2.bf16.msra.mxu1 %v4328_v58  ;;  %v4026_v58 = vcombine.low %v186_v38, %v190_v39  ;;  %v142_v38 = vld [vmem:[%s6054_s1 + $0x3f0] sm:$0xff] }
  0xfa   :  { %3487 = vmatprep.subr.bf16.mxu1 %v4321_v60  ;;  %v266_v39 = vld [vmem:[%s6054_s1 + $0x7d0] sm:$0xff] }
  0xfb   :  { %3447 = vmatpush2.bf16.msra.mxu0 %v4192_v2  ;;  %v174_v2 = vld [vmem:[%s6054_s1 + $0x4f0] sm:$0xff] }
  0xfc   :  { %3448 = vmatprep.subr.bf16.mxu0 %v4185_v6  ;;  %v4018_v6 = vcombine.low %v178_v52, %v182_v54  ;;  %v4011_v8 = vcombine.high %v170_v1, %v174_v2  ;;  %v258_v52 = vld [vmem:[%s6054_s1 + $0x790] sm:$0xff] }
  0xfd   :  { %3488 = vmatpush2.bf16.msra.mxu1 %v4320_v3  ;;  %v3890_v3 = vcombine.low %v50_v49, %v54_v50  ;;  %v130_v50 = vld [vmem:[%s6054_s1 + $0x390] sm:$0xff] }
  0xfe   :  { %3489 = vmatprep.subr.bf16.mxu1 %v4313_v7  ;;  %v3883_v7 = vcombine.high %v42_v62, %v46_v0  ;;  %v262_v54 = vld [vmem:[%s6054_s1 + $0x7b0] sm:$0xff] }
  0xff   :  { %3449 = vmatpush2.bf16.msra.mxu0 %v4184_v13  ;;  %v166_v13 = vld [vmem:[%s6054_s1 + $0x4b0] sm:$0xff] }
 0x100   :  { %3450 = vmatprep.subr.bf16.mxu0 %v4177_v15  ;;  %v4010_v15 = vcombine.low %v170_v1, %v174_v2  ;;  %v4003_v17 = vcombine.high %v162_v12, %v166_v13  ;;  %v4098_v1 = vcombine.low %v258_v52, %v262_v54 }
 0x101   :  { %3490 = vmatpush2.bf16.msra.mxu1 %v4312_v14  ;;  %v3882_v14 = vcombine.low %v42_v62, %v46_v0  ;;  %v254_v62 = vld [vmem:[%s6054_s1 + $0x770] sm:$0xff] }
 0x102   :  { %3491 = vmatprep.subr.bf16.mxu1 %v4305_v16  ;;  %v3875_v16 = vcombine.high %v34_v9, %v38_v10 }
 0x103   :  { %3451 = vmatpush2.bf16.msra.mxu0 %v4176_v21  ;;  %v158_v21 = vld [vmem:[%s6054_s1 + $0x470] sm:$0xff] }
 0x104   :  { %3502 = vmatprep.subr.bf16.mxu0 %v3915_v23  ;;  %v4002_v23 = vcombine.low %v162_v12, %v166_v13  ;;  %v3995_v25 = vcombine.high %v154_v20, %v158_v21 }
 0x105   :  { %3492 = vmatpush2.bf16.msra.mxu1 %v4304_v22  ;;  %v3874_v22 = vcombine.low %v34_v9, %v38_v10  ;;  %v246_v9 = vld [vmem:[%s6054_s1 + $0x730] sm:$0xff] }
 0x106   :  { %3543 = vmatprep.subr.bf16.mxu1 %v4043_v24  ;;  %v5242_v37 = vpop.f32.mrf.mxu0  ;;  %3453 = vmatmul.mubr.bf16.vlgmr.msra.gmra.mxu0 %v4629_v28  ;;  %v3867_v24 = vcombine.high %v26_v18, %v30_v19 }
 0x107   :  { %3503 = vmatpush1.bf16.msra.mxu0 %v3914_v30  ;;  %3534 = vmatprep.mubr.bf16.mxu0 %v4500_v4  ;;  %v150_v30 = vld [vmem:[%s6054_s1 + $0x430] sm:$0xff] }
 0x108   :  { %v5251_v41 = vpop.f32.mrf.mxu1  ;;  %3494 = vmatmul.mubr.bf16.vlgmr.msra.gmra.mxu1 %v4638_v31  ;;  %v5254_v44 = vpop.f32.mrf.mxu0  ;;  %3504 = vmatprep.subr.bf16.mxu0 %v3907_v33  ;;  %v3994_v33 = vcombine.low %v154_v20, %v158_v21  ;;  %v3987_v35 = vcombine.high %v146_v29, %v150_v30 }
 0x109   :  { %3544 = vmatpush1.bf16.msra.mxu1 %v4042_v32  ;;  %3575 = vmatprep.mubr.bf16.mxu1 %v4514_v11  ;;  %v3866_v32 = vcombine.low %v26_v18, %v30_v19  ;;  %v238_v18 = vld [vmem:[%s6054_s1 + $0x6f0] sm:$0xff] }
 0x10a   :  { %v5256_v47 = vpop.f32.mrf.mxu1  ;;  %3545 = vmatprep.subr.bf16.mxu1 %v4035_v34  ;;  %v3212_v51 = vpop.f32.mrf.mxu0  ;;  %v3859_v34 = vcombine.high %v18_v26, %v22_v27 }
 0x10b   :  { %3505 = vmatpush1.bf16.msra.mxu0 %v3906_v42  ;;  %v270_v42 = vld [vmem:[%s6054_s1 + $0x7f0] sm:$0xff] }
 0x10c   :  { %v3253_v55 = vpop.f32.mrf.mxu1  ;;  %v3213_v57 = vpop.f32.mrf.mxu0  ;;  %3506 = vmatprep.subr.bf16.mxu0 %v3899_v46  ;;  %v3986_v46 = vcombine.low %v146_v29, %v150_v30  ;;  %v4107_v49 = vcombine.high %v266_v39, %v270_v42  ;;  %v134_v51 = vld [vmem:[%s6054_s1 + $0x3b0] sm:$0xff] }
 0x10d   :  { %3546 = vmatpush1.bf16.msra.mxu1 %v4034_v45  ;;  %v3858_v45 = vcombine.low %v18_v26, %v22_v27  ;;  %v3978_v55 = vcombine.low %v138_v36, %v142_v38  ;;  %v3971_v57 = vcombine.high %v130_v50, %v134_v51  ;;  %v3970_v0 = vcombine.low %v130_v50, %v134_v51  ;;  %v230_v26 = vld [vmem:[%s6054_s1 + $0x6b0] sm:$0xff]  ;;  %v5414_v50 = vld [vmem:[%s6056_s2] sm:$0xff] }
 0x10e   :  { %v3254_v60 = vpop.f32.mrf.mxu1  ;;  %3547 = vmatprep.subr.bf16.mxu1 %v4027_v48  ;;  %v3979_v48 = vcombine.high %v138_v36, %v142_v38  ;;  %v222_v36 = vld [vmem:[%s6054_s1 + $0x670] sm:$0xff] }
 0x10f   :  { %3507 = vmatpush1.bf16.msra.mxu0 %v3898_v56  ;;  %v4106_v56 = vcombine.low %v266_v39, %v270_v42  ;;  %v126_v60 = vld [vmem:[%s6054_s1 + $0x370] sm:$0xff] }
 0x110   :  { %3508 = vmatprep.subr.bf16.mxu0 %v3891_v59  ;;  %v122_v59 = vld [vmem:[%s6054_s1 + $0x350] sm:$0xff] }
 0x111   :  { %3548 = vmatpush1.bf16.msra.mxu1 %v4026_v58  ;;  %v4099_v58 = vcombine.high %v258_v52, %v262_v54  ;;  %v3963_v2 = vcombine.high %v122_v59, %v126_v60  ;;  %v3962_v10 = vcombine.low %v122_v59, %v126_v60  ;;  %v210_v51 = vld [vmem:[%s6054_s1 + $0x610] sm:$0xff]  ;;  %v536_v54 = vsub.s32 1, %v4457_v43 }
 0x112   :  { %3549 = vmatprep.subr.bf16.mxu1 %v4019_v61  ;;  %v250_v61 = vld [vmem:[%s6054_s1 + $0x750] sm:$0xff] }
 0x113   :  { %3509 = vmatpush1.bf16.msra.mxu0 %v3890_v3  ;;  %v4091_v3 = vcombine.high %v250_v61, %v254_v62  ;;  %v4090_v12 = vcombine.low %v250_v61, %v254_v62  ;;  %v214_v52 = vld [vmem:[%s6054_s1 + $0x630] sm:$0xff] }
 0x114   :  { %3510 = vmatprep.subr.bf16.mxu0 %v3883_v7  ;;  %v118_v7 = vld [vmem:[%s6054_s1 + $0x330] sm:$0xff]  ;;  %v4051_v59 = vcombine.high %v210_v51, %v214_v52 }
 0x115   :  { %3550 = vmatpush1.bf16.msra.mxu1 %v4018_v6  ;;  %v114_v6 = vld [vmem:[%s6054_s1 + $0x310] sm:$0xff] }
 0x116   :  { %3551 = vmatprep.subr.bf16.mxu1 %v4011_v8  ;;  %v242_v8 = vld [vmem:[%s6054_s1 + $0x710] sm:$0xff]  ;;  %v3955_v13 = vcombine.high %v114_v6, %v118_v7  ;;  %v3954_v19 = vcombine.low %v114_v6, %v118_v7 }
 0x117   :  { %3511 = vmatpush1.bf16.msra.mxu0 %v3882_v14  ;;  %v4083_v14 = vcombine.high %v242_v8, %v246_v9  ;;  %v4082_v20 = vcombine.low %v242_v8, %v246_v9  ;;  %v330_v60 = vld [vmem:[%s6054_s1 + $0x9d0] sm:$0xff] }
 0x118   :  { %3512 = vmatprep.subr.bf16.mxu0 %v3875_v16  ;;  %v110_v16 = vld [vmem:[%s6054_s1 + $0x2f0] sm:$0xff] }
 0x119   :  { %3552 = vmatpush1.bf16.msra.mxu1 %v4010_v15  ;;  %v106_v15 = vld [vmem:[%s6054_s1 + $0x2d0] sm:$0xff] }
 0x11a   :  { %3553 = vmatprep.subr.bf16.mxu1 %v4003_v17  ;;  %v234_v17 = vld [vmem:[%s6054_s1 + $0x6d0] sm:$0xff]  ;;  %v3947_v21 = vcombine.high %v106_v15, %v110_v16  ;;  %v3946_v27 = vcombine.low %v106_v15, %v110_v16 }
 0x11b   :  { %3513 = vmatpush1.bf16.msra.mxu0 %v3874_v22  ;;  %v4075_v22 = vcombine.high %v234_v17, %v238_v18  ;;  %v4074_v29 = vcombine.low %v234_v17, %v238_v18  ;;  %v334_v61 = vld [vmem:[%s6054_s1 + $0x9f0] sm:$0xff] }
 0x11c   :  { %3514 = vmatprep.subr.bf16.mxu0 %v3867_v24  ;;  %v102_v24 = vld [vmem:[%s6054_s1 + $0x2b0] sm:$0xff]  ;;  %v4171_v6 = vcombine.high %v330_v60, %v334_v61 }
 0x11d   :  { %3554 = vmatpush1.bf16.msra.mxu1 %v4002_v23  ;;  %v98_v23 = vld [vmem:[%s6054_s1 + $0x290] sm:$0xff] }
 0x11e   :  { %3555 = vmatprep.subr.bf16.mxu1 %v3995_v25  ;;  %v226_v25 = vld [vmem:[%s6054_s1 + $0x690] sm:$0xff]  ;;  %v3939_v30 = vcombine.high %v98_v23, %v102_v24  ;;  %v3938_v38 = vcombine.low %v98_v23, %v102_v24 }
 0x11f   :  { %3515 = vmatpush1.bf16.msra.mxu0 %v3866_v32  ;;  %v4067_v32 = vcombine.high %v226_v25, %v230_v26  ;;  %v4066_v39 = vcombine.low %v226_v25, %v230_v26  ;;  %v458_v62 = vld [vmem:[%s6054_s1 + $0xdd0] sm:$0xff] }
 0x120   :  { %3516 = vmatprep.subr.bf16.mxu0 %v3859_v34  ;;  %v94_v34 = vld [vmem:[%s6054_s1 + $0x270] sm:$0xff] }
 0x121   :  { %3556 = vmatpush1.bf16.msra.mxu1 %v3994_v33  ;;  %v90_v33 = vld [vmem:[%s6054_s1 + $0x250] sm:$0xff] }
 0x122   :  { %3557 = vmatprep.subr.bf16.mxu1 %v3987_v35  ;;  %v218_v35 = vld [vmem:[%s6054_s1 + $0x650] sm:$0xff]  ;;  %v3931_v42 = vcombine.high %v90_v33, %v94_v34 }
 0x123   :  { %3517 = vmatpush1.bf16.msra.mxu0 %v3858_v45  ;;  %v532_v45 = vsub.s32 0, %v4457_v43  ;;  %v322_v9 = vld [vmem:[%s6054_s1 + $0x990] sm:$0xff] }
 0x124   :  { %3518 = vmatprep.subr.bf16.mxu0 %v3979_v48  ;;  %v82_v48 = vld [vmem:[%s6054_s1 + $0x210] sm:$0xff] }
 0x125   :  { %3558 = vmatpush1.bf16.msra.mxu1 %v3986_v46  ;;  %v4059_v46 = vcombine.high %v218_v35, %v222_v36 }
 0x126   :  { %3559 = vmatprep.subr.bf16.mxu1 %v4107_v49  ;;  %v86_v49 = vld [vmem:[%s6054_s1 + $0x230] sm:$0xff] }
 0x127   :  { %3519 = vmatpush2.bf16.msra.mxu0 %v3978_v55  ;;  %v3930_v55 = vcombine.low %v90_v33, %v94_v34  ;;  %v306_v34 = vld [vmem:[%s6054_s1 + $0x910] sm:$0xff] }
 0x128   :  { %3520 = vmatprep.subr.bf16.mxu0 %v3971_v57  ;;  %v3923_v57 = vcombine.high %v82_v48, %v86_v49 }
 0x129   :  { %3560 = vmatpush2.bf16.msra.mxu1 %v4106_v56  ;;  %v4058_v56 = vcombine.low %v218_v35, %v222_v36  ;;  %v434_v36 = vld [vmem:[%s6054_s1 + $0xd10] sm:$0xff] }
 0x12a   :  { %3561 = vmatprep.subr.bf16.mxu1 %v4099_v58  ;;  %v533_v58 = vrot.slane %v5414_v50, %v532_v45 }
 0x12b   :  { %3521 = vmatpush2.bf16.msra.mxu0 %v3970_v0  ;;  %v462_v0 = vld [vmem:[%s6054_s1 + $0xdf0] sm:$0xff] }
 0x12c   :  { %3522 = vmatprep.subr.bf16.mxu0 %v3963_v2  ;;  %v3922_v2 = vcombine.low %v82_v48, %v86_v49  ;;  %v3209_v7 = vadd.f32 %v5242_v37, %v533_v58  ;;  %v4299_v8 = vcombine.high %v458_v62, %v462_v0  ;;  %v4298_v15 = vcombine.low %v458_v62, %v462_v0  ;;  %v426_v58 = vld [vmem:[%s6054_s1 + $0xcd0] sm:$0xff] }
 0x12d   :  { %3562 = vmatpush2.bf16.msra.mxu1 %v4098_v1  ;;  %v537_v1 = vrot.slane %v5414_v50, %v536_v54 }
 0x12e   :  { %3563 = vmatprep.subr.bf16.mxu1 %v4091_v3  ;;  %v4050_v3 = vcombine.low %v210_v51, %v214_v52  ;;  %v3250_v17 = vadd.f32 %v5251_v41, %v3209_v7  ;;  %v446_v41 = vld [vmem:[%s6054_s1 + $0xd70] sm:$0xff] }
 0x12f   :  { %3523 = vmatpush2.bf16.msra.mxu0 %v3962_v10  ;;  %v326_v10 = vld [vmem:[%s6054_s1 + $0x9b0] sm:$0xff]  ;;  %v3211_v37 = vadd.f32 %v5254_v44, %v537_v1 }
 0x130   :  { %3524 = vmatprep.subr.bf16.mxu0 %v3955_v13  ;;  %v454_v13 = vld [vmem:[%s6054_s1 + $0xdb0] sm:$0xff]  ;;  %v4163_v16 = vcombine.high %v322_v9, %v326_v10  ;;  %v4162_v25 = vcombine.low %v322_v9, %v326_v10 }
 0x131   :  { %3564 = vmatpush2.bf16.msra.mxu1 %v4090_v12  ;;  %v450_v12 = vld [vmem:[%s6054_s1 + $0xd90] sm:$0xff] }
 0x132   :  { %3565 = vmatprep.subr.bf16.mxu1 %v4083_v14  ;;  %v4170_v14 = vcombine.low %v330_v60, %v334_v61  ;;  %v4291_v18 = vcombine.high %v450_v12, %v454_v13  ;;  %v442_v44 = vld [vmem:[%s6054_s1 + $0xd50] sm:$0xff] }
 0x133   :  { %3525 = vmatpush2.bf16.msra.mxu0 %v3954_v19  ;;  %v314_v19 = vld [vmem:[%s6054_s1 + $0x950] sm:$0xff]  ;;  %v4283_v33 = vcombine.high %v442_v44, %v446_v41  ;;  %v4282_v49 = vcombine.low %v442_v44, %v446_v41 }
 0x134   :  { %3526 = vmatprep.subr.bf16.mxu0 %v3947_v21  ;;  %v290_v1 = vld [vmem:[%s6054_s1 + $0x890] sm:$0xff] }
 0x135   :  { %3566 = vmatpush2.bf16.msra.mxu1 %v4082_v20  ;;  %v318_v20 = vld [vmem:[%s6054_s1 + $0x970] sm:$0xff] }
 0x136   :  { %3567 = vmatprep.subr.bf16.mxu1 %v4075_v22  ;;  %v3252_v22 = vadd.f32 %v5256_v47, %v3211_v37  ;;  %v310_v47 = vld [vmem:[%s6054_s1 + $0x930] sm:$0xff] }
 0x137   :  { %3527 = vmatpush2.bf16.msra.mxu0 %v3946_v27  ;;  %v4290_v27 = vcombine.low %v450_v12, %v454_v13  ;;  %v4147_v51 = vcombine.high %v306_v34, %v310_v47  ;;  %v4146_v60 = vcombine.low %v306_v34, %v310_v47  ;;  %v282_v12 = vld [vmem:[%s6054_s1 + $0x850] sm:$0xff] }
 0x138   :  { %3528 = vmatprep.subr.bf16.mxu0 %v3939_v30  ;;  %v286_v13 = vld [vmem:[%s6054_s1 + $0x870] sm:$0xff] }
 0x139   :  { %3568 = vmatpush2.bf16.msra.mxu1 %v4074_v29  ;;  %v4155_v29 = vcombine.high %v314_v19, %v318_v20  ;;  %v410_v37 = vld [vmem:[%s6054_s1 + $0xc50] sm:$0xff]  ;;  %v4122_v41 = vcombine.low %v282_v12, %v286_v13 }
 0x13a   :  { %3569 = vmatprep.subr.bf16.mxu1 %v4067_v32  ;;  %v406_v44 = vld [vmem:[%s6054_s1 + $0xc30] sm:$0xff] }
 0x13b   :  { %3529 = vmatpush2.bf16.msra.mxu0 %v3938_v38  ;;  %v438_v38 = vld [vmem:[%s6054_s1 + $0xd30] sm:$0xff] }
 0x13c   :  { %3530 = vmatprep.subr.bf16.mxu0 %v3931_v42  ;;  %v4274_v61 = vcombine.low %v434_v36, %v438_v38  ;;  %v386_v47 = vld [vmem:[%s6054_s1 + $0xb90] sm:$0xff] }
 0x13d   :  { %3570 = vmatpush2.bf16.msra.mxu1 %v4066_v39 }
 0x13e   :  { %3571 = vmatprep.subr.bf16.mxu1 %v4059_v46  ;;  %v4154_v46 = vcombine.low %v314_v19, %v318_v20  ;;  %v274_v19 = vld [vmem:[%s6054_s1 + $0x810] sm:$0xff] }
 0x13f   :  { %3531 = vmatpush2.bf16.msra.mxu0 %v3930_v55  ;;  %v4275_v55 = vcombine.high %v434_v36, %v438_v38  ;;  %v278_v20 = vld [vmem:[%s6054_s1 + $0x830] sm:$0xff] }
 0x140   :  { %3532 = vmatprep.subr.bf16.mxu0 %v3923_v57  ;;  %v302_v57 = vld [vmem:[%s6054_s1 + $0x8f0] sm:$0xff] }
 0x141   :  { %3572 = vmatpush2.bf16.msra.mxu1 %v4058_v56  ;;  %v298_v56 = vld [vmem:[%s6054_s1 + $0x8d0] sm:$0xff] }
 0x142   :  { %3573 = vmatprep.subr.bf16.mxu1 %v4051_v59  ;;  %v430_v59 = vld [vmem:[%s6054_s1 + $0xcf0] sm:$0xff]  ;;  %v4139_v62 = vcombine.high %v298_v56, %v302_v57  ;;  %v4138_v7 = vcombine.low %v298_v56, %v302_v57 }
 0x143   :  { %3533 = vmatpush2.bf16.msra.mxu0 %v3922_v2  ;;  %v4267_v0 = vcombine.high %v426_v58, %v430_v59  ;;  %v294_v2 = vld [vmem:[%s6054_s1 + $0x8b0] sm:$0xff] }
 0x144   :  { %3584 = vmatprep.subr.bf16.mxu0 %v4171_v6  ;;  %v422_v6 = vld [vmem:[%s6054_s1 + $0xcb0] sm:$0xff]  ;;  %v4131_v9 = vcombine.high %v290_v1, %v294_v2 }
 0x145   :  { %3574 = vmatpush2.bf16.msra.mxu1 %v4050_v3  ;;  %v418_v3 = vld [vmem:[%s6054_s1 + $0xc90] sm:$0xff] }
 0x146   :  { %3625 = vmatprep.subr.bf16.mxu1 %v4299_v8  ;;  %v3290_v21 = vpop.f32.mrf.mxu0  ;;  %3535 = vmatmul.mubr.bf16.vlgmr.msra.gmra.mxu0 %v4490_v63  ;;  %v4266_v8 = vcombine.low %v426_v58, %v430_v59  ;;  %v4259_v10 = vcombine.high %v418_v3, %v422_v6  ;;  %v514_v36 = vld [vmem:[%s6054_s1 + $0xf90] sm:$0xff] }
 0x147   :  { %v3291_v23 = vadd.f32 %v3290_v21, %v3250_v17  ;;  %3585 = vmatpush1.bf16.msra.mxu0 %v4170_v14  ;;  %3616 = vmatprep.mubr.bf16.mxu0 %v4648_v53  ;;  %v414_v14 = vld [vmem:[%s6054_s1 + $0xc70] sm:$0xff]  ;;  %v4123_v17 = vcombine.high %v282_v12, %v286_v13 }
 0x148   :  { %v3331_v24 = vpop.f32.mrf.mxu1  ;;  %3576 = vmatmul.mubr.bf16.vlgmr.msra.gmra.mxu1 %v4503_v5  ;;  %v3292_v26 = vpop.f32.mrf.mxu0  ;;  %3586 = vmatprep.subr.bf16.mxu0 %v4163_v16  ;;  %v4258_v16 = vcombine.low %v418_v3, %v422_v6  ;;  %v402_v21 = vld [vmem:[%s6054_s1 + $0xc10] sm:$0xff] }
 0x149   :  { %3626 = vmatpush1.bf16.msra.mxu1 %v4298_v15  ;;  %v3293_v30 = vadd.f32 %v3292_v26, %v3252_v22  ;;  %3657 = vmatprep.mubr.bf16.mxu1 %v4659_v40  ;;  %v3332_v39 = vadd.f32 %v3331_v24, %v3291_v23  ;;  %v4130_v15 = vcombine.low %v290_v1, %v294_v2  ;;  %v398_v26 = vld [vmem:[%s6054_s1 + $0xbf0] sm:$0xff] }
 0x14a   :  { %v3333_v32 = vpop.f32.mrf.mxu1  ;;  %3627 = vmatprep.subr.bf16.mxu1 %v4291_v18  ;;  %v3294_v35 = vpop.f32.mrf.mxu0  ;;  %v4251_v18 = vcombine.high %v410_v37, %v414_v14  ;;  %v4250_v22 = vcombine.low %v410_v37, %v414_v14  ;;  %v4115_v23 = vcombine.high %v274_v19, %v278_v20  ;;  %v4243_v24 = vcombine.high %v402_v21, %v406_v44  ;;  %v518_v38 = vld [vmem:[%s6054_s1 + $0xfb0] sm:$0xff] }
 0x14b   :  { %v3334_v42 = vadd.f32 %v3333_v32, %v3293_v30  ;;  %3587 = vmatpush1.bf16.msra.mxu0 %v4162_v25  ;;  %v394_v25 = vld [vmem:[%s6054_s1 + $0xbd0] sm:$0xff]  ;;  %v4114_v30 = vcombine.low %v274_v19, %v278_v20  ;;  %v4242_v32 = vcombine.low %v402_v21, %v406_v44 }
 0x14c   :  { %v3335_v45 = vpop.f32.mrf.mxu1  ;;  %v3295_v48 = vpop.f32.mrf.mxu0  ;;  %3588 = vmatprep.subr.bf16.mxu0 %v4155_v29  ;;  %v526_v29 = vld [vmem:[%s6054_s1 + $0xff0] sm:$0xff] }
 0x14d   :  { %3628 = vmatpush1.bf16.msra.mxu1 %v4290_v27  ;;  %v3838_v52 = vcombine.low %v3332_v39, %v3334_v42  ;;  %v522_v27 = vld [vmem:[%s6054_s1 + $0xfd0] sm:$0xff]  ;;  %v4234_v39 = vcombine.low %v394_v25, %v398_v26 }
 0x14e   :  { %v3336_v54 = vpop.f32.mrf.mxu1  ;;  %3629 = vmatprep.subr.bf16.mxu1 %v4283_v33  ;;  %v4235_v33 = vcombine.high %v394_v25, %v398_v26  ;;  %v4363_v34 = vcombine.high %v522_v27, %v526_v29  ;;  %v390_v35 = vld [vmem:[%s6054_s1 + $0xbb0] sm:$0xff]  ;;  %v4362_v42 = vcombine.low %v522_v27, %v526_v29 }
 0x14f   :  { %3846 = vst [vmem:[%s6057_s3] sm:$0xff] %v3838_v52  ;;  %3589 = vmatpush1.bf16.msra.mxu0 %v4154_v46  ;;  %v4227_v45 = vcombine.high %v386_v47, %v390_v35  ;;  %v4355_v46 = vcombine.high %v514_v36, %v518_v38  ;;  %v378_v48 = vld [vmem:[%s6054_s1 + $0xb50] sm:$0xff]  ;;  %v4226_v54 = vcombine.low %v386_v47, %v390_v35 }
 0x150   :  { %3590 = vmatprep.subr.bf16.mxu0 %v4147_v51  ;;  %v506_v51 = vld [vmem:[%s6054_s1 + $0xf50] sm:$0xff] }
 0x151   :  { %3630 = vmatpush1.bf16.msra.mxu1 %v4282_v49  ;;  %v382_v49 = vld [vmem:[%s6054_s1 + $0xb70] sm:$0xff] }
 0x152   :  { %3631 = vmatprep.subr.bf16.mxu1 %v4275_v55  ;;  %v510_v52 = vld [vmem:[%s6054_s1 + $0xf70] sm:$0xff]  ;;  %v4354_v55 = vcombine.low %v514_v36, %v518_v38  ;;  %v4219_v56 = vcombine.high %v378_v48, %v382_v49  ;;  %v75_v36 = vld [vmem:[%s6054_s1 + $0x1d8] sm:$0xff] }
 0x153   :  { %3591 = vmatpush1.bf16.msra.mxu0 %v4146_v60  ;;  %v4347_v57 = vcombine.high %v506_v51, %v510_v52  ;;  %v370_v58 = vld [vmem:[%s6054_s1 + $0xb10] sm:$0xff]  ;;  %v79_v38 = vld [vmem:[%s6054_s1 + $0x1f8] sm:$0xff] }
 0x154   :  { %3592 = vmatprep.subr.bf16.mxu0 %v4139_v62  ;;  %v374_v59 = vld [vmem:[%s6054_s1 + $0xb30] sm:$0xff]  ;;  %v4218_v62 = vcombine.low %v378_v48, %v382_v49  ;;  %v3917_v48 = vcombine.high %v75_v36, %v79_v38 }
 0x155   :  { %3632 = vmatpush1.bf16.msra.mxu1 %v4274_v61  ;;  %v498_v60 = vld [vmem:[%s6054_s1 + $0xf10] sm:$0xff]  ;;  %v4211_v1 = vcombine.high %v370_v58, %v374_v59 }
 0x156   :  { %3633 = vmatprep.subr.bf16.mxu1 %v4267_v0  ;;  %v502_v61 = vld [vmem:[%s6054_s1 + $0xf30] sm:$0xff]  ;;  %v4346_v0 = vcombine.low %v506_v51, %v510_v52  ;;  %v67_v51 = vld [vmem:[%s6054_s1 + $0x198] sm:$0xff] }
 0x157   :  { %3593 = vmatpush1.bf16.msra.mxu0 %v4138_v7  ;;  %v4339_v2 = vcombine.high %v498_v60, %v502_v61  ;;  %v362_v3 = vld [vmem:[%s6054_s1 + $0xad0] sm:$0xff]  ;;  %v71_v52 = vld [vmem:[%s6054_s1 + $0x1b8] sm:$0xff] }
 0x158   :  { %3594 = vmatprep.subr.bf16.mxu0 %v4131_v9  ;;  %v366_v6 = vld [vmem:[%s6054_s1 + $0xaf0] sm:$0xff]  ;;  %v4210_v9 = vcombine.low %v370_v58, %v374_v59  ;;  %v3909_v58 = vcombine.high %v67_v51, %v71_v52 }
 0x159   :  { %3634 = vmatpush1.bf16.msra.mxu1 %v4266_v8  ;;  %v490_v7 = vld [vmem:[%s6054_s1 + $0xed0] sm:$0xff]  ;;  %v4203_v12 = vcombine.high %v362_v3, %v366_v6 }
 0x15a   :  { %3635 = vmatprep.subr.bf16.mxu1 %v4259_v10  ;;  %v494_v8 = vld [vmem:[%s6054_s1 + $0xef0] sm:$0xff]  ;;  %v4338_v10 = vcombine.low %v498_v60, %v502_v61  ;;  %v59_v60 = vld [vmem:[%s6054_s1 + $0x158] sm:$0xff] }
 0x15b   :  { %3595 = vmatpush1.bf16.msra.mxu0 %v4130_v15  ;;  %v4331_v13 = vcombine.high %v490_v7, %v494_v8  ;;  %v354_v37 = vld [vmem:[%s6054_s1 + $0xa90] sm:$0xff]  ;;  %v63_v61 = vld [vmem:[%s6054_s1 + $0x178] sm:$0xff] }
 0x15c   :  { %3596 = vmatprep.subr.bf16.mxu0 %v4123_v17  ;;  %v358_v14 = vld [vmem:[%s6054_s1 + $0xab0] sm:$0xff]  ;;  %v4202_v17 = vcombine.low %v362_v3, %v366_v6  ;;  %v3908_v3 = vcombine.low %v67_v51, %v71_v52  ;;  %v19_v51 = vld [vmem:[%s6054_s1 + $0x18] sm:$0xff] }
 0x15d   :  { %3636 = vmatpush1.bf16.msra.mxu1 %v4258_v16  ;;  %v482_v15 = vld [vmem:[%s6054_s1 + $0xe90] sm:$0xff]  ;;  %v4195_v19 = vcombine.high %v354_v37, %v358_v14  ;;  %v23_v52 = vld [vmem:[%s6054_s1 + $0x38] sm:$0xff] }
 0x15e   :  { %3637 = vmatprep.subr.bf16.mxu1 %v4251_v18  ;;  %v486_v16 = vld [vmem:[%s6054_s1 + $0xeb0] sm:$0xff]  ;;  %v4330_v18 = vcombine.low %v490_v7, %v494_v8  ;;  %v3901_v8 = vcombine.high %v59_v60, %v63_v61 }
 0x15f   :  { %3597 = vmatpush1.bf16.msra.mxu0 %v4122_v41  ;;  %v4323_v20 = vcombine.high %v482_v15, %v486_v16  ;;  %v346_v21 = vld [vmem:[%s6054_s1 + $0xa50] sm:$0xff] }
 0x160   :  { %3598 = vmatprep.subr.bf16.mxu0 %v4115_v23  ;;  %v350_v44 = vld [vmem:[%s6054_s1 + $0xa70] sm:$0xff]  ;;  %v4194_v23 = vcombine.low %v354_v37, %v358_v14  ;;  %v179_v14 = vld [vmem:[%s6054_s1 + $0x518] sm:$0xff] }
 0x161   :  { %3638 = vmatpush1.bf16.msra.mxu1 %v4250_v22  ;;  %v474_v41 = vld [vmem:[%s6054_s1 + $0xe50] sm:$0xff]  ;;  %v4187_v25 = vcombine.high %v346_v21, %v350_v44 }
 0x162   :  { %3639 = vmatprep.subr.bf16.mxu1 %v4243_v24  ;;  %v478_v22 = vld [vmem:[%s6054_s1 + $0xe70] sm:$0xff]  ;;  %v4322_v24 = vcombine.low %v482_v15, %v486_v16  ;;  %v183_v15 = vld [vmem:[%s6054_s1 + $0x538] sm:$0xff] }
 0x163   :  { %3599 = vmatpush1.bf16.msra.mxu0 %v4114_v30  ;;  %v4315_v26 = vcombine.high %v474_v41, %v478_v22  ;;  %v338_v27 = vld [vmem:[%s6054_s1 + $0xa10] sm:$0xff] }
 0x164   :  { %3600 = vmatprep.subr.bf16.mxu0 %v4235_v33  ;;  %v342_v29 = vld [vmem:[%s6054_s1 + $0xa30] sm:$0xff]  ;;  %v4186_v33 = vcombine.low %v346_v21, %v350_v44  ;;  %v4021_v21 = vcombine.high %v179_v14, %v183_v15  ;;  %v43_v44 = vld [vmem:[%s6054_s1 + $0xd8] sm:$0xff] }
 0x165   :  { %3640 = vmatpush1.bf16.msra.mxu1 %v4242_v32  ;;  %v466_v30 = vld [vmem:[%s6054_s1 + $0xe10] sm:$0xff]  ;;  %v4179_v47 = vcombine.high %v338_v27, %v342_v29 }
 0x166   :  { %3641 = vmatprep.subr.bf16.mxu1 %v4363_v34  ;;  %v470_v32 = vld [vmem:[%s6054_s1 + $0xe30] sm:$0xff]  ;;  %v4314_v34 = vcombine.low %v474_v41, %v478_v22  ;;  %v47_v41 = vld [vmem:[%s6054_s1 + $0xf8] sm:$0xff] }
 0x167   :  { %3601 = vmatpush2.bf16.msra.mxu0 %v4234_v39  ;;  %v4307_v35 = vcombine.high %v466_v30, %v470_v32  ;;  %v203_v39 = vld [vmem:[%s6054_s1 + $0x5d8] sm:$0xff] }
 0x168   :  { %3602 = vmatprep.subr.bf16.mxu0 %v4227_v45  ;;  %v4178_v45 = vcombine.low %v338_v27, %v342_v29  ;;  %v175_v22 = vld [vmem:[%s6054_s1 + $0x4f8] sm:$0xff] }
 0x169   :  { %3642 = vmatpush2.bf16.msra.mxu1 %v4362_v42  ;;  %v207_v42 = vld [vmem:[%s6054_s1 + $0x5f8] sm:$0xff] }
 0x16a   :  { %3643 = vmatprep.subr.bf16.mxu1 %v4355_v46  ;;  %v4306_v46 = vcombine.low %v466_v30, %v470_v32  ;;  %v4045_v49 = vcombine.high %v203_v39, %v207_v42  ;;  %v35_v27 = vld [vmem:[%s6054_s1 + $0x98] sm:$0xff] }
 0x16b   :  { %3603 = vmatpush2.bf16.msra.mxu0 %v4226_v54  ;;  %v195_v54 = vld [vmem:[%s6054_s1 + $0x598] sm:$0xff] }
 0x16c   :  { %3604 = vmatprep.subr.bf16.mxu0 %v4219_v56  ;;  %v3916_v56 = vcombine.low %v75_v36, %v79_v38  ;;  %v39_v29 = vld [vmem:[%s6054_s1 + $0xb8] sm:$0xff] }
 0x16d   :  { %3644 = vmatpush2.bf16.msra.mxu1 %v4354_v55  ;;  %v199_v55 = vld [vmem:[%s6054_s1 + $0x5b8] sm:$0xff] }
 0x16e   :  { %3645 = vmatprep.subr.bf16.mxu1 %v4347_v57  ;;  %v4044_v57 = vcombine.low %v203_v39, %v207_v42  ;;  %v4037_v59 = vcombine.high %v195_v54, %v199_v55  ;;  %v4036_v7 = vcombine.low %v195_v54, %v199_v55  ;;  %v163_v30 = vld [vmem:[%s6054_s1 + $0x498] sm:$0xff] }
 0x16f   :  { %3605 = vmatpush2.bf16.msra.mxu0 %v4218_v62  ;;  %v167_v32 = vld [vmem:[%s6054_s1 + $0x4b8] sm:$0xff] }
 0x170   :  { %3606 = vmatprep.subr.bf16.mxu0 %v4211_v1  ;;  %v191_v1 = vld [vmem:[%s6054_s1 + $0x578] sm:$0xff] }
 0x171   :  { %3646 = vmatpush2.bf16.msra.mxu1 %v4346_v0  ;;  %v187_v0 = vld [vmem:[%s6054_s1 + $0x558] sm:$0xff] }
 0x172   :  { %3647 = vmatprep.subr.bf16.mxu1 %v4339_v2  ;;  %v27_v36 = vld [vmem:[%s6054_s1 + $0x58] sm:$0xff] }
 0x173   :  { %3607 = vmatpush2.bf16.msra.mxu0 %v4210_v9  ;;  %v31_v38 = vld [vmem:[%s6054_s1 + $0x78] sm:$0xff] }
 0x174   :  { %3608 = vmatprep.subr.bf16.mxu0 %v4203_v12  ;;  %v51_v12 = vld [vmem:[%s6054_s1 + $0x118] sm:$0xff] }
 0x175   :  { %3648 = vmatpush2.bf16.msra.mxu1 %v4338_v10  ;;  %v4029_v10 = vcombine.high %v187_v0, %v191_v1  ;;  %v155_v39 = vld [vmem:[%s6054_s1 + $0x458] sm:$0xff] }
 0x176   :  { %3649 = vmatprep.subr.bf16.mxu1 %v4331_v13  ;;  %v55_v13 = vld [vmem:[%s6054_s1 + $0x138] sm:$0xff] }
 0x177   :  { %3609 = vmatpush2.bf16.msra.mxu0 %v4202_v17  ;;  %v3900_v17 = vcombine.low %v59_v60, %v63_v61  ;;  %v159_v42 = vld [vmem:[%s6054_s1 + $0x478] sm:$0xff] }
 0x178   :  { %3610 = vmatprep.subr.bf16.mxu0 %v4195_v19  ;;  %v4028_v19 = vcombine.low %v187_v0, %v191_v1  ;;  %v147_v54 = vld [vmem:[%s6054_s1 + $0x418] sm:$0xff] }
 0x179   :  { %3650 = vmatpush2.bf16.msra.mxu1 %v4330_v18  ;;  %v151_v55 = vld [vmem:[%s6054_s1 + $0x438] sm:$0xff] }
 0x17a   :  { %3651 = vmatprep.subr.bf16.mxu1 %v4323_v20  ;;  %v3893_v20 = vcombine.high %v51_v12, %v55_v13  ;;  %v139_v60 = vld [vmem:[%s6054_s1 + $0x3d8] sm:$0xff] }
 0x17b   :  { %3611 = vmatpush2.bf16.msra.mxu0 %v4194_v23  ;;  %v3892_v23 = vcombine.low %v51_v12, %v55_v13  ;;  %v143_v61 = vld [vmem:[%s6054_s1 + $0x3f8] sm:$0xff] }
 0x17c   :  { %3612 = vmatprep.subr.bf16.mxu0 %v4187_v25  ;;  %v3885_v25 = vcombine.high %v43_v44, %v47_v41  ;;  %v267_v0 = vld [vmem:[%s6054_s1 + $0x7d8] sm:$0xff] }
 0x17d   :  { %3652 = vmatpush2.bf16.msra.mxu1 %v4322_v24  ;;  %v4020_v24 = vcombine.low %v179_v14, %v183_v15  ;;  %v271_v1 = vld [vmem:[%s6054_s1 + $0x7f8] sm:$0xff]  ;;  %v3980_v15 = vcombine.low %v139_v60, %v143_v61 }
 0x17e   :  { %3653 = vmatprep.subr.bf16.mxu1 %v4315_v26  ;;  %v131_v12 = vld [vmem:[%s6054_s1 + $0x398] sm:$0xff] }
 0x17f   :  { %3613 = vmatpush2.bf16.msra.mxu0 %v4186_v33  ;;  %v3884_v33 = vcombine.low %v43_v44, %v47_v41  ;;  %v135_v13 = vld [vmem:[%s6054_s1 + $0x3b8] sm:$0xff] }
 0x180   :  { %3614 = vmatprep.subr.bf16.mxu0 %v4179_v47  ;;  %v3877_v47 = vcombine.high %v35_v27, %v39_v29  ;;  %v263_v14 = vld [vmem:[%s6054_s1 + $0x7b8] sm:$0xff]  ;;  %v3972_v44 = vcombine.low %v131_v12, %v135_v13 }
 0x181   :  { %3654 = vmatpush2.bf16.msra.mxu1 %v4314_v34 }
 0x182   :  { %3655 = vmatprep.subr.bf16.mxu1 %v4307_v35  ;;  %v4005_v35 = vcombine.high %v163_v30, %v167_v32 }
 0x183   :  { %3615 = vmatpush2.bf16.msra.mxu0 %v4178_v45  ;;  %v3876_v45 = vcombine.low %v35_v27, %v39_v29 }
 0x184   :  { %3666 = vmatprep.subr.bf16.mxu0 %v3917_v48  ;;  %v3869_v48 = vcombine.high %v27_v36, %v31_v38 }
 0x185   :  { %3656 = vmatpush2.bf16.msra.mxu1 %v4306_v46  ;;  %v4004_v46 = vcombine.low %v163_v30, %v167_v32 }
 0x186   :  { %3707 = vmatprep.subr.bf16.mxu1 %v4045_v49  ;;  %v5658_v62 = vpop.f32.mrf.mxu0  ;;  %3617 = vmatmul.mubr.bf16.vlgmr.msra.gmra.mxu0 %v4629_v28  ;;  %v3997_v49 = vcombine.high %v155_v39, %v159_v42 }
 0x187   :  { %3667 = vmatpush1.bf16.msra.mxu0 %v3916_v56  ;;  %3698 = vmatprep.mubr.bf16.mxu0 %v4500_v4  ;;  %v3868_v56 = vcombine.low %v27_v36, %v31_v38 }
 0x188   :  { %v5667_v2 = vpop.f32.mrf.mxu1  ;;  %3658 = vmatmul.mubr.bf16.vlgmr.msra.gmra.mxu1 %v4638_v31  ;;  %v5670_v6 = vpop.f32.mrf.mxu0  ;;  %3668 = vmatprep.subr.bf16.mxu0 %v3909_v58  ;;  %v3861_v58 = vcombine.high %v19_v51, %v23_v52 }
 0x189   :  { %3708 = vmatpush1.bf16.msra.mxu1 %v4044_v57  ;;  %3739 = vmatprep.mubr.bf16.mxu1 %v4514_v11  ;;  %v171_v11 = vld [vmem:[%s6054_s1 + $0x4d8] sm:$0xff]  ;;  %v3996_v57 = vcombine.low %v155_v39, %v159_v42 }
 0x18a   :  { %v5672_v9 = vpop.f32.mrf.mxu1  ;;  %3709 = vmatprep.subr.bf16.mxu1 %v4037_v59  ;;  %v3376_v37 = vpop.f32.mrf.mxu0  ;;  %v4013_v26 = vcombine.high %v171_v11, %v175_v22  ;;  %v4012_v34 = vcombine.low %v171_v11, %v175_v22  ;;  %v3989_v59 = vcombine.high %v147_v54, %v151_v55 }
 0x18b   :  { %3669 = vmatpush1.bf16.msra.mxu0 %v3908_v3  ;;  %v3860_v3 = vcombine.low %v19_v51, %v23_v52  ;;  %v259_v37 = vld [vmem:[%s6054_s1 + $0x798] sm:$0xff] }
 0x18c   :  { %v3417_v16 = vpop.f32.mrf.mxu1  ;;  %v3377_v18 = vpop.f32.mrf.mxu0  ;;  %3670 = vmatprep.subr.bf16.mxu0 %v3901_v8  ;;  %v3981_v8 = vcombine.high %v139_v60, %v143_v61  ;;  %v4100_v41 = vcombine.low %v259_v37, %v263_v14 }
 0x18d   :  { %3710 = vmatpush1.bf16.msra.mxu1 %v4036_v7  ;;  %v3988_v7 = vcombine.low %v147_v54, %v151_v55  ;;  %v4108_v16 = vcombine.low %v267_v0, %v271_v1  ;;  %v4101_v18 = vcombine.high %v259_v37, %v263_v14 }
 0x18e   :  { %v3418_v4 = vpop.f32.mrf.mxu1  ;;  %3711 = vmatprep.subr.bf16.mxu1 %v4029_v10  ;;  %v4109_v10 = vcombine.high %v267_v0, %v271_v1  ;;  %v540_v1 = vsub.s32 2, %v4457_v43 }
 0x18f   :  { %3671 = vmatpush1.bf16.msra.mxu0 %v3900_v17  ;;  %v3973_v17 = vcombine.high %v131_v12, %v135_v13  ;;  %v251_v4 = vld [vmem:[%s6054_s1 + $0x758] sm:$0xff]  ;;  %v544_v13 = vsub.s32 3, %v4457_v43 }
 0x190   :  { %3672 = vmatprep.subr.bf16.mxu0 %v3893_v20  ;;  %v127_v20 = vld [vmem:[%s6054_s1 + $0x378] sm:$0xff] }
 0x191   :  { %3712 = vmatpush1.bf16.msra.mxu1 %v4028_v19  ;;  %v123_v19 = vld [vmem:[%s6054_s1 + $0x358] sm:$0xff] }
 0x192   :  { %3713 = vmatprep.subr.bf16.mxu1 %v4021_v21  ;;  %v255_v21 = vld [vmem:[%s6054_s1 + $0x778] sm:$0xff]  ;;  %v3965_v11 = vcombine.high %v123_v19, %v127_v20  ;;  %v3964_v27 = vcombine.low %v123_v19, %v127_v20 }
 0x193   :  { %3673 = vmatpush1.bf16.msra.mxu0 %v3892_v23  ;;  %v4093_v22 = vcombine.high %v251_v4, %v255_v21  ;;  %v115_v23 = vld [vmem:[%s6054_s1 + $0x318] sm:$0xff]  ;;  %v4092_v29 = vcombine.low %v251_v4, %v255_v21  ;;  %v545_v21 = vrot.slane %v5414_v50, %v544_v13 }
 0x194   :  { %3674 = vmatprep.subr.bf16.mxu0 %v3885_v25  ;;  %v243_v25 = vld [vmem:[%s6054_s1 + $0x718] sm:$0xff] }
 0x195   :  { %3714 = vmatpush1.bf16.msra.mxu1 %v4020_v24  ;;  %v119_v24 = vld [vmem:[%s6054_s1 + $0x338] sm:$0xff] }
 0x196   :  { %3715 = vmatprep.subr.bf16.mxu1 %v4013_v26  ;;  %v247_v26 = vld [vmem:[%s6054_s1 + $0x738] sm:$0xff]  ;;  %v3957_v30 = vcombine.high %v115_v23, %v119_v24  ;;  %v3956_v36 = vcombine.low %v115_v23, %v119_v24 }
 0x197   :  { %3675 = vmatpush1.bf16.msra.mxu0 %v3884_v33  ;;  %v4085_v32 = vcombine.high %v243_v25, %v247_v26  ;;  %v107_v33 = vld [vmem:[%s6054_s1 + $0x2d8] sm:$0xff]  ;;  %v4084_v38 = vcombine.low %v243_v25, %v247_v26 }
 0x198   :  { %3676 = vmatprep.subr.bf16.mxu0 %v3877_v47  ;;  %v235_v47 = vld [vmem:[%s6054_s1 + $0x6d8] sm:$0xff] }
 0x199   :  { %3716 = vmatpush1.bf16.msra.mxu1 %v4012_v34  ;;  %v111_v34 = vld [vmem:[%s6054_s1 + $0x2f8] sm:$0xff] }
 0x19a   :  { %3717 = vmatprep.subr.bf16.mxu1 %v4005_v35  ;;  %v239_v35 = vld [vmem:[%s6054_s1 + $0x6f8] sm:$0xff]  ;;  %v3949_v39 = vcombine.high %v107_v33, %v111_v34  ;;  %v3948_v51 = vcombine.low %v107_v33, %v111_v34 }
 0x19b   :  { %3677 = vmatpush1.bf16.msra.mxu0 %v3876_v45  ;;  %v4077_v42 = vcombine.high %v235_v47, %v239_v35  ;;  %v99_v45 = vld [vmem:[%s6054_s1 + $0x298] sm:$0xff]  ;;  %v4076_v52 = vcombine.low %v235_v47, %v239_v35 }
 0x19c   :  { %3678 = vmatprep.subr.bf16.mxu0 %v3869_v48  ;;  %v227_v48 = vld [vmem:[%s6054_s1 + $0x698] sm:$0xff] }
 0x19d   :  { %3718 = vmatpush1.bf16.msra.mxu1 %v4004_v46  ;;  %v103_v46 = vld [vmem:[%s6054_s1 + $0x2b8] sm:$0xff] }
 0x19e   :  { %3719 = vmatprep.subr.bf16.mxu1 %v3997_v49  ;;  %v231_v49 = vld [vmem:[%s6054_s1 + $0x6b8] sm:$0xff]  ;;  %v3941_v54 = vcombine.high %v99_v45, %v103_v46  ;;  %v3940_v60 = vcombine.low %v99_v45, %v103_v46 }
 0x19f   :  { %3679 = vmatpush1.bf16.msra.mxu0 %v3868_v56  ;;  %v4069_v55 = vcombine.high %v227_v48, %v231_v49  ;;  %v91_v56 = vld [vmem:[%s6054_s1 + $0x258] sm:$0xff]  ;;  %v4068_v61 = vcombine.low %v227_v48, %v231_v49 }
 0x1a0   :  { %3680 = vmatprep.subr.bf16.mxu0 %v3861_v58  ;;  %v219_v58 = vld [vmem:[%s6054_s1 + $0x658] sm:$0xff] }
 0x1a1   :  { %3720 = vmatpush1.bf16.msra.mxu1 %v3996_v57  ;;  %v95_v57 = vld [vmem:[%s6054_s1 + $0x278] sm:$0xff] }
 0x1a2   :  { %3721 = vmatprep.subr.bf16.mxu1 %v3989_v59  ;;  %v223_v59 = vld [vmem:[%s6054_s1 + $0x678] sm:$0xff]  ;;  %v3933_v0 = vcombine.high %v91_v56, %v95_v57  ;;  %v3932_v37 = vcombine.low %v91_v56, %v95_v57 }
 0x1a3   :  { %3681 = vmatpush1.bf16.msra.mxu0 %v3860_v3  ;;  %v4061_v3 = vcombine.high %v219_v58, %v223_v59  ;;  %v215_v12 = vld [vmem:[%s6054_s1 + $0x638] sm:$0xff]  ;;  %v4060_v14 = vcombine.low %v219_v58, %v223_v59 }
 0x1a4   :  { %3682 = vmatprep.subr.bf16.mxu0 %v3981_v8  ;;  %v87_v8 = vld [vmem:[%s6054_s1 + $0x238] sm:$0xff] }
 0x1a5   :  { %3722 = vmatpush1.bf16.msra.mxu1 %v3988_v7  ;;  %v83_v7 = vld [vmem:[%s6054_s1 + $0x218] sm:$0xff] }
 0x1a6   :  { %3723 = vmatprep.subr.bf16.mxu1 %v4109_v10  ;;  %v211_v10 = vld [vmem:[%s6054_s1 + $0x618] sm:$0xff] }
 0x1a7   :  { %3683 = vmatpush2.bf16.msra.mxu0 %v3980_v15  ;;  %v3925_v15 = vcombine.high %v83_v7, %v87_v8  ;;  %v335_v19 = vld [vmem:[%s6054_s1 + $0x9f8] sm:$0xff] }
 0x1a8   :  { %3684 = vmatprep.subr.bf16.mxu0 %v3973_v17  ;;  %v4053_v17 = vcombine.high %v211_v10, %v215_v12  ;;  %v459_v20 = vld [vmem:[%s6054_s1 + $0xdd8] sm:$0xff] }
 0x1a9   :  { %3724 = vmatpush2.bf16.msra.mxu1 %v4108_v16  ;;  %v541_v16 = vrot.slane %v5414_v50, %v540_v1  ;;  %v463_v4 = vld [vmem:[%s6054_s1 + $0xdf8] sm:$0xff] }
 0x1aa   :  { %3725 = vmatprep.subr.bf16.mxu1 %v4101_v18  ;;  %v331_v18 = vld [vmem:[%s6054_s1 + $0x9d8] sm:$0xff]  ;;  %v4301_v23 = vcombine.high %v459_v20, %v463_v4 }
 0x1ab   :  { %3685 = vmatpush2.bf16.msra.mxu0 %v3972_v44  ;;  %v3924_v44 = vcombine.low %v83_v7, %v87_v8  ;;  %v323_v24 = vld [vmem:[%s6054_s1 + $0x998] sm:$0xff] }
 0x1ac   :  { %3686 = vmatprep.subr.bf16.mxu0 %v3965_v11  ;;  %v4173_v11 = vcombine.high %v331_v18, %v335_v19  ;;  %v327_v25 = vld [vmem:[%s6054_s1 + $0x9b8] sm:$0xff] }
 0x1ad   :  { %3726 = vmatpush2.bf16.msra.mxu1 %v4100_v41  ;;  %v4052_v41 = vcombine.low %v211_v10, %v215_v12  ;;  %v451_v50 = vld [vmem:[%s6054_s1 + $0xd98] sm:$0xff] }
 0x1ae   :  { %3727 = vmatprep.subr.bf16.mxu1 %v4093_v22  ;;  %v3373_v22 = vadd.f32 %v5658_v62, %v541_v16  ;;  %v455_v26 = vld [vmem:[%s6054_s1 + $0xdb8] sm:$0xff]  ;;  %v3375_v62 = vadd.f32 %v5670_v6, %v545_v21 }
 0x1af   :  { %3687 = vmatpush2.bf16.msra.mxu0 %v3964_v27  ;;  %v4172_v27 = vcombine.low %v331_v18, %v335_v19  ;;  %v4293_v33 = vcombine.high %v451_v50, %v455_v26  ;;  %v315_v34 = vld [vmem:[%s6054_s1 + $0x958] sm:$0xff] }
 0x1b0   :  { %3688 = vmatprep.subr.bf16.mxu0 %v3957_v30  ;;  %v4165_v30 = vcombine.high %v323_v24, %v327_v25  ;;  %v319_v47 = vld [vmem:[%s6054_s1 + $0x978] sm:$0xff] }
 0x1b1   :  { %3728 = vmatpush2.bf16.msra.mxu1 %v4092_v29  ;;  %v4300_v29 = vcombine.low %v459_v20, %v463_v4  ;;  %v443_v6 = vld [vmem:[%s6054_s1 + $0xd58] sm:$0xff]  ;;  %v4157_v46 = vcombine.high %v315_v34, %v319_v47  ;;  %v4156_v59 = vcombine.low %v315_v34, %v319_v47 }
 0x1b2   :  { %3729 = vmatprep.subr.bf16.mxu1 %v4085_v32  ;;  %v3414_v32 = vadd.f32 %v5667_v2, %v3373_v22  ;;  %v447_v2 = vld [vmem:[%s6054_s1 + $0xd78] sm:$0xff] }
 0x1b3   :  { %3689 = vmatpush2.bf16.msra.mxu0 %v3956_v36  ;;  %v3416_v36 = vadd.f32 %v5672_v9, %v3375_v62  ;;  %v311_v9 = vld [vmem:[%s6054_s1 + $0x938] sm:$0xff] }
 0x1b4   :  { %3690 = vmatprep.subr.bf16.mxu0 %v3949_v39  ;;  %v299_v7 = vld [vmem:[%s6054_s1 + $0x8d8] sm:$0xff] }
 0x1b5   :  { %3730 = vmatpush2.bf16.msra.mxu1 %v4084_v38  ;;  %v427_v8 = vld [vmem:[%s6054_s1 + $0xcd8] sm:$0xff] }
 0x1b6   :  { %3731 = vmatprep.subr.bf16.mxu1 %v4077_v42  ;;  %v4164_v42 = vcombine.low %v323_v24, %v327_v25  ;;  %v431_v10 = vld [vmem:[%s6054_s1 + $0xcf8] sm:$0xff] }
 0x1b7   :  { %3691 = vmatpush2.bf16.msra.mxu0 %v3948_v51  ;;  %v4285_v51 = vcombine.high %v443_v6, %v447_v2  ;;  %v295_v16 = vld [vmem:[%s6054_s1 + $0x8b8] sm:$0xff]  ;;  %v4268_v20 = vcombine.low %v427_v8, %v431_v10 }
 0x1b8   :  { %3692 = vmatprep.subr.bf16.mxu0 %v3941_v54  ;;  %v435_v54 = vld [vmem:[%s6054_s1 + $0xd18] sm:$0xff] }
 0x1b9   :  { %3732 = vmatpush2.bf16.msra.mxu1 %v4076_v52  ;;  %v307_v52 = vld [vmem:[%s6054_s1 + $0x918] sm:$0xff] }
 0x1ba   :  { %3733 = vmatprep.subr.bf16.mxu1 %v4069_v55  ;;  %v439_v55 = vld [vmem:[%s6054_s1 + $0xd38] sm:$0xff]  ;;  %v4148_v12 = vcombine.low %v307_v52, %v311_v9 }
 0x1bb   :  { %3693 = vmatpush2.bf16.msra.mxu0 %v3940_v60  ;;  %v4276_v13 = vcombine.low %v435_v54, %v439_v55  ;;  %v423_v18 = vld [vmem:[%s6054_s1 + $0xcb8] sm:$0xff] }
 0x1bc   :  { %3694 = vmatprep.subr.bf16.mxu0 %v3933_v0  ;;  %v415_v22 = vld [vmem:[%s6054_s1 + $0xc78] sm:$0xff] }
 0x1bd   :  { %3734 = vmatpush2.bf16.msra.mxu1 %v4068_v61  ;;  %v4149_v61 = vcombine.high %v307_v52, %v311_v9  ;;  %v279_v62 = vld [vmem:[%s6054_s1 + $0x838] sm:$0xff] }
 0x1be   :  { %3735 = vmatprep.subr.bf16.mxu1 %v4061_v3  ;;  %v4277_v3 = vcombine.high %v435_v54, %v439_v55  ;;  %v395_v47 = vld [vmem:[%s6054_s1 + $0xbd8] sm:$0xff] }
 0x1bf   :  { %3695 = vmatpush2.bf16.msra.mxu0 %v3932_v37  ;;  %v383_v54 = vld [vmem:[%s6054_s1 + $0xb78] sm:$0xff] }
 0x1c0   :  { %3696 = vmatprep.subr.bf16.mxu0 %v3925_v15  ;;  %v291_v15 = vld [vmem:[%s6054_s1 + $0x898] sm:$0xff] }
 0x1c1   :  { %3736 = vmatpush2.bf16.msra.mxu1 %v4060_v14  ;;  %v4269_v14 = vcombine.high %v427_v8, %v431_v10  ;;  %v4133_v4 = vcombine.high %v291_v15, %v295_v16  ;;  %v507_v55 = vld [vmem:[%s6054_s1 + $0xf58] sm:$0xff] }
 0x1c2   :  { %3737 = vmatprep.subr.bf16.mxu1 %v4053_v17  ;;  %v419_v17 = vld [vmem:[%s6054_s1 + $0xc98] sm:$0xff] }
 0x1c3   :  { %3697 = vmatpush2.bf16.msra.mxu0 %v3924_v44  ;;  %v4261_v21 = vcombine.high %v419_v17, %v423_v18  ;;  %v283_v44 = vld [vmem:[%s6054_s1 + $0x858] sm:$0xff]  ;;  %v4260_v24 = vcombine.low %v419_v17, %v423_v18 }
 0x1c4   :  { %3748 = vmatprep.subr.bf16.mxu0 %v4173_v11  ;;  %v411_v11 = vld [vmem:[%s6054_s1 + $0xc58] sm:$0xff] }
 0x1c5   :  { %3738 = vmatpush2.bf16.msra.mxu1 %v4052_v41  ;;  %v287_v41 = vld [vmem:[%s6054_s1 + $0x878] sm:$0xff] }
 0x1c6   :  { %3789 = vmatprep.subr.bf16.mxu1 %v4301_v23  ;;  %v3454_v35 = vpop.f32.mrf.mxu0  ;;  %3699 = vmatmul.mubr.bf16.vlgmr.msra.gmra.mxu0 %v4490_v63  ;;  %v4292_v63 = vcombine.low %v451_v50, %v455_v26  ;;  %v4132_v23 = vcombine.low %v291_v15, %v295_v16  ;;  %v4125_v25 = vcombine.high %v283_v44, %v287_v41  ;;  %v275_v26 = vld [vmem:[%s6054_s1 + $0x818] sm:$0xff] }
 0x1c7   :  { %v3455_v38 = vadd.f32 %v3454_v35, %v3414_v32  ;;  %3749 = vmatpush1.bf16.msra.mxu0 %v4172_v27  ;;  %3780 = vmatprep.mubr.bf16.mxu0 %v4648_v53  ;;  %v4284_v53 = vcombine.low %v443_v6, %v447_v2  ;;  %v4253_v50 = vcombine.high %v411_v11, %v415_v22  ;;  %v403_v27 = vld [vmem:[%s6054_s1 + $0xc18] sm:$0xff] }
 0x1c8   :  { %v3495_v39 = vpop.f32.mrf.mxu1  ;;  %3740 = vmatmul.mubr.bf16.vlgmr.msra.gmra.mxu1 %v4503_v5  ;;  %v3456_v45 = vpop.f32.mrf.mxu0  ;;  %3750 = vmatprep.subr.bf16.mxu0 %v4165_v30  ;;  %v4124_v30 = vcombine.low %v283_v44, %v287_v41  ;;  %v4252_v32 = vcombine.low %v411_v11, %v415_v22  ;;  %v399_v35 = vld [vmem:[%s6054_s1 + $0xbf8] sm:$0xff] }
 0x1c9   :  { %3790 = vmatpush1.bf16.msra.mxu1 %v4300_v29  ;;  %v3457_v48 = vadd.f32 %v3456_v45, %v3416_v36  ;;  %3821 = vmatprep.mubr.bf16.mxu1 %v4659_v40  ;;  %v3496_v56 = vadd.f32 %v3495_v39, %v3455_v38  ;;  %v303_v40 = vld [vmem:[%s6054_s1 + $0x8f8] sm:$0xff]  ;;  %v4116_v36 = vcombine.low %v275_v26, %v279_v62 }
 0x1ca   :  { %v3497_v49 = vpop.f32.mrf.mxu1  ;;  %3791 = vmatprep.subr.bf16.mxu1 %v4293_v33  ;;  %v3458_v5 = vpop.f32.mrf.mxu0  ;;  %v4141_v37 = vcombine.high %v299_v7, %v303_v40  ;;  %v4140_v19 = vcombine.low %v299_v7, %v303_v40  ;;  %v407_v29 = vld [vmem:[%s6054_s1 + $0xc38] sm:$0xff]  ;;  %v4117_v33 = vcombine.high %v275_v26, %v279_v62  ;;  %v4237_v39 = vcombine.high %v395_v47, %v399_v35 }
 0x1cb   :  { %v3498_v57 = vadd.f32 %v3497_v49, %v3457_v48  ;;  %3751 = vmatpush1.bf16.msra.mxu0 %v4164_v42  ;;  %v4245_v34 = vcombine.high %v403_v27, %v407_v29  ;;  %v523_v6 = vld [vmem:[%s6054_s1 + $0xfd8] sm:$0xff]  ;;  %v4244_v38 = vcombine.low %v403_v27, %v407_v29  ;;  %v4236_v49 = vcombine.low %v395_v47, %v399_v35 }
 0x1cc   :  { %v3499_v58 = vpop.f32.mrf.mxu1  ;;  %v3459_v60 = vpop.f32.mrf.mxu0  ;;  %3752 = vmatprep.subr.bf16.mxu0 %v4157_v46  ;;  %v527_v2 = vld [vmem:[%s6054_s1 + $0xff8] sm:$0xff] }
 0x1cd   :  { %3792 = vmatpush1.bf16.msra.mxu1 %v4292_v63  ;;  %v3839_v0 = vcombine.low %v3496_v56, %v3498_v57  ;;  %v4365_v42 = vcombine.high %v523_v6, %v527_v2  ;;  %v387_v45 = vld [vmem:[%s6054_s1 + $0xb98] sm:$0xff] }
 0x1ce   :  { %v3500_v1 = vpop.f32.mrf.mxu1  ;;  %3793 = vmatprep.subr.bf16.mxu1 %v4285_v51  ;;  %v391_v63 = vld [vmem:[%s6054_s1 + $0xbb8] sm:$0xff]  ;;  %v4364_v51 = vcombine.low %v523_v6, %v527_v2 }
 0x1cf   :  { %3847 = vst [vmem:[%s6057_s3 + $0x8] sm:$0xff] %v3839_v0  ;;  %3753 = vmatpush1.bf16.msra.mxu0 %v4156_v59  ;;  %v515_v46 = vld [vmem:[%s6054_s1 + $0xf98] sm:$0xff]  ;;  %v4229_v52 = vcombine.high %v387_v45, %v391_v63  ;;  %v4228_v57 = vcombine.low %v387_v45, %v391_v63 }
 0x1d0   :  { %3754 = vmatprep.subr.bf16.mxu0 %v4149_v61  ;;  %v519_v48 = vld [vmem:[%s6054_s1 + $0xfb8] sm:$0xff] }
 0x1d1   :  { %3794 = vmatpush1.bf16.msra.mxu1 %v4284_v53  ;;  %v4357_v9 = vcombine.high %v515_v46, %v519_v48  ;;  %v379_v5 = vld [vmem:[%s6054_s1 + $0xb58] sm:$0xff]  ;;  %v4356_v58 = vcombine.low %v515_v46, %v519_v48 }
 0x1d2   :  { %3795 = vmatprep.subr.bf16.mxu1 %v4277_v3  ;;  %v511_v56 = vld [vmem:[%s6054_s1 + $0xf78] sm:$0xff]  ;;  %v4221_v59 = vcombine.high %v379_v5, %v383_v54  ;;  %v4220_v3 = vcombine.low %v379_v5, %v383_v54 }
 0x1d3   :  { %3755 = vmatpush1.bf16.msra.mxu0 %v4148_v12  ;;  %v4349_v60 = vcombine.high %v507_v55, %v511_v56  ;;  %v371_v53 = vld [vmem:[%s6054_s1 + $0xb18] sm:$0xff]  ;;  %v4348_v7 = vcombine.low %v507_v55, %v511_v56 }
 0x1d4   :  { %3756 = vmatprep.subr.bf16.mxu0 %v4141_v37  ;;  %v375_v61 = vld [vmem:[%s6054_s1 + $0xb38] sm:$0xff] }
 0x1d5   :  { %3796 = vmatpush1.bf16.msra.mxu1 %v4276_v13  ;;  %v499_v0 = vld [vmem:[%s6054_s1 + $0xf18] sm:$0xff]  ;;  %v4213_v40 = vcombine.high %v371_v53, %v375_v61 }
 0x1d6   :  { %3797 = vmatprep.subr.bf16.mxu1 %v4269_v14  ;;  %v503_v1 = vld [vmem:[%s6054_s1 + $0xf38] sm:$0xff]  ;;  %v4212_v14 = vcombine.low %v371_v53, %v375_v61 }
 0x1d7   :  { %3757 = vmatpush1.bf16.msra.mxu0 %v4140_v19  ;;  %v4341_v8 = vcombine.high %v499_v0, %v503_v1  ;;  %v363_v10 = vld [vmem:[%s6054_s1 + $0xad8] sm:$0xff]  ;;  %v4340_v15 = vcombine.low %v499_v0, %v503_v1 }
 0x1d8   :  { %3758 = vmatprep.subr.bf16.mxu0 %v4133_v4  ;;  %v367_v12 = vld [vmem:[%s6054_s1 + $0xaf8] sm:$0xff] }
 0x1d9   :  { %3798 = vmatpush1.bf16.msra.mxu1 %v4268_v20  ;;  %v491_v13 = vld [vmem:[%s6054_s1 + $0xed8] sm:$0xff]  ;;  %v4205_v16 = vcombine.high %v363_v10, %v367_v12 }
 0x1da   :  { %3799 = vmatprep.subr.bf16.mxu1 %v4261_v21  ;;  %v495_v37 = vld [vmem:[%s6054_s1 + $0xef8] sm:$0xff]  ;;  %v4204_v21 = vcombine.low %v363_v10, %v367_v12 }
 0x1db   :  { %3759 = vmatpush1.bf16.msra.mxu0 %v4132_v23  ;;  %v4333_v17 = vcombine.high %v491_v13, %v495_v37  ;;  %v355_v18 = vld [vmem:[%s6054_s1 + $0xa98] sm:$0xff]  ;;  %v4332_v44 = vcombine.low %v491_v13, %v495_v37 }
 0x1dc   :  { %3760 = vmatprep.subr.bf16.mxu0 %v4125_v25  ;;  %v359_v19 = vld [vmem:[%s6054_s1 + $0xab8] sm:$0xff] }
 0x1dd   :  { %3800 = vmatpush1.bf16.msra.mxu1 %v4260_v24  ;;  %v483_v20 = vld [vmem:[%s6054_s1 + $0xe98] sm:$0xff]  ;;  %v4197_v41 = vcombine.high %v355_v18, %v359_v19 }
 0x1de   :  { %3801 = vmatprep.subr.bf16.mxu1 %v4253_v50  ;;  %v487_v4 = vld [vmem:[%s6054_s1 + $0xeb8] sm:$0xff]  ;;  %v4196_v50 = vcombine.low %v355_v18, %v359_v19  ;;  %v556_v19 = vsub.s32 6, %v4457_v43 }
 0x1df   :  { %3761 = vmatpush1.bf16.msra.mxu0 %v4124_v30  ;;  %v4325_v11 = vcombine.high %v483_v20, %v487_v4  ;;  %v347_v22 = vld [vmem:[%s6054_s1 + $0xa58] sm:$0xff]  ;;  %v4324_v26 = vcombine.low %v483_v20, %v487_v4  ;;  %v560_v20 = vsub.s32 7, %v4457_v43 }
 0x1e0   :  { %3762 = vmatprep.subr.bf16.mxu0 %v4117_v33  ;;  %v351_v23 = vld [vmem:[%s6054_s1 + $0xa78] sm:$0xff] }
 0x1e1   :  { %3802 = vmatpush1.bf16.msra.mxu1 %v4252_v32  ;;  %v475_v24 = vld [vmem:[%s6054_s1 + $0xe58] sm:$0xff]  ;;  %v4189_v62 = vcombine.high %v347_v22, %v351_v23 }
 0x1e2   :  { %3803 = vmatprep.subr.bf16.mxu1 %v4245_v34  ;;  %v479_v25 = vld [vmem:[%s6054_s1 + $0xe78] sm:$0xff]  ;;  %v4188_v34 = vcombine.low %v347_v22, %v351_v23 }
 0x1e3   :  { %3763 = vmatpush1.bf16.msra.mxu0 %v4116_v36  ;;  %v4317_v27 = vcombine.high %v475_v24, %v479_v25  ;;  %v339_v29 = vld [vmem:[%s6054_s1 + $0xa18] sm:$0xff]  ;;  %v4316_v47 = vcombine.low %v475_v24, %v479_v25 }
 0x1e4   :  { %3764 = vmatprep.subr.bf16.mxu0 %v4237_v39  ;;  %v343_v30 = vld [vmem:[%s6054_s1 + $0xa38] sm:$0xff] }
 0x1e5   :  { %3804 = vmatpush1.bf16.msra.mxu1 %v4244_v38  ;;  %v467_v32 = vld [vmem:[%s6054_s1 + $0xe18] sm:$0xff]  ;;  %v4181_v35 = vcombine.high %v339_v29, %v343_v30  ;;  %v4180_v2 = vcombine.low %v339_v29, %v343_v30 }
 0x1e6   :  { %3805 = vmatprep.subr.bf16.mxu1 %v4365_v42  ;;  %v471_v33 = vld [vmem:[%s6054_s1 + $0xe38] sm:$0xff] }
 0x1e7   :  { %3765 = vmatpush2.bf16.msra.mxu0 %v4236_v49  ;;  %v4309_v6 = vcombine.high %v467_v32, %v471_v33  ;;  %v4308_v36 = vcombine.low %v467_v32, %v471_v33 }
 0x1e8   :  { %3766 = vmatprep.subr.bf16.mxu0 %v4229_v52  ;;  %v552_v52 = vsub.s32 5, %v4457_v43 }
 0x1e9   :  { %3806 = vmatpush2.bf16.msra.mxu1 %v4364_v51  ;;  %v548_v51 = vsub.s32 4, %v4457_v43 }
 0x1ea   :  { %3807 = vmatprep.subr.bf16.mxu1 %v4357_v9  ;;  %v4369_v9 = vld [vmem:[%s6056_s2] sm:$0xff] }
 0x1eb   :  { %3767 = vmatpush2.bf16.msra.mxu0 %v4228_v57  ;;  %v549_v5 = vrot.slane %v4369_v9, %v548_v51  ;;  %v553_v54 = vrot.slane %v4369_v9, %v552_v52  ;;  %v557_v4 = vrot.slane %v4369_v9, %v556_v19 }
 0x1ec   :  { %3768 = vmatprep.subr.bf16.mxu0 %v4221_v59 }
 0x1ed   :  { %3808 = vmatpush2.bf16.msra.mxu1 %v4356_v58 }
 0x1ee   :  { %3809 = vmatprep.subr.bf16.mxu1 %v4349_v60 }
 0x1ef   :  { %3769 = vmatpush2.bf16.msra.mxu0 %v4220_v3 }
 0x1f0   :  { %3770 = vmatprep.subr.bf16.mxu0 %v4213_v40 }
 0x1f1   :  { %3810 = vmatpush2.bf16.msra.mxu1 %v4348_v7 }
 0x1f2   :  { %3811 = vmatprep.subr.bf16.mxu1 %v4341_v8 }
 0x1f3   :  { %3771 = vmatpush2.bf16.msra.mxu0 %v4212_v14 }
 0x1f4   :  { %3772 = vmatprep.subr.bf16.mxu0 %v4205_v16 }
 0x1f5   :  { %3812 = vmatpush2.bf16.msra.mxu1 %v4340_v15 }
 0x1f6   :  { %3813 = vmatprep.subr.bf16.mxu1 %v4333_v17 }
 0x1f7   :  { %3773 = vmatpush2.bf16.msra.mxu0 %v4204_v21  ;;  %v561_v21 = vrot.slane %v4369_v9, %v560_v20 }
 0x1f8   :  { %3774 = vmatprep.subr.bf16.mxu0 %v4197_v41 }
 0x1f9   :  { %3814 = vmatpush2.bf16.msra.mxu1 %v4332_v44 }
 0x1fa   :  { %3815 = vmatprep.subr.bf16.mxu1 %v4325_v11 }
 0x1fb   :  { %3775 = vmatpush2.bf16.msra.mxu0 %v4196_v50 }
 0x1fc   :  { %3776 = vmatprep.subr.bf16.mxu0 %v4189_v62 }
 0x1fd   :  { %3816 = vmatpush2.bf16.msra.mxu1 %v4324_v26 }
 0x1fe   :  { %3817 = vmatprep.subr.bf16.mxu1 %v4317_v27 }
 0x1ff   :  { %3777 = vmatpush2.bf16.msra.mxu0 %v4188_v34 }
 0x200   :  { %3778 = vmatprep.subr.bf16.mxu0 %v4181_v35 }
 0x201   :  { %3818 = vmatpush2.bf16.msra.mxu1 %v4316_v47 }
 0x202   :  { %3819 = vmatprep.subr.bf16.mxu1 %v4309_v6 }
 0x203   :  { %3779 = vmatpush2.bf16.msra.mxu0 %v4180_v2 }
 0x205   :  { %3820 = vmatpush2.bf16.msra.mxu1 %v4308_v36 }
 0x206   :  { %v3536_v38 = vpop.f32.mrf.mxu0  ;;  %3781 = vmatmul.mubr.bf16.vlgmr.msra.gmra.mxu0 %v4629_v28 }
 0x207   :  { %v3537_v28 = vadd.f32 %v3536_v38, %v549_v5 }
 0x208   :  { %v3577_v39 = vpop.f32.mrf.mxu1  ;;  %3822 = vmatmul.mubr.bf16.vlgmr.msra.gmra.mxu1 %v4638_v31  ;;  %v3538_v42 = vpop.f32.mrf.mxu0 }
 0x209   :  { %v3539_v55 = vadd.f32 %v3538_v42, %v553_v54  ;;  %v3578_v56 = vadd.f32 %v3577_v39, %v3537_v28 }
 0x20a   :  { %v3579_v45 = vpop.f32.mrf.mxu1  ;;  %v3540_v63 = vpop.f32.mrf.mxu0 }
 0x20b   :  { %v3580_v57 = vadd.f32 %v3579_v45, %v3539_v55 }
 0x20c   :  { %v3581_v46 = vpop.f32.mrf.mxu1  ;;  %v3541_v48 = vpop.f32.mrf.mxu0 }
 0x20e   :  { %v3582_v49 = vpop.f32.mrf.mxu1 }
 0x246   :  { %v3618_v31 = vpop.f32.mrf.mxu0 }
 0x247   :  { %v3619_v58 = vadd.f32 %v3618_v31, %v3578_v56 }
 0x248   :  { %v3659_v59 = vpop.f32.mrf.mxu1  ;;  %v3620_v60 = vpop.f32.mrf.mxu0 }
 0x249   :  { %v3621_v53 = vadd.f32 %v3620_v60, %v3580_v57  ;;  %v3660_v1 = vadd.f32 %v3659_v59, %v3619_v58 }
 0x24a   :  { %v3661_v61 = vpop.f32.mrf.mxu1  ;;  %v3622_v0 = vpop.f32.mrf.mxu0 }
 0x24b   :  { %v3662_v3 = vadd.f32 %v3661_v61, %v3621_v53 }
 0x24c   :  { %v3663_v7 = vpop.f32.mrf.mxu1  ;;  %v3623_v40 = vpop.f32.mrf.mxu0 }
 0x24d   :  { %v3840_v8 = vcombine.low %v3660_v1, %v3662_v3 }
 0x24e   :  { %v3664_v10 = vpop.f32.mrf.mxu1 }
 0x24f   :  { %3848 = vst [vmem:[%s6057_s3 + $0x10] sm:$0xff] %v3840_v8 }
 0x286   :  { %v3700_v12 = vpop.f32.mrf.mxu0 }
 0x287   :  { %v3701_v44 = vadd.f32 %v3700_v12, %v557_v4 }
 0x288   :  { %v3741_v13 = vpop.f32.mrf.mxu1  ;;  %v3702_v37 = vpop.f32.mrf.mxu0 }
 0x289   :  { %v3703_v41 = vadd.f32 %v3702_v37, %v561_v21  ;;  %v3742_v11 = vadd.f32 %v3741_v13, %v3701_v44 }
 0x28a   :  { %v3743_v14 = vpop.f32.mrf.mxu1  ;;  %v3704_v15 = vpop.f32.mrf.mxu0 }
 0x28b   :  { %v3744_v23 = vadd.f32 %v3743_v14, %v3703_v41 }
 0x28c   :  { %v3745_v16 = vpop.f32.mrf.mxu1  ;;  %v3705_v17 = vpop.f32.mrf.mxu0 }
 0x28e   :  { %v3746_v18 = vpop.f32.mrf.mxu1 }
 0x2c6   :  { %v3782_v22 = vpop.f32.mrf.mxu0 }
 0x2c7   :  { %v3783_v24 = vadd.f32 %v3782_v22, %v3742_v11 }
 0x2c8   :  { %v3823_v25 = vpop.f32.mrf.mxu1  ;;  %v3784_v50 = vpop.f32.mrf.mxu0 }
 0x2c9   :  { %v3785_v26 = vadd.f32 %v3784_v50, %v3744_v23  ;;  %v3824_v29 = vadd.f32 %v3823_v25, %v3783_v24 }
 0x2ca   :  { %v3825_v62 = vpop.f32.mrf.mxu1  ;;  %v3786_v27 = vpop.f32.mrf.mxu0 }
 0x2cb   :  { %v3826_v30 = vadd.f32 %v3825_v62, %v3785_v26 }
 0x2cc   :  { %v3827_v32 = vpop.f32.mrf.mxu1  ;;  %v3787_v33 = vpop.f32.mrf.mxu0 }
 0x2cd   :  { %v3841_v34 = vcombine.low %v3824_v29, %v3826_v30 }
 0x2ce   :  { %v3828_v47 = vpop.f32.mrf.mxu1 }
 0x2cf   :  { %3849 = vst [vmem:[%s6057_s3 + $0x18] sm:$0xff] %v3841_v34 }

</bundles_post_ra>
